<compile_context>
chip_gen: v6e
topology: v6e:2x2x1
jax: 0.10.0
libtpu: 0.0.40
codegen_flags: <defaults>
</compile_context>

<pallas_src>
import functools

import jax
import jax.numpy as jnp
from jax import lax
from jax.experimental import pallas as pl
from jax.experimental.pallas import tpu as pltpu


def _rup(v, m):
    return -(-v // m) * m


# ----------------------------------------------------------------------------
# Static lane-tiling plan, shared by the kernels and the weight packer
# ----------------------------------------------------------------------------
def make_plan(D, H, W, *, tl_cap=4096):
    assert D >= 7 and H >= 7 and W >= 7, "need at least 7^3 input for 3 convs"
    S_d, S_h = H * W, W                       # original (depth, row) strides
    s_max = 2 * S_d + 2 * S_h + 2             # largest 3x3x3 tap lane shift
    D3, H3, W3 = D - 6, H - 6, W - 6
    lneed3 = (D3 - 1) * S_d + (H3 - 1) * S_h + W3   # last valid conv3 lane + 1
    TL = max(_rup(s_max, 128), min(tl_cap, _rup(lneed3, 128)))
    n3 = -(-lneed3 // TL)                     # lane tiles of the conv3 output
    n_out = (n3 + 2, n3 + 1, n3)              # output lane tiles per conv layer
    n0 = n_out[0] + 1                         # tiles of the (padded) raw input
    taps = tuple(kd * S_d + kh * S_h + kw
                 for kd in range(3) for kh in range(3) for kw in range(3))
    return dict(S_d=S_d, S_h=S_h, TL=TL, taps=taps, n_out=n_out, n0=n0,
                dims3=(D3, H3, W3), fc_tk=16 * TL)


# ----------------------------------------------------------------------------
# Conv3d(k=3, valid) + bias + folded BatchNorm3d: one lane-dense GEMM per tile
# ----------------------------------------------------------------------------
def _conv3d_bn_kernel(x_ref, w_ref, scale_ref, shift_ref, o_ref, xw_ref, p_ref,
                      *, taps, TL, Cin):
    # x_ref:     (1, n_in, Cin, TL)  all lane tiles of one batch element
    # w_ref:     (Cout, 27*Cin)      packed weights, cols ordered (kd,kh,kw,cin)
    # scale_ref: (Cout, 1) f32       folded BN scale
    # shift_ref: (Cout, 1) f32       folded BN shift (conv bias folded in)
    # o_ref:     (1, 1, Cout, TL)    one lane-dense output tile
    # xw_ref:    (Cin, 2*TL)         staging window: this tile + halo tile
    # p_ref:     (27*Cin, TL)        im2col patch matrix
    lt = pl.program_id(1)
    xw_ref[:, :TL] = x_ref[0, lt, :, :]
    xw_ref[:, TL:] = x_ref[0, lt + 1, :, :]
    for t, s in enumerate(taps):                       # 27 static lane shifts
        p_ref[t * Cin:(t + 1) * Cin, :] = xw_ref[:, s:s + TL]
    acc = jnp.dot(w_ref[...], p_ref[...],
                  preferred_element_type=jnp.float32)  # (Cout, TL) on the MXU
    o_ref[0, 0, :, :] = (acc * scale_ref[...] + shift_ref[...]).astype(o_ref.dtype)


def conv3d_bn(x, w_packed, scale, shift, *, TL, taps, n_out):
    N, n_in, Cin, TLx = x.shape
    Cout, KK = w_packed.shape
    assert TLx == TL and n_in == n_out + 1 and KK == 27 * Cin
    assert max(taps) + TL <= 2 * TL            # halo window covers every tap
    kernel = functools.partial(_conv3d_bn_kernel, taps=taps, TL=TL, Cin=Cin)
    return pl.pallas_call(
        kernel,
        out_shape=jax.ShapeDtypeStruct((N, n_out, Cout, TL), jnp.bfloat16),
        grid=(N, n_out),
        in_specs=[
            pl.BlockSpec((1, n_in, Cin, TL), lambda n, lt: (n, 0, 0, 0)),
            pl.BlockSpec((Cout, KK), lambda n, lt: (0, 0)),
            pl.BlockSpec((Cout, 1), lambda n, lt: (0, 0)),
            pl.BlockSpec((Cout, 1), lambda n, lt: (0, 0)),
        ],
        out_specs=pl.BlockSpec((1, 1, Cout, TL), lambda n, lt: (n, lt, 0, 0)),
        scratch_shapes=[pltpu.VMEM((Cin, 2 * TL), jnp.bfloat16),
                        pltpu.VMEM((KK, TL), jnp.bfloat16)],
        compiler_params=pltpu.CompilerParams(
            dimension_semantics=("parallel", "parallel"),
            vmem_limit_bytes=32 * 1024 * 1024),
    )(x, w_packed, scale, shift)


# ----------------------------------------------------------------------------
# Final Linear layer: lane-dense (O, K) weight stream, K tiled + 2-way parallel
# ----------------------------------------------------------------------------
def _linear_kernel(x_ref, w_ref, o_ref, acc_ref):
    k = pl.program_id(1)

    @pl.when(k == 0)
    def _():
        acc_ref[...] = jnp.zeros_like(acc_ref)

    acc_ref[...] += lax.dot_general(
        x_ref[...], w_ref[...],
        dimension_numbers=(((1,), (1,)), ((), ())),     # contract lane vs lane
        preferred_element_type=jnp.float32)

    @pl.when(k == pl.num_programs(1) - 1)
    def _():
        o_ref[0] = acc_ref[...]


def linear(x, w, b, *, tk):
    """y = x @ w.T + b.  Outer 'parallel' axis lets both v7x TensorCores
    stream half of the weight; inner 'arbitrary' axis accumulates K tiles."""
    N, Kf = x.shape
    O, Kw = w.shape
    assert Kw == Kf and Kf % tk == 0
    nk = Kf // tk
    nc = 2 if nk % 2 == 0 else 1
    nkpc = nk // nc
    partials = pl.pallas_call(
        _linear_kernel,
        out_shape=jax.ShapeDtypeStruct((nc, N, O), jnp.float32),
        grid=(nc, nkpc),
        in_specs=[
            pl.BlockSpec((N, tk), lambda c, k: (0, c * nkpc + k)),
            pl.BlockSpec((O, tk), lambda c, k: (0, c * nkpc + k)),
        ],
        out_specs=pl.BlockSpec((1, N, O), lambda c, k: (c, 0, 0)),
        scratch_shapes=[pltpu.VMEM((N, O), jnp.float32)],
        compiler_params=pltpu.CompilerParams(
            dimension_semantics=("parallel", "arbitrary"),
            vmem_limit_bytes=32 * 1024 * 1024),
    )(x, w)
    return partials.sum(axis=0) + b[None, :]


# ----------------------------------------------------------------------------
# Full forward pass (all inter-layer reshapes are free, no HBM transposes)
# ----------------------------------------------------------------------------
def conv2dnet_2_forward(x_ncdhw, params, plan):
    N, C = x_ncdhw.shape[0], x_ncdhw.shape[1]
    assert C == 1, "conv2DNet_2 has a single input channel"
    TL, n0 = plan["TL"], plan["n0"]
    # NCDHW (C=1) -> fused (d,h,w) lane axis with the original strides, zero
    # padded once to n0 lane tiles (cheap: the raw input is the smallest tensor).
    x = x_ncdhw.reshape(N, -1).astype(jnp.bfloat16)
    x = jnp.pad(x, ((0, 0), (0, n0 * TL - x.shape[1])))
    x = x.reshape(N, n0, 1, TL)
    for i, (wp, scale, shift) in enumerate(params["conv"]):
        x = conv3d_bn(x, wp, scale, shift, TL=TL, taps=plan["taps"],
                      n_out=plan["n_out"][i])
        # Dropout3d(0.2): identity in eval mode.
    xf = x.reshape(N, -1)          # (N, n3*32*TL); fc_w is packed to this order
    return linear(xf, params["fc_w"], params["fc_b"], tk=plan["fc_tk"])


# ----------------------------------------------------------------------------
# Parameter init (PyTorch-style) + repack into the kernels' GEMM-ready layouts
# ----------------------------------------------------------------------------
def init_raw_params(key, output_units, spatial):
    D, H, W = spatial
    channels = [(1, 8), (8, 16), (16, 32)]
    conv = []
    for cin, cout in channels:
        key, k1, k2 = jax.random.split(key, 3)
        fan_in = cin * 27
        bound = 1.0 / (fan_in ** 0.5)
        w = jax.random.uniform(k1, (cout, cin, 3, 3, 3), jnp.float32, -bound, bound)
        b = jax.random.uniform(k2, (cout,), jnp.float32, -bound, bound)
        # BatchNorm3d(cout, False): eps = 0.0, affine=True, default buffers.
        bn = dict(gamma=jnp.ones((cout,), jnp.float32),
                  beta=jnp.zeros((cout,), jnp.float32),
                  mean=jnp.zeros((cout,), jnp.float32),
                  var=jnp.ones((cout,), jnp.float32),
                  eps=0.0)
        conv.append((w, b, bn))
    d3, h3, w3 = D - 6, H - 6, W - 6
    fc_inputs = 32 * d3 * h3 * w3
    key, k1, k2 = jax.random.split(key, 3)
    bound = 1.0 / (fc_inputs ** 0.5)
    fc_w = jax.random.uniform(k1, (output_units, fc_inputs), jnp.float32, -bound, bound)
    fc_b = jax.random.uniform(k2, (output_units,), jnp.float32, -bound, bound)
    return dict(conv=conv, fc_w=fc_w, fc_b=fc_b)


def pack_params(raw, plan):
    S_d, S_h, TL = plan["S_d"], plan["S_h"], plan["TL"]
    n3 = plan["n_out"][2]
    D3, H3, W3 = plan["dims3"]
    conv = []
    for (w, b, bn) in raw["conv"]:
        cout, cin = w.shape[0], w.shape[1]
        # (Cout, Cin, kd, kh, kw) -> (Cout, kd*kh*kw*Cin), cin fastest (bf16).
        wp = jnp.transpose(w, (0, 2, 3, 4, 1)).reshape(cout, 27 * cin)
        s = bn["gamma"] / jnp.sqrt(bn["var"] + bn["eps"])
        shift = (b - bn["mean"]) * s + bn["beta"]   # conv bias folded into shift
        conv.append((wp.astype(jnp.bfloat16),
                     s.reshape(cout, 1).astype(jnp.float32),
                     shift.reshape(cout, 1).astype(jnp.float32)))
    # FC weight: scatter (O, C, D3, H3, W3) into the strided lane-tiled layout
    # the last conv emits (zeros on every garbage lane, so semantics match
    # x.view(-1, fc_inputs) exactly), then flatten in x.reshape(N, -1) order.
    LO3 = n3 * TL
    O = raw["fc_w"].shape[0]
    fw = raw["fc_w"].reshape(O, 32, D3, H3, W3)
    fw = jnp.pad(fw, ((0, 0), (0, 0), (0, 0), (0, 0), (0, S_h - W3)))
    fw = fw.reshape(O, 32, D3, H3 * S_h)
    fw = jnp.pad(fw, ((0, 0), (0, 0), (0, 0), (0, S_d - H3 * S_h)))
    fw = fw.reshape(O, 32, D3 * S_d)
    if D3 * S_d >= LO3:
        fw = fw[:, :, :LO3]                 # only all-zero garbage lanes dropped
    else:
        fw = jnp.pad(fw, ((0, 0), (0, 0), (0, LO3 - D3 * S_d)))
    fw = fw.reshape(O, 32, n3, TL)
    fc_w = jnp.transpose(fw, (0, 2, 1, 3)).reshape(O, n3 * 32 * TL)
    return dict(conv=conv, fc_w=fc_w.astype(jnp.bfloat16),
                fc_b=raw["fc_b"].astype(jnp.float32))


# ----------------------------------------------------------------------------
# Pure-JAX reference (eval-mode PyTorch semantics, f32) for validation
# ----------------------------------------------------------------------------
def reference_forward(x, raw):
    hi = jax.lax.Precision.HIGHEST
    y = x
    for (w, b, bn) in raw["conv"]:
        N, Ci, D, H, W = y.shape
        Co = w.shape[0]
        Do, Ho, Wo = D - 2, H - 2, W - 2
        out = jnp.zeros((N, Co, Do, Ho, Wo), jnp.float32)
        for kd in range(3):
            for kh in range(3):
                for kw in range(3):
                    patch = y[:, :, kd:kd + Do, kh:kh + Ho, kw:kw + Wo]
                    out = out + jnp.einsum('ncdhw,oc->nodhw', patch,
                                           w[:, :, kd, kh, kw], precision=hi)
        out = out + b[None, :, None, None, None]
        s = bn["gamma"] / jnp.sqrt(bn["var"] + bn["eps"])
        out = (out - bn["mean"][None, :, None, None, None]) \
            * s[None, :, None, None, None] + bn["beta"][None, :, None, None, None]
        y = out
    yf = y.reshape(y.shape[0], -1)
    return jnp.dot(yf, raw["fc_w"].T, precision=hi) + raw["fc_b"][None, :]


if __name__ == "__main__":
    # Small cube consistent with the module (reference model uses 32^3 -> 26^3).
    N, S = 2, 12
    OUTPUT_UNITS = 8

    key = jax.random.PRNGKey(0)
    key, kx = jax.random.split(key)
    x = jax.random.normal(kx, (N, 1, S, S, S), jnp.float32)   # NCDHW, PyTorch layout

    raw = init_raw_params(key, OUTPUT_UNITS, (S, S, S))
    plan = make_plan(S, S, S)
    params = pack_params(raw, plan)

    fwd = jax.jit(functools.partial(conv2dnet_2_forward, plan=plan))
    y = jax.block_until_ready(fwd(x, params))
    assert y.shape == (N, OUTPUT_UNITS), y.shape

    y_ref = jax.block_until_ready(jax.jit(reference_forward)(x, raw))
    err = float(jnp.max(jnp.abs(y - y_ref)) / (jnp.max(jnp.abs(y_ref)) + 1e-6))
    assert err < 2e-2, f"mismatch vs reference: {err}"

    print("KERNEL_OK")
</pallas_src>

<mosaic_0001>
module attributes {stable_mosaic.version = 11 : i64} {
  func.func @_conv3d_bn_kernel(%arg0: i32, %arg1: i32, %arg2: memref<1x4x1x896xbf16, #tpu.memory_space<vmem>>, %arg3: memref<8x27xbf16, #tpu.memory_space<vmem>>, %arg4: memref<8x1xf32, #tpu.memory_space<vmem>>, %arg5: memref<8x1xf32, #tpu.memory_space<vmem>>, %arg6: memref<1x1x8x896xbf16, #tpu.memory_space<vmem>>, %arg7: memref<1x1792xbf16, #tpu.memory_space<vmem>>, %arg8: memref<27x896xbf16, #tpu.memory_space<vmem>>) attributes {dimension_semantics = [#tpu.dimension_semantics<parallel>, #tpu.dimension_semantics<parallel>], iteration_bounds = array<i64: 2, 3>, scalar_prefetch = 0 : i64, scratch_operands = 2 : i64, tpu.core_type = #tpu.core_type<tc>, window_params = [{transform_indices = @transform_0, window_bounds = array<i64: 1, 4, 1, 896>}, {pipeline_mode = #tpu.pipeline_mode<synchronous>, transform_indices = @transform_1, window_bounds = array<i64: 8, 27>}, {pipeline_mode = #tpu.pipeline_mode<synchronous>, transform_indices = @transform_2, window_bounds = array<i64: 8, 1>}, {pipeline_mode = #tpu.pipeline_mode<synchronous>, transform_indices = @transform_3, window_bounds = array<i64: 8, 1>}, {transform_indices = @transform_4, window_bounds = array<i64: 1, 1, 8, 896>}]} {
    %c0 = arith.constant 0 : index
    %0 = arith.index_cast %arg1 : i32 to index
    %c0_0 = arith.constant 0 : index
    %c0_1 = arith.constant 0 : index
    %1 = vector.load %arg2[%c0, %0, %c0_0, %c0_1] : memref<1x4x1x896xbf16, #tpu.memory_space<vmem>>, vector<1x1x1x896xbf16>
    %2 = vector.shape_cast %1 : vector<1x1x1x896xbf16> to vector<1x896xbf16>
    %c0_2 = arith.constant 0 : index
    %c0_3 = arith.constant 0 : index
    %3 = vector.load %arg7[%c0_2, %c0_3] : memref<1x1792xbf16, #tpu.memory_space<vmem>>, vector<1x896xbf16>
    tpu.vector_store %arg7[%c0_2, %c0_3], %2 {strides = array<i32>} : memref<1x1792xbf16, #tpu.memory_space<vmem>>, vector<1x896xbf16>,
    %c1_i32 = arith.constant 1 : i32
    %4 = arith.addi %arg1, %c1_i32 : i32
    %c0_4 = arith.constant 0 : index
    %5 = arith.index_cast %4 : i32 to index
    %c0_5 = arith.constant 0 : index
    %c0_6 = arith.constant 0 : index
    %6 = vector.load %arg2[%c0_4, %5, %c0_5, %c0_6] : memref<1x4x1x896xbf16, #tpu.memory_space<vmem>>, vector<1x1x1x896xbf16>
    %7 = vector.shape_cast %6 : vector<1x1x1x896xbf16> to vector<1x896xbf16>
    %c0_7 = arith.constant 0 : index
    %c896 = arith.constant 896 : index
    %8 = vector.load %arg7[%c0_7, %c896] : memref<1x1792xbf16, #tpu.memory_space<vmem>>, vector<1x896xbf16>
    tpu.vector_store %arg7[%c0_7, %c896], %7 {strides = array<i32>} : memref<1x1792xbf16, #tpu.memory_space<vmem>>, vector<1x896xbf16>,
    %c0_8 = arith.constant 0 : index
    %c0_9 = arith.constant 0 : index
    %9 = vector.load %arg7[%c0_8, %c0_9] : memref<1x1792xbf16, #tpu.memory_space<vmem>>, vector<1x896xbf16>
    %c0_10 = arith.constant 0 : index
    %c0_11 = arith.constant 0 : index
    %10 = vector.load %arg8[%c0_10, %c0_11] : memref<27x896xbf16, #tpu.memory_space<vmem>>, vector<1x896xbf16>
    tpu.vector_store %arg8[%c0_10, %c0_11], %9 {strides = array<i32>} : memref<27x896xbf16, #tpu.memory_space<vmem>>, vector<1x896xbf16>,
    %c0_12 = arith.constant 0 : index
    %c1 = arith.constant 1 : index
    %11 = vector.load %arg7[%c0_12, %c1] : memref<1x1792xbf16, #tpu.memory_space<vmem>>, vector<1x896xbf16>
    %c1_13 = arith.constant 1 : index
    %c0_14 = arith.constant 0 : index
    %12 = vector.load %arg8[%c1_13, %c0_14] : memref<27x896xbf16, #tpu.memory_space<vmem>>, vector<1x896xbf16>
    tpu.vector_store %arg8[%c1_13, %c0_14], %11 {strides = array<i32>} : memref<27x896xbf16, #tpu.memory_space<vmem>>, vector<1x896xbf16>,
    %c0_15 = arith.constant 0 : index
    %c2 = arith.constant 2 : index
    %13 = vector.load %arg7[%c0_15, %c2] : memref<1x1792xbf16, #tpu.memory_space<vmem>>, vector<1x896xbf16>
    %c2_16 = arith.constant 2 : index
    %c0_17 = arith.constant 0 : index
    %14 = vector.load %arg8[%c2_16, %c0_17] : memref<27x896xbf16, #tpu.memory_space<vmem>>, vector<1x896xbf16>
    tpu.vector_store %arg8[%c2_16, %c0_17], %13 {strides = array<i32>} : memref<27x896xbf16, #tpu.memory_space<vmem>>, vector<1x896xbf16>,
    %c0_18 = arith.constant 0 : index
    %c12 = arith.constant 12 : index
    %15 = vector.load %arg7[%c0_18, %c12] : memref<1x1792xbf16, #tpu.memory_space<vmem>>, vector<1x896xbf16>
    %c3 = arith.constant 3 : index
    %c0_19 = arith.constant 0 : index
    %16 = vector.load %arg8[%c3, %c0_19] : memref<27x896xbf16, #tpu.memory_space<vmem>>, vector<1x896xbf16>
    tpu.vector_store %arg8[%c3, %c0_19], %15 {strides = array<i32>} : memref<27x896xbf16, #tpu.memory_space<vmem>>, vector<1x896xbf16>,
    %c0_20 = arith.constant 0 : index
    %c13 = arith.constant 13 : index
    %17 = vector.load %arg7[%c0_20, %c13] : memref<1x1792xbf16, #tpu.memory_space<vmem>>, vector<1x896xbf16>
    %c4 = arith.constant 4 : index
    %c0_21 = arith.constant 0 : index
    %18 = vector.load %arg8[%c4, %c0_21] : memref<27x896xbf16, #tpu.memory_space<vmem>>, vector<1x896xbf16>
    tpu.vector_store %arg8[%c4, %c0_21], %17 {strides = array<i32>} : memref<27x896xbf16, #tpu.memory_space<vmem>>, vector<1x896xbf16>,
    %c0_22 = arith.constant 0 : index
    %c14 = arith.constant 14 : index
    %19 = vector.load %arg7[%c0_22, %c14] : memref<1x1792xbf16, #tpu.memory_space<vmem>>, vector<1x896xbf16>
    %c5 = arith.constant 5 : index
    %c0_23 = arith.constant 0 : index
    %20 = vector.load %arg8[%c5, %c0_23] : memref<27x896xbf16, #tpu.memory_space<vmem>>, vector<1x896xbf16>
    tpu.vector_store %arg8[%c5, %c0_23], %19 {strides = array<i32>} : memref<27x896xbf16, #tpu.memory_space<vmem>>, vector<1x896xbf16>,
    %c0_24 = arith.constant 0 : index
    %c24 = arith.constant 24 : index
    %21 = vector.load %arg7[%c0_24, %c24] : memref<1x1792xbf16, #tpu.memory_space<vmem>>, vector<1x896xbf16>
    %c6 = arith.constant 6 : index
    %c0_25 = arith.constant 0 : index
    %22 = vector.load %arg8[%c6, %c0_25] : memref<27x896xbf16, #tpu.memory_space<vmem>>, vector<1x896xbf16>
    tpu.vector_store %arg8[%c6, %c0_25], %21 {strides = array<i32>} : memref<27x896xbf16, #tpu.memory_space<vmem>>, vector<1x896xbf16>,
    %c0_26 = arith.constant 0 : index
    %c25 = arith.constant 25 : index
    %23 = vector.load %arg7[%c0_26, %c25] : memref<1x1792xbf16, #tpu.memory_space<vmem>>, vector<1x896xbf16>
    %c7 = arith.constant 7 : index
    %c0_27 = arith.constant 0 : index
    %24 = vector.load %arg8[%c7, %c0_27] : memref<27x896xbf16, #tpu.memory_space<vmem>>, vector<1x896xbf16>
    tpu.vector_store %arg8[%c7, %c0_27], %23 {strides = array<i32>} : memref<27x896xbf16, #tpu.memory_space<vmem>>, vector<1x896xbf16>,
    %c0_28 = arith.constant 0 : index
    %c26 = arith.constant 26 : index
    %25 = vector.load %arg7[%c0_28, %c26] : memref<1x1792xbf16, #tpu.memory_space<vmem>>, vector<1x896xbf16>
    %c8 = arith.constant 8 : index
    %c0_29 = arith.constant 0 : index
    %26 = vector.load %arg8[%c8, %c0_29] : memref<27x896xbf16, #tpu.memory_space<vmem>>, vector<1x896xbf16>
    tpu.vector_store %arg8[%c8, %c0_29], %25 {strides = array<i32>} : memref<27x896xbf16, #tpu.memory_space<vmem>>, vector<1x896xbf16>,
    %c0_30 = arith.constant 0 : index
    %c144 = arith.constant 144 : index
    %27 = vector.load %arg7[%c0_30, %c144] : memref<1x1792xbf16, #tpu.memory_space<vmem>>, vector<1x896xbf16>
    %c9 = arith.constant 9 : index
    %c0_31 = arith.constant 0 : index
    %28 = vector.load %arg8[%c9, %c0_31] : memref<27x896xbf16, #tpu.memory_space<vmem>>, vector<1x896xbf16>
    tpu.vector_store %arg8[%c9, %c0_31], %27 {strides = array<i32>} : memref<27x896xbf16, #tpu.memory_space<vmem>>, vector<1x896xbf16>,
    %c0_32 = arith.constant 0 : index
    %c145 = arith.constant 145 : index
    %29 = vector.load %arg7[%c0_32, %c145] : memref<1x1792xbf16, #tpu.memory_space<vmem>>, vector<1x896xbf16>
    %c10 = arith.constant 10 : index
    %c0_33 = arith.constant 0 : index
    %30 = vector.load %arg8[%c10, %c0_33] : memref<27x896xbf16, #tpu.memory_space<vmem>>, vector<1x896xbf16>
    tpu.vector_store %arg8[%c10, %c0_33], %29 {strides = array<i32>} : memref<27x896xbf16, #tpu.memory_space<vmem>>, vector<1x896xbf16>,
    %c0_34 = arith.constant 0 : index
    %c146 = arith.constant 146 : index
    %31 = vector.load %arg7[%c0_34, %c146] : memref<1x1792xbf16, #tpu.memory_space<vmem>>, vector<1x896xbf16>
    %c11 = arith.constant 11 : index
    %c0_35 = arith.constant 0 : index
    %32 = vector.load %arg8[%c11, %c0_35] : memref<27x896xbf16, #tpu.memory_space<vmem>>, vector<1x896xbf16>
    tpu.vector_store %arg8[%c11, %c0_35], %31 {strides = array<i32>} : memref<27x896xbf16, #tpu.memory_space<vmem>>, vector<1x896xbf16>,
    %c0_36 = arith.constant 0 : index
    %c156 = arith.constant 156 : index
    %33 = vector.load %arg7[%c0_36, %c156] : memref<1x1792xbf16, #tpu.memory_space<vmem>>, vector<1x896xbf16>
    %c12_37 = arith.constant 12 : index
    %c0_38 = arith.constant 0 : index
    %34 = vector.load %arg8[%c12_37, %c0_38] : memref<27x896xbf16, #tpu.memory_space<vmem>>, vector<1x896xbf16>
    tpu.vector_store %arg8[%c12_37, %c0_38], %33 {strides = array<i32>} : memref<27x896xbf16, #tpu.memory_space<vmem>>, vector<1x896xbf16>,
    %c0_39 = arith.constant 0 : index
    %c157 = arith.constant 157 : index
    %35 = vector.load %arg7[%c0_39, %c157] : memref<1x1792xbf16, #tpu.memory_space<vmem>>, vector<1x896xbf16>
    %c13_40 = arith.constant 13 : index
    %c0_41 = arith.constant 0 : index
    %36 = vector.load %arg8[%c13_40, %c0_41] : memref<27x896xbf16, #tpu.memory_space<vmem>>, vector<1x896xbf16>
    tpu.vector_store %arg8[%c13_40, %c0_41], %35 {strides = array<i32>} : memref<27x896xbf16, #tpu.memory_space<vmem>>, vector<1x896xbf16>,
    %c0_42 = arith.constant 0 : index
    %c158 = arith.constant 158 : index
    %37 = vector.load %arg7[%c0_42, %c158] : memref<1x1792xbf16, #tpu.memory_space<vmem>>, vector<1x896xbf16>
    %c14_43 = arith.constant 14 : index
    %c0_44 = arith.constant 0 : index
    %38 = vector.load %arg8[%c14_43, %c0_44] : memref<27x896xbf16, #tpu.memory_space<vmem>>, vector<1x896xbf16>
    tpu.vector_store %arg8[%c14_43, %c0_44], %37 {strides = array<i32>} : memref<27x896xbf16, #tpu.memory_space<vmem>>, vector<1x896xbf16>,
    %c0_45 = arith.constant 0 : index
    %c168 = arith.constant 168 : index
    %39 = vector.load %arg7[%c0_45, %c168] : memref<1x1792xbf16, #tpu.memory_space<vmem>>, vector<1x896xbf16>
    %c15 = arith.constant 15 : index
    %c0_46 = arith.constant 0 : index
    %40 = vector.load %arg8[%c15, %c0_46] : memref<27x896xbf16, #tpu.memory_space<vmem>>, vector<1x896xbf16>
    tpu.vector_store %arg8[%c15, %c0_46], %39 {strides = array<i32>} : memref<27x896xbf16, #tpu.memory_space<vmem>>, vector<1x896xbf16>,
    %c0_47 = arith.constant 0 : index
    %c169 = arith.constant 169 : index
    %41 = vector.load %arg7[%c0_47, %c169] : memref<1x1792xbf16, #tpu.memory_space<vmem>>, vector<1x896xbf16>
    %c16 = arith.constant 16 : index
    %c0_48 = arith.constant 0 : index
    %42 = vector.load %arg8[%c16, %c0_48] : memref<27x896xbf16, #tpu.memory_space<vmem>>, vector<1x896xbf16>
    tpu.vector_store %arg8[%c16, %c0_48], %41 {strides = array<i32>} : memref<27x896xbf16, #tpu.memory_space<vmem>>, vector<1x896xbf16>,
    %c0_49 = arith.constant 0 : index
    %c170 = arith.constant 170 : index
    %43 = vector.load %arg7[%c0_49, %c170] : memref<1x1792xbf16, #tpu.memory_space<vmem>>, vector<1x896xbf16>
    %c17 = arith.constant 17 : index
    %c0_50 = arith.constant 0 : index
    %44 = vector.load %arg8[%c17, %c0_50] : memref<27x896xbf16, #tpu.memory_space<vmem>>, vector<1x896xbf16>
    tpu.vector_store %arg8[%c17, %c0_50], %43 {strides = array<i32>} : memref<27x896xbf16, #tpu.memory_space<vmem>>, vector<1x896xbf16>,
    %c0_51 = arith.constant 0 : index
    %c288 = arith.constant 288 : index
    %45 = vector.load %arg7[%c0_51, %c288] : memref<1x1792xbf16, #tpu.memory_space<vmem>>, vector<1x896xbf16>
    %c18 = arith.constant 18 : index
    %c0_52 = arith.constant 0 : index
    %46 = vector.load %arg8[%c18, %c0_52] : memref<27x896xbf16, #tpu.memory_space<vmem>>, vector<1x896xbf16>
    tpu.vector_store %arg8[%c18, %c0_52], %45 {strides = array<i32>} : memref<27x896xbf16, #tpu.memory_space<vmem>>, vector<1x896xbf16>,
    %c0_53 = arith.constant 0 : index
    %c289 = arith.constant 289 : index
    %47 = vector.load %arg7[%c0_53, %c289] : memref<1x1792xbf16, #tpu.memory_space<vmem>>, vector<1x896xbf16>
    %c19 = arith.constant 19 : index
    %c0_54 = arith.constant 0 : index
    %48 = vector.load %arg8[%c19, %c0_54] : memref<27x896xbf16, #tpu.memory_space<vmem>>, vector<1x896xbf16>
    tpu.vector_store %arg8[%c19, %c0_54], %47 {strides = array<i32>} : memref<27x896xbf16, #tpu.memory_space<vmem>>, vector<1x896xbf16>,
    %c0_55 = arith.constant 0 : index
    %c290 = arith.constant 290 : index
    %49 = vector.load %arg7[%c0_55, %c290] : memref<1x1792xbf16, #tpu.memory_space<vmem>>, vector<1x896xbf16>
    %c20 = arith.constant 20 : index
    %c0_56 = arith.constant 0 : index
    %50 = vector.load %arg8[%c20, %c0_56] : memref<27x896xbf16, #tpu.memory_space<vmem>>, vector<1x896xbf16>
    tpu.vector_store %arg8[%c20, %c0_56], %49 {strides = array<i32>} : memref<27x896xbf16, #tpu.memory_space<vmem>>, vector<1x896xbf16>,
    %c0_57 = arith.constant 0 : index
    %c300 = arith.constant 300 : index
    %51 = vector.load %arg7[%c0_57, %c300] : memref<1x1792xbf16, #tpu.memory_space<vmem>>, vector<1x896xbf16>
    %c21 = arith.constant 21 : index
    %c0_58 = arith.constant 0 : index
    %52 = vector.load %arg8[%c21, %c0_58] : memref<27x896xbf16, #tpu.memory_space<vmem>>, vector<1x896xbf16>
    tpu.vector_store %arg8[%c21, %c0_58], %51 {strides = array<i32>} : memref<27x896xbf16, #tpu.memory_space<vmem>>, vector<1x896xbf16>,
    %c0_59 = arith.constant 0 : index
    %c301 = arith.constant 301 : index
    %53 = vector.load %arg7[%c0_59, %c301] : memref<1x1792xbf16, #tpu.memory_space<vmem>>, vector<1x896xbf16>
    %c22 = arith.constant 22 : index
    %c0_60 = arith.constant 0 : index
    %54 = vector.load %arg8[%c22, %c0_60] : memref<27x896xbf16, #tpu.memory_space<vmem>>, vector<1x896xbf16>
    tpu.vector_store %arg8[%c22, %c0_60], %53 {strides = array<i32>} : memref<27x896xbf16, #tpu.memory_space<vmem>>, vector<1x896xbf16>,
    %c0_61 = arith.constant 0 : index
    %c302 = arith.constant 302 : index
    %55 = vector.load %arg7[%c0_61, %c302] : memref<1x1792xbf16, #tpu.memory_space<vmem>>, vector<1x896xbf16>
    %c23 = arith.constant 23 : index
    %c0_62 = arith.constant 0 : index
    %56 = vector.load %arg8[%c23, %c0_62] : memref<27x896xbf16, #tpu.memory_space<vmem>>, vector<1x896xbf16>
    tpu.vector_store %arg8[%c23, %c0_62], %55 {strides = array<i32>} : memref<27x896xbf16, #tpu.memory_space<vmem>>, vector<1x896xbf16>,
    %c0_63 = arith.constant 0 : index
    %c312 = arith.constant 312 : index
    %57 = vector.load %arg7[%c0_63, %c312] : memref<1x1792xbf16, #tpu.memory_space<vmem>>, vector<1x896xbf16>
    %c24_64 = arith.constant 24 : index
    %c0_65 = arith.constant 0 : index
    %58 = vector.load %arg8[%c24_64, %c0_65] : memref<27x896xbf16, #tpu.memory_space<vmem>>, vector<1x896xbf16>
    tpu.vector_store %arg8[%c24_64, %c0_65], %57 {strides = array<i32>} : memref<27x896xbf16, #tpu.memory_space<vmem>>, vector<1x896xbf16>,
    %c0_66 = arith.constant 0 : index
    %c313 = arith.constant 313 : index
    %59 = vector.load %arg7[%c0_66, %c313] : memref<1x1792xbf16, #tpu.memory_space<vmem>>, vector<1x896xbf16>
    %c25_67 = arith.constant 25 : index
    %c0_68 = arith.constant 0 : index
    %60 = vector.load %arg8[%c25_67, %c0_68] : memref<27x896xbf16, #tpu.memory_space<vmem>>, vector<1x896xbf16>
    tpu.vector_store %arg8[%c25_67, %c0_68], %59 {strides = array<i32>} : memref<27x896xbf16, #tpu.memory_space<vmem>>, vector<1x896xbf16>,
    %c0_69 = arith.constant 0 : index
    %c314 = arith.constant 314 : index
    %61 = vector.load %arg7[%c0_69, %c314] : memref<1x1792xbf16, #tpu.memory_space<vmem>>, vector<1x896xbf16>
    %c26_70 = arith.constant 26 : index
    %c0_71 = arith.constant 0 : index
    %62 = vector.load %arg8[%c26_70, %c0_71] : memref<27x896xbf16, #tpu.memory_space<vmem>>, vector<1x896xbf16>
    tpu.vector_store %arg8[%c26_70, %c0_71], %61 {strides = array<i32>} : memref<27x896xbf16, #tpu.memory_space<vmem>>, vector<1x896xbf16>,
    %c0_72 = arith.constant 0 : index
    %c0_73 = arith.constant 0 : index
    %63 = vector.load %arg3[%c0_72, %c0_73] : memref<8x27xbf16, #tpu.memory_space<vmem>>, vector<8x27xbf16>
    %c0_74 = arith.constant 0 : index
    %c0_75 = arith.constant 0 : index
    %64 = vector.load %arg8[%c0_74, %c0_75] : memref<27x896xbf16, #tpu.memory_space<vmem>>, vector<27x896xbf16>
    %cst = arith.constant dense<0.000000e+00> : vector<8x896xf32>
    %65 = tpu.matmul %63, %64, %cst {dimension_numbers = #tpu.dot_dimension_numbers<[1], [0], [0], [1], [0, 0, 1, 1], [], []>} : vector<8x27xbf16>, vector<27x896xbf16>, vector<8x896xf32> -> vector<8x896xf32>
    %c0_76 = arith.constant 0 : index
    %c0_77 = arith.constant 0 : index
    %66 = vector.load %arg4[%c0_76, %c0_77] : memref<8x1xf32, #tpu.memory_space<vmem>>, vector<8x1xf32>
    %67 = vector.broadcast %66 : vector<8x1xf32> to vector<8x896xf32>
    %68 = arith.mulf %65, %67 : vector<8x896xf32>
    %c0_78 = arith.constant 0 : index
    %c0_79 = arith.constant 0 : index
    %69 = vector.load %arg5[%c0_78, %c0_79] : memref<8x1xf32, #tpu.memory_space<vmem>>, vector<8x1xf32>
    %70 = vector.broadcast %69 : vector<8x1xf32> to vector<8x896xf32>
    %71 = arith.addf %68, %70 : vector<8x896xf32>
    %72 = arith.truncf %71 : vector<8x896xf32> to vector<8x896xbf16>
    %c0_80 = arith.constant 0 : index
    %c0_81 = arith.constant 0 : index
    %c0_82 = arith.constant 0 : index
    %c0_83 = arith.constant 0 : index
    %73 = vector.load %arg6[%c0_80, %c0_81, %c0_82, %c0_83] : memref<1x1x8x896xbf16, #tpu.memory_space<vmem>>, vector<1x1x8x896xbf16>
    %74 = vector.shape_cast %73 : vector<1x1x8x896xbf16> to vector<8x896xbf16>
    %75 = vector.shape_cast %72 : vector<8x896xbf16> to vector<1x1x8x896xbf16>
    tpu.vector_store %arg6[%c0_80, %c0_81, %c0_82, %c0_83], %75 {strides = array<i32>} : memref<1x1x8x896xbf16, #tpu.memory_space<vmem>>, vector<1x1x8x896xbf16>,
    return
  }
  func.func @transform_0(%arg0: i32, %arg1: i32) -> (i32, i32, i32, i32) {
    %c0_i32 = arith.constant 0 : i32
    %c0_i32_0 = arith.constant 0 : i32
    %c0_i32_1 = arith.constant 0 : i32
    %c0_i32_2 = arith.constant 0 : i32
    return %arg0, %c0_i32, %c0_i32_0, %c0_i32_1 : i32, i32, i32, i32
  }
  func.func @transform_1(%arg0: i32, %arg1: i32) -> (i32, i32) {
    %c0_i32 = arith.constant 0 : i32
    %c0_i32_0 = arith.constant 0 : i32
    %c0_i32_1 = arith.constant 0 : i32
    return %c0_i32, %c0_i32_0 : i32, i32
  }
  func.func @transform_2(%arg0: i32, %arg1: i32) -> (i32, i32) {
    %c0_i32 = arith.constant 0 : i32
    %c0_i32_0 = arith.constant 0 : i32
    %c0_i32_1 = arith.constant 0 : i32
    return %c0_i32, %c0_i32_0 : i32, i32
  }
  func.func @transform_3(%arg0: i32, %arg1: i32) -> (i32, i32) {
    %c0_i32 = arith.constant 0 : i32
    %c0_i32_0 = arith.constant 0 : i32
    %c0_i32_1 = arith.constant 0 : i32
    return %c0_i32, %c0_i32_0 : i32, i32
  }
  func.func @transform_4(%arg0: i32, %arg1: i32) -> (i32, i32, i32, i32) {
    %c0_i32 = arith.constant 0 : i32
    %c0_i32_0 = arith.constant 0 : i32
    %c0_i32_1 = arith.constant 0 : i32
    return %arg0, %arg1, %c0_i32, %c0_i32_0 : i32, i32, i32, i32
  }
}

module attributes {stable_mosaic.version = 11 : i64} {
  func.func @_conv3d_bn_kernel(%arg0: i32, %arg1: i32, %arg2: memref<1x3x8x896xbf16, #tpu.memory_space<vmem>>, %arg3: memref<16x216xbf16, #tpu.memory_space<vmem>>, %arg4: memref<16x1xf32, #tpu.memory_space<vmem>>, %arg5: memref<16x1xf32, #tpu.memory_space<vmem>>, %arg6: memref<1x1x16x896xbf16, #tpu.memory_space<vmem>>, %arg7: memref<8x1792xbf16, #tpu.memory_space<vmem>>, %arg8: memref<216x896xbf16, #tpu.memory_space<vmem>>) attributes {dimension_semantics = [#tpu.dimension_semantics<parallel>, #tpu.dimension_semantics<parallel>], iteration_bounds = array<i64: 2, 2>, scalar_prefetch = 0 : i64, scratch_operands = 2 : i64, tpu.core_type = #tpu.core_type<tc>, window_params = [{transform_indices = @transform_0, window_bounds = array<i64: 1, 3, 8, 896>}, {pipeline_mode = #tpu.pipeline_mode<synchronous>, transform_indices = @transform_1, window_bounds = array<i64: 16, 216>}, {pipeline_mode = #tpu.pipeline_mode<synchronous>, transform_indices = @transform_2, window_bounds = array<i64: 16, 1>}, {pipeline_mode = #tpu.pipeline_mode<synchronous>, transform_indices = @transform_3, window_bounds = array<i64: 16, 1>}, {transform_indices = @transform_4, window_bounds = array<i64: 1, 1, 16, 896>}]} {
    %c0 = arith.constant 0 : index
    %0 = arith.index_cast %arg1 : i32 to index
    %c0_0 = arith.constant 0 : index
    %c0_1 = arith.constant 0 : index
    %1 = vector.load %arg2[%c0, %0, %c0_0, %c0_1] : memref<1x3x8x896xbf16, #tpu.memory_space<vmem>>, vector<1x1x8x896xbf16>
    %2 = vector.shape_cast %1 : vector<1x1x8x896xbf16> to vector<8x896xbf16>
    %c0_2 = arith.constant 0 : index
    %c0_3 = arith.constant 0 : index
    %3 = vector.load %arg7[%c0_2, %c0_3] : memref<8x1792xbf16, #tpu.memory_space<vmem>>, vector<8x896xbf16>
    tpu.vector_store %arg7[%c0_2, %c0_3], %2 {strides = array<i32>} : memref<8x1792xbf16, #tpu.memory_space<vmem>>, vector<8x896xbf16>,
    %c1_i32 = arith.constant 1 : i32
    %4 = arith.addi %arg1, %c1_i32 : i32
    %c0_4 = arith.constant 0 : index
    %5 = arith.index_cast %4 : i32 to index
    %c0_5 = arith.constant 0 : index
    %c0_6 = arith.constant 0 : index
    %6 = vector.load %arg2[%c0_4, %5, %c0_5, %c0_6] : memref<1x3x8x896xbf16, #tpu.memory_space<vmem>>, vector<1x1x8x896xbf16>
    %7 = vector.shape_cast %6 : vector<1x1x8x896xbf16> to vector<8x896xbf16>
    %c0_7 = arith.constant 0 : index
    %c896 = arith.constant 896 : index
    %8 = vector.load %arg7[%c0_7, %c896] : memref<8x1792xbf16, #tpu.memory_space<vmem>>, vector<8x896xbf16>
    tpu.vector_store %arg7[%c0_7, %c896], %7 {strides = array<i32>} : memref<8x1792xbf16, #tpu.memory_space<vmem>>, vector<8x896xbf16>,
    %c0_8 = arith.constant 0 : index
    %c0_9 = arith.constant 0 : index
    %9 = vector.load %arg7[%c0_8, %c0_9] : memref<8x1792xbf16, #tpu.memory_space<vmem>>, vector<8x896xbf16>
    %c0_10 = arith.constant 0 : index
    %c0_11 = arith.constant 0 : index
    %10 = vector.load %arg8[%c0_10, %c0_11] : memref<216x896xbf16, #tpu.memory_space<vmem>>, vector<8x896xbf16>
    tpu.vector_store %arg8[%c0_10, %c0_11], %9 {strides = array<i32>} : memref<216x896xbf16, #tpu.memory_space<vmem>>, vector<8x896xbf16>,
    %c0_12 = arith.constant 0 : index
    %c1 = arith.constant 1 : index
    %11 = vector.load %arg7[%c0_12, %c1] : memref<8x1792xbf16, #tpu.memory_space<vmem>>, vector<8x896xbf16>
    %c8 = arith.constant 8 : index
    %c0_13 = arith.constant 0 : index
    %12 = vector.load %arg8[%c8, %c0_13] : memref<216x896xbf16, #tpu.memory_space<vmem>>, vector<8x896xbf16>
    tpu.vector_store %arg8[%c8, %c0_13], %11 {strides = array<i32>} : memref<216x896xbf16, #tpu.memory_space<vmem>>, vector<8x896xbf16>,
    %c0_14 = arith.constant 0 : index
    %c2 = arith.constant 2 : index
    %13 = vector.load %arg7[%c0_14, %c2] : memref<8x1792xbf16, #tpu.memory_space<vmem>>, vector<8x896xbf16>
    %c16 = arith.constant 16 : index
    %c0_15 = arith.constant 0 : index
    %14 = vector.load %arg8[%c16, %c0_15] : memref<216x896xbf16, #tpu.memory_space<vmem>>, vector<8x896xbf16>
    tpu.vector_store %arg8[%c16, %c0_15], %13 {strides = array<i32>} : memref<216x896xbf16, #tpu.memory_space<vmem>>, vector<8x896xbf16>,
    %c0_16 = arith.constant 0 : index
    %c12 = arith.constant 12 : index
    %15 = vector.load %arg7[%c0_16, %c12] : memref<8x1792xbf16, #tpu.memory_space<vmem>>, vector<8x896xbf16>
    %c24 = arith.constant 24 : index
    %c0_17 = arith.constant 0 : index
    %16 = vector.load %arg8[%c24, %c0_17] : memref<216x896xbf16, #tpu.memory_space<vmem>>, vector<8x896xbf16>
    tpu.vector_store %arg8[%c24, %c0_17], %15 {strides = array<i32>} : memref<216x896xbf16, #tpu.memory_space<vmem>>, vector<8x896xbf16>,
    %c0_18 = arith.constant 0 : index
    %c13 = arith.constant 13 : index
    %17 = vector.load %arg7[%c0_18, %c13] : memref<8x1792xbf16, #tpu.memory_space<vmem>>, vector<8x896xbf16>
    %c32 = arith.constant 32 : index
    %c0_19 = arith.constant 0 : index
    %18 = vector.load %arg8[%c32, %c0_19] : memref<216x896xbf16, #tpu.memory_space<vmem>>, vector<8x896xbf16>
    tpu.vector_store %arg8[%c32, %c0_19], %17 {strides = array<i32>} : memref<216x896xbf16, #tpu.memory_space<vmem>>, vector<8x896xbf16>,
    %c0_20 = arith.constant 0 : index
    %c14 = arith.constant 14 : index
    %19 = vector.load %arg7[%c0_20, %c14] : memref<8x1792xbf16, #tpu.memory_space<vmem>>, vector<8x896xbf16>
    %c40 = arith.constant 40 : index
    %c0_21 = arith.constant 0 : index
    %20 = vector.load %arg8[%c40, %c0_21] : memref<216x896xbf16, #tpu.memory_space<vmem>>, vector<8x896xbf16>
    tpu.vector_store %arg8[%c40, %c0_21], %19 {strides = array<i32>} : memref<216x896xbf16, #tpu.memory_space<vmem>>, vector<8x896xbf16>,
    %c0_22 = arith.constant 0 : index
    %c24_23 = arith.constant 24 : index
    %21 = vector.load %arg7[%c0_22, %c24_23] : memref<8x1792xbf16, #tpu.memory_space<vmem>>, vector<8x896xbf16>
    %c48 = arith.constant 48 : index
    %c0_24 = arith.constant 0 : index
    %22 = vector.load %arg8[%c48, %c0_24] : memref<216x896xbf16, #tpu.memory_space<vmem>>, vector<8x896xbf16>
    tpu.vector_store %arg8[%c48, %c0_24], %21 {strides = array<i32>} : memref<216x896xbf16, #tpu.memory_space<vmem>>, vector<8x896xbf16>,
    %c0_25 = arith.constant 0 : index
    %c25 = arith.constant 25 : index
    %23 = vector.load %arg7[%c0_25, %c25] : memref<8x1792xbf16, #tpu.memory_space<vmem>>, vector<8x896xbf16>
    %c56 = arith.constant 56 : index
    %c0_26 = arith.constant 0 : index
    %24 = vector.load %arg8[%c56, %c0_26] : memref<216x896xbf16, #tpu.memory_space<vmem>>, vector<8x896xbf16>
    tpu.vector_store %arg8[%c56, %c0_26], %23 {strides = array<i32>} : memref<216x896xbf16, #tpu.memory_space<vmem>>, vector<8x896xbf16>,
    %c0_27 = arith.constant 0 : index
    %c26 = arith.constant 26 : index
    %25 = vector.load %arg7[%c0_27, %c26] : memref<8x1792xbf16, #tpu.memory_space<vmem>>, vector<8x896xbf16>
    %c64 = arith.constant 64 : index
    %c0_28 = arith.constant 0 : index
    %26 = vector.load %arg8[%c64, %c0_28] : memref<216x896xbf16, #tpu.memory_space<vmem>>, vector<8x896xbf16>
    tpu.vector_store %arg8[%c64, %c0_28], %25 {strides = array<i32>} : memref<216x896xbf16, #tpu.memory_space<vmem>>, vector<8x896xbf16>,
    %c0_29 = arith.constant 0 : index
    %c144 = arith.constant 144 : index
    %27 = vector.load %arg7[%c0_29, %c144] : memref<8x1792xbf16, #tpu.memory_space<vmem>>, vector<8x896xbf16>
    %c72 = arith.constant 72 : index
    %c0_30 = arith.constant 0 : index
    %28 = vector.load %arg8[%c72, %c0_30] : memref<216x896xbf16, #tpu.memory_space<vmem>>, vector<8x896xbf16>
    tpu.vector_store %arg8[%c72, %c0_30], %27 {strides = array<i32>} : memref<216x896xbf16, #tpu.memory_space<vmem>>, vector<8x896xbf16>,
    %c0_31 = arith.constant 0 : index
    %c145 = arith.constant 145 : index
    %29 = vector.load %arg7[%c0_31, %c145] : memref<8x1792xbf16, #tpu.memory_space<vmem>>, vector<8x896xbf16>
    %c80 = arith.constant 80 : index
    %c0_32 = arith.constant 0 : index
    %30 = vector.load %arg8[%c80, %c0_32] : memref<216x896xbf16, #tpu.memory_space<vmem>>, vector<8x896xbf16>
    tpu.vector_store %arg8[%c80, %c0_32], %29 {strides = array<i32>} : memref<216x896xbf16, #tpu.memory_space<vmem>>, vector<8x896xbf16>,
    %c0_33 = arith.constant 0 : index
    %c146 = arith.constant 146 : index
    %31 = vector.load %arg7[%c0_33, %c146] : memref<8x1792xbf16, #tpu.memory_space<vmem>>, vector<8x896xbf16>
    %c88 = arith.constant 88 : index
    %c0_34 = arith.constant 0 : index
    %32 = vector.load %arg8[%c88, %c0_34] : memref<216x896xbf16, #tpu.memory_space<vmem>>, vector<8x896xbf16>
    tpu.vector_store %arg8[%c88, %c0_34], %31 {strides = array<i32>} : memref<216x896xbf16, #tpu.memory_space<vmem>>, vector<8x896xbf16>,
    %c0_35 = arith.constant 0 : index
    %c156 = arith.constant 156 : index
    %33 = vector.load %arg7[%c0_35, %c156] : memref<8x1792xbf16, #tpu.memory_space<vmem>>, vector<8x896xbf16>
    %c96 = arith.constant 96 : index
    %c0_36 = arith.constant 0 : index
    %34 = vector.load %arg8[%c96, %c0_36] : memref<216x896xbf16, #tpu.memory_space<vmem>>, vector<8x896xbf16>
    tpu.vector_store %arg8[%c96, %c0_36], %33 {strides = array<i32>} : memref<216x896xbf16, #tpu.memory_space<vmem>>, vector<8x896xbf16>,
    %c0_37 = arith.constant 0 : index
    %c157 = arith.constant 157 : index
    %35 = vector.load %arg7[%c0_37, %c157] : memref<8x1792xbf16, #tpu.memory_space<vmem>>, vector<8x896xbf16>
    %c104 = arith.constant 104 : index
    %c0_38 = arith.constant 0 : index
    %36 = vector.load %arg8[%c104, %c0_38] : memref<216x896xbf16, #tpu.memory_space<vmem>>, vector<8x896xbf16>
    tpu.vector_store %arg8[%c104, %c0_38], %35 {strides = array<i32>} : memref<216x896xbf16, #tpu.memory_space<vmem>>, vector<8x896xbf16>,
    %c0_39 = arith.constant 0 : index
    %c158 = arith.constant 158 : index
    %37 = vector.load %arg7[%c0_39, %c158] : memref<8x1792xbf16, #tpu.memory_space<vmem>>, vector<8x896xbf16>
    %c112 = arith.constant 112 : index
    %c0_40 = arith.constant 0 : index
    %38 = vector.load %arg8[%c112, %c0_40] : memref<216x896xbf16, #tpu.memory_space<vmem>>, vector<8x896xbf16>
    tpu.vector_store %arg8[%c112, %c0_40], %37 {strides = array<i32>} : memref<216x896xbf16, #tpu.memory_space<vmem>>, vector<8x896xbf16>,
    %c0_41 = arith.constant 0 : index
    %c168 = arith.constant 168 : index
    %39 = vector.load %arg7[%c0_41, %c168] : memref<8x1792xbf16, #tpu.memory_space<vmem>>, vector<8x896xbf16>
    %c120 = arith.constant 120 : index
    %c0_42 = arith.constant 0 : index
    %40 = vector.load %arg8[%c120, %c0_42] : memref<216x896xbf16, #tpu.memory_space<vmem>>, vector<8x896xbf16>
    tpu.vector_store %arg8[%c120, %c0_42], %39 {strides = array<i32>} : memref<216x896xbf16, #tpu.memory_space<vmem>>, vector<8x896xbf16>,
    %c0_43 = arith.constant 0 : index
    %c169 = arith.constant 169 : index
    %41 = vector.load %arg7[%c0_43, %c169] : memref<8x1792xbf16, #tpu.memory_space<vmem>>, vector<8x896xbf16>
    %c128 = arith.constant 128 : index
    %c0_44 = arith.constant 0 : index
    %42 = vector.load %arg8[%c128, %c0_44] : memref<216x896xbf16, #tpu.memory_space<vmem>>, vector<8x896xbf16>
    tpu.vector_store %arg8[%c128, %c0_44], %41 {strides = array<i32>} : memref<216x896xbf16, #tpu.memory_space<vmem>>, vector<8x896xbf16>,
    %c0_45 = arith.constant 0 : index
    %c170 = arith.constant 170 : index
    %43 = vector.load %arg7[%c0_45, %c170] : memref<8x1792xbf16, #tpu.memory_space<vmem>>, vector<8x896xbf16>
    %c136 = arith.constant 136 : index
    %c0_46 = arith.constant 0 : index
    %44 = vector.load %arg8[%c136, %c0_46] : memref<216x896xbf16, #tpu.memory_space<vmem>>, vector<8x896xbf16>
    tpu.vector_store %arg8[%c136, %c0_46], %43 {strides = array<i32>} : memref<216x896xbf16, #tpu.memory_space<vmem>>, vector<8x896xbf16>,
    %c0_47 = arith.constant 0 : index
    %c288 = arith.constant 288 : index
    %45 = vector.load %arg7[%c0_47, %c288] : memref<8x1792xbf16, #tpu.memory_space<vmem>>, vector<8x896xbf16>
    %c144_48 = arith.constant 144 : index
    %c0_49 = arith.constant 0 : index
    %46 = vector.load %arg8[%c144_48, %c0_49] : memref<216x896xbf16, #tpu.memory_space<vmem>>, vector<8x896xbf16>
    tpu.vector_store %arg8[%c144_48, %c0_49], %45 {strides = array<i32>} : memref<216x896xbf16, #tpu.memory_space<vmem>>, vector<8x896xbf16>,
    %c0_50 = arith.constant 0 : index
    %c289 = arith.constant 289 : index
    %47 = vector.load %arg7[%c0_50, %c289] : memref<8x1792xbf16, #tpu.memory_space<vmem>>, vector<8x896xbf16>
    %c152 = arith.constant 152 : index
    %c0_51 = arith.constant 0 : index
    %48 = vector.load %arg8[%c152, %c0_51] : memref<216x896xbf16, #tpu.memory_space<vmem>>, vector<8x896xbf16>
    tpu.vector_store %arg8[%c152, %c0_51], %47 {strides = array<i32>} : memref<216x896xbf16, #tpu.memory_space<vmem>>, vector<8x896xbf16>,
    %c0_52 = arith.constant 0 : index
    %c290 = arith.constant 290 : index
    %49 = vector.load %arg7[%c0_52, %c290] : memref<8x1792xbf16, #tpu.memory_space<vmem>>, vector<8x896xbf16>
    %c160 = arith.constant 160 : index
    %c0_53 = arith.constant 0 : index
    %50 = vector.load %arg8[%c160, %c0_53] : memref<216x896xbf16, #tpu.memory_space<vmem>>, vector<8x896xbf16>
    tpu.vector_store %arg8[%c160, %c0_53], %49 {strides = array<i32>} : memref<216x896xbf16, #tpu.memory_space<vmem>>, vector<8x896xbf16>,
    %c0_54 = arith.constant 0 : index
    %c300 = arith.constant 300 : index
    %51 = vector.load %arg7[%c0_54, %c300] : memref<8x1792xbf16, #tpu.memory_space<vmem>>, vector<8x896xbf16>
    %c168_55 = arith.constant 168 : index
    %c0_56 = arith.constant 0 : index
    %52 = vector.load %arg8[%c168_55, %c0_56] : memref<216x896xbf16, #tpu.memory_space<vmem>>, vector<8x896xbf16>
    tpu.vector_store %arg8[%c168_55, %c0_56], %51 {strides = array<i32>} : memref<216x896xbf16, #tpu.memory_space<vmem>>, vector<8x896xbf16>,
    %c0_57 = arith.constant 0 : index
    %c301 = arith.constant 301 : index
    %53 = vector.load %arg7[%c0_57, %c301] : memref<8x1792xbf16, #tpu.memory_space<vmem>>, vector<8x896xbf16>
    %c176 = arith.constant 176 : index
    %c0_58 = arith.constant 0 : index
    %54 = vector.load %arg8[%c176, %c0_58] : memref<216x896xbf16, #tpu.memory_space<vmem>>, vector<8x896xbf16>
    tpu.vector_store %arg8[%c176, %c0_58], %53 {strides = array<i32>} : memref<216x896xbf16, #tpu.memory_space<vmem>>, vector<8x896xbf16>,
    %c0_59 = arith.constant 0 : index
    %c302 = arith.constant 302 : index
    %55 = vector.load %arg7[%c0_59, %c302] : memref<8x1792xbf16, #tpu.memory_space<vmem>>, vector<8x896xbf16>
    %c184 = arith.constant 184 : index
    %c0_60 = arith.constant 0 : index
    %56 = vector.load %arg8[%c184, %c0_60] : memref<216x896xbf16, #tpu.memory_space<vmem>>, vector<8x896xbf16>
    tpu.vector_store %arg8[%c184, %c0_60], %55 {strides = array<i32>} : memref<216x896xbf16, #tpu.memory_space<vmem>>, vector<8x896xbf16>,
    %c0_61 = arith.constant 0 : index
    %c312 = arith.constant 312 : index
    %57 = vector.load %arg7[%c0_61, %c312] : memref<8x1792xbf16, #tpu.memory_space<vmem>>, vector<8x896xbf16>
    %c192 = arith.constant 192 : index
    %c0_62 = arith.constant 0 : index
    %58 = vector.load %arg8[%c192, %c0_62] : memref<216x896xbf16, #tpu.memory_space<vmem>>, vector<8x896xbf16>
    tpu.vector_store %arg8[%c192, %c0_62], %57 {strides = array<i32>} : memref<216x896xbf16, #tpu.memory_space<vmem>>, vector<8x896xbf16>,
    %c0_63 = arith.constant 0 : index
    %c313 = arith.constant 313 : index
    %59 = vector.load %arg7[%c0_63, %c313] : memref<8x1792xbf16, #tpu.memory_space<vmem>>, vector<8x896xbf16>
    %c200 = arith.constant 200 : index
    %c0_64 = arith.constant 0 : index
    %60 = vector.load %arg8[%c200, %c0_64] : memref<216x896xbf16, #tpu.memory_space<vmem>>, vector<8x896xbf16>
    tpu.vector_store %arg8[%c200, %c0_64], %59 {strides = array<i32>} : memref<216x896xbf16, #tpu.memory_space<vmem>>, vector<8x896xbf16>,
    %c0_65 = arith.constant 0 : index
    %c314 = arith.constant 314 : index
    %61 = vector.load %arg7[%c0_65, %c314] : memref<8x1792xbf16, #tpu.memory_space<vmem>>, vector<8x896xbf16>
    %c208 = arith.constant 208 : index
    %c0_66 = arith.constant 0 : index
    %62 = vector.load %arg8[%c208, %c0_66] : memref<216x896xbf16, #tpu.memory_space<vmem>>, vector<8x896xbf16>
    tpu.vector_store %arg8[%c208, %c0_66], %61 {strides = array<i32>} : memref<216x896xbf16, #tpu.memory_space<vmem>>, vector<8x896xbf16>,
    %c0_67 = arith.constant 0 : index
    %c0_68 = arith.constant 0 : index
    %63 = vector.load %arg3[%c0_67, %c0_68] : memref<16x216xbf16, #tpu.memory_space<vmem>>, vector<16x216xbf16>
    %c0_69 = arith.constant 0 : index
    %c0_70 = arith.constant 0 : index
    %64 = vector.load %arg8[%c0_69, %c0_70] : memref<216x896xbf16, #tpu.memory_space<vmem>>, vector<216x896xbf16>
    %cst = arith.constant dense<0.000000e+00> : vector<16x896xf32>
    %65 = tpu.matmul %63, %64, %cst {dimension_numbers = #tpu.dot_dimension_numbers<[1], [0], [0], [1], [0, 0, 1, 1], [], []>} : vector<16x216xbf16>, vector<216x896xbf16>, vector<16x896xf32> -> vector<16x896xf32>
    %c0_71 = arith.constant 0 : index
    %c0_72 = arith.constant 0 : index
    %66 = vector.load %arg4[%c0_71, %c0_72] : memref<16x1xf32, #tpu.memory_space<vmem>>, vector<16x1xf32>
    %67 = vector.broadcast %66 : vector<16x1xf32> to vector<16x896xf32>
    %68 = arith.mulf %65, %67 : vector<16x896xf32>
    %c0_73 = arith.constant 0 : index
    %c0_74 = arith.constant 0 : index
    %69 = vector.load %arg5[%c0_73, %c0_74] : memref<16x1xf32, #tpu.memory_space<vmem>>, vector<16x1xf32>
    %70 = vector.broadcast %69 : vector<16x1xf32> to vector<16x896xf32>
    %71 = arith.addf %68, %70 : vector<16x896xf32>
    %72 = arith.truncf %71 : vector<16x896xf32> to vector<16x896xbf16>
    %c0_75 = arith.constant 0 : index
    %c0_76 = arith.constant 0 : index
    %c0_77 = arith.constant 0 : index
    %c0_78 = arith.constant 0 : index
    %73 = vector.load %arg6[%c0_75, %c0_76, %c0_77, %c0_78] : memref<1x1x16x896xbf16, #tpu.memory_space<vmem>>, vector<1x1x16x896xbf16>
    %74 = vector.shape_cast %73 : vector<1x1x16x896xbf16> to vector<16x896xbf16>
    %75 = vector.shape_cast %72 : vector<16x896xbf16> to vector<1x1x16x896xbf16>
    tpu.vector_store %arg6[%c0_75, %c0_76, %c0_77, %c0_78], %75 {strides = array<i32>} : memref<1x1x16x896xbf16, #tpu.memory_space<vmem>>, vector<1x1x16x896xbf16>,
    return
  }
  func.func @transform_0(%arg0: i32, %arg1: i32) -> (i32, i32, i32, i32) {
    %c0_i32 = arith.constant 0 : i32
    %c0_i32_0 = arith.constant 0 : i32
    %c0_i32_1 = arith.constant 0 : i32
    %c0_i32_2 = arith.constant 0 : i32
    return %arg0, %c0_i32, %c0_i32_0, %c0_i32_1 : i32, i32, i32, i32
  }
  func.func @transform_1(%arg0: i32, %arg1: i32) -> (i32, i32) {
    %c0_i32 = arith.constant 0 : i32
    %c0_i32_0 = arith.constant 0 : i32
    %c0_i32_1 = arith.constant 0 : i32
    return %c0_i32, %c0_i32_0 : i32, i32
  }
  func.func @transform_2(%arg0: i32, %arg1: i32) -> (i32, i32) {
    %c0_i32 = arith.constant 0 : i32
    %c0_i32_0 = arith.constant 0 : i32
    %c0_i32_1 = arith.constant 0 : i32
    return %c0_i32, %c0_i32_0 : i32, i32
  }
  func.func @transform_3(%arg0: i32, %arg1: i32) -> (i32, i32) {
    %c0_i32 = arith.constant 0 : i32
    %c0_i32_0 = arith.constant 0 : i32
    %c0_i32_1 = arith.constant 0 : i32
    return %c0_i32, %c0_i32_0 : i32, i32
  }
  func.func @transform_4(%arg0: i32, %arg1: i32) -> (i32, i32, i32, i32) {
    %c0_i32 = arith.constant 0 : i32
    %c0_i32_0 = arith.constant 0 : i32
    %c0_i32_1 = arith.constant 0 : i32
    return %arg0, %arg1, %c0_i32, %c0_i32_0 : i32, i32, i32, i32
  }
}

module attributes {stable_mosaic.version = 11 : i64} {
  func.func @_conv3d_bn_kernel(%arg0: i32, %arg1: i32, %arg2: memref<1x2x16x896xbf16, #tpu.memory_space<vmem>>, %arg3: memref<32x432xbf16, #tpu.memory_space<vmem>>, %arg4: memref<32x1xf32, #tpu.memory_space<vmem>>, %arg5: memref<32x1xf32, #tpu.memory_space<vmem>>, %arg6: memref<1x1x32x896xbf16, #tpu.memory_space<vmem>>, %arg7: memref<16x1792xbf16, #tpu.memory_space<vmem>>, %arg8: memref<432x896xbf16, #tpu.memory_space<vmem>>) attributes {dimension_semantics = [#tpu.dimension_semantics<parallel>, #tpu.dimension_semantics<parallel>], iteration_bounds = array<i64: 2, 1>, scalar_prefetch = 0 : i64, scratch_operands = 2 : i64, tpu.core_type = #tpu.core_type<tc>, window_params = [{transform_indices = @transform_0, window_bounds = array<i64: 1, 2, 16, 896>}, {pipeline_mode = #tpu.pipeline_mode<synchronous>, transform_indices = @transform_1, window_bounds = array<i64: 32, 432>}, {pipeline_mode = #tpu.pipeline_mode<synchronous>, transform_indices = @transform_2, window_bounds = array<i64: 32, 1>}, {pipeline_mode = #tpu.pipeline_mode<synchronous>, transform_indices = @transform_3, window_bounds = array<i64: 32, 1>}, {transform_indices = @transform_4, window_bounds = array<i64: 1, 1, 32, 896>}]} {
    %c0 = arith.constant 0 : index
    %0 = arith.index_cast %arg1 : i32 to index
    %c0_0 = arith.constant 0 : index
    %c0_1 = arith.constant 0 : index
    %1 = vector.load %arg2[%c0, %0, %c0_0, %c0_1] : memref<1x2x16x896xbf16, #tpu.memory_space<vmem>>, vector<1x1x16x896xbf16>
    %2 = vector.shape_cast %1 : vector<1x1x16x896xbf16> to vector<16x896xbf16>
    %c0_2 = arith.constant 0 : index
    %c0_3 = arith.constant 0 : index
    %3 = vector.load %arg7[%c0_2, %c0_3] : memref<16x1792xbf16, #tpu.memory_space<vmem>>, vector<16x896xbf16>
    tpu.vector_store %arg7[%c0_2, %c0_3], %2 {strides = array<i32>} : memref<16x1792xbf16, #tpu.memory_space<vmem>>, vector<16x896xbf16>,
    %c1_i32 = arith.constant 1 : i32
    %4 = arith.addi %arg1, %c1_i32 : i32
    %c0_4 = arith.constant 0 : index
    %5 = arith.index_cast %4 : i32 to index
    %c0_5 = arith.constant 0 : index
    %c0_6 = arith.constant 0 : index
    %6 = vector.load %arg2[%c0_4, %5, %c0_5, %c0_6] : memref<1x2x16x896xbf16, #tpu.memory_space<vmem>>, vector<1x1x16x896xbf16>
    %7 = vector.shape_cast %6 : vector<1x1x16x896xbf16> to vector<16x896xbf16>
    %c0_7 = arith.constant 0 : index
    %c896 = arith.constant 896 : index
    %8 = vector.load %arg7[%c0_7, %c896] : memref<16x1792xbf16, #tpu.memory_space<vmem>>, vector<16x896xbf16>
    tpu.vector_store %arg7[%c0_7, %c896], %7 {strides = array<i32>} : memref<16x1792xbf16, #tpu.memory_space<vmem>>, vector<16x896xbf16>,
    %c0_8 = arith.constant 0 : index
    %c0_9 = arith.constant 0 : index
    %9 = vector.load %arg7[%c0_8, %c0_9] : memref<16x1792xbf16, #tpu.memory_space<vmem>>, vector<16x896xbf16>
    %c0_10 = arith.constant 0 : index
    %c0_11 = arith.constant 0 : index
    %10 = vector.load %arg8[%c0_10, %c0_11] : memref<432x896xbf16, #tpu.memory_space<vmem>>, vector<16x896xbf16>
    tpu.vector_store %arg8[%c0_10, %c0_11], %9 {strides = array<i32>} : memref<432x896xbf16, #tpu.memory_space<vmem>>, vector<16x896xbf16>,
    %c0_12 = arith.constant 0 : index
    %c1 = arith.constant 1 : index
    %11 = vector.load %arg7[%c0_12, %c1] : memref<16x1792xbf16, #tpu.memory_space<vmem>>, vector<16x896xbf16>
    %c16 = arith.constant 16 : index
    %c0_13 = arith.constant 0 : index
    %12 = vector.load %arg8[%c16, %c0_13] : memref<432x896xbf16, #tpu.memory_space<vmem>>, vector<16x896xbf16>
    tpu.vector_store %arg8[%c16, %c0_13], %11 {strides = array<i32>} : memref<432x896xbf16, #tpu.memory_space<vmem>>, vector<16x896xbf16>,
    %c0_14 = arith.constant 0 : index
    %c2 = arith.constant 2 : index
    %13 = vector.load %arg7[%c0_14, %c2] : memref<16x1792xbf16, #tpu.memory_space<vmem>>, vector<16x896xbf16>
    %c32 = arith.constant 32 : index
    %c0_15 = arith.constant 0 : index
    %14 = vector.load %arg8[%c32, %c0_15] : memref<432x896xbf16, #tpu.memory_space<vmem>>, vector<16x896xbf16>
    tpu.vector_store %arg8[%c32, %c0_15], %13 {strides = array<i32>} : memref<432x896xbf16, #tpu.memory_space<vmem>>, vector<16x896xbf16>,
    %c0_16 = arith.constant 0 : index
    %c12 = arith.constant 12 : index
    %15 = vector.load %arg7[%c0_16, %c12] : memref<16x1792xbf16, #tpu.memory_space<vmem>>, vector<16x896xbf16>
    %c48 = arith.constant 48 : index
    %c0_17 = arith.constant 0 : index
    %16 = vector.load %arg8[%c48, %c0_17] : memref<432x896xbf16, #tpu.memory_space<vmem>>, vector<16x896xbf16>
    tpu.vector_store %arg8[%c48, %c0_17], %15 {strides = array<i32>} : memref<432x896xbf16, #tpu.memory_space<vmem>>, vector<16x896xbf16>,
    %c0_18 = arith.constant 0 : index
    %c13 = arith.constant 13 : index
    %17 = vector.load %arg7[%c0_18, %c13] : memref<16x1792xbf16, #tpu.memory_space<vmem>>, vector<16x896xbf16>
    %c64 = arith.constant 64 : index
    %c0_19 = arith.constant 0 : index
    %18 = vector.load %arg8[%c64, %c0_19] : memref<432x896xbf16, #tpu.memory_space<vmem>>, vector<16x896xbf16>
    tpu.vector_store %arg8[%c64, %c0_19], %17 {strides = array<i32>} : memref<432x896xbf16, #tpu.memory_space<vmem>>, vector<16x896xbf16>,
    %c0_20 = arith.constant 0 : index
    %c14 = arith.constant 14 : index
    %19 = vector.load %arg7[%c0_20, %c14] : memref<16x1792xbf16, #tpu.memory_space<vmem>>, vector<16x896xbf16>
    %c80 = arith.constant 80 : index
    %c0_21 = arith.constant 0 : index
    %20 = vector.load %arg8[%c80, %c0_21] : memref<432x896xbf16, #tpu.memory_space<vmem>>, vector<16x896xbf16>
    tpu.vector_store %arg8[%c80, %c0_21], %19 {strides = array<i32>} : memref<432x896xbf16, #tpu.memory_space<vmem>>, vector<16x896xbf16>,
    %c0_22 = arith.constant 0 : index
    %c24 = arith.constant 24 : index
    %21 = vector.load %arg7[%c0_22, %c24] : memref<16x1792xbf16, #tpu.memory_space<vmem>>, vector<16x896xbf16>
    %c96 = arith.constant 96 : index
    %c0_23 = arith.constant 0 : index
    %22 = vector.load %arg8[%c96, %c0_23] : memref<432x896xbf16, #tpu.memory_space<vmem>>, vector<16x896xbf16>
    tpu.vector_store %arg8[%c96, %c0_23], %21 {strides = array<i32>} : memref<432x896xbf16, #tpu.memory_space<vmem>>, vector<16x896xbf16>,
    %c0_24 = arith.constant 0 : index
    %c25 = arith.constant 25 : index
    %23 = vector.load %arg7[%c0_24, %c25] : memref<16x1792xbf16, #tpu.memory_space<vmem>>, vector<16x896xbf16>
    %c112 = arith.constant 112 : index
    %c0_25 = arith.constant 0 : index
    %24 = vector.load %arg8[%c112, %c0_25] : memref<432x896xbf16, #tpu.memory_space<vmem>>, vector<16x896xbf16>
    tpu.vector_store %arg8[%c112, %c0_25], %23 {strides = array<i32>} : memref<432x896xbf16, #tpu.memory_space<vmem>>, vector<16x896xbf16>,
    %c0_26 = arith.constant 0 : index
    %c26 = arith.constant 26 : index
    %25 = vector.load %arg7[%c0_26, %c26] : memref<16x1792xbf16, #tpu.memory_space<vmem>>, vector<16x896xbf16>
    %c128 = arith.constant 128 : index
    %c0_27 = arith.constant 0 : index
    %26 = vector.load %arg8[%c128, %c0_27] : memref<432x896xbf16, #tpu.memory_space<vmem>>, vector<16x896xbf16>
    tpu.vector_store %arg8[%c128, %c0_27], %25 {strides = array<i32>} : memref<432x896xbf16, #tpu.memory_space<vmem>>, vector<16x896xbf16>,
    %c0_28 = arith.constant 0 : index
    %c144 = arith.constant 144 : index
    %27 = vector.load %arg7[%c0_28, %c144] : memref<16x1792xbf16, #tpu.memory_space<vmem>>, vector<16x896xbf16>
    %c144_29 = arith.constant 144 : index
    %c0_30 = arith.constant 0 : index
    %28 = vector.load %arg8[%c144_29, %c0_30] : memref<432x896xbf16, #tpu.memory_space<vmem>>, vector<16x896xbf16>
    tpu.vector_store %arg8[%c144_29, %c0_30], %27 {strides = array<i32>} : memref<432x896xbf16, #tpu.memory_space<vmem>>, vector<16x896xbf16>,
    %c0_31 = arith.constant 0 : index
    %c145 = arith.constant 145 : index
    %29 = vector.load %arg7[%c0_31, %c145] : memref<16x1792xbf16, #tpu.memory_space<vmem>>, vector<16x896xbf16>
    %c160 = arith.constant 160 : index
    %c0_32 = arith.constant 0 : index
    %30 = vector.load %arg8[%c160, %c0_32] : memref<432x896xbf16, #tpu.memory_space<vmem>>, vector<16x896xbf16>
    tpu.vector_store %arg8[%c160, %c0_32], %29 {strides = array<i32>} : memref<432x896xbf16, #tpu.memory_space<vmem>>, vector<16x896xbf16>,
    %c0_33 = arith.constant 0 : index
    %c146 = arith.constant 146 : index
    %31 = vector.load %arg7[%c0_33, %c146] : memref<16x1792xbf16, #tpu.memory_space<vmem>>, vector<16x896xbf16>
    %c176 = arith.constant 176 : index
    %c0_34 = arith.constant 0 : index
    %32 = vector.load %arg8[%c176, %c0_34] : memref<432x896xbf16, #tpu.memory_space<vmem>>, vector<16x896xbf16>
    tpu.vector_store %arg8[%c176, %c0_34], %31 {strides = array<i32>} : memref<432x896xbf16, #tpu.memory_space<vmem>>, vector<16x896xbf16>,
    %c0_35 = arith.constant 0 : index
    %c156 = arith.constant 156 : index
    %33 = vector.load %arg7[%c0_35, %c156] : memref<16x1792xbf16, #tpu.memory_space<vmem>>, vector<16x896xbf16>
    %c192 = arith.constant 192 : index
    %c0_36 = arith.constant 0 : index
    %34 = vector.load %arg8[%c192, %c0_36] : memref<432x896xbf16, #tpu.memory_space<vmem>>, vector<16x896xbf16>
    tpu.vector_store %arg8[%c192, %c0_36], %33 {strides = array<i32>} : memref<432x896xbf16, #tpu.memory_space<vmem>>, vector<16x896xbf16>,
    %c0_37 = arith.constant 0 : index
    %c157 = arith.constant 157 : index
    %35 = vector.load %arg7[%c0_37, %c157] : memref<16x1792xbf16, #tpu.memory_space<vmem>>, vector<16x896xbf16>
    %c208 = arith.constant 208 : index
    %c0_38 = arith.constant 0 : index
    %36 = vector.load %arg8[%c208, %c0_38] : memref<432x896xbf16, #tpu.memory_space<vmem>>, vector<16x896xbf16>
    tpu.vector_store %arg8[%c208, %c0_38], %35 {strides = array<i32>} : memref<432x896xbf16, #tpu.memory_space<vmem>>, vector<16x896xbf16>,
    %c0_39 = arith.constant 0 : index
    %c158 = arith.constant 158 : index
    %37 = vector.load %arg7[%c0_39, %c158] : memref<16x1792xbf16, #tpu.memory_space<vmem>>, vector<16x896xbf16>
    %c224 = arith.constant 224 : index
    %c0_40 = arith.constant 0 : index
    %38 = vector.load %arg8[%c224, %c0_40] : memref<432x896xbf16, #tpu.memory_space<vmem>>, vector<16x896xbf16>
    tpu.vector_store %arg8[%c224, %c0_40], %37 {strides = array<i32>} : memref<432x896xbf16, #tpu.memory_space<vmem>>, vector<16x896xbf16>,
    %c0_41 = arith.constant 0 : index
    %c168 = arith.constant 168 : index
    %39 = vector.load %arg7[%c0_41, %c168] : memref<16x1792xbf16, #tpu.memory_space<vmem>>, vector<16x896xbf16>
    %c240 = arith.constant 240 : index
    %c0_42 = arith.constant 0 : index
    %40 = vector.load %arg8[%c240, %c0_42] : memref<432x896xbf16, #tpu.memory_space<vmem>>, vector<16x896xbf16>
    tpu.vector_store %arg8[%c240, %c0_42], %39 {strides = array<i32>} : memref<432x896xbf16, #tpu.memory_space<vmem>>, vector<16x896xbf16>,
    %c0_43 = arith.constant 0 : index
    %c169 = arith.constant 169 : index
    %41 = vector.load %arg7[%c0_43, %c169] : memref<16x1792xbf16, #tpu.memory_space<vmem>>, vector<16x896xbf16>
    %c256 = arith.constant 256 : index
    %c0_44 = arith.constant 0 : index
    %42 = vector.load %arg8[%c256, %c0_44] : memref<432x896xbf16, #tpu.memory_space<vmem>>, vector<16x896xbf16>
    tpu.vector_store %arg8[%c256, %c0_44], %41 {strides = array<i32>} : memref<432x896xbf16, #tpu.memory_space<vmem>>, vector<16x896xbf16>,
    %c0_45 = arith.constant 0 : index
    %c170 = arith.constant 170 : index
    %43 = vector.load %arg7[%c0_45, %c170] : memref<16x1792xbf16, #tpu.memory_space<vmem>>, vector<16x896xbf16>
    %c272 = arith.constant 272 : index
    %c0_46 = arith.constant 0 : index
    %44 = vector.load %arg8[%c272, %c0_46] : memref<432x896xbf16, #tpu.memory_space<vmem>>, vector<16x896xbf16>
    tpu.vector_store %arg8[%c272, %c0_46], %43 {strides = array<i32>} : memref<432x896xbf16, #tpu.memory_space<vmem>>, vector<16x896xbf16>,
    %c0_47 = arith.constant 0 : index
    %c288 = arith.constant 288 : index
    %45 = vector.load %arg7[%c0_47, %c288] : memref<16x1792xbf16, #tpu.memory_space<vmem>>, vector<16x896xbf16>
    %c288_48 = arith.constant 288 : index
    %c0_49 = arith.constant 0 : index
    %46 = vector.load %arg8[%c288_48, %c0_49] : memref<432x896xbf16, #tpu.memory_space<vmem>>, vector<16x896xbf16>
    tpu.vector_store %arg8[%c288_48, %c0_49], %45 {strides = array<i32>} : memref<432x896xbf16, #tpu.memory_space<vmem>>, vector<16x896xbf16>,
    %c0_50 = arith.constant 0 : index
    %c289 = arith.constant 289 : index
    %47 = vector.load %arg7[%c0_50, %c289] : memref<16x1792xbf16, #tpu.memory_space<vmem>>, vector<16x896xbf16>
    %c304 = arith.constant 304 : index
    %c0_51 = arith.constant 0 : index
    %48 = vector.load %arg8[%c304, %c0_51] : memref<432x896xbf16, #tpu.memory_space<vmem>>, vector<16x896xbf16>
    tpu.vector_store %arg8[%c304, %c0_51], %47 {strides = array<i32>} : memref<432x896xbf16, #tpu.memory_space<vmem>>, vector<16x896xbf16>,
    %c0_52 = arith.constant 0 : index
    %c290 = arith.constant 290 : index
    %49 = vector.load %arg7[%c0_52, %c290] : memref<16x1792xbf16, #tpu.memory_space<vmem>>, vector<16x896xbf16>
    %c320 = arith.constant 320 : index
    %c0_53 = arith.constant 0 : index
    %50 = vector.load %arg8[%c320, %c0_53] : memref<432x896xbf16, #tpu.memory_space<vmem>>, vector<16x896xbf16>
    tpu.vector_store %arg8[%c320, %c0_53], %49 {strides = array<i32>} : memref<432x896xbf16, #tpu.memory_space<vmem>>, vector<16x896xbf16>,
    %c0_54 = arith.constant 0 : index
    %c300 = arith.constant 300 : index
    %51 = vector.load %arg7[%c0_54, %c300] : memref<16x1792xbf16, #tpu.memory_space<vmem>>, vector<16x896xbf16>
    %c336 = arith.constant 336 : index
    %c0_55 = arith.constant 0 : index
    %52 = vector.load %arg8[%c336, %c0_55] : memref<432x896xbf16, #tpu.memory_space<vmem>>, vector<16x896xbf16>
    tpu.vector_store %arg8[%c336, %c0_55], %51 {strides = array<i32>} : memref<432x896xbf16, #tpu.memory_space<vmem>>, vector<16x896xbf16>,
    %c0_56 = arith.constant 0 : index
    %c301 = arith.constant 301 : index
    %53 = vector.load %arg7[%c0_56, %c301] : memref<16x1792xbf16, #tpu.memory_space<vmem>>, vector<16x896xbf16>
    %c352 = arith.constant 352 : index
    %c0_57 = arith.constant 0 : index
    %54 = vector.load %arg8[%c352, %c0_57] : memref<432x896xbf16, #tpu.memory_space<vmem>>, vector<16x896xbf16>
    tpu.vector_store %arg8[%c352, %c0_57], %53 {strides = array<i32>} : memref<432x896xbf16, #tpu.memory_space<vmem>>, vector<16x896xbf16>,
    %c0_58 = arith.constant 0 : index
    %c302 = arith.constant 302 : index
    %55 = vector.load %arg7[%c0_58, %c302] : memref<16x1792xbf16, #tpu.memory_space<vmem>>, vector<16x896xbf16>
    %c368 = arith.constant 368 : index
    %c0_59 = arith.constant 0 : index
    %56 = vector.load %arg8[%c368, %c0_59] : memref<432x896xbf16, #tpu.memory_space<vmem>>, vector<16x896xbf16>
    tpu.vector_store %arg8[%c368, %c0_59], %55 {strides = array<i32>} : memref<432x896xbf16, #tpu.memory_space<vmem>>, vector<16x896xbf16>,
    %c0_60 = arith.constant 0 : index
    %c312 = arith.constant 312 : index
    %57 = vector.load %arg7[%c0_60, %c312] : memref<16x1792xbf16, #tpu.memory_space<vmem>>, vector<16x896xbf16>
    %c384 = arith.constant 384 : index
    %c0_61 = arith.constant 0 : index
    %58 = vector.load %arg8[%c384, %c0_61] : memref<432x896xbf16, #tpu.memory_space<vmem>>, vector<16x896xbf16>
    tpu.vector_store %arg8[%c384, %c0_61], %57 {strides = array<i32>} : memref<432x896xbf16, #tpu.memory_space<vmem>>, vector<16x896xbf16>,
    %c0_62 = arith.constant 0 : index
    %c313 = arith.constant 313 : index
    %59 = vector.load %arg7[%c0_62, %c313] : memref<16x1792xbf16, #tpu.memory_space<vmem>>, vector<16x896xbf16>
    %c400 = arith.constant 400 : index
    %c0_63 = arith.constant 0 : index
    %60 = vector.load %arg8[%c400, %c0_63] : memref<432x896xbf16, #tpu.memory_space<vmem>>, vector<16x896xbf16>
    tpu.vector_store %arg8[%c400, %c0_63], %59 {strides = array<i32>} : memref<432x896xbf16, #tpu.memory_space<vmem>>, vector<16x896xbf16>,
    %c0_64 = arith.constant 0 : index
    %c314 = arith.constant 314 : index
    %61 = vector.load %arg7[%c0_64, %c314] : memref<16x1792xbf16, #tpu.memory_space<vmem>>, vector<16x896xbf16>
    %c416 = arith.constant 416 : index
    %c0_65 = arith.constant 0 : index
    %62 = vector.load %arg8[%c416, %c0_65] : memref<432x896xbf16, #tpu.memory_space<vmem>>, vector<16x896xbf16>
    tpu.vector_store %arg8[%c416, %c0_65], %61 {strides = array<i32>} : memref<432x896xbf16, #tpu.memory_space<vmem>>, vector<16x896xbf16>,
    %c0_66 = arith.constant 0 : index
    %c0_67 = arith.constant 0 : index
    %63 = vector.load %arg3[%c0_66, %c0_67] : memref<32x432xbf16, #tpu.memory_space<vmem>>, vector<32x432xbf16>
    %c0_68 = arith.constant 0 : index
    %c0_69 = arith.constant 0 : index
    %64 = vector.load %arg8[%c0_68, %c0_69] : memref<432x896xbf16, #tpu.memory_space<vmem>>, vector<432x896xbf16>
    %cst = arith.constant dense<0.000000e+00> : vector<32x896xf32>
    %65 = tpu.matmul %63, %64, %cst {dimension_numbers = #tpu.dot_dimension_numbers<[1], [0], [0], [1], [0, 0, 1, 1], [], []>} : vector<32x432xbf16>, vector<432x896xbf16>, vector<32x896xf32> -> vector<32x896xf32>
    %c0_70 = arith.constant 0 : index
    %c0_71 = arith.constant 0 : index
    %66 = vector.load %arg4[%c0_70, %c0_71] : memref<32x1xf32, #tpu.memory_space<vmem>>, vector<32x1xf32>
    %67 = vector.broadcast %66 : vector<32x1xf32> to vector<32x896xf32>
    %68 = arith.mulf %65, %67 : vector<32x896xf32>
    %c0_72 = arith.constant 0 : index
    %c0_73 = arith.constant 0 : index
    %69 = vector.load %arg5[%c0_72, %c0_73] : memref<32x1xf32, #tpu.memory_space<vmem>>, vector<32x1xf32>
    %70 = vector.broadcast %69 : vector<32x1xf32> to vector<32x896xf32>
    %71 = arith.addf %68, %70 : vector<32x896xf32>
    %72 = arith.truncf %71 : vector<32x896xf32> to vector<32x896xbf16>
    %c0_74 = arith.constant 0 : index
    %c0_75 = arith.constant 0 : index
    %c0_76 = arith.constant 0 : index
    %c0_77 = arith.constant 0 : index
    %73 = vector.load %arg6[%c0_74, %c0_75, %c0_76, %c0_77] : memref<1x1x32x896xbf16, #tpu.memory_space<vmem>>, vector<1x1x32x896xbf16>
    %74 = vector.shape_cast %73 : vector<1x1x32x896xbf16> to vector<32x896xbf16>
    %75 = vector.shape_cast %72 : vector<32x896xbf16> to vector<1x1x32x896xbf16>
    tpu.vector_store %arg6[%c0_74, %c0_75, %c0_76, %c0_77], %75 {strides = array<i32>} : memref<1x1x32x896xbf16, #tpu.memory_space<vmem>>, vector<1x1x32x896xbf16>,
    return
  }
  func.func @transform_0(%arg0: i32, %arg1: i32) -> (i32, i32, i32, i32) {
    %c0_i32 = arith.constant 0 : i32
    %c0_i32_0 = arith.constant 0 : i32
    %c0_i32_1 = arith.constant 0 : i32
    %c0_i32_2 = arith.constant 0 : i32
    return %arg0, %c0_i32, %c0_i32_0, %c0_i32_1 : i32, i32, i32, i32
  }
  func.func @transform_1(%arg0: i32, %arg1: i32) -> (i32, i32) {
    %c0_i32 = arith.constant 0 : i32
    %c0_i32_0 = arith.constant 0 : i32
    %c0_i32_1 = arith.constant 0 : i32
    return %c0_i32, %c0_i32_0 : i32, i32
  }
  func.func @transform_2(%arg0: i32, %arg1: i32) -> (i32, i32) {
    %c0_i32 = arith.constant 0 : i32
    %c0_i32_0 = arith.constant 0 : i32
    %c0_i32_1 = arith.constant 0 : i32
    return %c0_i32, %c0_i32_0 : i32, i32
  }
  func.func @transform_3(%arg0: i32, %arg1: i32) -> (i32, i32) {
    %c0_i32 = arith.constant 0 : i32
    %c0_i32_0 = arith.constant 0 : i32
    %c0_i32_1 = arith.constant 0 : i32
    return %c0_i32, %c0_i32_0 : i32, i32
  }
  func.func @transform_4(%arg0: i32, %arg1: i32) -> (i32, i32, i32, i32) {
    %c0_i32 = arith.constant 0 : i32
    %c0_i32_0 = arith.constant 0 : i32
    %c0_i32_1 = arith.constant 0 : i32
    return %arg0, %arg1, %c0_i32, %c0_i32_0 : i32, i32, i32, i32
  }
}

module attributes {stable_mosaic.version = 11 : i64} {
  func.func @_linear_kernel(%arg0: i32, %arg1: i32, %arg2: memref<2x14336xbf16, #tpu.memory_space<vmem>>, %arg3: memref<8x14336xbf16, #tpu.memory_space<vmem>>, %arg4: memref<1x2x8xf32, #tpu.memory_space<vmem>>, %arg5: memref<2x8xf32, #tpu.memory_space<vmem>>) attributes {dimension_semantics = [#tpu.dimension_semantics<parallel>, #tpu.dimension_semantics<arbitrary>], iteration_bounds = array<i64: 2, 1>, scalar_prefetch = 0 : i64, scratch_operands = 1 : i64, tpu.core_type = #tpu.core_type<tc>, window_params = [{transform_indices = @transform_0, window_bounds = array<i64: 2, 14336>}, {transform_indices = @transform_1, window_bounds = array<i64: 8, 14336>}, {transform_indices = @transform_2, window_bounds = array<i64: 1, 2, 8>}]} {
    %c0_i32 = arith.constant 0 : i32
    %0 = arith.cmpi eq, %arg1, %c0_i32 : i32
    %1 = arith.extui %0 : i1 to i32
    %c0_i32_0 = arith.constant 0 : i32
    %2 = arith.cmpi ne, %1, %c0_i32_0 : i32
    scf.if %2 {
      %cst_10 = arith.constant 0.000000e+00 : f32
      %12 = vector.broadcast %cst_10 : f32 to vector<2x8xf32>
      %c0_11 = arith.constant 0 : index
      %c0_12 = arith.constant 0 : index
      %13 = vector.load %arg5[%c0_11, %c0_12] : memref<2x8xf32, #tpu.memory_space<vmem>>, vector<2x8xf32>
      tpu.vector_store %arg5[%c0_11, %c0_12], %12 {strides = array<i32>} : memref<2x8xf32, #tpu.memory_space<vmem>>, vector<2x8xf32>,
    } else {
    }
    %c0 = arith.constant 0 : index
    %c0_1 = arith.constant 0 : index
    %3 = vector.load %arg5[%c0, %c0_1] : memref<2x8xf32, #tpu.memory_space<vmem>>, vector<2x8xf32>
    %c0_2 = arith.constant 0 : index
    %c0_3 = arith.constant 0 : index
    %4 = vector.load %arg2[%c0_2, %c0_3] : memref<2x14336xbf16, #tpu.memory_space<vmem>>, vector<2x14336xbf16>
    %c0_4 = arith.constant 0 : index
    %c0_5 = arith.constant 0 : index
    %5 = vector.load %arg3[%c0_4, %c0_5] : memref<8x14336xbf16, #tpu.memory_space<vmem>>, vector<8x14336xbf16>
    %cst = arith.constant dense<0.000000e+00> : vector<2x8xf32>
    %6 = tpu.matmul %4, %5, %cst {dimension_numbers = #tpu.dot_dimension_numbers<[1], [1], [0], [0], [0, 0, 1, 0], [], []>} : vector<2x14336xbf16>, vector<8x14336xbf16>, vector<2x8xf32> -> vector<2x8xf32>
    %7 = arith.addf %3, %6 : vector<2x8xf32>
    %c0_6 = arith.constant 0 : index
    %c0_7 = arith.constant 0 : index
    %8 = vector.load %arg5[%c0_6, %c0_7] : memref<2x8xf32, #tpu.memory_space<vmem>>, vector<2x8xf32>
    tpu.vector_store %arg5[%c0_6, %c0_7], %7 {strides = array<i32>} : memref<2x8xf32, #tpu.memory_space<vmem>>, vector<2x8xf32>,
    %c0_i32_8 = arith.constant 0 : i32
    %9 = arith.cmpi eq, %arg1, %c0_i32_8 : i32
    %10 = arith.extui %9 : i1 to i32
    %c0_i32_9 = arith.constant 0 : i32
    %11 = arith.cmpi ne, %10, %c0_i32_9 : i32
    scf.if %11 {
      %c0_10 = arith.constant 0 : index
      %c0_11 = arith.constant 0 : index
      %12 = vector.load %arg5[%c0_10, %c0_11] : memref<2x8xf32, #tpu.memory_space<vmem>>, vector<2x8xf32>
      %c0_12 = arith.constant 0 : index
      %c0_13 = arith.constant 0 : index
      %c0_14 = arith.constant 0 : index
      %13 = vector.load %arg4[%c0_12, %c0_13, %c0_14] : memref<1x2x8xf32, #tpu.memory_space<vmem>>, vector<1x2x8xf32>
      %14 = vector.shape_cast %13 : vector<1x2x8xf32> to vector<2x8xf32>
      %15 = vector.shape_cast %12 : vector<2x8xf32> to vector<1x2x8xf32>
      tpu.vector_store %arg4[%c0_12, %c0_13, %c0_14], %15 {strides = array<i32>} : memref<1x2x8xf32, #tpu.memory_space<vmem>>, vector<1x2x8xf32>,
    } else {
    }
    return
  }
  func.func @transform_0(%arg0: i32, %arg1: i32) -> (i32, i32) {
    %c1_i32 = arith.constant 1 : i32
    %0 = arith.muli %arg0, %c1_i32 : i32
    %1 = arith.addi %0, %arg1 : i32
    %c0_i32 = arith.constant 0 : i32
    %c0_i32_0 = arith.constant 0 : i32
    return %c0_i32, %1 : i32, i32
  }
  func.func @transform_1(%arg0: i32, %arg1: i32) -> (i32, i32) {
    %c1_i32 = arith.constant 1 : i32
    %0 = arith.muli %arg0, %c1_i32 : i32
    %1 = arith.addi %0, %arg1 : i32
    %c0_i32 = arith.constant 0 : i32
    %c0_i32_0 = arith.constant 0 : i32
    return %c0_i32, %1 : i32, i32
  }
  func.func @transform_2(%arg0: i32, %arg1: i32) -> (i32, i32, i32) {
    %c0_i32 = arith.constant 0 : i32
    %c0_i32_0 = arith.constant 0 : i32
    %c0_i32_1 = arith.constant 0 : i32
    return %arg0, %c0_i32, %c0_i32_0 : i32, i32, i32
  }
}

</mosaic_0001>

<bundles_post_ra>
// kernel: conv2dnet_2_forward.4
= control target key start
LH: loop header
LB: loop body
LE: loop exit
PB: predicated region body
PF: predicated region fallthrough
CT: control target
= control target key end

     0   :  { %s3484_s15 = smov 0   ;;  %s3486_s16 = smov 0   ;;  %s4805_s0 = inlined_call_operand.vmem [shape: bf16[2,4,1,896], index: 0, kind: input, shape index: {}]   ;;  %s4806_s1 = inlined_call_operand.vmem [shape: bf16[8,27], index: 1, kind: input, shape index: {}]   ;;  %s4807_s2 = inlined_call_operand.vmem [shape: f32[8,1], index: 2, kind: input, shape index: {}]   ;;  %s4808_s3 = inlined_call_operand.vmem [shape: f32[8,1], index: 3, kind: input, shape index: {}]   ;;  %s4809_s4 = inlined_call_operand.vmem [shape: bf16[2,3,8,896], index: 4, kind: output, shape index: {}]  }
   0x1   :  { %s3488_s17 = smov 0   ;;  %s3490_s18 = smov 0  }
   0x2   :  { %s3492_s19 = smov 0  }
   0x3 LB: > { %s23_s20 = sadd.s32 1, %s3418_s17  ;;  %s26_s21 = sadd.s32 1, %s3422_s18  ;;  %s3426_s19 = sphi %s3492_s19, %s14_s19   ;;  %s3422_s18 = sphi %s3490_s18, %s5053_s18   ;;  %s3418_s17 = sphi %s3488_s17, %s5052_s17   ;;  %s3414_s16 = sphi %s3486_s16, %s5051_s16   ;;  %s3410_s15 = sphi %s3484_s15, %s5050_s15  }
   0x4   : > { %p24_p0 = scmp.ge.s32.totalorder %s23_s20, 3  ;;  %p3127_p1 = scmp.ge.s32.totalorder %s3426_s19, 1 }
   0x5   : > { %p175_p2 = scmp.lt.s32.totalorder %s3426_s19, 7 }
   0x6   : > { %s5055_s20 = smov (%p24_p0, %s23_s20), 0  ;;  %s5057_s21 = smov (!%p24_p0, %s26_s21), %s3422_s18 }
   0x7   : > { %p176_p3 = pnand %p3127_p1, %p175_p2  ;;  %p28_p4 = scmp.ge.s32.totalorder %s5057_s21, 2 }
   0x8   : > { %p204_p5 = scmp.lt.s32.totalorder (!%p176_p3), %s3414_s16, 1  ;;  %s218_s22 = smul.u32 (!%p176_p3), 7, %s3410_s15 }
   0x9   : > { %s5059_s21 = smov (%p28_p4, %s5057_s21), 0  ;;  %179 = sbr.rel (%p176_p3) target bundleno = 557 (0x22d), region = 36 }
   0xa   : > { %s3429_s28 = smov (!%p176_p3), 96   ;;  %s3430_s29 = smov (!%p176_p3), 87  }
   0xb   : > { %s3431_s30 = smov (!%p176_p3), 72   ;;  %s3432_s5 = smov (!%p176_p3), 83  }
   0xc   : > { %s3433_s6 = smov (!%p176_p3), 94   ;;  %s3434_s7 = smov (!%p176_p3), 126  }
   0xd   : > { %s3435_s8 = smov (!%p176_p3), 115   ;;  %s3436_s9 = smov (!%p176_p3), 104  }
   0xe   : > { %vm4812_vm0 = vcmask 1040384   ;;  %vm222_vm1 = vsmask.f32 256  ;;  %vm4811_vm2 = vcmask 1041409   ;;  %v4863_v0 = vmov 0  ;;  %s5061_s16 = smov (!%p204_p5, %s3414_s16), 1 }
   0xf   : > { %vm3517_vm3 = vmand %vm4812_vm0, %vm222_vm1  ;;  %vm225_vm4 = vsmask.f32 1280  ;;  %vm4810_vm5 = vcmask 1042434   ;;  %vm229_vm6 = vsmask.f32 2304  ;;  %v4865_v1 = vmov 0 }
  0x10   : > { %v4864_v0 = vsel %vm3517_vm3, 4294967295, %v4863_v0  ;;  %vm3524_vm7 = vmand %vm4811_vm2, %vm225_vm4  ;;  %vm4813_vm9 = vcmask 1043459   ;;  %vm233_vm10 = vsmask.f32 3328  ;;  %s3169_s23 = smul.u32 28, %s5061_s16  ;;  %vm4820_vm13 = vcmask 1044484  }
  0x11   : > { %v4866_v1 = vsel %vm3524_vm7, 4294967295, %v4865_v1  ;;  %vm227_vm8 = vmor %vm3524_vm7, %vm3517_vm3  ;;  %vm237_vm14 = vsmask.f32 4352  ;;  %v4869_v3 = vmov 0  ;;  %vm4815_vm4 = vcmask 1045509   ;;  %s3437_s10 = smov 102  }
  0x12   : > { %vm3535_vm11 = vmand %vm4810_vm5, %vm229_vm6  ;;  %s207_s26 = scalar_lea.vmem %s4805_s0, %s3169_s23  ;;  %vm241_vm6 = vsmask.f32 5376  ;;  %vm4814_vm2 = vcmask 1046534   ;;  %vm245_vm0 = vsmask.f32 6400  ;;  %v264_v12 = vlaneseq  ;;  %s3438_s11 = smov 111  }
  0x13   : > { %vm231_vm12 = vmor %vm3535_vm11, %vm227_vm8  ;;  %s219_s27 = scalar_lea.vmem %s207_s26, %s218_s22  ;;  %v248_v6 = vld [vmem:[#allocation2] sm:$0x7f]  ;;  %v255_v7 = vld [vmem:[#allocation2 + $0x7] sm:$0x7f]  ;;  %v3428_v10 = vmov 1935823168  }
  0x14   : > { %vm3545_vm15 = vmand %vm4813_vm9, %vm233_vm10  ;;  %v220_v8 = vld [vmem:[%s219_s27] sm:$0x7f]  ;;  %v3129_v9 = vld [vmem:[%s219_s27 + $0x7] sm:$0x7f]  ;;  %v262_v11 = vunpack.c.l.s4 %v3428_v10  ;;  %v265_v17 = vshrl.u32 %v264_v12, 7  ;;  %s3439_s12 = smov 100  }
  0x15   : > { %v4870_v3 = vsel %vm3545_vm15, 4294967295, %v4869_v3  ;;  %vm235_vm1 = vmor %vm3545_vm15, %vm231_vm12  ;;  %s3440_s13 = smov 98   ;;  %s3441_s14 = smov 86   ;;  %vm4822_vm9 = vcmask 711680  }
  0x16   : > { %vm3552_vm5 = vmand %vm4820_vm13, %vm237_vm14  ;;  %v263_v16 = vunpack.c.0.s8 %v262_v11  ;;  %s3442_s22 = smov 95   ;;  %s3443_s23 = smov 84   ;;  %vm4823_vm13 = vcmask 908288  }
  0x17   : > { %vm239_vm8 = vmor %vm3552_vm5, %vm235_vm1  ;;  %s3444_s24 = smov 82   ;;  %s3445_s25 = smov 71  }
  0x18   : > { %vm3559_vm10 = vmand %vm4815_vm4, %vm241_vm6  ;;  %v3572_v18 = vsub.s32 %v263_v16, %v265_v17  ;;  %s3446_s26 = smov 70   ;;  %vm4821_vm6 = vcmask 785408   ;;  %s3447_s27 = smov 127  }
  0x19   : > { %vm243_vm12 = vmor %vm3559_vm10, %vm239_vm8  ;;  %p210_p6 = scmp.lt.s32.totalorder %s3410_s15, 2 }
  0x1a   : > { %vm3566_vm14 = vmand %vm4814_vm2, %vm245_vm0  ;;  %vm4817_vm2 = vcmask 588800  }
  0x1b   : > { %vm247_vm1 = vmor %vm3566_vm14, %vm243_vm12  ;;  %vm871_vm12 = vsmask.f32 7424  ;;  %s5063_s15 = smov (!%p210_p6, %s3410_s15), 2 }
  0x1c   : > { %v249_v14 = vsel %vm247_vm1, %v220_v8, %v248_v6  ;;  %v256_v15 = vsel %vm247_vm1, %v3129_v9, %v255_v7  ;;  %vm3774_vm0 = vmor %vm3552_vm5, %vm3517_vm3  ;;  %vm4838_vm5 = vcmask 1043456   ;;  %vm4818_vm1 = vcmask 678912  }
  0x1d   : > { %250 = vst [vmem:[#allocation2] sm:$0x7f] %v249_v14  ;;  %257 = vst [vmem:[#allocation2 + $0x7] sm:$0x7f] %v256_v15 }
  0x1e   : > { %vm3806_vm8 = vmor %vm3559_vm10, %vm3524_vm7  ;;  %vm4816_vm10 = vcmask 1047559  }
  0x1f   : > { %vm3860_vm4 = vmand %vm4816_vm10, %vm871_vm12  ;;  %vm4819_vm10 = vcmask 769024  }
  0x20   : > { %vm3888_vm12 = vmor %vm3860_vm4, %vm3545_vm15 }
  0x21   : > { %vm3910_vm4 = vmor %vm3566_vm14, %vm3535_vm11  ;;  %vm4829_vm14 = vcmask 1031168  }
  0x24   : > { %v1892_v19 = vld [vmem:[#allocation2 + $0x2] sm:$0xff] }
  0x25   : > { %v3574_v20 = vld [vmem:[#allocation2 + $0x1] sm:$0xff]  ;;  %v1901_v21 = vrot.slane %v1892_v19, %v3572_v18  ;;  %v2258_v23 = vcombine.low %v1892_v19, %v1892_v19  ;;  %v1894_v32 = vcombine.high %v1892_v19, %v1892_v19 }
  0x26   : > { %v3579_v22 = vrot.slane %v3574_v20, %v3572_v18  ;;  %v1716_v33 = vcombine.high %v3574_v20, %v3574_v20  ;;  %v423_v39 = vld [vmem:[#allocation2] sm:$0xff]  ;;  %v1352_v58 = vcombine.low %v3574_v20, %v3574_v20 }
  0x27   : > { %v3582_v24 = vrot.slane %v1901_v21, %v3572_v18  ;;  %v1909_v25 = vcombine.low %v1901_v21, %v1901_v21  ;;  %v2265_v28 = vrot.slane %v2258_v23, %v3572_v18  ;;  %v2455_v31 = vcombine.high %v1901_v21, %v1901_v21 }
  0x28   : > { %v3586_v26 = vrot.slane %v3579_v22, %v3572_v18  ;;  %v1731_v29 = vcombine.high %v3579_v22, %v3579_v22  ;;  %v3615_v36 = vrot.slane %v1894_v32, %v3572_v18  ;;  %v3622_v38 = vrot.slane %v1716_v33, %v3572_v18 }
  0x29   : > { %1941 = vrot.lane.b32.xlu1 %v3582_v24, %s3429_s28  ;;  %v3593_v27 = vrot.slane %v1909_v25, %v3572_v18  ;;  %v2288_v30 = vrot.slane %v2265_v28, %v3572_v18  ;;  %v3609_v34 = vrot.slane %v2455_v31, %v3572_v18  ;;  %v2091_v37 = vcombine.high %v2265_v28, %v2265_v28 }
  0x2a   : > { %1761 = vrot.lane.b32.xlu0 %v3586_v26, %s3430_s29  ;;  %v3612_v35 = vrot.slane %v1731_v29, %v3572_v18  ;;  %v1910_v40 = vcombine.low %v3615_v36, %v3615_v36  ;;  %v432_v41 = vrot.slane %v423_v39, %v3572_v18  ;;  %v3633_v43 = vrot.slane %v3622_v38, %v3572_v18 }
  0x2b   : > { %v2106_v42 = vrot.slane %v2091_v37, %v3572_v18  ;;  %v2273_v44 = vcombine.low %v2265_v28, %v2265_v28  ;;  %v613_v45 = vcombine.low %v423_v39, %v423_v39  ;;  %v3647_v49 = vrot.slane %v3615_v36, %v3572_v18 }
  0x2c   : > { %v3639_v46 = vrot.slane %v1910_v40, %v3572_v18  ;;  %v440_v48 = vcombine.low %v432_v41, %v432_v41  ;;  %v3652_v52 = vrot.slane %v432_v41, %v3572_v18  ;;  %v1007_v59 = vcombine.high %v432_v41, %v432_v41 }
  0x2d   : > { %1939 = vrot.lane.b32.xlu1 %v3593_v27, %s3429_s28  ;;  %v2281_v47 = vrot.slane %v2273_v44, %v3572_v18  ;;  %v620_v51 = vrot.slane %v613_v45, %v3572_v18  ;;  %v1185_v60 = vcombine.low %v3579_v22, %v3579_v22  ;;  %v1359_v61 = vrot.slane %v1352_v58, %v3572_v18 }
  0x2e   : > { %2485 = vrot.lane.b32.xlu0 %v3582_v24, %s3431_s30  ;;  %v448_v50 = vrot.slane %v440_v48, %v3572_v18  ;;  %v3674_v62 = vrot.slane %v1007_v59, %v3572_v18  ;;  %v425_v6 = vcombine.high %v423_v39, %v423_v39  ;;  %v1186_v16 = vcombine.low %v3622_v38, %v3622_v38 }
  0x2f   : > { %v636_v53 = vrot.slane %v620_v51, %v3572_v18  ;;  %v628_v54 = vcombine.high %v620_v51, %v620_v51  ;;  %v816_v55 = vcombine.low %v620_v51, %v620_v51  ;;  %v1193_v63 = vrot.slane %v1185_v60, %v3572_v18 }
  0x30   : > { %v1375_v7 = vrot.slane %v1359_v61, %v3572_v18  ;;  %v1367_v8 = vcombine.high %v1359_v61, %v1359_v61  ;;  %v1549_v9 = vcombine.low %v1359_v61, %v1359_v61  ;;  %v3682_v10 = vrot.slane %v425_v6, %v3572_v18 }
  0x31   : > { %2305 = vrot.lane.b32.xlu1 %v2288_v30, %s3432_s5  ;;  %v643_v56 = vrot.slane %v628_v54, %v3572_v18  ;;  %v824_v57 = vrot.slane %v816_v55, %v3572_v18  ;;  %v1207_v19 = vrot.slane %v1186_v16, %v3572_v18  ;;  %v1732_v20 = vcombine.high %v3622_v38, %v3622_v38 }
  0x32   : > { %2125 = vrot.lane.b32.xlu0 %v3582_v24, %s3433_s6  ;;  %v1382_v11 = vrot.slane %v1367_v8, %v3572_v18  ;;  %v1557_v12 = vrot.slane %v1549_v9, %v3572_v18  ;;  %v441_v14 = vcombine.low %v3682_v10, %v3682_v10  ;;  %v3703_v17 = vrot.slane %v3682_v10, %v3572_v18 }
  0x33   : > { %v1760_v21 = vrot.slane %v1732_v20, %v3572_v18  ;;  %v3716_v22 = vshll.u32 %v3586_v26, 16  ;;  %v3719_v23 = vshll.u32 %v3612_v35, 16  ;;  %v2023_v25 = vshll.u32 %v3582_v24, 16 }
  0x34   : > { %v462_v15 = vrot.slane %v441_v14, %v3572_v18  ;;  %v2456_v28 = vcombine.high %v3615_v36, %v3615_v36  ;;  %v2027_v29 = vshll.u32 %v3609_v34, 16  ;;  %v2031_v44 = vshll.u32 %v3647_v49, 16 }
  0x35   : > { %2487 = vrot.lane.b32.xlu1 %v3609_v34, %s3431_s30  ;;  %v2025_v31 = vrot.slane %v2023_v25, 7  ;;  %v2207_v36 = vrot.slane %v2023_v25, 6  ;;  %v2389_v38 = vrot.slane %v2023_v25, 5  ;;  %v3743_v48 = vshll.u32 %v1760_v21, 16 }
  0x36   : > { %1763 = vrot.lane.b32.xlu0 %v3612_v35, %s3430_s29  ;;  %v2484_v32 = vrot.slane %v2456_v28, %v3572_v18  ;;  %v2029_v33 = vrot.slane %v2027_v29, 7  ;;  %v2211_v37 = vrot.slane %v2027_v29, 6  ;;  %v2393_v41 = vrot.slane %v2027_v29, 5 }
  0x37   : > { %v2215_v54 = vrot.slane %v2031_v44, 6  ;;  %v2397_v55 = vrot.slane %v2031_v44, 5  ;;  %v559_v8 = vshll.u32 %v3674_v62, 16  ;;  %v4877_v9 = vmov 0 }
  0x38   : > { %v3248_v39 = vpack.i.bf16 %v2029_v33, %v2025_v31  ;;  %v3253_v40 = vpack.i.bf16 %v2211_v37, %v2207_v36  ;;  %v2035_v45 = vshll.u32 %v2484_v32, 16  ;;  %v4878_v9 = vsel %vm3774_vm0, 4294967295, %v4877_v9 }
  0x39   : > { %2307 = vrot.lane.b32.xlu1 %v3593_v27, %s3432_s5  ;;  %v561_v14 = vrot.slane %v559_v8, 7  ;;  %v940_v20 = vrot.slane %v559_v8, 5  ;;  %v1483_v28 = vrot.slane %v3716_v22, 6 }
  0x3a   : > { %2121 = vrot.lane.b32.xlu0 %v2288_v30, %s3433_s6  ;;  %v3730_v30 = vpack.i.bf16 %v3719_v23, %v3716_v22  ;;  %v2037_v51 = vrot.slane %v2035_v45, 7  ;;  %v2401_v58 = vrot.slane %v2035_v45, 5  ;;  %v3288_v61 = vpack.i.bf16 %v2035_v45, %v2031_v44 }
  0x3c   : > { %v3283_v60 = vpack.i.bf16 %v2401_v58, %v2397_v55 }
  0x3d   : > { %2123 = vrot.lane.b32.xlu1 %v2106_v42, %s3433_s6  ;;  %v3263_v42 = vpack.i.bf16 %v2027_v29, %v2023_v25  ;;  %v1305_v25 = vrot.slane %v3719_v23, 7  ;;  %v1487_v29 = vrot.slane %v3719_v23, 6 }
  0x3e   : > { %1765 = vrot.lane.b32.xlu0 %v3633_v43, %s3430_s29 }
  0x41   : > { %1943 = vrot.lane.b32.xlu1 %v3639_v46, %s3429_s28 }
  0x42   : > { %2303 = vrot.lane.b32.xlu0 %v2281_v47, %s3432_s5  ;;  %v3741_v47 = vshll.u32 %v3633_v43, 16 }
  0x45   : > { %470 = vrot.lane.b32.xlu1 %v448_v50, %s3434_s7 }
  0x46   : > { %2489 = vrot.lane.b32.xlu0 %v3647_v49, %s3431_s30 }
  0x49   : > { %658 = vrot.lane.b32.xlu1 %v636_v53, %s3435_s8 }
  0x4a   : > { %472 = vrot.lane.b32.xlu0 %v3652_v52, %s3434_s7 }
  0x4d   : > { %846 = vrot.lane.b32.xlu1 %v824_v57, %s3436_s9  ;;  %v2219_v57 = vrot.slane %v2035_v45, 6 }
  0x4e   : > { %660 = vrot.lane.b32.xlu0 %v643_v56, %s3435_s8 }
  0x4f   : > { %v3278_v59 = vpack.i.bf16 %v2219_v57, %v2215_v54 }
  0x51   : > { %1037 = vrot.lane.b32.xlu1 %v3652_v52, %s3437_s10 }
  0x52   : > { %848 = vrot.lane.b32.xlu0 %v636_v53, %s3436_s9  ;;  %v3747_v53 = vpack.i.bf16 %v3743_v48, %v3741_v47 }
  0x55   : > { %1215 = vrot.lane.b32.xlu1 %v1193_v63, %s3438_s11 }
  0x56   : > { %1039 = vrot.lane.b32.xlu0 %v3674_v62, %s3437_s10 }
  0x59   : > { %1397 = vrot.lane.b32.xlu1 %v1375_v7, %s3439_s12 }
  0x5a   : > { %1217 = vrot.lane.b32.xlu0 %v3586_v26, %s3438_s11 }
  0x5d   : > { %1579 = vrot.lane.b32.xlu1 %v1557_v12, %s3440_s13  ;;  %v310_v12 = vld [vmem:[#allocation3] sm:$0x11] }
  0x5e   : > { %1399 = vrot.lane.b32.xlu0 %v1382_v11, %s3439_s12 }
  0x61   : > { %474 = vrot.lane.b32.xlu1 %v462_v15, %s3434_s7  ;;  %v749_v15 = vrot.slane %v559_v8, 6 }
  0x62   : > { %1581 = vrot.lane.b32.xlu0 %v1375_v7, %s3440_s13 }
  0x65   : > { %850 = vrot.lane.b32.xlu1 %v448_v50, %s3436_s9  ;;  %v2033_v50 = vrot.slane %v2031_v44, 7  ;;  %v1963_v44 = vld [vmem:[#allocation3 + $0x38] sm:$0x22] }
  0x66   : > { %662 = vrot.lane.b32.xlu0 %v3652_v52, %s3435_s8 }
  0x67   : > { %v3273_v56 = vpack.i.bf16 %v2037_v51, %v2033_v50 }
  0x69   : > { %1219 = vrot.lane.b32.xlu1 %v1207_v19, %s3438_s11 }
  0x6a   : > { %1041 = vrot.lane.b32.xlu0 %v3703_v17, %s3437_s10 }
  0x6d   : > { %1583 = vrot.lane.b32.xlu1 %v1193_v63, %s3440_s13  ;;  %v258_v63 = vld [vmem:[#allocation2] sm:$0x7f] }
  0x6e   : > { %1401 = vrot.lane.b32.xlu0 %v3586_v26, %s3439_s12  ;;  %v3765_v7 = vrot.slane %v258_v63, %v3572_v18 }
  0x71   : > { %1945 = vrot.lane.b32.xlu1 %v3647_v49, %s3429_s28  ;;  %s3448_s28 = smov 116  }
  0x72   : > { %1767 = vrot.lane.b32.xlu0 %v1760_v21, %s3430_s29  ;;  %v1301_v21 = vrot.slane %v3716_v22, 7  ;;  %s3449_s29 = smov 114  }
  0x75   : > { %2309 = vrot.lane.b32.xlu1 %v3582_v24, %s3432_s5  ;;  %s3451_s5 = smov 112  }
  0x76   : > { %2127 = vrot.lane.b32.xlu0 %v3609_v34, %s3433_s6  ;;  %v3258_v34 = vpack.i.bf16 %v2393_v41, %v2389_v38  ;;  %v3797_v38 = vpack.i.bf16 %v1305_v25, %v1301_v21  ;;  %v260_v41 = vcombine.high %v258_v63, %v258_v63  ;;  %s3452_s6 = smov 110  }
  0x78   : > { %v274_v5 = vrot.slane %v260_v41, %v3572_v18 }
  0x79   : > { %3244 = vrot.lane.b32.xlu1 %v3730_v30, %s3441_s14 }
  0x7a   : > { %2491 = vrot.lane.b32.xlu0 %v2484_v32, %s3431_s30  ;;  %s3450_s30 = smov 103  }
  0x7d   : > { %3254 = vrot.lane.b32.xlu1 %v3253_v40, %s3443_s23 }
  0x7e   : > { %3249 = vrot.lane.b32.xlu0 %v3248_v39, %s3442_s22  ;;  %v1665_v39 = vrot.slane %v3716_v22, 5  ;;  %v3323_v22 = vpack.i.bf16 %v1487_v29, %v1483_v28 }
  0x81   : > { %3264 = vrot.lane.b32.xlu1 %v3263_v42, %s3445_s25  ;;  %v4879_v42 = vmov 0 }
  0x82   : > { %3259 = vrot.lane.b32.xlu0 %v3258_v34, %s3444_s24  ;;  %v4880_v42 = vsel %vm3806_vm8, 4294967295, %v4879_v42  ;;  %v3814_v34 = vshll.u32 %v3703_v17, 16 }
  0x84   : > { %v565_v57 = vrot.slane %v3814_v34, 7 }
  0x85   : > { %2665 = vrot.lane.b32.xlu1 %v3582_v24, %s3446_s26  ;;  %v555_v24 = vshll.u32 %v3652_v52, 16 }
  0x86   : > { %2663 = vrot.lane.b32.xlu0 %v3593_v27, %s3446_s26  ;;  %v1008_v27 = vcombine.high %v3682_v10, %v3682_v10 }
  0x87   : > { %v557_v10 = vrot.slane %v555_v24, 7  ;;  %v745_v11 = vrot.slane %v555_v24, 6  ;;  %v936_v16 = vrot.slane %v555_v24, 5 }
  0x88   : > { %v1036_v6 = vrot.slane %v1008_v27, %v3572_v18 }
  0x89   : > { %3274 = vrot.lane.b32.xlu1 %v3273_v56, %s3442_s22  ;;  %v3298_v31 = vpack.i.bf16 %v561_v14, %v557_v10  ;;  %v3303_v36 = vpack.i.bf16 %v749_v15, %v745_v11  ;;  %v3308_v37 = vpack.i.bf16 %v940_v20, %v936_v16  ;;  %v276_v56 = vcombine.high %v274_v5, %v274_v5  ;;  %v313_v10 = vld [vmem:[#allocation3 + $0x8] sm:$0x11]  ;;  %v2509_v11 = vld [vmem:[#allocation3 + $0x54] sm:$0x11]  ;;  %s3170_s22 = smul.u32 7, %s5063_s15 }
  0x8a   : > { %3269 = vrot.lane.b32.xlu0 %v3747_v53, %s3441_s14  ;;  %v3833_v55 = vshll.u32 %v1036_v6, 16 }
  0x8b   : > { %v304_v63 = vrot.slane %v276_v56, %v3572_v18  ;;  %v4885_v56 = vmov 0 }
  0x8c   : > { %v3333_v25 = vpack.i.bf16 %v3833_v55, %v3814_v34  ;;  %v4886_v56 = vsel %vm3910_vm4, 4294967295, %v4885_v56 }
  0x8d   : > { %3284 = vrot.lane.b32.xlu1 %v3283_v60, %s3444_s24  ;;  %v1785_v60 = vld [vmem:[#allocation3 + $0x38] sm:$0x11] }
  0x8e   : > { %3279 = vrot.lane.b32.xlu0 %v3278_v59, %s3443_s23  ;;  %s3171_s23 = smul.u32 21, %s5061_s16 }
  0x90   : > { %s214_s24 = sadd.s32 %s3171_s23, %s3170_s22 }
  0x91   : > { %2667 = vrot.lane.b32.xlu1 %v3639_v46, %s3446_s26  ;;  %v283_v46 = vrot.slane %v3765_v7, %v3572_v18 }
  0x92   : > { %3289 = vrot.lane.b32.xlu0 %v3288_v61, %s3445_s25  ;;  %v319_v61 = vld [vmem:[#allocation3 + $0x18] sm:$0x1]  ;;  %s3128_s25 = sshll.u32 %s214_s24, 2 }
  0x95   : > { %664 = vrot.lane.b32.xlu1 %v3674_v62, %s3435_s8  ;;  %v311_v62 = vsel %vm3774_vm0, %v283_v46, %v310_v12  ;;  %v316_v12 = vld [vmem:[#allocation3 + $0x10] sm:$0x11]  ;;  %s3454_s8 = smov 88  }
  0x96   : > { %476 = vrot.lane.b32.xlu0 %v3703_v17, %s3434_s7  ;;  %312 = vst [vmem:[#allocation3] sm:$0x11] %v311_v62  ;;  %v320_v62 = vsel %vm3517_vm3, %v304_v63, %v319_v61  ;;  %s3453_s7 = smov 99   ;;  %v2148_v61 = vld [vmem:[#allocation3 + $0x40] sm:$0x44] }
  0x97   : > { %321 = vst [vmem:[#allocation3 + $0x18] sm:$0x1] %v320_v62  ;;  %v1966_v62 = vld [vmem:[#allocation3 + $0x40] sm:$0x22] }
  0x99   : > { %1043 = vrot.lane.b32.xlu1 %v1036_v6, %s3437_s10 }
  0x9a   : > { %852 = vrot.lane.b32.xlu0 %v3652_v52, %s3436_s9  ;;  %v3293_v52 = vpack.i.bf16 %v559_v8, %v555_v24  ;;  %v297_v24 = vrot.slane %v274_v5, %v3572_v18 }
  0x9b   : > { %v3783_v4 = vpop.permute.xlu1 %1941 }
  0x9c   : > { %v3785_v19 = vpop.permute.xlu0 %1761 }
  0x9d   : > { %1403 = vrot.lane.b32.xlu1 %v3612_v35, %s3439_s12  ;;  %v1669_v35 = vrot.slane %v3719_v23, 5  ;;  %v1769_v6 = vrot.slane %v3785_v19, 4 }
  0x9e   : > { %1221 = vrot.lane.b32.xlu0 %v3633_v43, %s3438_s11  ;;  %v1948_v43 = vrot.slane %v3783_v4, 4 }
  0x9f   : > { %v1940_v32 = vpop.permute.xlu1 %1939  ;;  %v3829_v54 = vpack.i.bf16 %v1669_v35, %v1665_v39  ;;  %v569_v39 = vrot.slane %v3833_v55, 7 }
  0xa0   : > { %v3795_v33 = vpop.permute.xlu0 %2485  ;;  %v1947_v40 = vrot.slane %v1940_v32, 4 }
  0xa1   : > { %3294 = vrot.lane.b32.xlu1 %v3293_v52, %s3447_s27  ;;  %v753_v52 = vrot.slane %v3814_v34, 6 }
  0xa2   : > { %1585 = vrot.lane.b32.xlu0 %v3586_v26, %s3440_s13  ;;  %v1951_v23 = vsel %vm4838_vm5, %v1947_v40, %v1948_v43  ;;  %v275_v26 = vcombine.high %v3765_v7, %v3765_v7  ;;  %v2493_v7 = vrot.slane %v3795_v33, 4  ;;  %v757_v40 = vrot.slane %v3833_v55, 6 }
  0xa3   : > { %v1953_v45 = vsel %vm4821_vm6, %v1940_v32, %v1951_v23  ;;  %v3821_v50 = vpop.permute.xlu1 %2305  ;;  %v944_v23 = vrot.slane %v3814_v34, 5 }
  0xa4   : > { %v3823_v51 = vpop.permute.xlu0 %2125  ;;  %v1964_v17 = vsel %vm3806_vm8, %v1953_v45, %v1963_v44  ;;  %v290_v27 = vrot.slane %v275_v26, %v3572_v18 }
  0xa5   : > { %1965 = vst [vmem:[#allocation3 + $0x38] sm:$0x22] %v1964_v17  ;;  %3304 = vrot.lane.b32.xlu1 %v3303_v36, %s3449_s29  ;;  %v2131_v35 = vrot.slane %v3823_v51, 4 }
  0xa6   : > { %3299 = vrot.lane.b32.xlu0 %v3298_v31, %s3448_s28  ;;  %v314_v18 = vsel %vm3774_vm0, %v290_v27, %v313_v10  ;;  %v2312_v31 = vrot.slane %v3821_v50, 4  ;;  %v3343_v27 = vpack.i.bf16 %v757_v40, %v753_v52 }
  0xa7   : > { %v3836_v58 = vpop.permute.xlu1 %2487  ;;  %315 = vst [vmem:[#allocation3 + $0x8] sm:$0x11] %v314_v18 }
  0xa8   : > { %v3838_v59 = vpop.permute.xlu0 %1763  ;;  %v2494_v8 = vrot.slane %v3836_v58, 4 }
  0xa9   : > { %v1770_v46 = vrot.slane %v3838_v59, 4  ;;  %3314 = vrot.lane.b32.xlu1 %v3730_v30, %s3451_s5  ;;  %v317_v30 = vsel %vm3774_vm0, %v297_v24, %v316_v12  ;;  %v948_v24 = vrot.slane %v3833_v55, 5 }
  0xaa   : > { %3309 = vrot.lane.b32.xlu0 %v3308_v37, %s3450_s30  ;;  %v2497_v14 = vsel %vm4838_vm5, %v2493_v7, %v2494_v8  ;;  %318 = vst [vmem:[#allocation3 + $0x10] sm:$0x11] %v317_v30 }
  0xab   : > { %v1773_v15 = vsel %vm4838_vm5, %v1769_v6, %v1770_v46  ;;  %v3866_v20 = vpop.permute.xlu1 %2307  ;;  %v2499_v29 = vsel %vm4817_vm2, %v3795_v33, %v2497_v14  ;;  %v2330_v33 = vld [vmem:[#allocation3 + $0x40] sm:$0x88]  ;;  %v2327_v14 = vld [vmem:[#allocation3 + $0x38] sm:$0x88] }
  0xac   : > { %v2122_v21 = vpop.permute.xlu0 %2121  ;;  %v1775_v28 = vsel %vm4822_vm9, %v3785_v19, %v1773_v15  ;;  %v2313_v32 = vrot.slane %v3866_v20, 4  ;;  %v2510_v37 = vsel %vm3774_vm0, %v2499_v29, %v2509_v11  ;;  %v4883_v19 = vmov 0 }
  0xad   : > { %v1786_v36 = vsel %vm3774_vm0, %v1775_v28, %v1785_v60  ;;  %3324 = vrot.lane.b32.xlu1 %v3323_v22, %s3453_s7  ;;  %v4884_v19 = vsel %vm3888_vm12, 4294967295, %v4883_v19  ;;  %2511 = vst [vmem:[#allocation3 + $0x54] sm:$0x11] %v2510_v37  ;;  %v2129_v5 = vrot.slane %v2122_v21, 4  ;;  %v2145_v60 = vld [vmem:[#allocation3 + $0x38] sm:$0x44]  ;;  %v3348_v15 = vpack.i.bf16 %v948_v24, %v944_v23 }
  0xae   : > { %3319 = vrot.lane.b32.xlu0 %v3797_v38, %s3452_s6  ;;  %1787 = vst [vmem:[#allocation3 + $0x38] sm:$0x11] %v1786_v36  ;;  %v2318_v38 = vsel %vm4838_vm5, %v2312_v31, %v2313_v32  ;;  %v1673_v23 = vrot.slane %v3741_v47, 5  ;;  %v683_v24 = vld [vmem:[#allocation3] sm:$0x44] }
  0xaf   : > { %v2124_v41 = vpop.permute.xlu1 %2123  ;;  %v2319_v22 = vsel %vm4818_vm1, %v3821_v50, %v2318_v38  ;;  %v3338_v50 = vpack.i.bf16 %v569_v39, %v565_v57 }
  0xb0   : > { %v3898_v44 = vpop.permute.xlu0 %1765  ;;  %v2130_v45 = vrot.slane %v2124_v41, 4  ;;  %v2331_v17 = vsel %vm3888_vm12, %v2319_v22, %v2330_v33 }
  0xb1   : > { %v1771_v26 = vrot.slane %v3898_v44, 4  ;;  %3334 = vrot.lane.b32.xlu1 %v3333_v25, %s3447_s27  ;;  %2332 = vst [vmem:[#allocation3 + $0x40] sm:$0x88] %v2331_v17 }
  0xb2   : > { %3329 = vrot.lane.b32.xlu0 %v3829_v54, %s3454_s8  ;;  %v2133_v13 = vsel %vm4838_vm5, %v2129_v5, %v2130_v45  ;;  %v2136_v63 = vsel %vm4838_vm5, %v2130_v45, %v2131_v35  ;;  %v1788_v54 = vld [vmem:[#allocation3 + $0x40] sm:$0x11] }
  0xb3   : > { %v1776_v6 = vsel %vm4838_vm5, %v1770_v46, %v1771_v26  ;;  %v2135_v7 = vsel %vm4819_vm10, %v2122_v21, %v2133_v13  ;;  %v2137_v10 = vsel %vm4819_vm10, %v2124_v41, %v2136_v63  ;;  %v3929_v34 = vpop.permute.xlu1 %1943  ;;  %vm4824_vm10 = vcmask 834560  }
  0xb4   : > { %v2304_v57 = vpop.permute.xlu0 %2303  ;;  %v1777_v55 = vsel %vm4822_vm9, %v3838_v59, %v1776_v6  ;;  %v2146_v11 = vsel %vm3910_vm4, %v2135_v7, %v2145_v60  ;;  %v2149_v12 = vsel %vm3910_vm4, %v2137_v10, %v2148_v61  ;;  %v1949_v18 = vrot.slane %v3929_v34, 4 }
  0xb5   : > { %v2311_v46 = vrot.slane %v2304_v57, 4  ;;  %2147 = vst [vmem:[#allocation3 + $0x38] sm:$0x44] %v2146_v11  ;;  %2150 = vst [vmem:[#allocation3 + $0x40] sm:$0x44] %v2149_v12  ;;  %3344 = vrot.lane.b32.xlu1 %v3343_v27, %s3449_s29  ;;  %v1789_v59 = vsel %vm3774_vm0, %v1777_v55, %v1788_v54  ;;  %v1495_v27 = vrot.slane %v3743_v48, 6 }
  0xb6   : > { %3339 = vrot.lane.b32.xlu0 %v3338_v50, %s3448_s28  ;;  %v1954_v16 = vsel %vm4838_vm5, %v1948_v43, %v1949_v18  ;;  %1790 = vst [vmem:[#allocation3 + $0x40] sm:$0x11] %v1789_v59  ;;  %v1491_v43 = vrot.slane %v3741_v47, 6  ;;  %v874_v55 = vld [vmem:[#allocation3] sm:$0x88]  ;;  %v4841_v12 = vmov 0   ;;  %s216_s28 = scalar_lea.vmem %s4809_s4, %s3128_s25 }
  0xb7   : > { %v2315_v30 = vsel %vm4838_vm5, %v2311_v46, %v2312_v31  ;;  %v1955_v21 = vsel %vm4821_vm6, %v3783_v4, %v1954_v16  ;;  %v471_v28 = vpop.permute.xlu1 %470  ;;  %v1309_v4 = vrot.slane %v3741_v47, 7  ;;  %v2512_v31 = vld [vmem:[#allocation3 + $0x5c] sm:$0x11]  ;;  %v1313_v47 = vrot.slane %v3743_v48, 7  ;;  %2842 = vmatprep.mubr.bf16.mxu0 %v4841_v12  ;;  %2883 = vmatprep.mubr.bf16.mxu1 %v4841_v12 }
  0xb8   : > { %v2317_v25 = vsel %vm4818_vm1, %v2304_v57, %v2315_v30  ;;  %v3951_v52 = vpop.permute.xlu0 %2489  ;;  %v1967_v29 = vsel %vm3806_vm8, %v1955_v21, %v1966_v62  ;;  %v478_v41 = vrot.slane %v471_v28, 4  ;;  %vm4827_vm1 = vcmask 850944   ;;  %3358 = vset.pattern.permute.xlu1 %v4841_v12  ;;  %3359 = vset.pattern.permute.xlu0 %v4841_v12  ;;  %v1061_v16 = vld [vmem:[#allocation3 + $0x1c] sm:$0x11] }
  0xb9   : > { %v2328_v36 = vsel %vm3888_vm12, %v2317_v25, %v2327_v14  ;;  %v2495_v37 = vrot.slane %v3951_v52, 4  ;;  %1968 = vst [vmem:[#allocation3 + $0x40] sm:$0x22] %v1967_v29  ;;  %3354 = vrot.lane.b32.xlu1 %v3747_v53, %s3451_s5  ;;  %v1677_v57 = vrot.slane %v3743_v48, 5  ;;  %vm4826_vm6 = vcmask 818176  }
  0xba   : > { %2329 = vst [vmem:[#allocation3 + $0x38] sm:$0x88] %v2328_v36  ;;  %3349 = vrot.lane.b32.xlu0 %v3348_v15, %s3450_s30  ;;  %vm4825_vm9 = vcmask 801792  }
  0xbb   : > { %v2500_v33 = vsel %vm4838_vm5, %v2494_v8, %v2495_v37  ;;  %v659_v40 = vpop.permute.xlu1 %658  ;;  %v495_v8 = vld [vmem:[#allocation3] sm:$0x22] }
  0xbc   : > { %v3968_v39 = vpop.permute.xlu0 %472  ;;  %v2501_v38 = vsel %vm4817_vm2, %v3836_v58, %v2500_v33  ;;  %v666_v60 = vrot.slane %v659_v40, 4  ;;  %vm4828_vm2 = vcmask 941056  }
  0xbd   : > { %v479_v53 = vrot.slane %v3968_v39, 4  ;;  %v2513_v22 = vsel %vm3774_vm0, %v2501_v38, %v2512_v31  ;;  %1500 = vrot.lane.b32.xlu1 %v1491_v43, %s3453_s7  ;;  %v1239_v43 = vld [vmem:[#allocation3 + $0x1c] sm:$0x22] }
  0xbe   : > { %1318 = vrot.lane.b32.xlu0 %v1309_v4, %s3452_s6  ;;  %2514 = vst [vmem:[#allocation3 + $0x5c] sm:$0x11] %v2513_v22 }
  0xbf   : > { %v482_v5 = vsel %vm4838_vm5, %v478_v41, %v479_v53  ;;  %v847_v45 = vpop.permute.xlu1 %846 }
  0xc0   : > { %v3981_v58 = vpop.permute.xlu0 %660  ;;  %v484_v17 = vsel %vm4829_vm14, %v471_v28, %v482_v5  ;;  %v854_v7 = vrot.slane %v847_v45, 4 }
  0xc1   : > { %v667_v61 = vrot.slane %v3981_v58, 4  ;;  %v496_v50 = vsel %vm3806_vm8, %v484_v17, %v495_v8  ;;  %2669 = vrot.lane.b32.xlu1 %v3647_v49, %s3446_s26  ;;  %v1421_v8 = vld [vmem:[#allocation3 + $0x1c] sm:$0x44] }
  0xc2   : > { %1682 = vrot.lane.b32.xlu0 %v1673_v23, %s3454_s8  ;;  %497 = vst [vmem:[#allocation3] sm:$0x22] %v496_v50  ;;  %v2973_v50 = vld [vmem:[%s4807_s2] sm:$0xff] }
  0xc3   : > { %v670_v13 = vsel %vm4838_vm5, %v666_v60, %v667_v61  ;;  %v1038_v6 = vpop.permute.xlu1 %1037 }
  0xc4   : > { %v3995_v63 = vpop.permute.xlu0 %848  ;;  %v672_v54 = vsel %vm4828_vm2, %v659_v40, %v670_v13  ;;  %v1045_v48 = vrot.slane %v1038_v6, 4 }
  0xc5   : > { %v855_v10 = vrot.slane %v3995_v63, 4  ;;  %v684_v49 = vsel %vm3910_vm4, %v672_v54, %v683_v24  ;;  %1502 = vrot.lane.b32.xlu1 %v1495_v27, %s3453_s7  ;;  %v498_v54 = vld [vmem:[#allocation3 + $0x8] sm:$0x22] }
  0xc6   : > { %1320 = vrot.lane.b32.xlu0 %v1313_v47, %s3452_s6  ;;  %685 = vst [vmem:[#allocation3] sm:$0x44] %v684_v49  ;;  %v2986_v47 = vld [vmem:[%s4808_s3] sm:$0xff] }
  0xc7   : > { %v858_v11 = vsel %vm4838_vm5, %v854_v7, %v855_v10  ;;  %v1216_v62 = vpop.permute.xlu1 %1215  ;;  %v1603_v7 = vld [vmem:[#allocation3 + $0x1c] sm:$0x88] }
  0xc8   : > { %v4009_v46 = vpop.permute.xlu0 %1039  ;;  %v860_v14 = vsel %vm4827_vm1, %v847_v45, %v858_v11  ;;  %v1223_v29 = vrot.slane %v1216_v62, 4 }
  0xc9   : > { %v1046_v15 = vrot.slane %v4009_v46, 4  ;;  %v875_v59 = vsel %vm3888_vm12, %v860_v14, %v874_v55  ;;  %2976 = vperm.xlu1 %3358, %v2973_v50  }
  0xca   : > { %1684 = vrot.lane.b32.xlu0 %v1677_v57, %s3454_s8  ;;  %876 = vst [vmem:[#allocation3] sm:$0x88] %v875_v59 }
  0xcb   : > { %v1049_v30 = vsel %vm4838_vm5, %v1045_v48, %v1046_v15  ;;  %v1398_v25 = vpop.permute.xlu1 %1397 }
  0xcc   : > { %v4021_v21 = vpop.permute.xlu0 %1217  ;;  %v1051_v28 = vsel %vm4824_vm10, %v1038_v6, %v1049_v30  ;;  %v1405_v41 = vrot.slane %v1398_v25, 4 }
  0xcd   : > { %v1224_v36 = vrot.slane %v4021_v21, 4  ;;  %v1062_v4 = vsel %vm3774_vm0, %v1051_v28, %v1061_v16 }
  0xce   : > { %1063 = vst [vmem:[#allocation3 + $0x1c] sm:$0x11] %v1062_v4  ;;  %2989 = vperm.xlu0 %3359, %v2986_v47  }
  0xcf   : > { %v1227_v31 = vsel %vm4838_vm5, %v1223_v29, %v1224_v36  ;;  %v1580_v40 = vpop.permute.xlu1 %1579 }
  0xd0   : > { %v4028_v33 = vpop.permute.xlu0 %1399  ;;  %v1229_v38 = vsel %vm4823_vm13, %v1216_v62, %v1227_v31  ;;  %v1587_v27 = vrot.slane %v1580_v40, 4 }
  0xd1   : > { %v1406_v22 = vrot.slane %v4028_v33, 4  ;;  %v1240_v23 = vsel %vm3806_vm8, %v1229_v38, %v1239_v43 }
  0xd2   : > { %1241 = vst [vmem:[#allocation3 + $0x1c] sm:$0x22] %v1240_v23  ;;  %v1242_v23 = vld [vmem:[#allocation3 + $0x24] sm:$0x22] }
  0xd3   : > { %v1409_v5 = vsel %vm4838_vm5, %v1405_v41, %v1406_v22  ;;  %v4039_v17 = vpop.permute.xlu1 %474  ;;  %v1064_v41 = vld [vmem:[#allocation3 + $0x24] sm:$0x11] }
  0xd4   : > { %v4037_v45 = vpop.permute.xlu0 %1581  ;;  %v1411_v60 = vsel %vm4826_vm6, %v1398_v25, %v1409_v5  ;;  %v480_v13 = vrot.slane %v4039_v17, 4  ;;  %v877_v25 = vld [vmem:[#allocation3 + $0x8] sm:$0x88] }
  0xd5   : > { %v1588_v24 = vrot.slane %v4037_v45, 4  ;;  %v1422_v6 = vsel %vm3910_vm4, %v1411_v60, %v1421_v8 }
  0xd6   : > { %1423 = vst [vmem:[#allocation3 + $0x1c] sm:$0x44] %v1422_v6  ;;  %v485_v57 = vsel %vm4838_vm5, %v479_v53, %v480_v13  ;;  %v686_v53 = vld [vmem:[#allocation3 + $0x8] sm:$0x44] }
  0xd7   : > { %v1591_v49 = vsel %vm4838_vm5, %v1587_v27, %v1588_v24  ;;  %v4060_v11 = vpop.permute.xlu1 %850  ;;  %v486_v62 = vsel %vm4829_vm14, %v3968_v39, %v485_v57  ;;  %v1424_v6 = vld [vmem:[#allocation3 + $0x24] sm:$0x44] }
  0xd8   : > { %v4058_v55 = vpop.permute.xlu0 %662  ;;  %v1593_v14 = vsel %vm4825_vm9, %v1580_v40, %v1591_v49  ;;  %v4850_v59 = vrot.slane %v4060_v11, 4  ;;  %v499_v16 = vsel %vm3806_vm8, %v486_v62, %v498_v54  ;;  %v1606_v54 = vld [vmem:[#allocation3 + $0x24] sm:$0x88] }
  0xd9   : > { %v668_v48 = vrot.slane %v4058_v55, 4  ;;  %v1604_v30 = vsel %vm3888_vm12, %v1593_v14, %v1603_v7  ;;  %500 = vst [vmem:[#allocation3 + $0x8] sm:$0x22] %v499_v16  ;;  %v1794_v14 = vld [vmem:[#allocation3 + $0x50] sm:$0x1] }
  0xda   : > { %1605 = vst [vmem:[#allocation3 + $0x1c] sm:$0x88] %v1604_v30  ;;  %v861_v28 = vsel %vm4838_vm5, %v855_v10, %v4850_v59  ;;  %v1972_v30 = vld [vmem:[#allocation3 + $0x50] sm:$0x2] }
  0xdb   : > { %v673_v39 = vsel %vm4838_vm5, %v667_v61, %v668_v48  ;;  %v4083_v4 = vpop.permute.xlu1 %1219  ;;  %v862_v31 = vsel %vm4827_vm1, %v3995_v63, %v861_v28 }
  0xdc   : > { %v4081_v29 = vpop.permute.xlu0 %1041  ;;  %v674_v43 = vsel %vm4828_vm2, %v3981_v58, %v673_v39  ;;  %v4846_v61 = vrot.slane %v4083_v4, 4  ;;  %v878_v10 = vsel %vm3888_vm12, %v862_v31, %v877_v25  ;;  %v1969_v39 = vld [vmem:[#allocation3 + $0x48] sm:$0x22] }
  0xdd   : > { %v4847_v40 = vrot.slane %v4081_v29, 4  ;;  %v687_v38 = vsel %vm3910_vm4, %v674_v43, %v686_v53  ;;  %879 = vst [vmem:[#allocation3 + $0x8] sm:$0x88] %v878_v10 }
  0xde   : > { %688 = vst [vmem:[#allocation3 + $0x8] sm:$0x44] %v687_v38  ;;  %v1230_v63 = vsel %vm4838_vm5, %v1224_v36, %v4846_v61 }
  0xdf   : > { %v1052_v58 = vsel %vm4838_vm5, %v1046_v15, %v4847_v40  ;;  %v4105_v5 = vpop.permute.xlu1 %1583  ;;  %v1231_v50 = vsel %vm4823_vm13, %v4021_v21, %v1230_v63  ;;  %vm408_vm13 = vsmask.f32 7954 }
  0xe0   : > { %v4103_v8 = vpop.permute.xlu0 %1401  ;;  %v1053_v60 = vsel %vm4824_vm10, %v4009_v46, %v1052_v58  ;;  %v4843_v27 = vrot.slane %v4105_v5, 4  ;;  %v1243_v36 = vsel %vm3806_vm8, %v1231_v50, %v1242_v23  ;;  %vm406_vm10 = vsmask.f32 7938  ;;  %v2154_v23 = vld [vmem:[#allocation3 + $0x50] sm:$0x4] }
  0xe1   : > { %v4844_v47 = vrot.slane %v4103_v8, 4  ;;  %v1065_v15 = vsel %vm3774_vm0, %v1053_v60, %v1064_v41  ;;  %1244 = vst [vmem:[#allocation3 + $0x24] sm:$0x22] %v1243_v36  ;;  %v2151_v41 = vld [vmem:[#allocation3 + $0x48] sm:$0x44] }
  0xe2   : > { %1066 = vst [vmem:[#allocation3 + $0x24] sm:$0x11] %v1065_v15  ;;  %v1594_v21 = vsel %vm4838_vm5, %v1588_v24, %v4843_v27  ;;  %v1791_v24 = vld [vmem:[#allocation3 + $0x48] sm:$0x11]  ;;  %v2333_v50 = vld [vmem:[#allocation3 + $0x48] sm:$0x88] }
  0xe3   : > { %v1412_v46 = vsel %vm4838_vm5, %v1406_v22, %v4844_v47  ;;  %v1946_v49 = vpop.permute.xlu1 %1945  ;;  %v1595_v62 = vsel %vm4825_vm9, %v4037_v45, %v1594_v21  ;;  %vm4887_vm9 = vcmask 711680   ;;  %v2336_v15 = vld [vmem:[#allocation3 + $0x50] sm:$0x8] }
  0xe4   : > { %v1768_v7 = vpop.permute.xlu0 %1767  ;;  %v1413_v57 = vsel %vm4826_vm6, %v4028_v33, %v1412_v46  ;;  %v1950_v53 = vrot.slane %v1946_v49, 4  ;;  %v1607_v25 = vsel %vm3888_vm12, %v1595_v62, %v1606_v54  ;;  %vm4888_vm6 = vcmask 785408   ;;  %vm4889_vm1 = vmmov %vm4887_vm9 }
  0xe5   : > { %v1772_v16 = vrot.slane %v1768_v7, 4  ;;  %v1425_v22 = vsel %vm3910_vm4, %v1413_v57, %v1424_v6  ;;  %1608 = vst [vmem:[#allocation3 + $0x24] sm:$0x88] %v1607_v25  ;;  %vm4890_vm2 = vmmov %vm4888_vm6  ;;  %v4895_v6 = vmov 0  ;;  %v2515_v25 = vld [vmem:[#allocation3 + $0x64] sm:$0x11] }
  0xe6   : > { %1426 = vst [vmem:[#allocation3 + $0x24] sm:$0x44] %v1425_v22  ;;  %v1956_v28 = vsel %vm4838_vm5, %v1949_v18, %v1950_v53  ;;  %v1958_v43 = vsel %vm4888_vm6, %v1946_v49, %v1950_v53  ;;  %vm594_vm6 = vsmask.f32 7942 }
  0xe7   : > { %v1778_v33 = vsel %vm4838_vm5, %v1771_v26, %v1772_v16  ;;  %v1780_v45 = vsel %vm4887_vm9, %v1768_v7, %v1772_v16  ;;  %v1957_v10 = vsel %vm4890_vm2, %v3929_v34, %v1956_v28  ;;  %v1973_v26 = vsel %vm3524_vm7, %v1958_v43, %v1972_v30  ;;  %v2310_v63 = vpop.permute.xlu1 %2309 }
  0xe8   : > { %v1779_v31 = vsel %vm4889_vm1, %v3898_v44, %v1778_v33  ;;  %v1795_v38 = vsel %vm3517_vm3, %v1780_v45, %v1794_v14  ;;  %v2128_v58 = vpop.permute.xlu0 %2127  ;;  %vm4891_vm9 = vcmask 1044484   ;;  %v1970_v34 = vsel %vm3806_vm8, %v1957_v10, %v1969_v39  ;;  %1974 = vst [vmem:[#allocation3 + $0x50] sm:$0x2] %v1973_v26 }
  0xe9   : > { %vm4151_vm14 = vmand %vm4891_vm9, %vm408_vm13  ;;  %v1792_v44 = vsel %vm3774_vm0, %v1779_v31, %v1791_v24  ;;  %1796 = vst [vmem:[#allocation3 + $0x50] sm:$0x1] %v1795_v38  ;;  %v2132_v60 = vrot.slane %v2128_v58, 4  ;;  %v2314_v36 = vrot.slane %v2310_v63, 4  ;;  %vm4894_vm2 = vcmask 1040384  }
  0xea   : > { %1793 = vst [vmem:[#allocation3 + $0x48] sm:$0x11] %v1792_v44  ;;  %1971 = vst [vmem:[#allocation3 + $0x48] sm:$0x22] %v1970_v34  ;;  %vm4897_vm7 = vcmask 769024   ;;  %vm4898_vm8 = vcmask 678912  }
  0xeb   : > { %vm4161_vm13 = vmand %vm4894_vm2, %vm406_vm10  ;;  %v2138_v54 = vsel %vm4838_vm5, %v2131_v35, %v2132_v60  ;;  %v2140_v46 = vsel %vm4897_vm7, %v2128_v58, %v2132_v60  ;;  %v2320_v21 = vsel %vm4838_vm5, %v2313_v32, %v2314_v36  ;;  %v2322_v7 = vsel %vm4898_vm8, %v2310_v63, %v2314_v36  ;;  %v4181_v16 = vpop.permute.xlu1 %3244 }
  0xec   : > { %v4896_v6 = vsel %vm4161_vm13, 4294967295, %v4895_v6  ;;  %vm4899_vm10 = vmmov %vm4897_vm7  ;;  %v2155_v57 = vsel %vm3535_vm11, %v2140_v46, %v2154_v23  ;;  %v2337_v35 = vsel %vm3545_vm15, %v2322_v7, %v2336_v15  ;;  %v2492_v14 = vpop.permute.xlu0 %2491  ;;  %v3247_v22 = vunpack.i.h.bf16 %v4181_v16 }
  0xed   : > { %v2139_v49 = vsel %vm4899_vm10, %v3823_v51, %v2138_v54  ;;  %vm4900_vm2 = vmmov %vm4898_vm8  ;;  %2156 = vst [vmem:[#allocation3 + $0x50] sm:$0x4] %v2155_v57  ;;  %v2518_v51 = vld [vmem:[#allocation3 + $0x6c] sm:$0x1]  ;;  %v2496_v53 = vrot.slane %v2492_v14, 4  ;;  %v3246_v24 = vunpack.i.l.bf16 %v4181_v16  ;;  %vm4903_vm10 = vcmask 1041409  }
  0xee   : > { %v2321_v62 = vsel %vm4900_vm2, %v3866_v20, %v2320_v21  ;;  %v2152_v32 = vsel %vm3910_vm4, %v2139_v49, %v2151_v41  ;;  %2338 = vst [vmem:[#allocation3 + $0x50] sm:$0x8] %v2337_v35  ;;  %vm4191_vm7 = vmor %vm4151_vm14, %vm4161_vm13  ;;  %v4904_v39 = vmov 0  ;;  %vm784_vm9 = vsmask.f32 7962 }
  0xef   : > { %v2334_v30 = vsel %vm3888_vm12, %v2321_v62, %v2333_v50  ;;  %2153 = vst [vmem:[#allocation3 + $0x48] sm:$0x44] %v2152_v32  ;;  %vm4199_vm2 = vmand %vm4903_vm10, %vm594_vm6  ;;  %v2502_v33 = vsel %vm4838_vm5, %v2495_v37, %v2496_v53  ;;  %vm4906_vm14 = vcmask 588800   ;;  %v4209_v28 = vrot.slane %v3247_v22, 4  ;;  %v4229_v41 = vpop.permute.xlu1 %3254  ;;  %v1880_v50 = vld [vmem:[#allocation3 + $0x38] sm:$0x11] }
  0xf0   : > { %2335 = vst [vmem:[#allocation3 + $0x48] sm:$0x88] %v2334_v30  ;;  %v4905_v39 = vsel %vm4199_vm2, 4294967295, %v4904_v39  ;;  %v2504_v45 = vsel %vm4906_vm14, %v2492_v14, %v2496_v53  ;;  %vm4907_vm8 = vsmask.f32 7958  ;;  %vm4908_vm15 = vcmask 1045509   ;;  %vm4911_vm6 = vmmov %vm4906_vm14  ;;  %v4221_v10 = vpop.permute.xlu0 %3249 }
  0xf1   : > { %vm4213_vm12 = vmand %vm4908_vm15, %vm4907_vm8  ;;  %v2503_v31 = vsel %vm4911_vm6, %v3951_v52, %v2502_v33  ;;  %v2519_v38 = vsel %vm3517_vm3, %v2504_v45, %v2518_v51  ;;  %v1864_v37 = vrot.slane %v3246_v24, 4  ;;  %vm4912_vm14 = vsmask.f32 7946  ;;  %v1886_v61 = vld [vmem:[#allocation3 + $0x48] sm:$0x11] }
  0xf2   : > { %vm4913_vm1 = vcmask 1042434   ;;  %v4914_v26 = vmov 0  ;;  %v2516_v23 = vsel %vm3774_vm0, %v2503_v31, %v2515_v25  ;;  %2520 = vst [vmem:[#allocation3 + $0x6c] sm:$0x1] %v2519_v38  ;;  %v3252_v52 = vunpack.i.h.bf16 %v4221_v10  ;;  %v2062_v25 = vld [vmem:[#allocation3 + $0x38] sm:$0x22] }
  0xf3   : > { %vm4225_vm5 = vmand %vm4913_vm1, %vm4912_vm14  ;;  %v3251_v58 = vunpack.i.l.bf16 %v4221_v10  ;;  %vm4916_vm15 = vcmask 1046534   ;;  %v3257_v18 = vunpack.i.h.bf16 %v4229_v41  ;;  %vm4919_vm1 = vsmask.f32 7966  ;;  %2517 = vst [vmem:[#allocation3 + $0x64] sm:$0x11] %v2516_v23  ;;  %v4280_v35 = vpop.permute.xlu1 %3264 }
  0xf4   : > { %v4915_v26 = vsel %vm4225_vm5, 4294967295, %v4914_v26  ;;  %vm4237_vm8 = vmand %vm4916_vm15, %vm784_vm9  ;;  %vm4920_vm6 = vcmask 1047559   ;;  %vm4923_vm10 = vcmask 1043456   ;;  %v3256_v60 = vunpack.i.l.bf16 %v4229_v41  ;;  %v4278_v62 = vpop.permute.xlu0 %3259  ;;  %v2244_v31 = vld [vmem:[#allocation3 + $0x38] sm:$0x44] }
  0xf5   : > { %vm4244_vm14 = vmand %vm4920_vm6, %vm4919_vm1  ;;  %v1868_v34 = vsel %vm4923_vm10, %v1864_v37, %v4209_v28  ;;  %vm973_vm0 = vsmask.f32 7950  ;;  %vm4924_vm9 = vcmask 703488   ;;  %v4262_v54 = vrot.slane %v3252_v52, 4 }
  0xf6   : > { %v1870_v15 = vsel %vm4924_vm9, %v3246_v24, %v1868_v34  ;;  %vm4256_vm15 = vmor %vm4213_vm12, %vm4199_vm2  ;;  %v2046_v46 = vrot.slane %v3251_v58, 4  ;;  %v4266_v21 = vrot.slane %v3257_v18, 4  ;;  %v2228_v57 = vrot.slane %v3256_v60, 4 }
  0xf7   : > { %v1881_v7 = vsel %vm4191_vm7, %v1870_v15, %v1880_v50  ;;  %vm4274_vm12 = vmor %vm4237_vm8, %vm4225_vm5  ;;  %vm4842_vm10 = vcmask 670720   ;;  %vm4929_vm6 = vcmask 1043456   ;;  %vm4930_vm9 = vcmask 1043459   ;;  %v4318_v15 = vpop.permute.xlu1 %2665 }
  0xf8   : > { %1882 = vst [vmem:[#allocation3 + $0x38] sm:$0x11] %v1881_v7  ;;  %v2050_v14 = vsel %vm4929_vm6, %v2046_v46, %v4262_v54  ;;  %vm4286_vm3 = vmand %vm4930_vm9, %vm973_vm0  ;;  %v4931_v32 = vmov 0  ;;  %v3262_v30 = vunpack.i.h.bf16 %v4278_v62  ;;  %v3261_v51 = vunpack.i.l.bf16 %v4278_v62  ;;  %v2664_v50 = vpop.permute.xlu0 %2663 }
  0xf9   : > { %v4932_v32 = vsel %vm4286_vm3, 4294967295, %v4931_v32  ;;  %v3267_v53 = vunpack.i.h.bf16 %v4280_v35  ;;  %vm4933_vm8 = vcmask 777216   ;;  %vm4934_vm1 = vmmov %vm4929_vm6  ;;  %v3266_v45 = vunpack.i.l.bf16 %v4280_v35 }
  0xfa   : > { %v2052_v24 = vsel %vm4933_vm8, %v3251_v58, %v2050_v14  ;;  %v2232_v33 = vsel %vm4934_vm1, %v2228_v57, %v4266_v21  ;;  %vm4845_vm6 = vcmask 572416   ;;  %vm4935_vm0 = vcmask 687104   ;;  %vm4310_vm1 = vmor %vm4244_vm14, %vm4286_vm3  ;;  %v2426_v57 = vld [vmem:[#allocation3 + $0x38] sm:$0x88] }
  0xfb   : > { %v2063_v43 = vsel %vm4256_vm15, %v2052_v24, %v2062_v25  ;;  %v2234_v38 = vsel %vm4935_vm0, %v3256_v60, %v2232_v33  ;;  %v4302_v37 = vrot.slane %v3262_v30, 4  ;;  %v2410_v23 = vrot.slane %v3261_v51, 4  ;;  %v2687_v24 = vld [vmem:[#allocation3 + $0x54] sm:$0x22] }
  0xfc   : > { %2064 = vst [vmem:[#allocation3 + $0x38] sm:$0x22] %v2063_v43  ;;  %v2245_v58 = vsel %vm4274_vm12, %v2234_v38, %v2244_v31  ;;  %v4316_v34 = vrot.slane %v3267_v53, 4  ;;  %v2588_v60 = vrot.slane %v3266_v45, 4  ;;  %vm4938_vm8 = vcmask 1043456  }
  0xfd   : > { %2246 = vst [vmem:[#allocation3 + $0x38] sm:$0x44] %v2245_v58  ;;  %v2414_v46 = vsel %vm4938_vm8, %v2410_v23, %v4302_v37  ;;  %v2671_v7 = vrot.slane %v2664_v50, 4  ;;  %v2672_v44 = vrot.slane %v4318_v15, 4  ;;  %vm4939_vm14 = vmmov %vm4938_vm8  ;;  %v2604_v43 = vld [vmem:[#allocation3 + $0x54] sm:$0x11]  ;;  %v3270_v58 = vpop.permute.xlu0 %3269 }
  0xfe   : > { %v2416_v14 = vsel %vm4842_vm10, %v3261_v51, %v2414_v46  ;;  %v2592_v25 = vsel %vm4939_vm14, %v2588_v60, %v4316_v34  ;;  %vm4940_vm0 = vcmask 580608   ;;  %vm4941_vm9 = vmmov %vm4938_vm8  ;;  %v3275_v46 = vpop.permute.xlu1 %3274  ;;  %vm2786_vm8 = vcmask 1045504  }
  0xff   : > { %v2427_v33 = vsel %vm4310_vm1, %v2416_v14, %v2426_v57  ;;  %v2594_v31 = vsel %vm4940_vm0, %v3266_v45, %v2592_v25  ;;  %v2675_v38 = vsel %vm4941_vm9, %v2671_v7, %v2672_v44  ;;  %v3456_v60 = vmov 65535  }
 0x100   : > { %2428 = vst [vmem:[#allocation3 + $0x38] sm:$0x88] %v2427_v33  ;;  %v2605_v23 = vsel %vm4191_vm7, %v2594_v31, %v2604_v43  ;;  %v2677_v51 = vsel %vm4845_vm6, %v2664_v50, %v2675_v38  ;;  %vm4942_vm14 = vcmask 1044480   ;;  %vm4943_vm10 = vnez %v4880_v42 }
 0x101   : > { %v2787_v12 = vsel %vm4942_vm14, 4294967295, %v3456_v60  ;;  %2606 = vst [vmem:[#allocation3 + $0x54] sm:$0x11] %v2605_v23  ;;  %v2688_v45 = vsel %vm4943_vm10, %v2677_v51, %v2687_v24  ;;  %v3272_v57 = vunpack.i.h.bf16 %v3270_v58  ;;  %v3271_v14 = vunpack.i.l.bf16 %v3270_v58  ;;  %v3280_v50 = vpop.permute.xlu0 %3279  ;;  %v1889_v60 = vld [vmem:[#allocation3 + $0x50] sm:$0x1] }
 0x102   : > { %v3277_v25 = vunpack.i.h.bf16 %v3275_v46  ;;  %2689 = vst [vmem:[#allocation3 + $0x54] sm:$0x22] %v2688_v45  ;;  %v3276_v7 = vunpack.i.l.bf16 %v3275_v46  ;;  %v4338_v38 = vpop.permute.xlu1 %3284  ;;  %v4341_v47 = vsel %vm2786_vm8, %v2787_v12, 0  ;;  %vm4944_vm9 = vcmask 703488   ;;  %v2071_v58 = vld [vmem:[#allocation3 + $0x50] sm:$0x2] }
 0x103   : > { %v1867_v33 = vrot.slane %v3272_v57, 4  ;;  %v1866_v27 = vrot.slane %v3271_v14, 4  ;;  %vm4945_vm0 = vcmask 1043456   ;;  %vm4947_vm6 = vcmask 777216   ;;  %v1883_v45 = vld [vmem:[#allocation3 + $0x40] sm:$0x11]  ;;  %vm4948_vm8 = vmmov %vm4944_vm9 }
 0x104   : > { %v2049_v43 = vrot.slane %v3277_v25, 4  ;;  %v2048_v31 = vrot.slane %v3276_v7, 4  ;;  %vm4946_vm14 = vmmov %vm4945_vm0  ;;  %v3286_v10 = vunpack.i.l.bf16 %v4338_v38 }
 0x105   : > { %v1875_v23 = vsel %vm4944_vm9, %v3272_v57, %v1867_v33  ;;  %v1871_v24 = vsel %vm4945_vm0, %v4209_v28, %v1866_v27  ;;  %v1873_v51 = vsel %vm4946_vm14, %v1866_v27, %v1867_v33  ;;  %vm4949_vm4 = vmmov %vm4948_vm8  ;;  %vm4954_vm14 = vcmask 687104  }
 0x106   : > { %v2057_v46 = vsel %vm4947_vm6, %v3277_v25, %v2049_v43  ;;  %v1890_v40 = vsel %vm4161_vm13, %v1875_v23, %v1889_v60  ;;  %v1872_v12 = vsel %vm4948_vm8, %v3247_v22, %v1871_v24  ;;  %v1874_v59 = vsel %vm4949_vm4, %v3271_v14, %v1873_v51  ;;  %vm4950_vm6 = vmmov %vm4945_vm0  ;;  %v2065_v22 = vld [vmem:[#allocation3 + $0x40] sm:$0x22]  ;;  %v2068_v14 = vld [vmem:[#allocation3 + $0x48] sm:$0x22]  ;;  %v4367_v24 = vpop.permute.xlu0 %3289 }
 0x107   : > { %v2072_v57 = vsel %vm4199_vm2, %v2057_v46, %v2071_v58  ;;  %1891 = vst [vmem:[#allocation3 + $0x50] sm:$0x1] %v1890_v40  ;;  %v1884_v27 = vsel %vm4191_vm7, %v1872_v12, %v1883_v45  ;;  %v1887_v28 = vsel %vm4191_vm7, %v1874_v59, %v1886_v61  ;;  %v2053_v25 = vsel %vm4950_vm6, %v4262_v54, %v2048_v31  ;;  %vm4951_vm9 = vmmov %vm4945_vm0  ;;  %v4369_v59 = vpop.permute.xlu1 %2667 }
 0x108   : > { %2073 = vst [vmem:[#allocation3 + $0x50] sm:$0x2] %v2072_v57  ;;  %v2055_v16 = vsel %vm4951_vm9, %v2048_v31, %v2049_v43  ;;  %1885 = vst [vmem:[#allocation3 + $0x40] sm:$0x11] %v1884_v27  ;;  %vm4952_vm4 = vcmask 777216   ;;  %v3282_v60 = vunpack.i.h.bf16 %v3280_v50  ;;  %v3281_v23 = vunpack.i.l.bf16 %v3280_v50 }
 0x109   : > { %1888 = vst [vmem:[#allocation3 + $0x48] sm:$0x11] %v1887_v28  ;;  %v2054_v40 = vsel %vm4952_vm4, %v3252_v52, %v2053_v25  ;;  %vm4953_vm0 = vmmov %vm4952_vm4  ;;  %v3287_v43 = vunpack.i.h.bf16 %v4338_v38  ;;  %v3367_v31 = vld [vmem:[#allocation3 + $0x3c] ss:$28 sps:$4 sm:$0x3f]   ;;  %v3292_v50 = vunpack.i.h.bf16 %v4367_v24  ;;  %v3291_v51 = vunpack.i.l.bf16 %v4367_v24 }
 0x10a   : > { %v2056_v33 = vsel %vm4953_vm0, %v3276_v7, %v2055_v16  ;;  %v2066_v61 = vsel %vm4256_vm15, %v2054_v40, %v2065_v22  ;;  %v2231_v52 = vrot.slane %v3282_v60, 4  ;;  %v2230_v7 = vrot.slane %v3281_v23, 4  ;;  %v2253_v57 = vld [vmem:[#allocation3 + $0x50] sm:$0x4]  ;;  %vm4955_vm8 = vmmov %vm4950_vm6  ;;  %v477_v16 = vpop.permute.xlu0 %476  ;;  %v2250_v40 = vld [vmem:[#allocation3 + $0x48] sm:$0x44] }
 0x10b   : > { %v2069_v54 = vsel %vm4256_vm15, %v2056_v33, %v2068_v14  ;;  %2067 = vst [vmem:[#allocation3 + $0x40] sm:$0x22] %v2066_v61  ;;  %v2413_v58 = vrot.slane %v3287_v43, 4  ;;  %v2412_v46 = vrot.slane %v3286_v10, 4  ;;  %v2673_v45 = vrot.slane %v4369_v59, 4  ;;  %v4385_v22 = vpop.permute.xlu1 %664  ;;  %vm4956_vm9 = vmmov %vm4954_vm14 }
 0x10c   : > { %2070 = vst [vmem:[#allocation3 + $0x48] sm:$0x22] %v2069_v54  ;;  %v2793_v12 = vand.u32 %v3367_v31, %v4341_v47  ;;  %v2239_v27 = vsel %vm4954_vm14, %v3282_v60, %v2231_v52  ;;  %v2235_v38 = vsel %vm4955_vm8, %v4266_v21, %v2230_v7  ;;  %v2237_v28 = vsel %vm4950_vm6, %v2230_v7, %v2231_v52  ;;  %v2247_v14 = vld [vmem:[#allocation3 + $0x40] sm:$0x44]  ;;  %vm4957_vm4 = vmmov %vm4956_vm9  ;;  %v2435_v61 = vld [vmem:[#allocation3 + $0x50] sm:$0x8] }
 0x10d   : > { %v2591_v25 = vrot.slane %v3292_v50, 4  ;;  %v2254_v33 = vsel %vm4225_vm5, %v2239_v27, %v2253_v57  ;;  %v2236_v24 = vsel %vm4956_vm9, %v3257_v18, %v2235_v38  ;;  %v2238_v60 = vsel %vm4957_vm4, %v3281_v23, %v2237_v28  ;;  %v2429_v52 = vld [vmem:[#allocation3 + $0x40] sm:$0x88]  ;;  %vm4959_vm14 = vmmov %vm4950_vm6  ;;  %v2690_v18 = vld [vmem:[#allocation3 + $0x5c] sm:$0x22] }
 0x10e   : > { %vm4958_vm0 = vcmask 670720   ;;  %2822 = vmatprep.subr.bf16.mxu0 %v2793_v12  ;;  %2255 = vst [vmem:[#allocation3 + $0x50] sm:$0x4] %v2254_v33  ;;  %v2248_v54 = vsel %vm4274_vm12, %v2236_v24, %v2247_v14  ;;  %v2251_v31 = vsel %vm4274_vm12, %v2238_v60, %v2250_v40  ;;  %v2417_v41 = vsel %vm4959_vm14, %v4302_v37, %v2412_v46  ;;  %v2613_v12 = vld [vmem:[#allocation3 + $0x6c] sm:$0x1] }
 0x10f   : > { %v2421_v21 = vsel %vm4958_vm0, %v3287_v43, %v2413_v58  ;;  %2249 = vst [vmem:[#allocation3 + $0x40] sm:$0x44] %v2248_v54  ;;  %2252 = vst [vmem:[#allocation3 + $0x48] sm:$0x44] %v2251_v31  ;;  %v2419_v43 = vsel %vm4950_vm6, %v2412_v46, %v2413_v58  ;;  %vm4961_vm9 = vcmask 580608   ;;  %v2590_v27 = vrot.slane %v3291_v51, 4  ;;  %v1044_v58 = vpop.permute.xlu1 %1043 }
 0x110   : > { %v2436_v7 = vsel %vm4286_vm3, %v2421_v21, %v2435_v61  ;;  %vm4960_vm8 = vmmov %vm4958_vm0  ;;  %v2599_v57 = vsel %vm4961_vm9, %v3292_v50, %v2591_v25  ;;  %v3369_v38 = vld [vmem:[#allocation3 + $0x38] ss:$28 sps:$4 sm:$0x3f]   ;;  %v2432_v28 = vld [vmem:[#allocation3 + $0x48] sm:$0x88]  ;;  %v481_v31 = vrot.slane %v477_v16, 4 }
 0x111   : > { %2437 = vst [vmem:[#allocation3 + $0x50] sm:$0x8] %v2436_v7  ;;  %v2418_v23 = vsel %vm4960_vm8, %v3262_v30, %v2417_v41  ;;  %vm4962_vm4 = vmmov %vm4958_vm0  ;;  %v2614_v40 = vsel %vm4161_vm13, %v2599_v57, %v2613_v12  ;;  %v853_v30 = vpop.permute.xlu0 %852  ;;  %v504_v24 = vld [vmem:[#allocation3 + $0x18] sm:$0x2]  ;;  %v2607_v60 = vld [vmem:[#allocation3 + $0x5c] sm:$0x11]  ;;  %v2790_v35 = vand.u32 %v3369_v38, %v4341_v47 }
 0x112   : > { %v2420_v14 = vsel %vm4962_vm4, %v3286_v10, %v2419_v43  ;;  %v2430_v37 = vsel %vm4310_vm1, %v2418_v23, %v2429_v52  ;;  %vm4963_vm0 = vmmov %vm4950_vm6  ;;  %2615 = vst [vmem:[#allocation3 + $0x6c] sm:$0x1] %v2614_v40  ;;  %vm4966_vm6 = vcmask 572416   ;;  %v2610_v61 = vld [vmem:[#allocation3 + $0x64] sm:$0x11]  ;;  %v669_v7 = vrot.slane %v4385_v22, 4 }
 0x113   : > { %v2678_v62 = vsel %vm4963_vm0, %v2672_v44, %v2673_v45  ;;  %2431 = vst [vmem:[#allocation3 + $0x40] sm:$0x88] %v2430_v37  ;;  %v2433_v50 = vsel %vm4310_vm1, %v2420_v14, %v2432_v28  ;;  %vm4964_vm14 = vmmov %vm4963_vm0  ;;  %v692_v52 = vld [vmem:[#allocation3 + $0x18] sm:$0x4]  ;;  %v689_v41 = vld [vmem:[#allocation3 + $0x10] sm:$0x44]  ;;  %v1404_v12 = vpop.permute.xlu1 %1403  ;;  %2823 = vmatpush1.bf16.msra.mxu0 %v2790_v35 }
 0x114   : > { %v2595_v10 = vsel %vm4964_vm14, %v4316_v34, %v2590_v27  ;;  %vm4965_vm8 = vmmov %vm4963_vm0  ;;  %v2679_v33 = vsel %vm4966_vm6, %v4318_v15, %v2678_v62  ;;  %2434 = vst [vmem:[#allocation3 + $0x48] sm:$0x88] %v2433_v50  ;;  %vm4968_vm14 = vcmask 1031168   ;;  %v1048_v23 = vrot.slane %v1044_v58, 4  ;;  %v883_v28 = vld [vmem:[#allocation3 + $0x18] sm:$0x8] }
 0x115   : > { %v2597_v46 = vsel %vm4965_vm8, %v2590_v27, %v2591_v25  ;;  %v2596_v44 = vsel %vm4961_vm9, %v3267_v53, %v2595_v10  ;;  %vm4967_vm4 = vmmov %vm4961_vm9  ;;  %v2691_v54 = vsel %vm4943_vm10, %v2679_v33, %v2690_v18  ;;  %v501_v25 = vld [vmem:[#allocation3 + $0x10] sm:$0x22]  ;;  %v487_v53 = vsel %vm4963_vm0, %v480_v13, %v481_v31  ;;  %v1222_v43 = vpop.permute.xlu0 %1221  ;;  %v1067_v62 = vld [vmem:[#allocation3 + $0x2c] sm:$0x11] }
 0x116   : > { %v2598_v21 = vsel %vm4967_vm4, %v3291_v51, %v2597_v46  ;;  %v2608_v34 = vsel %vm4191_vm7, %v2596_v44, %v2607_v60  ;;  %2692 = vst [vmem:[#allocation3 + $0x5c] sm:$0x22] %v2691_v54  ;;  %v489_v51 = vsel %vm4968_vm14, %v477_v16, %v481_v31  ;;  %v857_v18 = vrot.slane %v853_v30, 4  ;;  %vm4969_vm8 = vmmov %vm4968_vm14  ;;  %v880_v16 = vld [vmem:[#allocation3 + $0x10] sm:$0x88] }
 0x117   : > { %v2611_v15 = vsel %vm4191_vm7, %v2598_v21, %v2610_v61  ;;  %2609 = vst [vmem:[#allocation3 + $0x5c] sm:$0x11] %v2608_v34  ;;  %v488_v57 = vsel %vm4969_vm8, %v4039_v17, %v487_v53  ;;  %vm4970_vm6 = vnez %v4866_v1  ;;  %vm4971_vm9 = vmmov %vm4963_vm0  ;;  %vm4972_vm4 = vcmask 941056   ;;  %v1070_v50 = vld [vmem:[#allocation3 + $0x34] sm:$0x1] }
 0x118   : > { %2612 = vst [vmem:[#allocation3 + $0x64] sm:$0x11] %v2611_v15  ;;  %v505_v27 = vsel %vm4970_vm6, %v489_v51, %v504_v24  ;;  %v675_v38 = vsel %vm4971_vm9, %v668_v48, %v669_v7  ;;  %v677_v13 = vsel %vm4972_vm4, %v4385_v22, %v669_v7  ;;  %v502_v14 = vsel %vm4943_vm10, %v488_v57, %v501_v25  ;;  %vm4973_vm0 = vmmov %vm4972_vm4  ;;  %v1245_v21 = vld [vmem:[#allocation3 + $0x2c] sm:$0x22]  ;;  %v1430_v25 = vld [vmem:[#allocation3 + $0x34] sm:$0x4] }
 0x119   : > { %506 = vst [vmem:[#allocation3 + $0x18] sm:$0x2] %v505_v27  ;;  %v676_v17 = vsel %vm4973_vm0, %v4058_v55, %v675_v38  ;;  %v693_v37 = vsel %vm3535_vm11, %v677_v13, %v692_v52  ;;  %v4974_v40 = vrot.slane %v4060_v11, 4  ;;  %vm4975_vm14 = vmmov %vm4971_vm9  ;;  %vm4976_vm9 = vnez %v4886_v56  ;;  %v1586_v54 = vpop.permute.xlu0 %1585 }
 0x11a   : > { %503 = vst [vmem:[#allocation3 + $0x10] sm:$0x22] %v502_v14  ;;  %v690_v22 = vsel %vm4976_vm9, %v676_v17, %v689_v41  ;;  %694 = vst [vmem:[#allocation3 + $0x18] sm:$0x4] %v693_v37  ;;  %vm4977_vm4 = vcmask 850944   ;;  %v4979_v46 = vrot.slane %v4081_v29, 4  ;;  %vm4982_vm8 = vnez %v4870_v3 }
 0x11b   : > { %v863_v48 = vsel %vm4975_vm14, %v4974_v40, %v857_v18  ;;  %vm4978_vm3 = vmmov %vm4977_vm4  ;;  %691 = vst [vmem:[#allocation3 + $0x10] sm:$0x44] %v690_v22  ;;  %vm4983_vm5 = vcmask 834560   ;;  %v1226_v15 = vrot.slane %v1222_v43, 4  ;;  %v1408_v52 = vrot.slane %v1404_v12, 4 }
 0x11c   : > { %v864_v10 = vsel %vm4977_vm4, %v4060_v11, %v863_v48  ;;  %v865_v55 = vsel %vm4978_vm3, %v853_v30, %v857_v18  ;;  %vm4980_vm0 = vmmov %vm4975_vm14  ;;  %vm4981_vm14 = vnez %v4884_v19  ;;  %v1248_v11 = vld [vmem:[#allocation3 + $0x34] sm:$0x2]  ;;  %v4473_v30 = vpop.permute.xlu1 %3294  ;;  %vm4985_vm3 = vnez %v4878_v9  ;;  %v411_v22 = vld [vmem:[#allocation3] sm:$0x11] }
 0x11d   : > { %v1054_v33 = vsel %vm4980_vm0, %v4979_v46, %v1048_v23  ;;  %v881_v24 = vsel %vm4981_vm14, %v864_v10, %v880_v16  ;;  %v884_v60 = vsel %vm4982_vm8, %v865_v55, %v883_v28  ;;  %vm4984_vm2 = vmmov %vm4983_vm5  ;;  %vm4986_vm4 = vnez %v4864_v0  ;;  %v4497_v28 = vpop.permute.xlu0 %3299 }
 0x11e   : > { %v1055_v61 = vsel %vm4983_vm5, %v4081_v29, %v1054_v33  ;;  %v1056_v44 = vsel %vm4984_vm2, %v1044_v58, %v1048_v23  ;;  %882 = vst [vmem:[#allocation3 + $0x10] sm:$0x88] %v881_v24  ;;  %885 = vst [vmem:[#allocation3 + $0x18] sm:$0x8] %v884_v60  ;;  %v1427_v29 = vld [vmem:[#allocation3 + $0x2c] sm:$0x44]  ;;  %v3297_v35 = vunpack.i.h.bf16 %v4473_v30  ;;  %v3296_v53 = vunpack.i.l.bf16 %v4473_v30 }
 0x11f   : > { %v1068_v31 = vsel %vm4985_vm3, %v1055_v61, %v1067_v62  ;;  %v1071_v34 = vsel %vm4986_vm4, %v1056_v44, %v1070_v50  ;;  %v1612_v58 = vld [vmem:[#allocation3 + $0x34] sm:$0x8]  ;;  %v1590_v7 = vrot.slane %v1586_v54, 4  ;;  %v4987_v9 = vrot.slane %v4083_v4, 4  ;;  %vm4988_vm2 = vmmov %vm4980_vm0 }
 0x120   : > { %1069 = vst [vmem:[#allocation3 + $0x2c] sm:$0x11] %v1068_v31  ;;  %1072 = vst [vmem:[#allocation3 + $0x34] sm:$0x1] %v1071_v34  ;;  %vm4989_vm3 = vcmask 908288   ;;  %v4990_v41 = vrot.slane %v4103_v8, 4  ;;  %v4499_v14 = vpop.permute.xlu1 %3304  ;;  %v3302_v10 = vunpack.i.h.bf16 %v4497_v28  ;;  %v3301_v55 = vunpack.i.l.bf16 %v4497_v28 }
 0x121   : > { %v1232_v51 = vsel %vm4988_vm2, %v4987_v9, %v1226_v15  ;;  %v1234_v0 = vsel %vm4989_vm3, %v1222_v43, %v1226_v15  ;;  %vm4991_vm4 = vmmov %vm4980_vm0  ;;  %vm4992_vm0 = vcmask 818176   ;;  %v3370_v57 = vld [vmem:[#allocation3 + $0x44] ss:$28 sps:$4 sm:$0x3f]   ;;  %v1609_v43 = vld [vmem:[#allocation3 + $0x2c] sm:$0x88]  ;;  %v3306_v33 = vunpack.i.l.bf16 %v4499_v14  ;;  %v4527_v19 = vpop.permute.xlu0 %3309 }
 0x122   : > { %v1414_v18 = vsel %vm4991_vm4, %v4990_v41, %v1408_v52  ;;  %v1416_v23 = vsel %vm4992_vm0, %v1404_v12, %v1408_v52  ;;  %vm4993_vm13 = vmmov %vm4989_vm3  ;;  %v1249_v38 = vsel %vm4970_vm6, %v1234_v0, %v1248_v11  ;;  %v3372_v17 = vld [vmem:[#allocation3 + $0x40] ss:$28 sps:$4 sm:$0x3f]   ;;  %v4515_v56 = vrot.slane %v3297_v35, 4  ;;  %v608_v30 = vld [vmem:[#allocation3 + $0x18] sm:$0x2] }
 0x123   : > { %v1233_v27 = vsel %vm4993_vm13, %v4083_v4, %v1232_v51  ;;  %vm4994_vm5 = vmmov %vm4992_vm0  ;;  %v1431_v16 = vsel %vm3535_vm11, %v1416_v23, %v1430_v25  ;;  %vm962_vm0 = vcmask 842752   ;;  %1250 = vst [vmem:[#allocation3 + $0x34] sm:$0x2] %v1249_v38  ;;  %vm4997_vm11 = vcmask 801792   ;;  %v787_v23 = vld [vmem:[#allocation3] sm:$0x44] }
 0x124   : > { %v1415_v13 = vsel %vm4994_vm5, %v4103_v8, %v1414_v18  ;;  %v1246_v12 = vsel %vm4943_vm10, %v1233_v27, %v1245_v21  ;;  %1432 = vst [vmem:[#allocation3 + $0x34] sm:$0x4] %v1431_v16  ;;  %v4995_v8 = vrot.slane %v4105_v5, 4  ;;  %vm4996_vm13 = vmmov %vm4988_vm2  ;;  %v1598_v37 = vsel %vm4997_vm11, %v1586_v54, %v1590_v7  ;;  %v4529_v60 = vpop.permute.xlu1 %3314 }
 0x125   : > { %v1428_v4 = vsel %vm4976_vm9, %v1415_v13, %v1427_v29  ;;  %vm4862_vm5 = vcmask 916480   ;;  %1247 = vst [vmem:[#allocation3 + $0x2c] sm:$0x22] %v1246_v12  ;;  %vm4998_vm2 = vmmov %vm4997_vm11  ;;  %v1613_v48 = vsel %vm4982_vm8, %v1598_v37, %v1612_v58  ;;  %v389_v62 = vrot.slane %v3296_v53, 4  ;;  %v4555_v0 = vpop.permute.xlu0 %3319  ;;  %v978_v12 = vld [vmem:[#allocation3] sm:$0x88] }
 0x126   : > { %v1596_v2 = vsel %vm4996_vm13, %v4995_v8, %v1590_v7  ;;  %1429 = vst [vmem:[#allocation3 + $0x2c] sm:$0x44] %v1428_v4  ;;  %1614 = vst [vmem:[#allocation3 + $0x34] sm:$0x8] %v1613_v48  ;;  %v2799_v46 = vand.u32 %v3370_v57, %v4341_v47  ;;  %v2796_v24 = vand.u32 %v3372_v17, %v4341_v47  ;;  %vm4861_vm8 = vcmask 900096  }
 0x127   : > { %v1597_v40 = vsel %vm4998_vm2, %v4105_v5, %v1596_v2  ;;  %vm4999_vm9 = vmmov %vm4991_vm4  ;;  %v3307_v5 = vunpack.i.h.bf16 %v4499_v14  ;;  %v4534_v44 = vrot.slane %v3302_v10, 4  ;;  %v578_v21 = vrot.slane %v3301_v55, 4  ;;  %v599_v7 = vld [vmem:[#allocation3] sm:$0x22]  ;;  %v1156_v48 = vld [vmem:[#allocation3 + $0x1c] sm:$0x11] }
 0x128   : > { %v1610_v50 = vsel %vm4981_vm14, %v1597_v40, %v1609_v43  ;;  %v394_v3 = vsel %vm4999_vm9, %v389_v62, %v4515_v56  ;;  %vm5000_vm14 = vcmask 1039360   ;;  %2863 = vmatprep.subr.bf16.mxu1 %v2799_v46  ;;  %v3312_v11 = vunpack.i.h.bf16 %v4527_v19  ;;  %vm5001_vm3 = vmmov %vm4991_vm4  ;;  %v4557_v41 = vpop.permute.xlu1 %3324 }
 0x129   : > { %1611 = vst [vmem:[#allocation3 + $0x2c] sm:$0x88] %v1610_v50  ;;  %v396_v61 = vsel %vm5000_vm14, %v3296_v53, %v394_v3  ;;  %v4541_v31 = vrot.slane %v3307_v5, 4  ;;  %v766_v34 = vrot.slane %v3306_v33, 4  ;;  %2864 = vmatpush1.bf16.msra.mxu1 %v2796_v24  ;;  %v3311_v15 = vunpack.i.l.bf16 %v4527_v19  ;;  %vm5003_vm13 = vmmov %vm5001_vm3 }
 0x12a   : > { %v412_v54 = vsel %vm4191_vm7, %v396_v61, %v411_v22  ;;  %v582_v25 = vsel %vm5001_vm3, %v578_v21, %v4534_v44  ;;  %v4548_v52 = vrot.slane %v3312_v11, 4  ;;  %v3317_v29 = vunpack.i.h.bf16 %v4529_v60  ;;  %vm5005_vm9 = vmmov %vm5001_vm3 }
 0x12b   : > { %413 = vst [vmem:[#allocation3] sm:$0x11] %v412_v54  ;;  %v3316_v58 = vunpack.i.l.bf16 %v4529_v60  ;;  %vm5002_vm4 = vcmask 949248   ;;  %v770_v9 = vsel %vm5003_vm13, %v766_v34, %v4541_v31  ;;  %v957_v51 = vrot.slane %v3311_v15, 4  ;;  %vm5006_vm14 = vmmov %vm5001_vm3 }
 0x12c   : > { %v584_v53 = vsel %vm5002_vm4, %v3301_v55, %v582_v25  ;;  %vm4860_vm11 = vcmask 809984   ;;  %vm5004_vm2 = vcmask 932864   ;;  %v4564_v27 = vrot.slane %v3317_v29, 4  ;;  %v4584_v55 = vpop.permute.xlu0 %3329  ;;  %v3335_v46 = vpop.permute.xlu1 %3334  ;;  %v1338_v25 = vld [vmem:[#allocation3 + $0x1c] sm:$0x22]  ;;  %vm5007_vm4 = vmmov %vm5001_vm3 }
 0x12d   : > { %v600_v18 = vsel %vm4256_vm15, %v584_v53, %v599_v7  ;;  %v772_v57 = vsel %vm5004_vm2, %v3306_v33, %v770_v9  ;;  %v1140_v38 = vrot.slane %v3316_v58, 4  ;;  %v961_v16 = vsel %vm5005_vm9, %v957_v51, %v4548_v52  ;;  %v1520_v51 = vld [vmem:[#allocation3 + $0x1c] sm:$0x44]  ;;  %vm5008_vm2 = vmmov %vm5001_vm3 }
 0x12e   : > { %601 = vst [vmem:[#allocation3] sm:$0x22] %v600_v18  ;;  %v788_v13 = vsel %vm4274_vm12, %v772_v57, %v787_v23  ;;  %v3322_v43 = vunpack.i.h.bf16 %v4555_v0  ;;  %v3321_v17 = vunpack.i.l.bf16 %v4555_v0  ;;  %v963_v4 = vsel %vm962_vm0, %v3311_v15, %v961_v16 }
 0x12f   : > { %789 = vst [vmem:[#allocation3] sm:$0x44] %v788_v13  ;;  %v1144_v8 = vsel %vm5006_vm14, %v1140_v38, %v4564_v27  ;;  %v3327_v2 = vunpack.i.h.bf16 %v4557_v41  ;;  %v3326_v37 = vunpack.i.l.bf16 %v4557_v41  ;;  %v979_v40 = vsel %vm4310_vm1, %v963_v4, %v978_v12  ;;  %v420_v38 = vld [vmem:[#allocation3 + $0x18] sm:$0x1]  ;;  %vm5010_vm14 = vmmov %vm5008_vm2 }
 0x130   : > { %v1146_v62 = vsel %vm4862_vm5, %v3316_v58, %v1144_v8  ;;  %v4582_v50 = vrot.slane %v3322_v43, 4  ;;  %v1322_v22 = vrot.slane %v3321_v17, 4  ;;  %980 = vst [vmem:[#allocation3] sm:$0x88] %v979_v40  ;;  %v3332_v61 = vunpack.i.h.bf16 %v4584_v55  ;;  %v3340_v13 = vpop.permute.xlu0 %3339  ;;  %v4606_v16 = vpop.permute.xlu1 %3344 }
 0x131   : > { %v1157_v3 = vsel %vm4191_vm7, %v1146_v62, %v1156_v48  ;;  %v4590_v33 = vrot.slane %v3327_v2, 4  ;;  %v1504_v24 = vrot.slane %v3326_v37, 4  ;;  %v3331_v54 = vunpack.i.l.bf16 %v4584_v55  ;;  %v417_v62 = vld [vmem:[#allocation3 + $0x10] sm:$0x11]  ;;  %v2693_v55 = vld [vmem:[#allocation3 + $0x64] sm:$0x22] }
 0x132   : > { %1158 = vst [vmem:[#allocation3 + $0x1c] sm:$0x11] %v1157_v3  ;;  %v1326_v21 = vsel %vm5001_vm3, %v1322_v22, %v4582_v50  ;;  %v3337_v34 = vunpack.i.h.bf16 %v3335_v46  ;;  %v3336_v15 = vunpack.i.l.bf16 %v3335_v46  ;;  %vm4859_vm13 = vcmask 719872   ;;  %v1702_v3 = vld [vmem:[#allocation3 + $0x1c] sm:$0x88]  ;;  %vm5011_vm3 = vmmov %vm5008_vm2 }
 0x133   : > { %v1328_v58 = vsel %vm4861_vm8, %v3321_v17, %v1326_v21  ;;  %v1508_v7 = vsel %vm5007_vm4, %v1504_v24, %v4590_v33  ;;  %v4601_v53 = vrot.slane %v3332_v61, 4  ;;  %v1686_v23 = vrot.slane %v3331_v54, 4 }
 0x134   : > { %v1339_v9 = vsel %vm4256_vm15, %v1328_v58, %v1338_v25  ;;  %v1510_v18 = vsel %vm4860_vm11, %v3326_v37, %v1508_v7  ;;  %v392_v57 = vrot.slane %v3337_v34, 4  ;;  %v391_v12 = vrot.slane %v3336_v15, 4  ;;  %v414_v37 = vld [vmem:[#allocation3 + $0x8] sm:$0x11] }
 0x135   : > { %1340 = vst [vmem:[#allocation3 + $0x1c] sm:$0x22] %v1339_v9  ;;  %v1521_v17 = vsel %vm4274_vm12, %v1510_v18, %v1520_v51  ;;  %v3342_v4 = vunpack.i.h.bf16 %v3340_v13  ;;  %v3341_v8 = vunpack.i.l.bf16 %v3340_v13  ;;  %v1690_v40 = vsel %vm5008_vm2, %v1686_v23, %v4601_v53  ;;  %v4627_v18 = vpop.permute.xlu1 %3354 }
 0x136   : > { %1522 = vst [vmem:[#allocation3 + $0x1c] sm:$0x44] %v1521_v17  ;;  %vm5009_vm9 = vcmask 1039360   ;;  %v3347_v22 = vunpack.i.h.bf16 %v4606_v16  ;;  %v3346_v46 = vunpack.i.l.bf16 %v4606_v16  ;;  %v1692_v24 = vsel %vm4859_vm13, %v3331_v54, %v1690_v40  ;;  %v3350_v54 = vpop.permute.xlu0 %3349 }
 0x137   : > { %v401_v48 = vsel %vm5009_vm9, %v3337_v34, %v392_v57  ;;  %v397_v21 = vsel %vm5010_vm14, %v4515_v56, %v391_v12  ;;  %v399_v25 = vsel %vm5011_vm3, %v391_v12, %v392_v57  ;;  %vm5012_vm4 = vnez %v4896_v6  ;;  %vm5013_vm2 = vmmov %vm5009_vm9 }
 0x138   : > { %v421_v58 = vsel %vm5012_vm4, %v401_v48, %v420_v38  ;;  %v1703_v34 = vsel %vm4310_vm1, %v1692_v24, %v1702_v3  ;;  %v398_v7 = vsel %vm5013_vm2, %v3297_v35, %v397_v21  ;;  %vm5014_vm9 = vmmov %vm5013_vm2  ;;  %v581_v51 = vrot.slane %v3342_v4, 4  ;;  %v796_v48 = vld [vmem:[#allocation3 + $0x18] sm:$0x4]  ;;  %v602_v3 = vld [vmem:[#allocation3 + $0x8] sm:$0x22] }
 0x139   : > { %v400_v9 = vsel %vm5014_vm9, %v3336_v15, %v399_v25  ;;  %422 = vst [vmem:[#allocation3 + $0x18] sm:$0x1] %v421_v58  ;;  %1704 = vst [vmem:[#allocation3 + $0x1c] sm:$0x88] %v1703_v34  ;;  %v415_v56 = vsel %vm4191_vm7, %v398_v7, %v414_v37  ;;  %v580_v57 = vrot.slane %v3341_v8, 4  ;;  %v769_v38 = vrot.slane %v3347_v22, 4  ;;  %v4650_v58 = vpop.permute.xlu1 %1500 }
 0x13a   : > { %v418_v23 = vsel %vm4191_vm7, %v400_v9, %v417_v62  ;;  %416 = vst [vmem:[#allocation3 + $0x8] sm:$0x11] %v415_v56  ;;  %vm5015_vm14 = vcmask 949248   ;;  %v768_v15 = vrot.slane %v3346_v46, 4  ;;  %v3352_v13 = vunpack.i.h.bf16 %v3350_v54  ;;  %v605_v24 = vld [vmem:[#allocation3 + $0x10] sm:$0x22]  ;;  %v4648_v25 = vpop.permute.xlu0 %1318 }
 0x13b   : > { %419 = vst [vmem:[#allocation3 + $0x10] sm:$0x11] %v418_v23  ;;  %v589_v35 = vsel %vm5015_vm14, %v3342_v4, %v581_v51  ;;  %v3351_v16 = vunpack.i.l.bf16 %v3350_v54  ;;  %vm5016_vm3 = vnez %v4905_v39  ;;  %vm5017_vm2 = vcmask 1043456   ;;  %vm5020_vm8 = vmmov %vm5015_vm14  ;;  %v987_v23 = vld [vmem:[#allocation3 + $0x18] sm:$0x8] }
 0x13c   : > { %v609_v17 = vsel %vm5016_vm3, %v589_v35, %v608_v30  ;;  %v585_v12 = vsel %vm5017_vm2, %v4534_v44, %v580_v57  ;;  %vm5018_vm9 = vmmov %vm5017_vm2  ;;  %vm5019_vm13 = vcmask 932864   ;;  %vm2781_vm11 = vcmask 220160  }
 0x13d   : > { %v587_v40 = vsel %vm5018_vm9, %v580_v57, %v581_v51  ;;  %v777_v37 = vsel %vm5019_vm13, %v3347_v22, %v769_v38  ;;  %610 = vst [vmem:[#allocation3 + $0x18] sm:$0x2] %v609_v17  ;;  %v586_v4 = vsel %vm5020_vm8, %v3302_v10, %v585_v12  ;;  %vm5021_vm14 = vmmov %vm5020_vm8  ;;  %vm5022_vm5 = vnez %v4915_v26  ;;  %v790_v10 = vld [vmem:[#allocation3 + $0x8] sm:$0x44]  ;;  %v2670_v17 = vpop.permute.xlu1 %2669 }
 0x13e   : > { %v588_v62 = vsel %vm5021_vm14, %v3341_v8, %v587_v40  ;;  %v797_v21 = vsel %vm5022_vm5, %v777_v37, %v796_v48  ;;  %v773_v44 = vsel %vm5017_vm2, %v4541_v31, %v768_v15  ;;  %v603_v22 = vsel %vm4256_vm15, %v586_v4, %v602_v3  ;;  %vm5023_vm8 = vmmov %vm5019_vm13  ;;  %v793_v31 = vld [vmem:[#allocation3 + $0x10] sm:$0x44]  ;;  %v981_v37 = vld [vmem:[#allocation3 + $0x8] sm:$0x88] }
 0x13f   : > { %v606_v28 = vsel %vm4256_vm15, %v588_v62, %v605_v24  ;;  %798 = vst [vmem:[#allocation3 + $0x18] sm:$0x4] %v797_v21  ;;  %v774_v8 = vsel %vm5023_vm8, %v3307_v5, %v773_v44  ;;  %vm5024_vm13 = vmmov %vm5017_vm2  ;;  %v960_v51 = vrot.slane %v3352_v13, 4  ;;  %v959_v54 = vrot.slane %v3351_v16, 4 }
 0x140   : > { %v775_v34 = vsel %vm5024_vm13, %v768_v15, %v769_v38  ;;  %604 = vst [vmem:[#allocation3 + $0x8] sm:$0x22] %v603_v22  ;;  %607 = vst [vmem:[#allocation3 + $0x10] sm:$0x22] %v606_v28  ;;  %v791_v9 = vsel %vm4274_vm12, %v774_v8, %v790_v10  ;;  %v3357_v14 = vunpack.i.h.bf16 %v4627_v18  ;;  %v3356_v5 = vunpack.i.l.bf16 %v4627_v18  ;;  %v4673_v15 = vpop.permute.xlu0 %1682  ;;  %v3374_v12 = vld [vmem:[#allocation3 + $0x4] ss:$28 sps:$4 sm:$0xff]  }
 0x141   : > { %vm5025_vm9 = vmmov %vm5023_vm8  ;;  %792 = vst [vmem:[#allocation3 + $0x8] sm:$0x44] %v791_v9  ;;  %v1324_v57 = vrot.slane %v4648_v25, 4  ;;  %v968_v38 = vsel %vm962_vm0, %v3352_v13, %v960_v51  ;;  %v966_v30 = vsel %vm5017_vm2, %v959_v54, %v960_v51  ;;  %v1506_v35 = vrot.slane %v4650_v58, 4  ;;  %v3376_v40 = vld [vmem:[#allocation3] ss:$28 sps:$4 sm:$0xff]   ;;  %2824 = vmatprep.subr.bf16.mxu0 %v3374_v12 }
 0x142   : > { %v776_v7 = vsel %vm5025_vm9, %v3346_v46, %v775_v34  ;;  %vm5026_vm14 = vmmov %vm5017_vm2  ;;  %vm5027_vm8 = vnez %v4932_v32  ;;  %v967_v13 = vsel %vm962_vm0, %v3351_v16, %v966_v30  ;;  %v1143_v4 = vrot.slane %v3357_v14, 4  ;;  %v1165_v16 = vld [vmem:[#allocation3 + $0x34] sm:$0x1]  ;;  %v1341_v22 = vld [vmem:[#allocation3 + $0x24] sm:$0x22]  ;;  %2825 = vmatpush1.bf16.msra.mxu0 %v3376_v40 }
 0x143   : > { %v794_v56 = vsel %vm4274_vm12, %v776_v7, %v793_v31  ;;  %v964_v46 = vsel %vm5026_vm14, %v4548_v52, %v959_v54  ;;  %v988_v18 = vsel %vm5027_vm8, %v968_v38, %v987_v23  ;;  %v984_v52 = vld [vmem:[#allocation3 + $0x10] sm:$0x88]  ;;  %v1142_v24 = vrot.slane %v3356_v5, 4  ;;  %vm5028_vm13 = vmmov %vm5017_vm2  ;;  %v1503_v31 = vpop.permute.xlu1 %1502  ;;  %v1159_v7 = vld [vmem:[#allocation3 + $0x24] sm:$0x11] }
 0x144   : > { %795 = vst [vmem:[#allocation3 + $0x10] sm:$0x44] %v794_v56  ;;  %v965_v48 = vsel %vm962_vm0, %v3312_v11, %v964_v46  ;;  %989 = vst [vmem:[#allocation3 + $0x18] sm:$0x8] %v988_v18  ;;  %v985_v3 = vsel %vm4310_vm1, %v967_v13, %v984_v52  ;;  %v1329_v19 = vsel %vm5028_vm13, %v4582_v50, %v1324_v57  ;;  %v4692_v11 = vld [vmem:[%s4806_s1] sm:$0xf] }
 0x145   : > { %v982_v62 = vsel %vm4310_vm1, %v965_v48, %v981_v37  ;;  %986 = vst [vmem:[#allocation3 + $0x10] sm:$0x88] %v985_v3  ;;  %vm5029_vm0 = vcmask 916480   ;;  %vm5030_vm9 = vcmask 900096   ;;  %vm5031_vm14 = vmmov %vm5017_vm2  ;;  %v1688_v28 = vrot.slane %v4673_v15, 4  ;;  %3144 = vmatmul.mubr.msk.bf16.vlgmr.msra.gmra.mxu0 %vm2781_vm11, %v4692_v11 }
 0x146   : > { %983 = vst [vmem:[#allocation3 + $0x8] sm:$0x88] %v982_v62  ;;  %v1151_v21 = vsel %vm5029_vm0, %v3357_v14, %v1143_v4  ;;  %v1330_v44 = vsel %vm5030_vm9, %v3322_v43, %v1329_v19  ;;  %v1511_v50 = vsel %vm5031_vm14, %v4590_v33, %v1506_v35  ;;  %v1147_v8 = vsel %vm5017_vm2, %v4564_v27, %v1142_v24  ;;  %vm5032_vm13 = vmmov %vm5017_vm2  ;;  %v1321_v43 = vpop.permute.xlu0 %1320  ;;  %v1162_v9 = vld [vmem:[#allocation3 + $0x2c] sm:$0x11]  ;;  %v1523_v51 = vld [vmem:[#allocation3 + $0x24] sm:$0x44] }
 0x147   : > { %v1166_v10 = vsel %vm5012_vm4, %v1151_v21, %v1165_v16  ;;  %v1149_v34 = vsel %vm5032_vm13, %v1142_v24, %v1143_v4  ;;  %v1342_v0 = vsel %vm4256_vm15, %v1330_v44, %v1341_v22  ;;  %v1148_v33 = vsel %vm5029_vm0, %v3317_v29, %v1147_v8  ;;  %vm5033_vm9 = vmmov %vm5029_vm0  ;;  %v1705_v23 = vld [vmem:[#allocation3 + $0x24] sm:$0x88]  ;;  %v1347_v30 = vld [vmem:[#allocation3 + $0x34] sm:$0x2] }
 0x148   : > { %1167 = vst [vmem:[#allocation3 + $0x34] sm:$0x1] %v1166_v10  ;;  %v1150_v6 = vsel %vm5033_vm9, %v3356_v5, %v1149_v34  ;;  %1343 = vst [vmem:[#allocation3 + $0x24] sm:$0x22] %v1342_v0  ;;  %vm5034_vm4 = vcmask 809984   ;;  %v1160_v56 = vsel %vm4191_vm7, %v1148_v33, %v1159_v7  ;;  %v2674_v20 = vrot.slane %v2670_v17, 4 }
 0x149   : > { %v1512_v27 = vsel %vm5034_vm4, %v3327_v2, %v1511_v50  ;;  %vm5035_vm14 = vmmov %vm5017_vm2  ;;  %v1163_v60 = vsel %vm4191_vm7, %v1150_v6, %v1162_v9  ;;  %vm5036_vm2 = vcmask 719872   ;;  %1161 = vst [vmem:[#allocation3 + $0x24] sm:$0x11] %v1160_v56  ;;  %v1325_v14 = vrot.slane %v1321_v43, 4  ;;  %v1529_v4 = vld [vmem:[#allocation3 + $0x34] sm:$0x4] }
 0x14a   : > { %v1693_v54 = vsel %vm5035_vm14, %v4601_v53, %v1688_v28  ;;  %v1524_v29 = vsel %vm4274_vm12, %v1512_v27, %v1523_v51  ;;  %1164 = vst [vmem:[#allocation3 + $0x2c] sm:$0x11] %v1163_v60  ;;  %v2696_v53 = vld [vmem:[#allocation3 + $0x6c] sm:$0x2]  ;;  %v1507_v5 = vrot.slane %v1503_v31, 4  ;;  %v5037_v38 = vmov 0   ;;  %vm5038_vm7 = vmmov %vm5032_vm13  ;;  %v1685_v18 = vpop.permute.xlu0 %1684 }
 0x14b   : > { %v1694_v41 = vsel %vm5036_vm2, %v3332_v61, %v1693_v54  ;;  %1525 = vst [vmem:[#allocation3 + $0x24] sm:$0x44] %v1524_v29  ;;  %2924 = vmatprep.mubr.bf16.mxu0 %v5037_v38  ;;  %v2680_v61 = vsel %vm5038_vm7, %v2673_v45, %v2674_v20  ;;  %vm5039_vm13 = vcmask 572416   ;;  %vm5040_vm0 = vmmov %vm5038_vm7  ;;  %vm5041_vm9 = vcmask 900096   ;;  %v1344_v45 = vld [vmem:[#allocation3 + $0x2c] sm:$0x22] }
 0x14c   : > { %v1706_v2 = vsel %vm4310_vm1, %v1694_v41, %v1705_v23  ;;  %v2682_v46 = vsel %vm5039_vm13, %v2670_v17, %v2674_v20  ;;  %v1331_v12 = vsel %vm5040_vm0, %v1324_v57, %v1325_v14  ;;  %v1333_v40 = vsel %vm5041_vm9, %v1321_v43, %v1325_v14  ;;  %vm5042_vm4 = vmmov %vm5039_vm13  ;;  %v1711_v3 = vld [vmem:[#allocation3 + $0x34] sm:$0x8]  ;;  %v1708_v19 = vld [vmem:[#allocation3 + $0x2c] sm:$0x88] }
 0x14d   : > { %1707 = vst [vmem:[#allocation3 + $0x24] sm:$0x88] %v1706_v2  ;;  %v2681_v48 = vsel %vm5042_vm4, %v4369_v59, %v2680_v61  ;;  %v2697_v13 = vsel %vm4970_vm6, %v2682_v46, %v2696_v53  ;;  %vm5043_vm14 = vmmov %vm5041_vm9  ;;  %v1348_v17 = vsel %vm5016_vm3, %v1333_v40, %v1347_v30  ;;  %vm5045_vm6 = vcmask 809984  }
 0x14e   : > { %v1332_v37 = vsel %vm5043_vm14, %v4648_v25, %v1331_v12  ;;  %v2694_v52 = vsel %vm4943_vm10, %v2681_v48, %v2693_v55  ;;  %2698 = vst [vmem:[#allocation3 + $0x6c] sm:$0x2] %v2697_v13  ;;  %1349 = vst [vmem:[#allocation3 + $0x34] sm:$0x2] %v1348_v17  ;;  %v1515_v59 = vsel %vm5045_vm6, %v1503_v31, %v1507_v5  ;;  %v1526_v25 = vld [vmem:[#allocation3 + $0x2c] sm:$0x44]  ;;  %v2990_v43 = vpop.permute.xlu0 %2989 }
 0x14f   : > { %v1345_v57 = vsel %vm4256_vm15, %v1332_v37, %v1344_v45  ;;  %vm5044_vm2 = vmmov %vm5040_vm0  ;;  %2695 = vst [vmem:[#allocation3 + $0x64] sm:$0x22] %v2694_v52  ;;  %v1530_v42 = vsel %vm5022_vm5, %v1515_v59, %v1529_v4  ;;  %v1689_v62 = vrot.slane %v1685_v18, 4  ;;  %vm5048_vm10 = vcmask 719872  }
 0x150   : > { %v1513_v1 = vsel %vm5044_vm2, %v1506_v35, %v1507_v5  ;;  %1346 = vst [vmem:[#allocation3 + $0x2c] sm:$0x22] %v1345_v57  ;;  %vm5046_vm3 = vmmov %vm5045_vm6  ;;  %v3457_v50 = vmov 0.0  }
 0x151   : > { %v1514_v39 = vsel %vm5046_vm3, %v4650_v58, %v1513_v1  ;;  %1531 = vst [vmem:[#allocation3 + $0x34] sm:$0x4] %v1530_v42  ;;  %vm5047_vm15 = vmmov %vm5040_vm0  ;;  %v1697_v24 = vsel %vm5048_vm10, %v1685_v18, %v1689_v62 }
 0x152   : > { %v1527_v36 = vsel %vm4274_vm12, %v1514_v39, %v1526_v25  ;;  %v1695_v35 = vsel %vm5047_vm15, %v1688_v28, %v1689_v62  ;;  %vm5049_vm7 = vmmov %vm5048_vm10  ;;  %v1712_v26 = vsel %vm5027_vm8, %v1697_v24, %v1711_v3  ;;  %vm3458_vm12 = vmmov 0  }
 0x153   : > { %1528 = vst [vmem:[#allocation3 + $0x2c] sm:$0x44] %v1527_v36  ;;  %v1696_v58 = vsel %vm5049_vm7, %v4673_v15, %v1695_v35  ;;  %1713 = vst [vmem:[#allocation3 + $0x34] sm:$0x8] %v1712_v26 }
 0x154   : > { %v3377_v16 = vld [vmem:[#allocation3 + $0xc] ss:$28 sps:$4 sm:$0xff]   ;;  %v1709_v49 = vsel %vm4310_vm1, %v1696_v58, %v1708_v19 }
 0x155   : > { %v3379_v21 = vld [vmem:[#allocation3 + $0x8] ss:$28 sps:$4 sm:$0xff]   ;;  %1710 = vst [vmem:[#allocation3 + $0x2c] sm:$0x88] %v1709_v49  ;;  %2865 = vmatprep.subr.bf16.mxu1 %v3377_v16 }
 0x156   : > { %2866 = vmatpush1.bf16.msra.mxu1 %v3379_v21  ;;  %v3383_v44 = vld [vmem:[#allocation3 + $0x50] ss:$28 sps:$4 sm:$0x3f]   ;;  %v3380_v22 = vld [vmem:[#allocation3 + $0x48] ss:$28 sps:$4 sm:$0x3f]  }
 0x157   : > { %3161 = vmatprep.subr.bf16.mxu1 %v3457_v50  ;;  %v3382_v28 = vld [vmem:[#allocation3 + $0x4c] ss:$28 sps:$4 sm:$0x3f]   ;;  %v2808_v10 = vand.u32 %v3383_v44, %v4341_v47  ;;  %v2802_v15 = vand.u32 %v3380_v22, %v4341_v47 }
 0x158   : > { %v2805_v32 = vand.u32 %v3382_v28, %v4341_v47  ;;  %v2977_v47 = vpop.permute.xlu1 %2976 }
 0x159   : > { %3145 = vmatmul.mubr.msk.bf16.vlgmr.msra.gmra.mxu1 %vm2781_vm11, %v4692_v11 }
 0x15a   : > { %3162 = vmatpush3.bf16.msra.mxu1 %v2808_v10  ;;  %3165 = vmatprep.mubr.msk.bf16.mxu1 %vm3458_vm12, %v3457_v50  ;;  %v3387_v8 = vld [vmem:[#allocation3 + $0x18] ss:$28 sps:$4 sm:$0xff]  }
 0x15b   : > { %3163 = vmatprep.subr.bf16.mxu1 %v3457_v50  ;;  %2904 = vmatprep.subr.bf16.mxu0 %v2805_v32 }
 0x15c   : > { %v3386_v63 = vld [vmem:[#allocation3 + $0x14] ss:$28 sps:$4 sm:$0xff]   ;;  %2905 = vmatpush1.bf16.msra.mxu0 %v2802_v15 }
 0x15d   : > { %v3384_v34 = vld [vmem:[#allocation3 + $0x10] ss:$28 sps:$4 sm:$0xff]   ;;  %2906 = vmatprep.subr.bf16.mxu0 %v3386_v63 }
 0x15e   : > { %3164 = vmatpush3.bf16.msra.mxu1 %v3387_v8 }
 0x160   : > { %2907 = vmatpush1.bf16.msra.mxu0 %v3384_v34 }
 0x161   : > { %3166 = vmatmul.mubr.msk.bf16.vlgmr.msra.gmra.mxu1 %vm2781_vm11, %v4692_v11 }
 0x163   : > { %3146 = vmatmul.mubr.msk.bf16.vlgmr.msra.gmra.mxu0 %vm2781_vm11, %v4692_v11 }
 0x205   : > { %v2844_v0 = vpop.f32.mrf.mxu0 }
 0x206   : > { %v2979_v31 = vmul.f32 %v2977_v47, %v2844_v0 }
 0x207   : > { %v2846_v7 = vpop.f32.mrf.mxu0 }
 0x208   : > { %v2980_v9 = vmul.f32 %v2977_v47, %v2846_v7  ;;  %v2992_v33 = vadd.f32 %v2990_v43, %v2979_v31 }
 0x209   : > { %v2848_v6 = vpop.f32.mrf.mxu0 }
 0x20a   : > { %v2993_v51 = vadd.f32 %v2990_v43, %v2980_v9 }
 0x20b   : > { %v2849_v27 = vpop.f32.mrf.mxu0 }
 0x20c   : > { %v3154_v11 = vpack.c.bf16 %v2993_v51, %v2992_v33 }
 0x20e   : > { %3028 = vst [vmem:[%s216_s28] sm:$0xff] %v3154_v11 }
 0x219   : > { %v2885_v54 = vpop.f32.mrf.mxu1 }
 0x21a   : > { %v2981_v56 = vmul.f32 %v2977_v47, %v2885_v54 }
 0x21b   : > { %v2887_v60 = vpop.f32.mrf.mxu1 }
 0x21c   : > { %v2982_v29 = vmul.f32 %v2977_v47, %v2887_v60  ;;  %v2994_v41 = vadd.f32 %v2990_v43, %v2981_v56 }
 0x21d   : > { %v2889_v23 = vpop.f32.mrf.mxu1 }
 0x21e   : > { %v2995_v2 = vadd.f32 %v2990_v43, %v2982_v29 }
 0x21f   : > { %v2890_v53 = vpop.f32.mrf.mxu1 }
 0x220   : > { %v3155_v20 = vpack.c.bf16 %v2995_v2, %v2994_v41 }
 0x221   : > { %v2967_v14 = vpop.f32.mrf.mxu1 }
 0x222   : > { %v2985_v5 = vmul.f32 %v2977_v47, %v2967_v14  ;;  %3029 = vst [vmem:[%s216_s28 + $0x8] sm:$0xff] %v3155_v20 }
 0x223   : > { %v3167_v38 = vpop.f32.mrf.mxu1  ;;  %v2926_v55 = vpop.f32.mrf.mxu0 }
 0x224   : > { %v2998_v61 = vadd.f32 %v2990_v43, %v2985_v5  ;;  %v2983_v46 = vmul.f32 %v2977_v47, %v2926_v55 }
 0x225   : > { %v2970_v30 = vpop.f32.mrf.mxu1  ;;  %v2928_v40 = vpop.f32.mrf.mxu0 }
 0x226   : > { %v3157_v12 = vpack.c.bf16 %v2998_v61, %v2998_v61  ;;  %v2984_v18 = vmul.f32 %v2977_v47, %v2928_v40  ;;  %v2996_v37 = vadd.f32 %v2990_v43, %v2983_v46 }
 0x227   : > { %v3168_v48 = vpop.f32.mrf.mxu1  ;;  %v2930_v13 = vpop.f32.mrf.mxu0 }
 0x228   : > { %3031 = vst [vmem:[%s216_s28 + $0x18] sm:$0xf] %v3157_v12  ;;  %v2997_v45 = vadd.f32 %v2990_v43, %v2984_v18 }
 0x229   : > { %v2931_v17 = vpop.f32.mrf.mxu0 }
 0x22a   : > { %v3156_v52 = vpack.c.bf16 %v2997_v45, %v2996_v37 }
 0x22c   : > { %3030 = vst [vmem:[%s216_s28 + $0x10] sm:$0xff] %v3156_v52 }
 0x22d PF: > { %s14_s19 = sadd.s32 1, %s3426_s19   ;;  %s5050_s15 = smov %s3418_s17 }
 0x22e   : > { %p11_p7 = scmp.ge.s32.totalorder %s14_s19, 8   ;;  %s5051_s16 = smov %s3422_s18 }
 0x22f   : > { %s5052_s17 = smov %s5055_s20  ;;  %s5053_s18 = smov %s5059_s21 }
 0x230   :  { %13 = sbr.rel (!%p11_p7) target bundleno = 3 (0x3), region = 68 }

// kernel: conv2dnet_2_forward.5
= control target key start
LH: loop header
LB: loop body
LE: loop exit
PB: predicated region body
PF: predicated region fallthrough
CT: control target
= control target key end

     0   :  { %s2504_s15 = smov 0   ;;  %s2506_s16 = smov 0   ;;  %s3260_s0 = inlined_call_operand.vmem [shape: bf16[2,3,8,896], index: 0, kind: input, shape index: {}]   ;;  %s3261_s1 = inlined_call_operand.vmem [shape: bf16[16,216], index: 1, kind: input, shape index: {}]   ;;  %s3262_s2 = inlined_call_operand.vmem [shape: f32[16,1], index: 2, kind: input, shape index: {}]   ;;  %s3263_s3 = inlined_call_operand.vmem [shape: f32[16,1], index: 3, kind: input, shape index: {}]   ;;  %s3264_s4 = inlined_call_operand.vmem [shape: bf16[2,2,16,896], index: 4, kind: output, shape index: {}]  }
   0x1   :  { %s2508_s17 = smov 0   ;;  %s2510_s18 = smov 0  }
   0x2   :  { %s2512_s19 = smov 0  }
   0x3 LB: > { %s23_s20 = sadd.s32 1, %s2442_s17  ;;  %s26_s21 = sadd.s32 1, %s2446_s18  ;;  %s2450_s19 = sphi %s2512_s19, %s14_s19   ;;  %s2446_s18 = sphi %s2510_s18, %s3333_s18   ;;  %s2442_s17 = sphi %s2508_s17, %s3332_s17   ;;  %s2438_s16 = sphi %s2506_s16, %s3331_s16   ;;  %s2434_s15 = sphi %s2504_s15, %s3330_s15  }
   0x4   : > { %p24_p0 = scmp.ge.s32.totalorder %s23_s20, 2  ;;  %p2189_p1 = scmp.ge.s32.totalorder %s2450_s19, 1 }
   0x5   : > { %p176_p2 = scmp.lt.s32.totalorder %s2450_s19, 5 }
   0x6   : > { %s3335_s20 = smov (%p24_p0, %s23_s20), 0  ;;  %s3337_s21 = smov (!%p24_p0, %s26_s21), %s2446_s18 }
   0x7   : > { %p177_p3 = pnand %p2189_p1, %p176_p2  ;;  %p28_p4 = scmp.ge.s32.totalorder %s3337_s21, 2 }
   0x8   : > { %p206_p5 = scmp.lt.s32.totalorder (!%p177_p3), %s2438_s16, 1  ;;  %s2314_s22 = smul.u32 (!%p177_p3), 28, %s2434_s15 }
   0x9   : > { %s3339_s21 = smov (%p28_p4, %s3337_s21), 0  ;;  %180 = sbr.rel (%p177_p3) target bundleno = 569 (0x239), region = 36 }
   0xa   : > { %s2452_s28 = smov (!%p177_p3), 88   ;;  %s2453_s29 = smov (!%p177_p3), 98  }
   0xb   : > { %s2454_s30 = smov (!%p177_p3), 100   ;;  %s2455_s5 = smov (!%p177_p3), 99  }
   0xc   : > { %s2456_s6 = smov (!%p177_p3), 111   ;;  %s2457_s7 = smov (!%p177_p3), 110  }
   0xd   : > { %s2458_s8 = smov (!%p177_p3), 102   ;;  %s2459_s9 = smov (!%p177_p3), 112  }
   0xe   : > { %s3341_s16 = smov (!%p206_p5, %s2438_s16), 1  ;;  %s2460_s10 = smov 104   ;;  %vm272_vm0 = vcmask 1043456   ;;  %vm778_vm1 = vcmask 719872   ;;  %vm742_vm2 = vcmask 801792   ;;  %vm670_vm3 = vcmask 818176  }
   0xf   : > { %s2323_s23 = smul.u32 84, %s3341_s16  ;;  %s2461_s11 = smov 103   ;;  %vm706_vm4 = vcmask 809984   ;;  %vm598_vm5 = vcmask 908288   ;;  %vm634_vm6 = vcmask 900096   ;;  %vm526_vm7 = vcmask 834560  }
  0x10   : > { %s2462_s12 = smov 115   ;;  %s2463_s13 = smov 114   ;;  %vm562_vm8 = vcmask 916480   ;;  %vm454_vm9 = vcmask 850944   ;;  %vm490_vm10 = vcmask 842752   ;;  %vm382_vm11 = vcmask 941056  }
  0x11   : > { %s210_s26 = scalar_lea.vmem %s3260_s0, %s2323_s23  ;;  %s2464_s14 = smov 126   ;;  %vm418_vm12 = vcmask 932864   ;;  %vm3273_vm13 = vcmask 1031168   ;;  %vm3276_vm14 = vcmask 949248   ;;  %vm3274_vm15 = vcmask 1039360  }
  0x12   : > { %s2543_s27 = scalar_lea.vmem %s210_s26, %s2314_s22  ;;  %s2465_s22 = smov 116  }
  0x13   : > { %v2546_v0 = vld [vmem:[%s2543_s27] sm:$0xff]  ;;  %v2549_v1 = vld [vmem:[%s2543_s27 + $0x8] sm:$0xff]  ;;  %v2554_v2 = vld [vmem:[%s2543_s27 + $0x10] sm:$0xff]  ;;  %s3265_s23 = smov 127   ;;  %s2467_s24 = smov 70  }
  0x14   : > { %228 = vst [vmem:[#allocation2] sm:$0xff] %v2546_v0  ;;  %229 = vst [vmem:[#allocation2 + $0x8] sm:$0xff] %v2549_v1  ;;  %v227_v3 = vld [vmem:[%s2543_s27 + $0x18] sm:$0xf]  ;;  %v2559_v4 = vld [vmem:[%s2543_s27 + $0x1c] sm:$0xff]  ;;  %s3266_s25 = smov 72  }
  0x15   : > { %230 = vst [vmem:[#allocation2 + $0x10] sm:$0xff] %v2554_v2  ;;  %231 = vst [vmem:[#allocation2 + $0x18] sm:$0xf] %v227_v3  ;;  %v2194_v8 = vld [vmem:[%s2543_s27 + $0x24] sm:$0xff]  ;;  %s2469_s26 = smov 71   ;;  %s3267_s27 = smov 83  }
  0x16   : > { %240 = vst [vmem:[#allocation2 + $0x1c] sm:$0xff] %v2559_v4  ;;  %241 = vst [vmem:[#allocation2 + $0x24] sm:$0xff] %v2194_v8  ;;  %p213_p6 = scmp.lt.s32.totalorder %s2434_s15, 1 }
  0x18   : > { %s3343_s15 = smov (!%p213_p6, %s2434_s15), 1 }
  0x1b   : > { %v2562_v5 = vld [vmem:[#allocation2 + $0x4] sm:$0xff] }
  0x1c   : > { %765 = vrot.lane.b32.xlu1 %v2562_v5, %s2452_s28  ;;  %729 = vrot.lane.b32.xlu0 %v2562_v5, %s2453_s29  ;;  %v2568_v6 = vld [vmem:[#allocation2 + $0xc] sm:$0xff]  ;;  %v2574_v7 = vld [vmem:[#allocation2 + $0x14] sm:$0xff]  ;;  %v2645_v9 = vld [vmem:[#allocation2] sm:$0xff] }
  0x1d   : > { %v2651_v10 = vld [vmem:[#allocation2 + $0x8] sm:$0xff]  ;;  %v2665_v11 = vld [vmem:[#allocation2 + $0x18] sm:$0xff] }
  0x20   : > { %767 = vrot.lane.b32.xlu1 %v2568_v6, %s2452_s28  ;;  %731 = vrot.lane.b32.xlu0 %v2568_v6, %s2453_s29 }
  0x24   : > { %769 = vrot.lane.b32.xlu1 %v2574_v7, %s2452_s28  ;;  %733 = vrot.lane.b32.xlu0 %v2574_v7, %s2453_s29 }
  0x28   : > { %659 = vrot.lane.b32.xlu1 %v2568_v6, %s2454_s30  ;;  %657 = vrot.lane.b32.xlu0 %v2562_v5, %s2454_s30 }
  0x2c   : > { %695 = vrot.lane.b32.xlu1 %v2568_v6, %s2455_s5  ;;  %693 = vrot.lane.b32.xlu0 %v2562_v5, %s2455_s5 }
  0x30   : > { %697 = vrot.lane.b32.xlu1 %v2574_v7, %s2455_s5  ;;  %661 = vrot.lane.b32.xlu0 %v2574_v7, %s2454_s30 }
  0x34   : > { %587 = vrot.lane.b32.xlu1 %v2568_v6, %s2456_s6  ;;  %585 = vrot.lane.b32.xlu0 %v2562_v5, %s2456_s6 }
  0x38   : > { %623 = vrot.lane.b32.xlu1 %v2568_v6, %s2457_s7  ;;  %621 = vrot.lane.b32.xlu0 %v2562_v5, %s2457_s7 }
  0x3c   : > { %625 = vrot.lane.b32.xlu1 %v2574_v7, %s2457_s7  ;;  %589 = vrot.lane.b32.xlu0 %v2574_v7, %s2456_s6 }
  0x40   : > { %515 = vrot.lane.b32.xlu1 %v2549_v1, %s2458_s8  ;;  %513 = vrot.lane.b32.xlu0 %v2546_v0, %s2458_s8 }
  0x44   : > { %551 = vrot.lane.b32.xlu1 %v2568_v6, %s2459_s9  ;;  %549 = vrot.lane.b32.xlu0 %v2562_v5, %s2459_s9 }
  0x48   : > { %553 = vrot.lane.b32.xlu1 %v2574_v7, %s2459_s9  ;;  %517 = vrot.lane.b32.xlu0 %v2554_v2, %s2458_s8 }
  0x4c   : > { %443 = vrot.lane.b32.xlu1 %v2549_v1, %s2460_s10  ;;  %441 = vrot.lane.b32.xlu0 %v2546_v0, %s2460_s10 }
  0x50   : > { %479 = vrot.lane.b32.xlu1 %v2549_v1, %s2461_s11  ;;  %477 = vrot.lane.b32.xlu0 %v2546_v0, %s2461_s11 }
  0x54   : > { %481 = vrot.lane.b32.xlu1 %v2554_v2, %s2461_s11  ;;  %445 = vrot.lane.b32.xlu0 %v2554_v2, %s2460_s10 }
  0x58   : > { %371 = vrot.lane.b32.xlu1 %v2549_v1, %s2462_s12  ;;  %369 = vrot.lane.b32.xlu0 %v2546_v0, %s2462_s12 }
  0x5c   : > { %407 = vrot.lane.b32.xlu1 %v2549_v1, %s2463_s13  ;;  %405 = vrot.lane.b32.xlu0 %v2546_v0, %s2463_s13 }
  0x60   : > { %409 = vrot.lane.b32.xlu1 %v2554_v2, %s2463_s13  ;;  %373 = vrot.lane.b32.xlu0 %v2554_v2, %s2462_s12 }
  0x64   : > { %299 = vrot.lane.b32.xlu1 %v2549_v1, %s2464_s14  ;;  %297 = vrot.lane.b32.xlu0 %v2546_v0, %s2464_s14 }
  0x68   : > { %335 = vrot.lane.b32.xlu1 %v2549_v1, %s2465_s22  ;;  %333 = vrot.lane.b32.xlu0 %v2546_v0, %s2465_s22 }
  0x6c   : > { %337 = vrot.lane.b32.xlu1 %v2554_v2, %s2465_s22  ;;  %301 = vrot.lane.b32.xlu0 %v2554_v2, %s2464_s14 }
  0x70   : > { %262 = vrot.lane.b32.xlu1 %v2549_v1, %s3265_s23  ;;  %260 = vrot.lane.b32.xlu0 %v2546_v0, %s3265_s23 }
  0x74   : > { %1161 = vrot.lane.b32.xlu1 %v2549_v1, %s2467_s24  ;;  %264 = vrot.lane.b32.xlu0 %v2554_v2, %s3265_s23  ;;  %s3268_s23 = smov 82  }
  0x78   : > { %1165 = vrot.lane.b32.xlu1 %v2665_v11, %s2467_s24  ;;  %1163 = vrot.lane.b32.xlu0 %v2554_v2, %s2467_s24 }
  0x7c   : > { %1091 = vrot.lane.b32.xlu1 %v2554_v2, %s3266_s25  ;;  %1089 = vrot.lane.b32.xlu0 %v2549_v1, %s3266_s25 }
  0x80   : > { %1127 = vrot.lane.b32.xlu1 %v2554_v2, %s2469_s26  ;;  %1125 = vrot.lane.b32.xlu0 %v2549_v1, %s2469_s26 }
  0x84   : > { %1129 = vrot.lane.b32.xlu1 %v2665_v11, %s2469_s26  ;;  %1093 = vrot.lane.b32.xlu0 %v2665_v11, %s3266_s25  ;;  %s3269_s25 = smov 94  }
  0x88   : > { %1019 = vrot.lane.b32.xlu1 %v2554_v2, %s3267_s27  ;;  %1017 = vrot.lane.b32.xlu0 %v2549_v1, %s3267_s27 }
  0x8c   : > { %1055 = vrot.lane.b32.xlu1 %v2554_v2, %s3268_s23  ;;  %1053 = vrot.lane.b32.xlu0 %v2549_v1, %s3268_s23 }
  0x8e   : > { %v766_v12 = vpop.permute.xlu1 %765  ;;  %v730_v13 = vpop.permute.xlu0 %729 }
  0x8f   : > { %v773_v16 = vrot.slane %v766_v12, 4  ;;  %v737_v17 = vrot.slane %v730_v13, 4 }
  0x90   : > { %1057 = vrot.lane.b32.xlu1 %v2665_v11, %s3268_s23  ;;  %1021 = vrot.lane.b32.xlu0 %v2665_v11, %s3267_s27  ;;  %s3270_s27 = smov 84   ;;  %s3271_s23 = smov 96  }
  0x92   : > { %v768_v14 = vpop.permute.xlu1 %767  ;;  %v732_v15 = vpop.permute.xlu0 %731 }
  0x93   : > { %v774_v18 = vrot.slane %v768_v14, 4  ;;  %v738_v19 = vrot.slane %v732_v15, 4 }
  0x94   : > { %947 = vrot.lane.b32.xlu1 %v2554_v2, %s3269_s25  ;;  %945 = vrot.lane.b32.xlu0 %v2549_v1, %s3269_s25 }
  0x95   : > { %v777_v20 = vsel %vm272_vm0, %v773_v16, %v774_v18  ;;  %v741_v21 = vsel %vm272_vm0, %v737_v17, %v738_v19 }
  0x96   : > { %v779_v22 = vsel %vm778_vm1, %v766_v12, %v777_v20  ;;  %v743_v23 = vsel %vm742_vm2, %v730_v13, %v741_v21  ;;  %v2703_v24 = vpop.permute.xlu1 %769  ;;  %v2705_v25 = vpop.permute.xlu0 %733 }
  0x97   : > { %v775_v26 = vrot.slane %v2703_v24, 4  ;;  %v739_v27 = vrot.slane %v2705_v25, 4  ;;  %v2249_v28 = vcombine.high %v743_v23, %v779_v22  ;;  %v2248_v29 = vcombine.low %v743_v23, %v779_v22 }
  0x98   : > { %983 = vrot.lane.b32.xlu1 %v2554_v2, %s3270_s27  ;;  %981 = vrot.lane.b32.xlu0 %v2549_v1, %s3270_s27 }
  0x99   : > { %v780_v30 = vsel %vm272_vm0, %v774_v18, %v775_v26  ;;  %v744_v31 = vsel %vm272_vm0, %v738_v19, %v739_v27  ;;  %1820 = vmatprep.subr.bf16.mxu0 %v2249_v28 }
  0x9a   : > { %v781_v32 = vsel %vm778_vm1, %v768_v14, %v780_v30  ;;  %v745_v33 = vsel %vm742_vm2, %v732_v15, %v744_v31  ;;  %v660_v34 = vpop.permute.xlu1 %659  ;;  %v658_v35 = vpop.permute.xlu0 %657  ;;  %1821 = vmatpush1.bf16.msra.mxu0 %v2248_v29  ;;  %v2765_v14 = vld [vmem:[%s3261_s1 + $0x4] ss:$8 sps:$4 sm:$0xff]  }
  0x9b   : > { %v666_v36 = vrot.slane %v660_v34, 4  ;;  %v665_v37 = vrot.slane %v658_v35, 4  ;;  %v2251_v38 = vcombine.high %v745_v33, %v781_v32  ;;  %v2250_v39 = vcombine.low %v745_v33, %v781_v32  ;;  %2298 = vmatprep.mubr.msk.bf16.mxu0 %vm778_vm1, %v2765_v14  ;;  %2300 = vmatprep.mubr.msk.bf16.mxu1 %vm778_vm1, %v2765_v14 }
  0x9c   : > { %985 = vrot.lane.b32.xlu1 %v2665_v11, %s3270_s27  ;;  %949 = vrot.lane.b32.xlu0 %v2665_v11, %s3269_s25  ;;  %s3272_s25 = smov 95   ;;  %s2476_s27 = smov 87  }
  0x9d   : > { %v669_v40 = vsel %vm272_vm0, %v665_v37, %v666_v36  ;;  %1863 = vmatprep.subr.bf16.mxu1 %v2251_v38 }
  0x9e   : > { %v671_v41 = vsel %vm670_vm3, %v658_v35, %v669_v40  ;;  %v696_v42 = vpop.permute.xlu1 %695  ;;  %v694_v43 = vpop.permute.xlu0 %693  ;;  %1864 = vmatpush1.bf16.msra.mxu1 %v2250_v39  ;;  %v2478_v40 = vmov 0  }
  0x9f   : > { %v702_v44 = vrot.slane %v696_v42, 4  ;;  %v701_v45 = vrot.slane %v694_v43, 4  ;;  %2394 = vset.pattern.permute.xlu1 %v2478_v40  ;;  %2393 = vset.pattern.permute.xlu0 %v2478_v40 }
  0xa0   : > { %875 = vrot.lane.b32.xlu1 %v2554_v2, %s3271_s23  ;;  %873 = vrot.lane.b32.xlu0 %v2549_v1, %s3271_s23 }
  0xa1   : > { %v705_v46 = vsel %vm272_vm0, %v701_v45, %v702_v44 }
  0xa2   : > { %v707_v47 = vsel %vm706_vm4, %v694_v43, %v705_v46  ;;  %v2733_v48 = vpop.permute.xlu1 %697  ;;  %v2735_v49 = vpop.permute.xlu0 %661 }
  0xa3   : > { %v703_v50 = vrot.slane %v2733_v48, 4  ;;  %v667_v51 = vrot.slane %v2735_v49, 4  ;;  %v2242_v52 = vcombine.high %v671_v41, %v707_v47  ;;  %v2241_v53 = vcombine.low %v671_v41, %v707_v47 }
  0xa4   : > { %911 = vrot.lane.b32.xlu1 %v2554_v2, %s3272_s25  ;;  %909 = vrot.lane.b32.xlu0 %v2549_v1, %s3272_s25 }
  0xa5   : > { %v708_v54 = vsel %vm272_vm0, %v702_v44, %v703_v50  ;;  %v672_v55 = vsel %vm272_vm0, %v666_v36, %v667_v51  ;;  %1822 = vmatprep.subr.bf16.mxu0 %v2242_v52 }
  0xa6   : > { %v709_v56 = vsel %vm706_vm4, %v696_v42, %v708_v54  ;;  %v673_v57 = vsel %vm670_vm3, %v660_v34, %v672_v55  ;;  %v588_v58 = vpop.permute.xlu1 %587  ;;  %v586_v59 = vpop.permute.xlu0 %585  ;;  %1823 = vmatpush1.bf16.msra.mxu0 %v2241_v53 }
  0xa7   : > { %v594_v60 = vrot.slane %v588_v58, 4  ;;  %v593_v61 = vrot.slane %v586_v59, 4  ;;  %v2244_v62 = vcombine.high %v673_v57, %v709_v56  ;;  %v2243_v63 = vcombine.low %v673_v57, %v709_v56 }
  0xa8   : > { %913 = vrot.lane.b32.xlu1 %v2665_v11, %s3272_s25  ;;  %877 = vrot.lane.b32.xlu0 %v2665_v11, %s3271_s23  ;;  %s2477_s23 = smov 86  }
  0xa9   : > { %v597_v0 = vsel %vm272_vm0, %v593_v61, %v594_v60  ;;  %1865 = vmatprep.subr.bf16.mxu1 %v2244_v62 }
  0xaa   : > { %v599_v1 = vsel %vm598_vm5, %v586_v59, %v597_v0  ;;  %v624_v2 = vpop.permute.xlu1 %623  ;;  %v622_v3 = vpop.permute.xlu0 %621  ;;  %1866 = vmatpush1.bf16.msra.mxu1 %v2243_v63 }
  0xab   : > { %v630_v8 = vrot.slane %v624_v2, 4  ;;  %v629_v12 = vrot.slane %v622_v3, 4 }
  0xac   : > { %803 = vrot.lane.b32.xlu1 %v2568_v6, %s2476_s27  ;;  %801 = vrot.lane.b32.xlu0 %v2562_v5, %s2476_s27 }
  0xad   : > { %v633_v13 = vsel %vm272_vm0, %v629_v12, %v630_v8 }
  0xae   : > { %v635_v15 = vsel %vm634_vm6, %v622_v3, %v633_v13  ;;  %v2768_v16 = vpop.permute.xlu1 %625  ;;  %v2770_v17 = vpop.permute.xlu0 %589 }
  0xaf   : > { %v631_v18 = vrot.slane %v2768_v16, 4  ;;  %v595_v19 = vrot.slane %v2770_v17, 4  ;;  %v2235_v20 = vcombine.high %v599_v1, %v635_v15  ;;  %v2234_v21 = vcombine.low %v599_v1, %v635_v15 }
  0xb0   : > { %839 = vrot.lane.b32.xlu1 %v2568_v6, %s2477_s23  ;;  %837 = vrot.lane.b32.xlu0 %v2562_v5, %s2477_s23 }
  0xb1   : > { %v636_v22 = vsel %vm272_vm0, %v630_v8, %v631_v18  ;;  %v600_v23 = vsel %vm272_vm0, %v594_v60, %v595_v19  ;;  %1824 = vmatprep.subr.bf16.mxu0 %v2235_v20 }
  0xb2   : > { %v637_v28 = vsel %vm634_vm6, %v624_v2, %v636_v22  ;;  %v601_v29 = vsel %vm598_vm5, %v588_v58, %v600_v23  ;;  %v516_v30 = vpop.permute.xlu1 %515  ;;  %v514_v31 = vpop.permute.xlu0 %513  ;;  %1825 = vmatpush1.bf16.msra.mxu0 %v2234_v21 }
  0xb3   : > { %v522_v6 = vrot.slane %v516_v30, 4  ;;  %v521_v32 = vrot.slane %v514_v31, 4  ;;  %v2237_v5 = vcombine.high %v601_v29, %v637_v28  ;;  %v2236_v33 = vcombine.low %v601_v29, %v637_v28 }
  0xb4   : > { %841 = vrot.lane.b32.xlu1 %v2574_v7, %s2477_s23  ;;  %805 = vrot.lane.b32.xlu0 %v2574_v7, %s2476_s27 }
  0xb5   : > { %v525_v34 = vsel %vm272_vm0, %v521_v32, %v522_v6  ;;  %1867 = vmatprep.subr.bf16.mxu1 %v2237_v5  ;;  %v247_v5 = vld [vmem:[#allocation2 + $0x18] sm:$0xf] }
  0xb6   : > { %v527_v35 = vsel %vm526_vm7, %v514_v31, %v525_v34  ;;  %v552_v36 = vpop.permute.xlu1 %551  ;;  %v550_v37 = vpop.permute.xlu0 %549  ;;  %1868 = vmatpush1.bf16.msra.mxu1 %v2236_v33  ;;  %251 = vst [vmem:[#allocation3 + $0x18] sm:$0xf] %v247_v5 }
  0xb7   : > { %v558_v38 = vrot.slane %v552_v36, 4  ;;  %v557_v39 = vrot.slane %v550_v37, 4 }
  0xb8   : > { %771 = vrot.lane.b32.xlu1 %v2559_v4, %s2452_s28  ;;  %735 = vrot.lane.b32.xlu0 %v2559_v4, %s2453_s29  ;;  %s3292_s28 = smov 127   ;;  %s3293_s29 = smov 72  }
  0xb9   : > { %v561_v7 = vsel %vm272_vm0, %v557_v39, %v558_v38 }
  0xba   : > { %v563_v41 = vsel %vm562_vm8, %v550_v37, %v561_v7  ;;  %v2804_v42 = vpop.permute.xlu1 %553  ;;  %v2806_v43 = vpop.permute.xlu0 %517  ;;  %v2852_v37 = vld [vmem:[#allocation2 + $0x10] sm:$0xff] }
  0xbb   : > { %v559_v44 = vrot.slane %v2804_v42, 4  ;;  %v523_v45 = vrot.slane %v2806_v43, 4  ;;  %v2228_v46 = vcombine.high %v527_v35, %v563_v41  ;;  %v2227_v47 = vcombine.low %v527_v35, %v563_v41 }
  0xbc   : > { %699 = vrot.lane.b32.xlu1 %v2559_v4, %s2455_s5  ;;  %663 = vrot.lane.b32.xlu0 %v2559_v4, %s2454_s30  ;;  %s3294_s30 = smov 82   ;;  %s3295_s5 = smov 83  }
  0xbd   : > { %v564_v52 = vsel %vm272_vm0, %v558_v38, %v559_v44  ;;  %v528_v53 = vsel %vm272_vm0, %v522_v6, %v523_v45  ;;  %1826 = vmatprep.subr.bf16.mxu0 %v2228_v46 }
  0xbe   : > { %v565_v54 = vsel %vm562_vm8, %v552_v36, %v564_v52  ;;  %v529_v55 = vsel %vm526_vm7, %v516_v30, %v528_v53  ;;  %v444_v56 = vpop.permute.xlu1 %443  ;;  %v442_v57 = vpop.permute.xlu0 %441  ;;  %1827 = vmatpush1.bf16.msra.mxu0 %v2227_v47  ;;  %v1156_v53 = vld [vmem:[#allocation2 + $0x20] sm:$0xff] }
  0xbf   : > { %v450_v58 = vrot.slane %v444_v56, 4  ;;  %v449_v59 = vrot.slane %v442_v57, 4  ;;  %v2230_v60 = vcombine.high %v529_v55, %v565_v54  ;;  %v2229_v61 = vcombine.low %v529_v55, %v565_v54 }
  0xc0   : > { %627 = vrot.lane.b32.xlu1 %v2559_v4, %s2457_s7  ;;  %591 = vrot.lane.b32.xlu0 %v2559_v4, %s2456_s6  ;;  %s3296_s6 = smov 84   ;;  %s3297_s7 = smov 94  }
  0xc1   : > { %v453_v62 = vsel %vm272_vm0, %v449_v59, %v450_v58  ;;  %1869 = vmatprep.subr.bf16.mxu1 %v2230_v60 }
  0xc2   : > { %v455_v63 = vsel %vm454_vm9, %v442_v57, %v453_v62  ;;  %v480_v0 = vpop.permute.xlu1 %479  ;;  %v478_v1 = vpop.permute.xlu0 %477  ;;  %1870 = vmatpush1.bf16.msra.mxu1 %v2229_v61 }
  0xc3   : > { %v486_v2 = vrot.slane %v480_v0, 4  ;;  %v485_v3 = vrot.slane %v478_v1, 4 }
  0xc4   : > { %555 = vrot.lane.b32.xlu1 %v2559_v4, %s2459_s9  ;;  %519 = vrot.lane.b32.xlu0 %v2665_v11, %s2458_s8  ;;  %s3298_s8 = smov 95   ;;  %s3299_s9 = smov 96  }
  0xc5   : > { %v489_v8 = vsel %vm272_vm0, %v485_v3, %v486_v2 }
  0xc6   : > { %v491_v12 = vsel %vm490_vm10, %v478_v1, %v489_v8  ;;  %v2834_v13 = vpop.permute.xlu1 %481  ;;  %v2836_v15 = vpop.permute.xlu0 %445 }
  0xc7   : > { %v487_v20 = vrot.slane %v2834_v13, 4  ;;  %v451_v21 = vrot.slane %v2836_v15, 4  ;;  %v2221_v22 = vcombine.high %v455_v63, %v491_v12  ;;  %v2220_v23 = vcombine.low %v455_v63, %v491_v12 }
  0xc8   : > { %483 = vrot.lane.b32.xlu1 %v2665_v11, %s2461_s11  ;;  %447 = vrot.lane.b32.xlu0 %v2665_v11, %s2460_s10 }
  0xc9   : > { %v492_v28 = vsel %vm272_vm0, %v486_v2, %v487_v20  ;;  %v456_v29 = vsel %vm272_vm0, %v450_v58, %v451_v21  ;;  %1828 = vmatprep.subr.bf16.mxu0 %v2221_v22 }
  0xca   : > { %v493_v30 = vsel %vm490_vm10, %v480_v0, %v492_v28  ;;  %v457_v31 = vsel %vm454_vm9, %v444_v56, %v456_v29  ;;  %v372_v6 = vpop.permute.xlu1 %371  ;;  %v370_v32 = vpop.permute.xlu0 %369  ;;  %1829 = vmatpush1.bf16.msra.mxu0 %v2220_v23 }
  0xcb   : > { %v378_v33 = vrot.slane %v372_v6, 4  ;;  %v377_v34 = vrot.slane %v370_v32, 4  ;;  %v2223_v35 = vcombine.high %v457_v31, %v493_v30  ;;  %v2222_v36 = vcombine.low %v457_v31, %v493_v30 }
  0xcc   : > { %411 = vrot.lane.b32.xlu1 %v2665_v11, %s2463_s13  ;;  %375 = vrot.lane.b32.xlu0 %v2665_v11, %s2462_s12 }
  0xcd   : > { %v381_v38 = vsel %vm272_vm0, %v377_v34, %v378_v33  ;;  %1871 = vmatprep.subr.bf16.mxu1 %v2223_v35 }
  0xce   : > { %v383_v39 = vsel %vm382_vm11, %v370_v32, %v381_v38  ;;  %v408_v7 = vpop.permute.xlu1 %407  ;;  %v406_v41 = vpop.permute.xlu0 %405  ;;  %1872 = vmatpush1.bf16.msra.mxu1 %v2222_v36 }
  0xcf   : > { %v414_v46 = vrot.slane %v408_v7, 4  ;;  %v413_v47 = vrot.slane %v406_v41, 4 }
  0xd0   : > { %339 = vrot.lane.b32.xlu1 %v2665_v11, %s2465_s22  ;;  %303 = vrot.lane.b32.xlu0 %v2665_v11, %s2464_s14 }
  0xd1   : > { %v417_v52 = vsel %vm272_vm0, %v413_v47, %v414_v46 }
  0xd2   : > { %v419_v54 = vsel %vm418_vm12, %v406_v41, %v417_v52  ;;  %v2866_v55 = vpop.permute.xlu1 %409  ;;  %v2868_v56 = vpop.permute.xlu0 %373 }
  0xd3   : > { %v415_v57 = vrot.slane %v2866_v55, 4  ;;  %v379_v58 = vrot.slane %v2868_v56, 4  ;;  %v2214_v59 = vcombine.high %v383_v39, %v419_v54  ;;  %v2213_v60 = vcombine.low %v383_v39, %v419_v54 }
  0xd4   : > { %1167 = vrot.lane.b32.xlu1 %v1156_v53, %s2467_s24  ;;  %266 = vrot.lane.b32.xlu0 %v2665_v11, %s3292_s28  ;;  %s2324_s28 = smul.u32 14, %s3343_s15 }
  0xd5   : > { %v420_v61 = vsel %vm272_vm0, %v414_v46, %v415_v57  ;;  %v384_v62 = vsel %vm272_vm0, %v378_v33, %v379_v58  ;;  %1830 = vmatprep.subr.bf16.mxu0 %v2214_v59 }
  0xd6   : > { %v421_v63 = vsel %vm418_vm12, %v408_v7, %v420_v61  ;;  %v385_v0 = vsel %vm382_vm11, %v372_v6, %v384_v62  ;;  %v300_v1 = vpop.permute.xlu1 %299  ;;  %v298_v2 = vpop.permute.xlu0 %297  ;;  %1831 = vmatpush1.bf16.msra.mxu0 %v2213_v60 }
  0xd7   : > { %v306_v3 = vrot.slane %v300_v1, 4  ;;  %v305_v8 = vrot.slane %v298_v2, 4  ;;  %v2216_v11 = vcombine.high %v385_v0, %v421_v63  ;;  %v2215_v12 = vcombine.low %v385_v0, %v421_v63 }
  0xd8   : > { %1131 = vrot.lane.b32.xlu1 %v1156_v53, %s2469_s26  ;;  %1095 = vrot.lane.b32.xlu0 %v1156_v53, %s3293_s29 }
  0xd9   : > { %v309_v22 = vsel %vm272_vm0, %v305_v8, %v306_v3  ;;  %1873 = vmatprep.subr.bf16.mxu1 %v2216_v11 }
  0xda   : > { %v311_v23 = vsel %vm3273_vm13, %v298_v2, %v309_v22  ;;  %v336_v28 = vpop.permute.xlu1 %335  ;;  %v334_v29 = vpop.permute.xlu0 %333  ;;  %1874 = vmatpush1.bf16.msra.mxu1 %v2215_v12 }
  0xdb   : > { %v342_v30 = vrot.slane %v336_v28, 4  ;;  %v341_v31 = vrot.slane %v334_v29, 4 }
  0xdc   : > { %1059 = vrot.lane.b32.xlu1 %v1156_v53, %s3294_s30  ;;  %1023 = vrot.lane.b32.xlu0 %v1156_v53, %s3295_s5 }
  0xdd   : > { %v345_v6 = vsel %vm272_vm0, %v341_v31, %v342_v30 }
  0xde   : > { %v347_v32 = vsel %vm3276_vm14, %v334_v29, %v345_v6  ;;  %v2891_v5 = vpop.permute.xlu1 %337  ;;  %v2893_v33 = vpop.permute.xlu0 %301 }
  0xdf   : > { %v343_v34 = vrot.slane %v2891_v5, 4  ;;  %v307_v35 = vrot.slane %v2893_v33, 4  ;;  %v2207_v36 = vcombine.high %v311_v23, %v347_v32  ;;  %v2206_v38 = vcombine.low %v311_v23, %v347_v32 }
  0xe0   : > { %987 = vrot.lane.b32.xlu1 %v1156_v53, %s3296_s6  ;;  %951 = vrot.lane.b32.xlu0 %v1156_v53, %s3297_s7 }
  0xe1   : > { %v348_v39 = vsel %vm272_vm0, %v342_v30, %v343_v34  ;;  %v312_v7 = vsel %vm272_vm0, %v306_v3, %v307_v35  ;;  %1832 = vmatprep.subr.bf16.mxu0 %v2207_v36 }
  0xe2   : > { %v349_v41 = vsel %vm3276_vm14, %v336_v28, %v348_v39  ;;  %v313_v46 = vsel %vm3273_vm13, %v300_v1, %v312_v7  ;;  %v263_v47 = vpop.permute.xlu1 %262  ;;  %v261_v52 = vpop.permute.xlu0 %260  ;;  %1833 = vmatpush1.bf16.msra.mxu0 %v2206_v38  ;;  %vm3275_vm13 = vcmask 572416   ;;  %v1991_v39 = vld [vmem:[%s3262_s2 + $0x8] sm:$0xff]  ;;  %vm3280_vm14 = vcmask 678912  }
  0xe3   : > { %v269_v54 = vrot.slane %v263_v47, 4  ;;  %v268_v59 = vrot.slane %v261_v52, 4  ;;  %v2209_v60 = vcombine.high %v313_v46, %v349_v41  ;;  %v2208_v61 = vcombine.low %v313_v46, %v349_v41 }
  0xe4   : > { %915 = vrot.lane.b32.xlu1 %v1156_v53, %s3298_s8  ;;  %879 = vrot.lane.b32.xlu0 %v1156_v53, %s3299_s9 }
  0xe5   : > { %v273_v62 = vsel %vm272_vm0, %v268_v59, %v269_v54  ;;  %1875 = vmatprep.subr.bf16.mxu1 %v2209_v60  ;;  %v2016_v60 = vld [vmem:[%s3263_s3] sm:$0xff] }
  0xe6   : > { %v275_v63 = vsel %vm3274_vm15, %v261_v52, %v273_v62  ;;  %v1162_v0 = vpop.permute.xlu1 %1161  ;;  %v2911_v2 = vpop.permute.xlu0 %264  ;;  %1876 = vmatpush1.bf16.msra.mxu1 %v2208_v61  ;;  %v2017_v61 = vld [vmem:[%s3263_s3 + $0x8] sm:$0xff] }
  0xe7   : > { %v270_v1 = vrot.slane %v2911_v2, 4  ;;  %v2200_v3 = vcombine.high %v2645_v9, %v275_v63  ;;  %v2199_v8 = vcombine.low %v2645_v9, %v275_v63  ;;  %v1169_v11 = vrot.slane %v1162_v0, 4 }
  0xe8   : > { %843 = vrot.lane.b32.xlu1 %v2559_v4, %s2477_s23  ;;  %807 = vrot.lane.b32.xlu0 %v2559_v4, %s2476_s27  ;;  %s2325_s23 = smul.u32 28, %s3341_s16 }
  0xe9   : > { %v276_v53 = vsel %vm272_vm0, %v269_v54, %v270_v1  ;;  %1834 = vmatprep.subr.bf16.mxu0 %v2200_v3 }
  0xea   : > { %v277_v12 = vsel %vm3274_vm15, %v263_v47, %v276_v53  ;;  %v2924_v22 = vpop.permute.xlu1 %1165  ;;  %v1164_v23 = vpop.permute.xlu0 %1163  ;;  %1835 = vmatpush1.bf16.msra.mxu0 %v2199_v8  ;;  %vm3278_vm15 = vcmask 588800   ;;  %s217_s29 = sadd.s32 %s2325_s23, %s2324_s28 }
  0xeb   : > { %v1171_v9 = vrot.slane %v2924_v22, 4  ;;  %v1170_v28 = vrot.slane %v1164_v23, 4  ;;  %v2202_v29 = vcombine.high %v2651_v10, %v277_v12  ;;  %v2201_v4 = vcombine.low %v2651_v10, %v277_v12  ;;  %v1990_v10 = vld [vmem:[%s3262_s2] sm:$0xff]  ;;  %s2191_s30 = sshll.u32 %s217_s29, 2 }
  0xec   : > { %1999 = vperm.xlu1 %2394, %v1991_v39   ;;  %1994 = vperm.xlu0 %2393, %v1990_v10   ;;  %s3235_s15 = scalar_lea.vmem %s3264_s4, %s2191_s30 }
  0xed   : > { %v1173_v30 = vsel %vm272_vm0, %v1169_v11, %v1170_v28  ;;  %v1176_v31 = vsel %vm272_vm0, %v1170_v28, %v1171_v9  ;;  %1877 = vmatprep.subr.bf16.mxu1 %v2202_v29 }
  0xee   : > { %v1175_v6 = vsel %vm3275_vm13, %v1162_v0, %v1173_v30  ;;  %v1177_v32 = vsel %vm3275_vm13, %v1164_v23, %v1176_v31  ;;  %v1092_v36 = vpop.permute.xlu1 %1091  ;;  %v1090_v38 = vpop.permute.xlu0 %1089  ;;  %1878 = vmatpush1.bf16.msra.mxu1 %v2201_v4  ;;  %vm3277_vm13 = vcmask 580608  }
  0xef   : > { %v1098_v7 = vrot.slane %v1092_v36, 4  ;;  %v1097_v41 = vrot.slane %v1090_v38, 4  ;;  %v2291_v46 = vcombine.high %v1175_v6, %v1175_v6  ;;  %v2293_v47 = vcombine.high %v1177_v32, %v1177_v32 }
  0xf0   : > { %v2292_v52 = vcombine.low %v1177_v32, %v1177_v32  ;;  %v2290_v54 = vcombine.low %v1175_v6, %v1175_v6  ;;  %2020 = vperm.xlu1 %2394, %v2016_v60   ;;  %2025 = vperm.xlu0 %2393, %v2017_v61  }
  0xf1   : > { %v1101_v59 = vsel %vm272_vm0, %v1097_v41, %v1098_v7  ;;  %2297 = vmatprep.subr.msk.bf16.mxu0 %vm272_vm0, %v2291_v46  ;;  %2299 = vmatprep.subr.msk.bf16.mxu1 %vm272_vm0, %v2293_v47 }
  0xf2   : > { %v1103_v62 = vsel %vm3278_vm15, %v1090_v38, %v1101_v59  ;;  %v1128_v63 = vpop.permute.xlu1 %1127  ;;  %v1126_v0 = vpop.permute.xlu0 %1125  ;;  %v1806_v3 = vsel %vm272_vm0, %v2292_v52, 0  ;;  %v1800_v8 = vsel %vm272_vm0, %v2290_v54, 0 }
  0xf3   : > { %v1134_v53 = vrot.slane %v1128_v63, 4  ;;  %v1133_v11 = vrot.slane %v1126_v0, 4  ;;  %1884 = vmatpush2.bf16.msra.mxu1 %v1806_v3  ;;  %1841 = vmatpush2.bf16.msra.mxu0 %v1800_v8 }
  0xf5   : > { %v1137_v12 = vsel %vm272_vm0, %v1133_v11, %v1134_v53 }
  0xf6   : > { %v1139_v23 = vsel %vm3277_vm13, %v1126_v0, %v1137_v12  ;;  %v2955_v28 = vpop.permute.xlu1 %1129  ;;  %v2957_v29 = vpop.permute.xlu0 %1093 }
  0xf7   : > { %v1135_v4 = vrot.slane %v2955_v28, 4  ;;  %v1099_v30 = vrot.slane %v2957_v29, 4  ;;  %v2284_v31 = vcombine.high %v1103_v62, %v1139_v23  ;;  %v2283_v6 = vcombine.low %v1103_v62, %v1139_v23 }
  0xf9   : > { %v1140_v32 = vsel %vm272_vm0, %v1134_v53, %v1135_v4  ;;  %v1104_v38 = vsel %vm272_vm0, %v1098_v7, %v1099_v30  ;;  %1842 = vmatprep.subr.bf16.mxu0 %v2284_v31 }
  0xfa   : > { %v1141_v39 = vsel %vm3277_vm13, %v1128_v63, %v1140_v32  ;;  %v1105_v10 = vsel %vm3278_vm15, %v1092_v36, %v1104_v38  ;;  %v1020_v41 = vpop.permute.xlu1 %1019  ;;  %v1018_v46 = vpop.permute.xlu0 %1017  ;;  %1843 = vmatpush2.bf16.msra.mxu0 %v2283_v6  ;;  %vm3279_vm13 = vcmask 670720   ;;  %vm3283_vm15 = vcmask 769024  }
  0xfb   : > { %v1026_v47 = vrot.slane %v1020_v41, 4  ;;  %v1025_v52 = vrot.slane %v1018_v46, 4  ;;  %v2286_v54 = vcombine.high %v1105_v10, %v1141_v39  ;;  %v2285_v59 = vcombine.low %v1105_v10, %v1141_v39 }
  0xfd   : > { %v1029_v60 = vsel %vm272_vm0, %v1025_v52, %v1026_v47  ;;  %1885 = vmatprep.subr.bf16.mxu1 %v2286_v54 }
  0xfe   : > { %v1031_v61 = vsel %vm3280_vm14, %v1018_v46, %v1029_v60  ;;  %v1056_v62 = vpop.permute.xlu1 %1055  ;;  %v1054_v7 = vpop.permute.xlu0 %1053  ;;  %1886 = vmatpush2.bf16.msra.mxu1 %v2285_v59 }
  0xff   : > { %v1062_v0 = vrot.slane %v1056_v62, 4  ;;  %v1061_v63 = vrot.slane %v1054_v7, 4 }
 0x101   : > { %v1065_v36 = vsel %vm272_vm0, %v1061_v63, %v1062_v0 }
 0x102   : > { %v1067_v3 = vsel %vm3279_vm13, %v1054_v7, %v1065_v36  ;;  %v2973_v8 = vpop.permute.xlu1 %1057  ;;  %v2975_v53 = vpop.permute.xlu0 %1021 }
 0x103   : > { %v3286_v11 = vrot.slane %v2973_v8, 4  ;;  %v3285_v12 = vrot.slane %v2975_v53, 4  ;;  %v2277_v23 = vcombine.high %v1031_v61, %v1067_v3  ;;  %v2276_v31 = vcombine.low %v1031_v61, %v1067_v3 }
 0x105   : > { %v1068_v6 = vsel %vm272_vm0, %v1062_v0, %v3286_v11  ;;  %v1032_v32 = vsel %vm272_vm0, %v1026_v47, %v3285_v12  ;;  %1844 = vmatprep.subr.bf16.mxu0 %v2277_v23 }
 0x106   : > { %v1069_v38 = vsel %vm3279_vm13, %v1056_v62, %v1068_v6  ;;  %v1033_v39 = vsel %vm3280_vm14, %v1020_v41, %v1032_v32  ;;  %v948_v10 = vpop.permute.xlu1 %947  ;;  %v946_v46 = vpop.permute.xlu0 %945  ;;  %1845 = vmatpush2.bf16.msra.mxu0 %v2276_v31  ;;  %vm3282_vm13 = vcmask 687104   ;;  %vm886_vm14 = vcmask 785408  }
 0x107   : > { %v954_v52 = vrot.slane %v948_v10, 4  ;;  %v953_v54 = vrot.slane %v946_v46, 4  ;;  %v2279_v59 = vcombine.high %v1033_v39, %v1069_v38  ;;  %v2278_v60 = vcombine.low %v1033_v39, %v1069_v38 }
 0x109   : > { %v957_v61 = vsel %vm272_vm0, %v953_v54, %v954_v52  ;;  %1887 = vmatprep.subr.bf16.mxu1 %v2279_v59 }
 0x10a   : > { %v959_v7 = vsel %vm3283_vm15, %v946_v46, %v957_v61  ;;  %v984_v0 = vpop.permute.xlu1 %983  ;;  %v982_v47 = vpop.permute.xlu0 %981  ;;  %1888 = vmatpush2.bf16.msra.mxu1 %v2278_v60 }
 0x10b   : > { %v990_v63 = vrot.slane %v984_v0, 4  ;;  %v989_v62 = vrot.slane %v982_v47, 4 }
 0x10d   : > { %v993_v41 = vsel %vm272_vm0, %v989_v62, %v990_v63 }
 0x10e   : > { %v995_v36 = vsel %vm3282_vm13, %v982_v47, %v993_v41  ;;  %v2991_v3 = vpop.permute.xlu1 %985  ;;  %v2993_v23 = vpop.permute.xlu0 %949 }
 0x10f   : > { %v3281_v31 = vrot.slane %v2991_v3, 4  ;;  %v3284_v6 = vrot.slane %v2993_v23, 4  ;;  %v2270_v32 = vcombine.high %v959_v7, %v995_v36  ;;  %v2269_v38 = vcombine.low %v959_v7, %v995_v36 }
 0x111   : > { %v996_v39 = vsel %vm272_vm0, %v990_v63, %v3281_v31  ;;  %v960_v46 = vsel %vm272_vm0, %v954_v52, %v3284_v6  ;;  %1846 = vmatprep.subr.bf16.mxu0 %v2270_v32 }
 0x112   : > { %v997_v54 = vsel %vm3282_vm13, %v984_v0, %v996_v39  ;;  %v961_v59 = vsel %vm3283_vm15, %v948_v10, %v960_v46  ;;  %v876_v60 = vpop.permute.xlu1 %875  ;;  %v874_v61 = vpop.permute.xlu0 %873  ;;  %1847 = vmatpush2.bf16.msra.mxu0 %v2269_v38  ;;  %vm3288_vm13 = vcmask 777216   ;;  %vm814_vm15 = vcmask 711680  }
 0x113   : > { %v882_v47 = vrot.slane %v876_v60, 4  ;;  %v881_v62 = vrot.slane %v874_v61, 4  ;;  %v2272_v7 = vcombine.high %v961_v59, %v997_v54  ;;  %v2271_v41 = vcombine.low %v961_v59, %v997_v54 }
 0x115   : > { %v885_v36 = vsel %vm272_vm0, %v881_v62, %v882_v47  ;;  %1889 = vmatprep.subr.bf16.mxu1 %v2272_v7 }
 0x116   : > { %v887_v63 = vsel %vm886_vm14, %v874_v61, %v885_v36  ;;  %v912_v31 = vpop.permute.xlu1 %911  ;;  %v910_v52 = vpop.permute.xlu0 %909  ;;  %1890 = vmatpush2.bf16.msra.mxu1 %v2271_v41 }
 0x117   : > { %v918_v32 = vrot.slane %v912_v31, 4  ;;  %v917_v0 = vrot.slane %v910_v52, 4 }
 0x119   : > { %v921_v10 = vsel %vm272_vm0, %v917_v0, %v918_v32 }
 0x11a   : > { %v923_v39 = vsel %vm3288_vm13, %v910_v52, %v921_v10  ;;  %v3009_v38 = vpop.permute.xlu1 %913  ;;  %v3011_v46 = vpop.permute.xlu0 %877 }
 0x11b   : > { %v3287_v54 = vrot.slane %v3009_v38, 4  ;;  %v3289_v59 = vrot.slane %v3011_v46, 4  ;;  %v2263_v62 = vcombine.high %v887_v63, %v923_v39  ;;  %v2262_v61 = vcombine.low %v887_v63, %v923_v39 }
 0x11d   : > { %v924_v7 = vsel %vm272_vm0, %v918_v32, %v3287_v54  ;;  %v888_v41 = vsel %vm272_vm0, %v882_v47, %v3289_v59  ;;  %1848 = vmatprep.subr.bf16.mxu0 %v2263_v62 }
 0x11e   : > { %v925_v36 = vsel %vm3288_vm13, %v912_v31, %v924_v7  ;;  %v889_v52 = vsel %vm886_vm14, %v876_v60, %v888_v41  ;;  %v804_v0 = vpop.permute.xlu1 %803  ;;  %v802_v10 = vpop.permute.xlu0 %801  ;;  %1849 = vmatpush2.bf16.msra.mxu0 %v2262_v61  ;;  %vm850_vm13 = vcmask 703488  }
 0x11f   : > { %v810_v6 = vrot.slane %v804_v0, 4  ;;  %v809_v12 = vrot.slane %v802_v10, 4  ;;  %v2265_v63 = vcombine.high %v889_v52, %v925_v36  ;;  %v2264_v39 = vcombine.low %v889_v52, %v925_v36 }
 0x121   : > { %v813_v11 = vsel %vm272_vm0, %v809_v12, %v810_v6  ;;  %1891 = vmatprep.subr.bf16.mxu1 %v2265_v63 }
 0x122   : > { %v815_v32 = vsel %vm814_vm15, %v802_v10, %v813_v11  ;;  %v840_v54 = vpop.permute.xlu1 %839  ;;  %v838_v47 = vpop.permute.xlu0 %837  ;;  %1892 = vmatpush2.bf16.msra.mxu1 %v2264_v39  ;;  %v3042_v39 = vld [vmem:[%s3261_s1] ss:$8 sps:$4 sm:$0xff]  }
 0x123   : > { %v846_v62 = vrot.slane %v840_v54, 4  ;;  %v845_v31 = vrot.slane %v838_v47, 4 }
 0x125   : > { %v849_v60 = vsel %vm272_vm0, %v845_v31, %v846_v62 }
 0x126   : > { %v851_v7 = vsel %vm850_vm13, %v838_v47, %v849_v60  ;;  %v3027_v61 = vpop.permute.xlu1 %841  ;;  %v3029_v41 = vpop.permute.xlu0 %805 }
 0x127   : > { %v3290_v36 = vrot.slane %v3027_v61, 4  ;;  %v3291_v12 = vrot.slane %v3029_v41, 4  ;;  %v2256_v52 = vcombine.high %v815_v32, %v851_v7  ;;  %v2255_v11 = vcombine.low %v815_v32, %v851_v7 }
 0x129   : > { %v852_v10 = vsel %vm272_vm0, %v846_v62, %v3290_v36  ;;  %v816_v63 = vsel %vm272_vm0, %v810_v6, %v3291_v12  ;;  %1850 = vmatprep.subr.bf16.mxu0 %v2256_v52 }
 0x12a   : > { %v853_v47 = vsel %vm850_vm13, %v840_v54, %v852_v10  ;;  %v817_v31 = vsel %vm814_vm15, %v804_v0, %v816_v63  ;;  %v772_v60 = vpop.permute.xlu1 %771  ;;  %v736_v32 = vpop.permute.xlu0 %735  ;;  %1851 = vmatpush2.bf16.msra.mxu0 %v2255_v11 }
 0x12b   : > { %v776_v7 = vrot.slane %v772_v60, 4  ;;  %v740_v59 = vrot.slane %v736_v32, 4  ;;  %v2258_v62 = vcombine.high %v817_v31, %v853_v47  ;;  %v2257_v36 = vcombine.low %v817_v31, %v853_v47 }
 0x12d   : > { %v782_v6 = vsel %vm272_vm0, %v775_v26, %v776_v7  ;;  %v784_v52 = vsel %vm778_vm1, %v772_v60, %v776_v7  ;;  %v746_v12 = vsel %vm272_vm0, %v739_v27, %v740_v59  ;;  %v748_v54 = vsel %vm742_vm2, %v736_v32, %v740_v59  ;;  %1853 = vmatmul.mubr.bf16.vlgmr.msra.gmra.mxu0 %v3042_v39 }
 0x12e   : > { %v783_v0 = vsel %vm778_vm1, %v2703_v24, %v782_v6  ;;  %792 = vst [vmem:[#allocation3 + $0x1bc] sm:$0xf] %v784_v52  ;;  %v747_v11 = vsel %vm742_vm2, %v2705_v25, %v746_v12  ;;  %756 = vst [vmem:[#allocation3 + $0x1a0] sm:$0xf] %v748_v54  ;;  %v700_v10 = vpop.permute.xlu1 %699  ;;  %v664_v26 = vpop.permute.xlu0 %663  ;;  %1893 = vmatprep.subr.bf16.mxu1 %v2258_v62  ;;  %2302 = vmatprep.mubr.msk.bf16.mxu0 %vm778_vm1, %v2765_v14  ;;  %vm3301_vm2 = vcmask 1031168  }
 0x12f   : > { %v704_v63 = vrot.slane %v700_v10, 4  ;;  %v668_v27 = vrot.slane %v664_v26, 4  ;;  %1894 = vmatpush2.bf16.msra.mxu1 %v2257_v36  ;;  %v2252_v59 = vcombine.low %v747_v11, %v783_v0  ;;  %v2253_v47 = vcombine.high %v747_v11, %v783_v0 }
 0x130   : > { %1949 = vmatprep.subr.bf16.mxu1 %v2478_v40 }
 0x131   : > { %v710_v24 = vsel %vm272_vm0, %v703_v50, %v704_v63  ;;  %v712_v25 = vsel %vm706_vm4, %v700_v10, %v704_v63  ;;  %v674_v12 = vsel %vm272_vm0, %v667_v51, %v668_v27  ;;  %v676_v31 = vsel %vm670_vm3, %v664_v26, %v668_v27  ;;  %1906 = vmatprep.subr.bf16.mxu0 %v2253_v47 }
 0x132   : > { %v711_v36 = vsel %vm706_vm4, %v2733_v48, %v710_v24  ;;  %720 = vst [vmem:[#allocation3 + $0x184] sm:$0xf] %v712_v25  ;;  %v675_v60 = vsel %vm670_vm3, %v2735_v49, %v674_v12  ;;  %684 = vst [vmem:[#allocation3 + $0x168] sm:$0xf] %v676_v31  ;;  %v628_v32 = vpop.permute.xlu1 %627  ;;  %v592_v7 = vpop.permute.xlu0 %591  ;;  %1896 = vmatmul.mubr.bf16.vlgmr.msra.gmra.mxu1 %v3042_v39  ;;  %1907 = vmatpush1.bf16.msra.mxu0 %v2252_v59 }
 0x133   : > { %v632_v50 = vrot.slane %v628_v32, 4  ;;  %v596_v62 = vrot.slane %v592_v7, 4  ;;  %v2245_v6 = vcombine.low %v675_v60, %v711_v36  ;;  %v2246_v51 = vcombine.high %v675_v60, %v711_v36  ;;  %2303 = vmatprep.mubr.msk.bf16.mxu1 %vm778_vm1, %v2765_v14  ;;  %vm3303_vm4 = vmmov %vm3301_vm2 }
 0x134   : > { %vm3300_vm1 = vcmask 949248  }
 0x135   : > { %v638_v48 = vsel %vm272_vm0, %v631_v18, %v632_v50  ;;  %v640_v52 = vsel %vm634_vm6, %v628_v32, %v632_v50  ;;  %v602_v49 = vsel %vm272_vm0, %v595_v19, %v596_v62  ;;  %v604_v54 = vsel %vm598_vm5, %v592_v7, %v596_v62  ;;  %v2398_v0 = vld [vmem:[#allocation3 + $0x1a0] ss:$28 sps:$4 sm:$0xff]   ;;  %1908 = vmatprep.subr.bf16.mxu0 %v2246_v51  ;;  %vm3302_vm3 = vmmov %vm3300_vm1 }
 0x136   : > { %v639_v11 = vsel %vm634_vm6, %v2768_v16, %v638_v48  ;;  %648 = vst [vmem:[#allocation3 + $0x14c] sm:$0xf] %v640_v52  ;;  %v603_v14 = vsel %vm598_vm5, %v2770_v17, %v602_v49  ;;  %612 = vst [vmem:[#allocation3 + $0x130] sm:$0xf] %v604_v54  ;;  %v556_v10 = vpop.permute.xlu1 %555  ;;  %v520_v18 = vpop.permute.xlu0 %519  ;;  %1909 = vmatpush1.bf16.msra.mxu0 %v2245_v6  ;;  %1950 = vmatpush1.bf16.msra.mxu1 %v2398_v0  ;;  %vm3304_vm5 = vcmask 572416   ;;  %vm3305_vm6 = vcmask 1039360  }
 0x137   : > { %v560_v26 = vrot.slane %v556_v10, 4  ;;  %v524_v63 = vrot.slane %v520_v18, 4  ;;  %v2238_v27 = vcombine.low %v603_v14, %v639_v11  ;;  %v2239_v19 = vcombine.high %v603_v14, %v639_v11  ;;  %1951 = vmatprep.subr.bf16.mxu1 %v2478_v40 }
 0x139   : > { %v566_v59 = vsel %vm272_vm0, %v559_v44, %v560_v26  ;;  %v568_v16 = vsel %vm562_vm8, %v556_v10, %v560_v26  ;;  %v530_v17 = vsel %vm272_vm0, %v523_v45, %v524_v63  ;;  %v532_v47 = vsel %vm526_vm7, %v520_v18, %v524_v63  ;;  %v2399_v24 = vld [vmem:[#allocation3 + $0x168] ss:$28 sps:$4 sm:$0xff]   ;;  %1910 = vmatprep.subr.bf16.mxu0 %v2239_v19 }
 0x13a   : > { %v567_v25 = vsel %vm562_vm8, %v2804_v42, %v566_v59  ;;  %576 = vst [vmem:[#allocation3 + $0x114] sm:$0xf] %v568_v16  ;;  %v531_v12 = vsel %vm526_vm7, %v2806_v43, %v530_v17  ;;  %540 = vst [vmem:[#allocation3 + $0xf8] sm:$0xf] %v532_v47  ;;  %v484_v31 = vpop.permute.xlu1 %483  ;;  %v448_v44 = vpop.permute.xlu0 %447  ;;  %1911 = vmatpush1.bf16.msra.mxu0 %v2238_v27  ;;  %1952 = vmatpush1.bf16.msra.mxu1 %v2399_v24 }
 0x13b   : > { %v488_v36 = vrot.slane %v484_v31, 4  ;;  %v452_v60 = vrot.slane %v448_v44, 4  ;;  %v2231_v32 = vcombine.low %v531_v12, %v567_v25  ;;  %v2232_v45 = vcombine.high %v531_v12, %v567_v25  ;;  %1953 = vmatprep.subr.bf16.mxu1 %v2478_v40  ;;  %vm3306_vm7 = vmmov %vm3304_vm5 }
 0x13c   : > { %vm3307_vm8 = vmmov %vm3305_vm6 }
 0x13d   : > { %v494_v7 = vsel %vm272_vm0, %v487_v20, %v488_v36  ;;  %v496_v42 = vsel %vm490_vm10, %v484_v31, %v488_v36  ;;  %v458_v43 = vsel %vm272_vm0, %v451_v21, %v452_v60  ;;  %v460_v50 = vsel %vm454_vm9, %v448_v44, %v452_v60  ;;  %v2400_v62 = vld [vmem:[#allocation3 + $0x130] ss:$28 sps:$4 sm:$0xff]   ;;  %1912 = vmatprep.subr.bf16.mxu0 %v2232_v45 }
 0x13e   : > { %v495_v6 = vsel %vm490_vm10, %v2834_v13, %v494_v7  ;;  %504 = vst [vmem:[#allocation3 + $0xdc] sm:$0xf] %v496_v42  ;;  %v459_v51 = vsel %vm454_vm9, %v2836_v15, %v458_v43  ;;  %468 = vst [vmem:[#allocation3 + $0xc0] sm:$0xf] %v460_v50  ;;  %v412_v48 = vpop.permute.xlu1 %411  ;;  %v376_v20 = vpop.permute.xlu0 %375  ;;  %1913 = vmatpush1.bf16.msra.mxu0 %v2231_v32  ;;  %1954 = vmatpush1.bf16.msra.mxu1 %v2400_v62  ;;  %vm3308_vm9 = vcmask 580608   ;;  %vm3309_vm10 = vcmask 588800  }
 0x13f   : > { %v416_v52 = vrot.slane %v412_v48, 4  ;;  %v380_v49 = vrot.slane %v376_v20, 4  ;;  %v2224_v54 = vcombine.low %v459_v51, %v495_v6  ;;  %v2225_v21 = vcombine.high %v459_v51, %v495_v6  ;;  %1955 = vmatprep.subr.bf16.mxu1 %v2478_v40 }
 0x141   : > { %v422_v0 = vsel %vm272_vm0, %v415_v57, %v416_v52  ;;  %v424_v13 = vsel %vm418_vm12, %v412_v48, %v416_v52  ;;  %v386_v15 = vsel %vm272_vm0, %v379_v58, %v380_v49  ;;  %v388_v11 = vsel %vm382_vm11, %v376_v20, %v380_v49  ;;  %v2401_v14 = vld [vmem:[#allocation3 + $0xf8] ss:$28 sps:$4 sm:$0xff]   ;;  %1914 = vmatprep.subr.bf16.mxu0 %v2225_v21 }
 0x142   : > { %v423_v10 = vsel %vm418_vm12, %v2866_v55, %v422_v0  ;;  %432 = vst [vmem:[#allocation3 + $0xa4] sm:$0xf] %v424_v13  ;;  %v387_v18 = vsel %vm382_vm11, %v2868_v56, %v386_v15  ;;  %396 = vst [vmem:[#allocation3 + $0x88] sm:$0xf] %v388_v11  ;;  %v340_v26 = vpop.permute.xlu1 %339  ;;  %v304_v57 = vpop.permute.xlu0 %303  ;;  %1915 = vmatpush1.bf16.msra.mxu0 %v2224_v54  ;;  %1956 = vmatpush1.bf16.msra.mxu1 %v2401_v14  ;;  %v3314_v11 = vrot.slane %v2975_v53, 4 }
 0x143   : > { %v344_v63 = vrot.slane %v340_v26, 4  ;;  %v308_v27 = vrot.slane %v304_v57, 4  ;;  %v2217_v19 = vcombine.low %v387_v18, %v423_v10  ;;  %v2218_v58 = vcombine.high %v387_v18, %v423_v10  ;;  %1957 = vmatprep.subr.bf16.mxu1 %v2478_v40  ;;  %vm3310_vm11 = vmmov %vm3308_vm9 }
 0x144   : > { %vm3311_vm12 = vmmov %vm3309_vm10 }
 0x145   : > { %v350_v59 = vsel %vm272_vm0, %v343_v34, %v344_v63  ;;  %v352_v55 = vsel %vm3300_vm1, %v340_v26, %v344_v63  ;;  %v314_v56 = vsel %vm272_vm0, %v307_v35, %v308_v27  ;;  %v316_v16 = vsel %vm3301_vm2, %v304_v57, %v308_v27  ;;  %v2402_v17 = vld [vmem:[#allocation3 + $0xc0] ss:$28 sps:$4 sm:$0xff]   ;;  %1916 = vmatprep.subr.bf16.mxu0 %v2218_v58 }
 0x146   : > { %v351_v47 = vsel %vm3302_vm3, %v2891_v5, %v350_v59  ;;  %360 = vst [vmem:[#allocation3 + $0x6c] sm:$0xf] %v352_v55  ;;  %v315_v24 = vsel %vm3303_vm4, %v2893_v33, %v314_v56  ;;  %324 = vst [vmem:[#allocation3 + $0x50] sm:$0xf] %v316_v16  ;;  %v1168_v25 = vpop.permute.xlu1 %1167  ;;  %v267_v34 = vpop.permute.xlu0 %266  ;;  %1917 = vmatpush1.bf16.msra.mxu0 %v2217_v19  ;;  %1958 = vmatpush1.bf16.msra.mxu1 %v2402_v17  ;;  %vm3313_vm1 = vcmask 670720   ;;  %vm3315_vm2 = vcmask 678912  }
 0x147   : > { %v1172_v12 = vrot.slane %v1168_v25, 4  ;;  %v271_v31 = vrot.slane %v267_v34, 4  ;;  %v2210_v44 = vcombine.low %v315_v24, %v351_v47  ;;  %v2211_v35 = vcombine.high %v315_v24, %v351_v47  ;;  %1959 = vmatprep.subr.bf16.mxu1 %v2478_v40  ;;  %vm3316_vm3 = vmmov %vm3313_vm1 }
 0x148   : > { %vm3317_vm4 = vmmov %vm3315_vm2  ;;  %v3318_v16 = vrot.slane %v2991_v3, 4 }
 0x149   : > { %v1178_v36 = vsel %vm272_vm0, %v1171_v9, %v1172_v12  ;;  %v1180_v5 = vsel %vm3304_vm5, %v1168_v25, %v1172_v12  ;;  %v278_v33 = vsel %vm272_vm0, %v270_v1, %v271_v31  ;;  %v280_v60 = vsel %vm3305_vm6, %v267_v34, %v271_v31  ;;  %v2403_v32 = vld [vmem:[#allocation3 + $0x88] ss:$28 sps:$4 sm:$0xff]   ;;  %1918 = vmatprep.subr.bf16.mxu0 %v2211_v35 }
 0x14a   : > { %v1179_v45 = vsel %vm3306_vm7, %v2924_v22, %v1178_v36  ;;  %1188 = vst [vmem:[#allocation3 + $0x2f0] sm:$0xf] %v1180_v5  ;;  %v279_v7 = vsel %vm3307_vm8, %v2911_v2, %v278_v33  ;;  %288 = vst [vmem:[#allocation3 + $0x34] sm:$0xf] %v280_v60  ;;  %v1132_v42 = vpop.permute.xlu1 %1131  ;;  %v1096_v9 = vpop.permute.xlu0 %1095  ;;  %1919 = vmatpush1.bf16.msra.mxu0 %v2210_v44  ;;  %1960 = vmatpush1.bf16.msra.mxu1 %v2403_v32  ;;  %vm3319_vm5 = vcmask 687104   ;;  %vm3321_vm6 = vcmask 769024  }
 0x14b   : > { %v1136_v43 = vrot.slane %v1132_v42, 4  ;;  %v1100_v50 = vrot.slane %v1096_v9, 4  ;;  %v2203_v1 = vcombine.low %v2852_v37, %v279_v7  ;;  %v2204_v62 = vcombine.high %v2852_v37, %v279_v7  ;;  %1961 = vmatprep.subr.bf16.mxu1 %v2478_v40  ;;  %vm3322_vm7 = vmmov %vm3319_vm5 }
 0x14c   : > { %v2295_v6 = vcombine.high %v1179_v45, %v1179_v45  ;;  %v2294_v51 = vcombine.low %v1179_v45, %v1179_v45  ;;  %vm3323_vm8 = vmmov %vm3321_vm6  ;;  %v3326_v32 = vrot.slane %v3011_v46, 4 }
 0x14d   : > { %v1142_v22 = vsel %vm272_vm0, %v1135_v4, %v1136_v43  ;;  %v1144_v2 = vsel %vm3308_vm9, %v1132_v42, %v1136_v43  ;;  %v1106_v48 = vsel %vm272_vm0, %v1099_v30, %v1100_v50  ;;  %v1108_v20 = vsel %vm3309_vm10, %v1096_v9, %v1100_v50  ;;  %v2404_v52 = vld [vmem:[#allocation3 + $0x50] ss:$28 sps:$4 sm:$0xff]   ;;  %1920 = vmatprep.subr.bf16.mxu0 %v2204_v62 }
 0x14e   : > { %v1143_v37 = vsel %vm3310_vm11, %v2955_v28, %v1142_v22  ;;  %1152 = vst [vmem:[#allocation3 + $0x2d4] sm:$0xf] %v1144_v2  ;;  %v1107_v49 = vsel %vm3311_vm12, %v2957_v29, %v1106_v48  ;;  %1116 = vst [vmem:[#allocation3 + $0x2b8] sm:$0xf] %v1108_v20  ;;  %v1060_v54 = vpop.permute.xlu1 %1059  ;;  %v1024_v4 = vpop.permute.xlu0 %1023  ;;  %1921 = vmatpush1.bf16.msra.mxu0 %v2203_v1  ;;  %1962 = vmatpush1.bf16.msra.mxu1 %v2404_v52  ;;  %v1812_v30 = vsel %vm272_vm0, %v2294_v51, 0  ;;  %vm3325_vm9 = vcmask 777216  }
 0x14f   : > { %v1064_v21 = vrot.slane %v1060_v54, 4  ;;  %v1028_v0 = vrot.slane %v1024_v4, 4  ;;  %2301 = vmatprep.subr.msk.bf16.mxu0 %vm272_vm0, %v2295_v6  ;;  %1963 = vmatprep.subr.bf16.mxu1 %v2478_v40  ;;  %v2288_v13 = vcombine.high %v1107_v49, %v1143_v37  ;;  %v3312_v28 = vrot.slane %v2973_v8, 4  ;;  %vm3327_vm10 = vmmov %vm3325_vm9 }
 0x150   : > { %v2287_v55 = vcombine.low %v1107_v49, %v1143_v37  ;;  %v3328_v2 = vrot.slane %v3027_v61, 4 }
 0x151   : > { %v1070_v15 = vsel %vm272_vm0, %v3312_v28, %v1064_v21  ;;  %v1072_v29 = vsel %vm3313_vm1, %v1060_v54, %v1064_v21  ;;  %v1034_v14 = vsel %vm272_vm0, %v3314_v11, %v1028_v0  ;;  %v1036_v10 = vsel %vm3315_vm2, %v1024_v4, %v1028_v0  ;;  %v2405_v18 = vld [vmem:[#allocation3 + $0x18] ss:$28 sps:$4 sm:$0xff]   ;;  %v2406_v19 = vld [vmem:[#allocation3 + $0x2f0] ss:$0 sps:$4 sm:$0xff]  }
 0x152   : > { %v1071_v26 = vsel %vm3316_vm3, %v2973_v8, %v1070_v15  ;;  %1080 = vst [vmem:[#allocation3 + $0x29c] sm:$0xf] %v1072_v29  ;;  %v1035_v57 = vsel %vm3317_vm4, %v2975_v53, %v1034_v14  ;;  %1044 = vst [vmem:[#allocation3 + $0x280] sm:$0xf] %v1036_v10  ;;  %v988_v63 = vpop.permute.xlu1 %987  ;;  %v952_v27 = vpop.permute.xlu0 %951  ;;  %1927 = vmatpush2.bf16.msra.mxu0 %v1812_v30  ;;  %1964 = vmatpush1.bf16.msra.mxu1 %v2405_v18  ;;  %v3320_v53 = vrot.slane %v2993_v23, 4 }
 0x153   : > { %v992_v58 = vrot.slane %v988_v63, 4  ;;  %v956_v59 = vrot.slane %v952_v27, 4  ;;  %1928 = vmatprep.subr.bf16.mxu0 %v2288_v13  ;;  %1969 = vmatprep.subr.bf16.mxu1 %v2478_v40  ;;  %v2281_v56 = vcombine.high %v1035_v57, %v1071_v26  ;;  %v1818_v44 = vsel %vm272_vm0, %v2406_v19, 0 }
 0x154   : > { %v2280_v5 = vcombine.low %v1035_v57, %v1071_v26 }
 0x155   : > { %v998_v8 = vsel %vm272_vm0, %v3318_v16, %v992_v58  ;;  %v1000_v17 = vsel %vm3319_vm5, %v988_v63, %v992_v58  ;;  %v962_v47 = vsel %vm272_vm0, %v3320_v53, %v956_v59  ;;  %v964_v24 = vsel %vm3321_vm6, %v952_v27, %v956_v59  ;;  %v2407_v42 = vld [vmem:[#allocation3 + $0x2b8] ss:$28 sps:$4 sm:$0xff]  }
 0x156   : > { %v999_v25 = vsel %vm3322_vm7, %v2991_v3, %v998_v8  ;;  %1008 = vst [vmem:[#allocation3 + $0x264] sm:$0xf] %v1000_v17  ;;  %v963_v34 = vsel %vm3323_vm8, %v2993_v23, %v962_v47  ;;  %972 = vst [vmem:[#allocation3 + $0x248] sm:$0xf] %v964_v24  ;;  %v916_v12 = vpop.permute.xlu1 %915  ;;  %v880_v31 = vpop.permute.xlu0 %879  ;;  %1929 = vmatpush2.bf16.msra.mxu0 %v2287_v55  ;;  %1970 = vmatpush2.bf16.msra.mxu1 %v1818_v44  ;;  %v3324_v3 = vrot.slane %v3009_v38, 4 }
 0x157   : > { %v920_v35 = vrot.slane %v916_v12, 4  ;;  %v884_v36 = vrot.slane %v880_v31, 4  ;;  %1930 = vmatprep.subr.bf16.mxu0 %v2281_v56  ;;  %1971 = vmatprep.subr.bf16.mxu1 %v2478_v40  ;;  %v2274_v33 = vcombine.high %v963_v34, %v999_v25  ;;  %v2273_v51 = vcombine.low %v963_v34, %v999_v25 }
 0x159   : > { %v926_v60 = vsel %vm272_vm0, %v3324_v3, %v920_v35  ;;  %v928_v23 = vsel %vm3325_vm9, %v916_v12, %v920_v35  ;;  %v890_v45 = vsel %vm272_vm0, %v3326_v32, %v884_v36  ;;  %v892_v7 = vsel %vm886_vm14, %v880_v31, %v884_v36  ;;  %v2408_v37 = vld [vmem:[#allocation3 + $0x280] ss:$28 sps:$4 sm:$0xff]  }
 0x15a   : > { %v927_v9 = vsel %vm3327_vm10, %v3009_v38, %v926_v60  ;;  %936 = vst [vmem:[#allocation3 + $0x22c] sm:$0xf] %v928_v23  ;;  %v891_v43 = vsel %vm886_vm14, %v3011_v46, %v890_v45  ;;  %900 = vst [vmem:[#allocation3 + $0x210] sm:$0xf] %v892_v7  ;;  %v844_v50 = vpop.permute.xlu1 %843  ;;  %v808_v1 = vpop.permute.xlu0 %807  ;;  %1931 = vmatpush2.bf16.msra.mxu0 %v2280_v5  ;;  %1972 = vmatpush2.bf16.msra.mxu1 %v2407_v42  ;;  %v3329_v46 = vrot.slane %v3029_v41, 4 }
 0x15b   : > { %v848_v62 = vrot.slane %v844_v50, 4  ;;  %v812_v6 = vrot.slane %v808_v1, 4  ;;  %1932 = vmatprep.subr.bf16.mxu0 %v2274_v33  ;;  %1973 = vmatprep.subr.bf16.mxu1 %v2478_v40  ;;  %v2267_v22 = vcombine.high %v891_v43, %v927_v9  ;;  %v2266_v4 = vcombine.low %v891_v43, %v927_v9 }
 0x15d   : > { %v854_v38 = vsel %vm272_vm0, %v3328_v2, %v848_v62  ;;  %v856_v48 = vsel %vm850_vm13, %v844_v50, %v848_v62  ;;  %v818_v20 = vsel %vm272_vm0, %v3329_v46, %v812_v6  ;;  %v820_v52 = vsel %vm814_vm15, %v808_v1, %v812_v6  ;;  %v2409_v21 = vld [vmem:[#allocation3 + $0x248] ss:$28 sps:$4 sm:$0xff]  }
 0x15e   : > { %v855_v49 = vsel %vm850_vm13, %v3027_v61, %v854_v38  ;;  %864 = vst [vmem:[#allocation3 + $0x1f4] sm:$0xf] %v856_v48  ;;  %v819_v54 = vsel %vm814_vm15, %v3029_v41, %v818_v20  ;;  %828 = vst [vmem:[#allocation3 + $0x1d8] sm:$0xf] %v820_v52  ;;  %1933 = vmatpush2.bf16.msra.mxu0 %v2273_v51  ;;  %1974 = vmatpush2.bf16.msra.mxu1 %v2408_v37 }
 0x15f   : > { %1934 = vmatprep.subr.bf16.mxu0 %v2267_v22  ;;  %1975 = vmatprep.subr.bf16.mxu1 %v2478_v40  ;;  %v2260_v0 = vcombine.high %v819_v54, %v855_v49  ;;  %v2259_v61 = vcombine.low %v819_v54, %v855_v49 }
 0x161   : > { %v2410_v30 = vld [vmem:[#allocation3 + $0x210] ss:$28 sps:$4 sm:$0xff]  }
 0x162   : > { %1935 = vmatpush2.bf16.msra.mxu0 %v2266_v4  ;;  %1976 = vmatpush2.bf16.msra.mxu1 %v2409_v21 }
 0x163   : > { %1936 = vmatprep.subr.bf16.mxu0 %v2260_v0  ;;  %1977 = vmatprep.subr.bf16.mxu1 %v2478_v40 }
 0x165   : > { %v2411_v41 = vld [vmem:[#allocation3 + $0x1d8] ss:$28 sps:$4 sm:$0xff]  }
 0x166   : > { %1937 = vmatpush2.bf16.msra.mxu0 %v2259_v61  ;;  %1978 = vmatpush2.bf16.msra.mxu1 %v2410_v30 }
 0x167   : > { %1979 = vmatprep.subr.bf16.mxu1 %v2478_v40  ;;  %v2000_v13 = vpop.permute.xlu1 %1999  ;;  %v1995_v28 = vpop.permute.xlu0 %1994 }
 0x169   : > { %1939 = vmatmul.mubr.bf16.vlgmr.msra.gmra.mxu0 %v3042_v39 }
 0x16a   : > { %1980 = vmatpush2.bf16.msra.mxu1 %v2411_v41 }
 0x16b   : > { %v2021_v29 = vpop.permute.xlu1 %2020  ;;  %v2026_v26 = vpop.permute.xlu0 %2025 }
 0x16d   : > { %1982 = vmatmul.mubr.bf16.vlgmr.msra.gmra.mxu1 %v3042_v39 }
 0x1ed   : > { %v1854_v15 = vpop.f32.mrf.mxu0 }
 0x1ee   : > { %v2002_v11 = vmul.f32 %v1995_v28, %v1854_v15 }
 0x1ef   : > { %v1856_v14 = vpop.f32.mrf.mxu0 }
 0x1f0   : > { %v2003_v10 = vmul.f32 %v1995_v28, %v1856_v14  ;;  %v2028_v40 = vadd.f32 %v2021_v29, %v2002_v11 }
 0x1f1   : > { %v1858_v18 = vpop.f32.mrf.mxu0 }
 0x1f2   : > { %v2009_v57 = vmul.f32 %v2000_v13, %v1858_v18  ;;  %v1897_v63 = vpop.f32.mrf.mxu1  ;;  %v2029_v27 = vadd.f32 %v2021_v29, %v2003_v10 }
 0x1f3   : > { %v2004_v39 = vmul.f32 %v1995_v28, %v1897_v63  ;;  %v1860_v19 = vpop.f32.mrf.mxu0 }
 0x1f4   : > { %v2010_v58 = vmul.f32 %v2000_v13, %v1860_v19  ;;  %v1899_v59 = vpop.f32.mrf.mxu1  ;;  %v2315_v55 = vpack.c.bf16 %v2029_v27, %v2028_v40  ;;  %v2035_v56 = vadd.f32 %v2026_v26, %v2009_v57 }
 0x1f5   : > { %v2005_v16 = vmul.f32 %v1995_v28, %v1899_v59  ;;  %v2030_v8 = vadd.f32 %v2021_v29, %v2004_v39 }
 0x1f6   : > { %2086 = vst [vmem:[%s3235_s15] sm:$0xff] %v2315_v55  ;;  %v2036_v17 = vadd.f32 %v2026_v26, %v2010_v58  ;;  %v1901_v53 = vpop.f32.mrf.mxu1 }
 0x1f7   : > { %v2031_v47 = vadd.f32 %v2021_v29, %v2005_v16  ;;  %v2011_v24 = vmul.f32 %v2000_v13, %v1901_v53 }
 0x1f8   : > { %v2319_v25 = vpack.c.bf16 %v2036_v17, %v2035_v56  ;;  %v1903_v34 = vpop.f32.mrf.mxu1 }
 0x1f9   : > { %v2316_v12 = vpack.c.bf16 %v2031_v47, %v2030_v8  ;;  %v2037_v31 = vadd.f32 %v2026_v26, %v2011_v24  ;;  %v2012_v44 = vmul.f32 %v2000_v13, %v1903_v34 }
 0x1fa   : > { %2090 = vst [vmem:[%s3235_s15 + $0x1c] sm:$0xff] %v2319_v25 }
 0x1fb   : > { %2087 = vst [vmem:[%s3235_s15 + $0x8] sm:$0xff] %v2316_v12  ;;  %v2038_v35 = vadd.f32 %v2026_v26, %v2012_v44 }
 0x1fd   : > { %v2320_v36 = vpack.c.bf16 %v2038_v35, %v2037_v31 }
 0x1ff   : > { %2091 = vst [vmem:[%s3235_s15 + $0x24] sm:$0xff] %v2320_v36 }
 0x229   : > { %v1940_v5 = vpop.f32.mrf.mxu0 }
 0x22a   : > { %v2006_v33 = vmul.f32 %v1995_v28, %v1940_v5 }
 0x22b   : > { %v1942_v3 = vpop.f32.mrf.mxu0 }
 0x22c   : > { %v2032_v60 = vadd.f32 %v2021_v29, %v2006_v33  ;;  %v2007_v23 = vmul.f32 %v1995_v28, %v1942_v3 }
 0x22d   : > { %v1944_v32 = vpop.f32.mrf.mxu0  ;;  %v1983_v45 = vpop.f32.mrf.mxu1 }
 0x22e   : > { %v2033_v7 = vadd.f32 %v2021_v29, %v2007_v23  ;;  %v2013_v42 = vmul.f32 %v2000_v13, %v1944_v32  ;;  %v2008_v9 = vmul.f32 %v1995_v28, %v1983_v45 }
 0x22f   : > { %v1946_v43 = vpop.f32.mrf.mxu0  ;;  %v1985_v1 = vpop.f32.mrf.mxu1 }
 0x230   : > { %v2317_v50 = vpack.c.bf16 %v2033_v7, %v2032_v60  ;;  %v2014_v62 = vmul.f32 %v2000_v13, %v1946_v43  ;;  %v2034_v6 = vadd.f32 %v2021_v29, %v2008_v9  ;;  %v2039_v51 = vadd.f32 %v2026_v26, %v2013_v42 }
 0x231   : > { %v1986_v22 = vpop.f32.mrf.mxu1 }
 0x232   : > { %2088 = vst [vmem:[%s3235_s15 + $0x10] sm:$0xff] %v2317_v50  ;;  %v2040_v2 = vadd.f32 %v2026_v26, %v2014_v62  ;;  %v2318_v38 = vpack.c.bf16 %v2034_v6, %v2034_v6  ;;  %v2015_v48 = vmul.f32 %v2000_v13, %v1986_v22 }
 0x233   : > { %v1988_v20 = vpop.f32.mrf.mxu1 }
 0x234   : > { %v2321_v46 = vpack.c.bf16 %v2040_v2, %v2039_v51  ;;  %2089 = vst [vmem:[%s3235_s15 + $0x18] sm:$0xf] %v2318_v38  ;;  %v2041_v52 = vadd.f32 %v2026_v26, %v2015_v48 }
 0x236   : > { %2092 = vst [vmem:[%s3235_s15 + $0x2c] sm:$0xff] %v2321_v46  ;;  %v2322_v37 = vpack.c.bf16 %v2041_v52, %v2041_v52 }
 0x238   : > { %2093 = vst [vmem:[%s3235_s15 + $0x34] sm:$0xf] %v2322_v37 }
 0x239 PF: > { %s14_s19 = sadd.s32 1, %s2450_s19   ;;  %s3330_s15 = smov %s2442_s17 }
 0x23a   : > { %p11_p7 = scmp.ge.s32.totalorder %s14_s19, 6   ;;  %s3331_s16 = smov %s2446_s18 }
 0x23b   : > { %s3332_s17 = smov %s3335_s20  ;;  %s3333_s18 = smov %s3339_s21 }
 0x23c   :  { %13 = sbr.rel (!%p11_p7) target bundleno = 3 (0x3), region = 68 }

// kernel: conv2dnet_2_forward.6
= control target key start
LH: loop header
LB: loop body
LE: loop exit
PB: predicated region body
PF: predicated region fallthrough
CT: control target
= control target key end

     0   :  { %s4542_s15 = smov 0   ;;  %s4544_s16 = smov 0   ;;  %s6536_s0 = inlined_call_operand.vmem [shape: bf16[2,2,16,896], index: 0, kind: input, shape index: {}]   ;;  %s6537_s1 = inlined_call_operand.vmem [shape: bf16[32,432], index: 1, kind: input, shape index: {}]   ;;  %s6538_s2 = inlined_call_operand.vmem [shape: f32[32,1], index: 2, kind: input, shape index: {}]   ;;  %s6539_s3 = inlined_call_operand.vmem [shape: f32[32,1], index: 3, kind: input, shape index: {}]   ;;  %s6540_s4 = inlined_call_operand.vmem [shape: bf16[2,1,32,896], index: 4, kind: output, shape index: {}]  }
   0x1   :  { %s4546_s17 = smov 0  }
   0x2 LB: > { %s26_s18 = sadd.s32 1, %s4484_s16  ;;  %p4080_p0 = scmp.ge.s32.totalorder %s4488_s17, 1  ;;  %s4488_s17 = sphi %s4546_s17, %s14_s17   ;;  %s4484_s16 = sphi %s4544_s16, %s6907_s16   ;;  %s4480_s15 = sphi %s4542_s15, %s6906_s15  }
   0x3   : > { %p28_p1 = scmp.ge.s32.totalorder %s26_s18, 2  ;;  %p176_p2 = scmp.lt.s32.totalorder %s4488_s17, 3 }
   0x5   : > { %s6909_s18 = smov (%p28_p1, %s26_s18), 0  ;;  %p177_p3 = pnand %p4080_p0, %p176_p2 }
   0x7   : > { %180 = sbr.rel (%p177_p3) target bundleno = 808 (0x328), region = 36 }
   0xc   : > { %p206_p4 = scmp.lt.s32.totalorder %s4480_s15, 1  ;;  %s4490_s23 = smov 103   ;;  %vm316_vm0 = vcmask 1043456   ;;  %vm744_vm1 = vcmask 842752   ;;  %vm673_vm2 = vcmask 850944   ;;  %vm602_vm3 = vcmask 932864  }
   0xd   : > { %s4491_s24 = smov 104   ;;  %s4492_s25 = smov 114   ;;  %vm531_vm4 = vcmask 941056   ;;  %vm460_vm5 = vcmask 949248   ;;  %vm6600_vm6 = vcmask 1031168   ;;  %vm6590_vm7 = vcmask 1039360  }
   0xe   : > { %s6911_s15 = smov (!%p206_p4, %s4480_s15), 1  ;;  %s4493_s26 = smov 115   ;;  %vm6633_vm8 = vcmask 670720   ;;  %vm6576_vm9 = vcmask 719872   ;;  %vm1809_vm10 = vcmask 678912   ;;  %vm6565_vm11 = vcmask 801792  }
   0xf   : > { %s6541_s19 = smul.u32 112, %s6911_s15  ;;  %s4494_s27 = smov 116   ;;  %vm1738_vm12 = vcmask 687104   ;;  %vm3357_vm13 = vcmask 392192   ;;  %vm6561_vm14 = vcmask 809984   ;;  %vm1667_vm15 = vcmask 769024  }
  0x10   : > { %s4495_s28 = smov 126   ;;  %s4496_s29 = smov 127  }
  0x11   : > { %s4568_s22 = scalar_lea.vmem %s6536_s0, %s6541_s19  ;;  %s4497_s30 = smov 82  }
  0x12   : > { %v4571_v0 = vld [vmem:[%s4568_s22 + $0x1c] sm:$0xff]  ;;  %v4583_v2 = vld [vmem:[%s4568_s22 + $0x24] sm:$0xff]  ;;  %v4589_v4 = vld [vmem:[%s4568_s22 + $0x10] sm:$0xff]  ;;  %s4498_s5 = smov 88   ;;  %s6553_s6 = smov 83  }
  0x13   : > { %236 = vst [vmem:[#allocation2 + $0x38] sm:$0xff] %v4571_v0  ;;  %727 = vrot.lane.b32.xlu1 %v4571_v0, %s4490_s23  ;;  %v4577_v1 = vld [vmem:[%s4568_s22] sm:$0xff]  ;;  %v4586_v3 = vld [vmem:[%s4568_s22 + $0x8] sm:$0xff]  ;;  %237 = vst [vmem:[#allocation2 + $0x40] sm:$0xff] %v4583_v2  ;;  %s4500_s7 = smov 98   ;;  %s4501_s8 = smov 84  }
  0x14   : > { %232 = vst [vmem:[#allocation2] sm:$0xff] %v4577_v1  ;;  %719 = vrot.lane.b32.xlu0 %v4577_v1, %s4490_s23  ;;  %233 = vst [vmem:[#allocation2 + $0x8] sm:$0xff] %v4586_v3  ;;  %v4595_v5 = vld [vmem:[%s4568_s22 + $0x2c] sm:$0xff]  ;;  %v231_v6 = vld [vmem:[%s4568_s22 + $0x34] sm:$0xf]  ;;  %s4502_s9 = smov 99  }
  0x15   : > { %234 = vst [vmem:[#allocation2 + $0x10] sm:$0xff] %v4589_v4  ;;  %238 = vst [vmem:[#allocation2 + $0x48] sm:$0xff] %v4595_v5  ;;  %v4087_v7 = vld [vmem:[%s4568_s22 + $0x54] sm:$0xff]  ;;  %s4503_s10 = smov 94   ;;  %s6548_s11 = smov 100  }
  0x16   : > { %v227_v8 = vld [vmem:[%s4568_s22 + $0x18] sm:$0xf]  ;;  %239 = vst [vmem:[#allocation2 + $0x50] sm:$0xf] %v231_v6  ;;  %256 = vst [vmem:[#allocation2 + $0x54] sm:$0xff] %v4087_v7  ;;  %s4505_s12 = smov 95  }
  0x17   : > { %729 = vrot.lane.b32.xlu1 %v4583_v2, %s4490_s23  ;;  %235 = vst [vmem:[#allocation2 + $0x18] sm:$0xf] %v227_v8  ;;  %v4083_v9 = vld [vmem:[%s4568_s22 + $0x38] sm:$0xff]  ;;  %s6546_s13 = smov 110   ;;  %s4507_s14 = smov 96  }
  0x18   : > { %721 = vrot.lane.b32.xlu0 %v4586_v3, %s4490_s23  ;;  %252 = vst [vmem:[#allocation2 + $0x1c] sm:$0xff] %v4083_v9  ;;  %s6542_s20 = smov 111   ;;  %s4509_s21 = smov 86  }
  0x19   : > { %s6544_s19 = smov 112  }
  0x1a   : > { %v4672_v13 = vld [vmem:[#allocation2 + $0x3c] sm:$0xff] }
  0x1b   : > { %650 = vrot.lane.b32.xlu1 %v4586_v3, %s4491_s24  ;;  %v4664_v11 = vld [vmem:[#allocation2 + $0x4] sm:$0xff] }
  0x1c   : > { %648 = vrot.lane.b32.xlu0 %v4577_v1, %s4491_s24  ;;  %v4662_v10 = vld [vmem:[#allocation2 + $0xc] sm:$0xff]  ;;  %v4670_v12 = vld [vmem:[#allocation2 + $0x44] sm:$0xff] }
  0x1f   : > { %658 = vrot.lane.b32.xlu1 %v4583_v2, %s4491_s24 }
  0x20   : > { %656 = vrot.lane.b32.xlu0 %v4571_v0, %s4491_s24 }
  0x23   : > { %579 = vrot.lane.b32.xlu1 %v4586_v3, %s4492_s25 }
  0x24   : > { %577 = vrot.lane.b32.xlu0 %v4577_v1, %s4492_s25 }
  0x27   : > { %587 = vrot.lane.b32.xlu1 %v4583_v2, %s4492_s25 }
  0x28   : > { %585 = vrot.lane.b32.xlu0 %v4571_v0, %s4492_s25 }
  0x2b   : > { %508 = vrot.lane.b32.xlu1 %v4586_v3, %s4493_s26 }
  0x2c   : > { %506 = vrot.lane.b32.xlu0 %v4577_v1, %s4493_s26 }
  0x2f   : > { %516 = vrot.lane.b32.xlu1 %v4583_v2, %s4493_s26 }
  0x30   : > { %514 = vrot.lane.b32.xlu0 %v4571_v0, %s4493_s26 }
  0x33   : > { %437 = vrot.lane.b32.xlu1 %v4586_v3, %s4494_s27 }
  0x34   : > { %435 = vrot.lane.b32.xlu0 %v4577_v1, %s4494_s27 }
  0x37   : > { %445 = vrot.lane.b32.xlu1 %v4583_v2, %s4494_s27 }
  0x38   : > { %443 = vrot.lane.b32.xlu0 %v4571_v0, %s4494_s27 }
  0x3b   : > { %366 = vrot.lane.b32.xlu1 %v4586_v3, %s4495_s28 }
  0x3c   : > { %364 = vrot.lane.b32.xlu0 %v4577_v1, %s4495_s28 }
  0x3f   : > { %374 = vrot.lane.b32.xlu1 %v4583_v2, %s4495_s28 }
  0x40   : > { %372 = vrot.lane.b32.xlu0 %v4571_v0, %s4495_s28 }
  0x43   : > { %294 = vrot.lane.b32.xlu1 %v4586_v3, %s4496_s29 }
  0x44   : > { %292 = vrot.lane.b32.xlu0 %v4577_v1, %s4496_s29 }
  0x47   : > { %302 = vrot.lane.b32.xlu1 %v4583_v2, %s4496_s29 }
  0x48   : > { %300 = vrot.lane.b32.xlu0 %v4571_v0, %s4496_s29 }
  0x4b   : > { %1857 = vrot.lane.b32.xlu1 %v4589_v4, %s4497_s30 }
  0x4c   : > { %1855 = vrot.lane.b32.xlu0 %v4586_v3, %s4497_s30 }
  0x4f   : > { %1865 = vrot.lane.b32.xlu1 %v4595_v5, %s4497_s30 }
  0x50   : > { %1863 = vrot.lane.b32.xlu0 %v4583_v2, %s4497_s30 }
  0x53   : > { %1289 = vrot.lane.b32.xlu1 %v4662_v10, %s4498_s5 }
  0x54   : > { %1287 = vrot.lane.b32.xlu0 %v4664_v11, %s4498_s5 }
  0x57   : > { %1297 = vrot.lane.b32.xlu1 %v4670_v12, %s4498_s5 }
  0x58   : > { %1295 = vrot.lane.b32.xlu0 %v4672_v13, %s4498_s5 }
  0x5b   : > { %1786 = vrot.lane.b32.xlu1 %v4589_v4, %s6553_s6 }
  0x5c   : > { %1784 = vrot.lane.b32.xlu0 %v4586_v3, %s6553_s6 }
  0x5f   : > { %1794 = vrot.lane.b32.xlu1 %v4595_v5, %s6553_s6 }
  0x60   : > { %1792 = vrot.lane.b32.xlu0 %v4583_v2, %s6553_s6 }
  0x63   : > { %1218 = vrot.lane.b32.xlu1 %v4662_v10, %s4500_s7 }
  0x64   : > { %1216 = vrot.lane.b32.xlu0 %v4664_v11, %s4500_s7 }
  0x67   : > { %1226 = vrot.lane.b32.xlu1 %v4670_v12, %s4500_s7 }
  0x68   : > { %1224 = vrot.lane.b32.xlu0 %v4672_v13, %s4500_s7 }
  0x6b   : > { %1715 = vrot.lane.b32.xlu1 %v4589_v4, %s4501_s8 }
  0x6c   : > { %1713 = vrot.lane.b32.xlu0 %v4586_v3, %s4501_s8 }
  0x6f   : > { %1723 = vrot.lane.b32.xlu1 %v4595_v5, %s4501_s8 }
  0x70   : > { %1721 = vrot.lane.b32.xlu0 %v4583_v2, %s4501_s8 }
  0x73   : > { %1147 = vrot.lane.b32.xlu1 %v4662_v10, %s4502_s9 }
  0x74   : > { %1145 = vrot.lane.b32.xlu0 %v4664_v11, %s4502_s9 }
  0x77   : > { %1155 = vrot.lane.b32.xlu1 %v4670_v12, %s4502_s9 }
  0x78   : > { %1153 = vrot.lane.b32.xlu0 %v4672_v13, %s4502_s9 }
  0x7b   : > { %1644 = vrot.lane.b32.xlu1 %v4589_v4, %s4503_s10 }
  0x7c   : > { %1642 = vrot.lane.b32.xlu0 %v4586_v3, %s4503_s10 }
  0x7f   : > { %1652 = vrot.lane.b32.xlu1 %v4595_v5, %s4503_s10 }
  0x80   : > { %1650 = vrot.lane.b32.xlu0 %v4583_v2, %s4503_s10 }
  0x83   : > { %1076 = vrot.lane.b32.xlu1 %v4662_v10, %s6548_s11 }
  0x84   : > { %1074 = vrot.lane.b32.xlu0 %v4664_v11, %s6548_s11 }
  0x85   : > { %v728_v14 = vpop.permute.xlu1 %727 }
  0x86   : > { %v720_v15 = vpop.permute.xlu0 %719  ;;  %v739_v17 = vrot.slane %v728_v14, 4 }
  0x87   : > { %1084 = vrot.lane.b32.xlu1 %v4670_v12, %s6548_s11  ;;  %v735_v20 = vrot.slane %v720_v15, 4 }
  0x88   : > { %1082 = vrot.lane.b32.xlu0 %v4672_v13, %s6548_s11  ;;  %s4515_s11 = smov 72  }
  0x89   : > { %v4726_v16 = vpop.permute.xlu1 %729 }
  0x8a   : > { %v6592_v18 = vrot.slane %v4726_v16, 4  ;;  %v4729_v19 = vpop.permute.xlu0 %721 }
  0x8b   : > { %v6591_v21 = vrot.slane %v4729_v19, 4  ;;  %1573 = vrot.lane.b32.xlu1 %v4589_v4, %s4505_s12 }
  0x8c   : > { %v751_v22 = vsel %vm316_vm0, %v739_v17, %v6592_v18  ;;  %1571 = vrot.lane.b32.xlu0 %v4586_v3, %s4505_s12 }
  0x8d   : > { %v752_v23 = vsel %vm744_vm1, %v728_v14, %v751_v22  ;;  %v743_v24 = vsel %vm316_vm0, %v735_v20, %v6591_v21  ;;  %v4743_v25 = vpop.permute.xlu1 %650 }
  0x8e   : > { %v745_v26 = vsel %vm744_vm1, %v720_v15, %v743_v24  ;;  %v6582_v27 = vrot.slane %v4743_v25, 4  ;;  %v649_v28 = vpop.permute.xlu0 %648 }
  0x8f   : > { %v664_v29 = vrot.slane %v649_v28, 4  ;;  %1581 = vrot.lane.b32.xlu1 %v4595_v5, %s4505_s12  ;;  %v4149_v30 = vcombine.high %v745_v26, %v752_v23  ;;  %v4148_v31 = vcombine.low %v745_v26, %v752_v23 }
  0x90   : > { %1579 = vrot.lane.b32.xlu0 %v4583_v2, %s4505_s12 }
  0x91   : > { %v672_v32 = vsel %vm316_vm0, %v664_v29, %v6582_v27  ;;  %v4754_v33 = vpop.permute.xlu1 %658  ;;  %3364 = vmatprep.subr.bf16.mxu0 %v4149_v30 }
  0x92   : > { %v674_v34 = vsel %vm673_vm2, %v649_v28, %v672_v32  ;;  %v6586_v35 = vrot.slane %v4754_v33, 4  ;;  %v657_v36 = vpop.permute.xlu0 %656  ;;  %3365 = vmatpush1.bf16.msra.mxu0 %v4148_v31 }
  0x93   : > { %v668_v37 = vrot.slane %v657_v36, 4  ;;  %1005 = vrot.lane.b32.xlu1 %v4662_v10, %s6546_s13 }
  0x94   : > { %1003 = vrot.lane.b32.xlu0 %v4664_v11, %s6546_s13 }
  0x95   : > { %v680_v38 = vsel %vm316_vm0, %v668_v37, %v6586_v35  ;;  %v4765_v39 = vpop.permute.xlu1 %579 }
  0x96   : > { %v681_v40 = vsel %vm673_vm2, %v657_v36, %v680_v38  ;;  %v6575_v41 = vrot.slane %v4765_v39, 4  ;;  %v578_v42 = vpop.permute.xlu0 %577 }
  0x97   : > { %v593_v43 = vrot.slane %v578_v42, 4  ;;  %1013 = vrot.lane.b32.xlu1 %v4670_v12, %s6546_s13  ;;  %v4142_v44 = vcombine.high %v674_v34, %v681_v40  ;;  %v4141_v45 = vcombine.low %v674_v34, %v681_v40 }
  0x98   : > { %1011 = vrot.lane.b32.xlu0 %v4672_v13, %s6546_s13  ;;  %s4513_s13 = smov 70  }
  0x99   : > { %v601_v46 = vsel %vm316_vm0, %v593_v43, %v6575_v41  ;;  %v4776_v47 = vpop.permute.xlu1 %587  ;;  %3366 = vmatprep.subr.bf16.mxu0 %v4142_v44 }
  0x9a   : > { %v603_v48 = vsel %vm602_vm3, %v578_v42, %v601_v46  ;;  %v6578_v49 = vrot.slane %v4776_v47, 4  ;;  %v586_v50 = vpop.permute.xlu0 %585  ;;  %3367 = vmatpush1.bf16.msra.mxu0 %v4141_v45 }
  0x9b   : > { %v597_v51 = vrot.slane %v586_v50, 4  ;;  %1502 = vrot.lane.b32.xlu1 %v4589_v4, %s4507_s14 }
  0x9c   : > { %1500 = vrot.lane.b32.xlu0 %v4586_v3, %s4507_s14 }
  0x9d   : > { %v609_v52 = vsel %vm316_vm0, %v597_v51, %v6578_v49  ;;  %v4787_v53 = vpop.permute.xlu1 %508 }
  0x9e   : > { %v610_v54 = vsel %vm602_vm3, %v586_v50, %v609_v52  ;;  %v6570_v55 = vrot.slane %v4787_v53, 4  ;;  %v507_v56 = vpop.permute.xlu0 %506 }
  0x9f   : > { %v522_v57 = vrot.slane %v507_v56, 4  ;;  %1510 = vrot.lane.b32.xlu1 %v4595_v5, %s4507_s14  ;;  %v4135_v58 = vcombine.high %v603_v48, %v610_v54  ;;  %v4134_v59 = vcombine.low %v603_v48, %v610_v54 }
  0xa0   : > { %1508 = vrot.lane.b32.xlu0 %v4583_v2, %s4507_s14 }
  0xa1   : > { %v530_v60 = vsel %vm316_vm0, %v522_v57, %v6570_v55  ;;  %v4798_v61 = vpop.permute.xlu1 %516  ;;  %3368 = vmatprep.subr.bf16.mxu0 %v4135_v58 }
  0xa2   : > { %v532_v62 = vsel %vm531_vm4, %v507_v56, %v530_v60  ;;  %v6572_v63 = vrot.slane %v4798_v61, 4  ;;  %v515_v6 = vpop.permute.xlu0 %514  ;;  %3369 = vmatpush1.bf16.msra.mxu0 %v4134_v59 }
  0xa3   : > { %v526_v7 = vrot.slane %v515_v6, 4  ;;  %934 = vrot.lane.b32.xlu1 %v4662_v10, %s6542_s20 }
  0xa4   : > { %932 = vrot.lane.b32.xlu0 %v4664_v11, %s6542_s20 }
  0xa5   : > { %v538_v8 = vsel %vm316_vm0, %v526_v7, %v6572_v63  ;;  %v4809_v9 = vpop.permute.xlu1 %437 }
  0xa6   : > { %v539_v14 = vsel %vm531_vm4, %v515_v6, %v538_v8  ;;  %v6567_v15 = vrot.slane %v4809_v9, 4  ;;  %v436_v17 = vpop.permute.xlu0 %435 }
  0xa7   : > { %v451_v20 = vrot.slane %v436_v17, 4  ;;  %942 = vrot.lane.b32.xlu1 %v4670_v12, %s6542_s20  ;;  %v4128_v22 = vcombine.high %v532_v62, %v539_v14  ;;  %v4127_v23 = vcombine.low %v532_v62, %v539_v14 }
  0xa8   : > { %940 = vrot.lane.b32.xlu0 %v4672_v13, %s6542_s20  ;;  %s4511_s20 = smov 87  }
  0xa9   : > { %v459_v24 = vsel %vm316_vm0, %v451_v20, %v6567_v15  ;;  %v4820_v26 = vpop.permute.xlu1 %445  ;;  %3370 = vmatprep.subr.bf16.mxu0 %v4128_v22 }
  0xaa   : > { %v461_v28 = vsel %vm460_vm5, %v436_v17, %v459_v24  ;;  %v6569_v29 = vrot.slane %v4820_v26, 4  ;;  %v444_v30 = vpop.permute.xlu0 %443  ;;  %3371 = vmatpush1.bf16.msra.mxu0 %v4127_v23 }
  0xab   : > { %v455_v31 = vrot.slane %v444_v30, 4  ;;  %1431 = vrot.lane.b32.xlu1 %v4662_v10, %s4509_s21 }
  0xac   : > { %1429 = vrot.lane.b32.xlu0 %v4664_v11, %s4509_s21 }
  0xad   : > { %v467_v32 = vsel %vm316_vm0, %v455_v31, %v6569_v29  ;;  %v4831_v34 = vpop.permute.xlu1 %366 }
  0xae   : > { %v468_v36 = vsel %vm460_vm5, %v444_v30, %v467_v32  ;;  %v6563_v37 = vrot.slane %v4831_v34, 4  ;;  %v365_v38 = vpop.permute.xlu0 %364 }
  0xaf   : > { %v380_v40 = vrot.slane %v365_v38, 4  ;;  %1439 = vrot.lane.b32.xlu1 %v4670_v12, %s4509_s21  ;;  %v4121_v42 = vcombine.high %v461_v28, %v468_v36  ;;  %v4120_v43 = vcombine.low %v461_v28, %v468_v36 }
  0xb0   : > { %1437 = vrot.lane.b32.xlu0 %v4672_v13, %s4509_s21 }
  0xb1   : > { %v388_v44 = vsel %vm316_vm0, %v380_v40, %v6563_v37  ;;  %v4842_v45 = vpop.permute.xlu1 %374  ;;  %3372 = vmatprep.subr.bf16.mxu0 %v4121_v42 }
  0xb2   : > { %v390_v46 = vsel %vm6600_vm6, %v365_v38, %v388_v44  ;;  %v6564_v48 = vrot.slane %v4842_v45, 4  ;;  %v373_v50 = vpop.permute.xlu0 %372  ;;  %3373 = vmatpush1.bf16.msra.mxu0 %v4120_v43  ;;  %v4099_v43 = vcombine.low %v4577_v1, %v4571_v0 }
  0xb3   : > { %v384_v51 = vrot.slane %v373_v50, 4  ;;  %863 = vrot.lane.b32.xlu1 %v4662_v10, %s6544_s19 }
  0xb4   : > { %861 = vrot.lane.b32.xlu0 %v4664_v11, %s6544_s19 }
  0xb5   : > { %v396_v52 = vsel %vm316_vm0, %v384_v51, %v6564_v48  ;;  %v4853_v54 = vpop.permute.xlu1 %294 }
  0xb6   : > { %v397_v56 = vsel %vm6600_vm6, %v373_v50, %v396_v52  ;;  %v6560_v57 = vrot.slane %v4853_v54, 4  ;;  %v293_v58 = vpop.permute.xlu0 %292  ;;  %vm6613_vm6 = vcmask 711680  }
  0xb7   : > { %v308_v59 = vrot.slane %v293_v58, 4  ;;  %871 = vrot.lane.b32.xlu1 %v4670_v12, %s6544_s19  ;;  %v4114_v60 = vcombine.high %v390_v46, %v397_v56  ;;  %v4113_v62 = vcombine.low %v390_v46, %v397_v56 }
  0xb8   : > { %869 = vrot.lane.b32.xlu0 %v4672_v13, %s6544_s19  ;;  %s6550_s19 = smov 102  }
  0xb9   : > { %v317_v6 = vsel %vm316_vm0, %v308_v59, %v6560_v57  ;;  %v4864_v7 = vpop.permute.xlu1 %302  ;;  %3374 = vmatprep.subr.bf16.mxu0 %v4114_v60 }
  0xba   : > { %v319_v8 = vsel %vm6590_vm7, %v293_v58, %v317_v6  ;;  %v6562_v14 = vrot.slane %v4864_v7, 4  ;;  %v301_v17 = vpop.permute.xlu0 %300  ;;  %3375 = vmatpush1.bf16.msra.mxu0 %v4113_v62 }
  0xbb   : > { %v312_v20 = vrot.slane %v301_v17, 4  ;;  %1360 = vrot.lane.b32.xlu1 %v4662_v10, %s4511_s20 }
  0xbc   : > { %1358 = vrot.lane.b32.xlu0 %v4664_v11, %s4511_s20  ;;  %v4100_v11 = vcombine.high %v4577_v1, %v4571_v0 }
  0xbd   : > { %v325_v22 = vsel %vm316_vm0, %v312_v20, %v6562_v14  ;;  %v4875_v23 = vpop.permute.xlu1 %1857 }
  0xbe   : > { %v326_v24 = vsel %vm6590_vm7, %v301_v17, %v325_v22  ;;  %v6599_v28 = vrot.slane %v4875_v23, 4  ;;  %v1856_v30 = vpop.permute.xlu0 %1855  ;;  %vm6674_vm7 = vcmask 703488  }
  0xbf   : > { %v1871_v31 = vrot.slane %v1856_v30, 4  ;;  %1368 = vrot.lane.b32.xlu1 %v4670_v12, %s4511_s20  ;;  %v4107_v10 = vcombine.high %v319_v8, %v326_v24  ;;  %v4106_v32 = vcombine.low %v319_v8, %v326_v24 }
  0xc0   : > { %1366 = vrot.lane.b32.xlu0 %v4672_v13, %s4511_s20 }
  0xc1   : > { %v1879_v36 = vsel %vm316_vm0, %v1871_v31, %v6599_v28  ;;  %v4888_v38 = vpop.permute.xlu1 %1865  ;;  %3376 = vmatprep.subr.bf16.mxu0 %v4107_v10 }
  0xc2   : > { %v1881_v40 = vsel %vm6633_vm8, %v1856_v30, %v1879_v36  ;;  %v6603_v42 = vrot.slane %v4888_v38, 4  ;;  %v1864_v12 = vpop.permute.xlu0 %1863  ;;  %3377 = vmatpush1.bf16.msra.mxu0 %v4106_v32  ;;  %v4934_v36 = vld [vmem:[#allocation2 + $0x50] sm:$0xff] }
  0xc3   : > { %v1875_v44 = vrot.slane %v1864_v12, 4  ;;  %792 = vrot.lane.b32.xlu1 %v4586_v3, %s6550_s19  ;;  %3378 = vmatprep.subr.bf16.mxu0 %v4100_v11 }
  0xc4   : > { %790 = vrot.lane.b32.xlu0 %v4577_v1, %s6550_s19 }
  0xc5   : > { %v1887_v13 = vsel %vm316_vm0, %v1875_v44, %v6603_v42  ;;  %v4901_v46 = vpop.permute.xlu1 %1289 }
  0xc6   : > { %v1888_v50 = vsel %vm6633_vm8, %v1864_v12, %v1887_v13  ;;  %v6556_v51 = vrot.slane %v4901_v46, 4  ;;  %v1288_v52 = vpop.permute.xlu0 %1287  ;;  %3379 = vmatpush1.bf16.msra.mxu0 %v4099_v43  ;;  %v4941_v43 = vld [vmem:[#allocation2 + $0x18] sm:$0xff] }
  0xc7   : > { %v1303_v56 = vrot.slane %v1288_v52, 4  ;;  %800 = vrot.lane.b32.xlu1 %v4583_v2, %s6550_s19  ;;  %v4261_v58 = vcombine.high %v1881_v40, %v1888_v50  ;;  %v4260_v59 = vcombine.low %v1881_v40, %v1888_v50 }
  0xc8   : > { %798 = vrot.lane.b32.xlu0 %v4571_v0, %s6550_s19  ;;  %v4414_v0 = vld [vmem:[%s6537_s1 + $0x4] ss:$16 sps:$4 sm:$0xff]   ;;  %s4514_s19 = smov 71  }
  0xc9   : > { %v1311_v1 = vsel %vm316_vm0, %v1303_v56, %v6556_v51  ;;  %v4912_v60 = vpop.permute.xlu1 %1297  ;;  %3417 = vmatprep.subr.bf16.mxu1 %v4261_v58  ;;  %3396 = vmatprep.mubr.bf16.mxu0 %v4414_v0 }
  0xca   : > { %v1313_v62 = vsel %vm6576_vm9, %v1288_v52, %v1311_v1  ;;  %v6557_v6 = vrot.slane %v4912_v60, 4  ;;  %v1296_v8 = vpop.permute.xlu0 %1295  ;;  %3418 = vmatpush1.bf16.msra.mxu1 %v4260_v59 }
  0xcb   : > { %v1307_v17 = vrot.slane %v1296_v8, 4  ;;  %2070 = vrot.lane.b32.xlu1 %v4589_v4, %s4513_s13 }
  0xcc   : > { %2068 = vrot.lane.b32.xlu0 %v4586_v3, %s4513_s13 }
  0xcd   : > { %v1319_v20 = vsel %vm316_vm0, %v1307_v17, %v6557_v6  ;;  %v4926_v22 = vpop.permute.xlu1 %1786 }
  0xce   : > { %v1320_v24 = vsel %vm6576_vm9, %v1296_v8, %v1319_v20  ;;  %v6594_v30 = vrot.slane %v4926_v22, 4  ;;  %v1785_v31 = vpop.permute.xlu0 %1784  ;;  %vm6676_vm9 = vcmask 785408  }
  0xcf   : > { %v1800_v10 = vrot.slane %v1785_v31, 4  ;;  %2078 = vrot.lane.b32.xlu1 %v4595_v5, %s4513_s13  ;;  %v4205_v32 = vcombine.high %v1313_v62, %v1320_v24  ;;  %v4204_v11 = vcombine.low %v1313_v62, %v1320_v24 }
  0xd0   : > { %2076 = vrot.lane.b32.xlu0 %v4583_v2, %s4513_s13 }
  0xd1   : > { %v1808_v40 = vsel %vm316_vm0, %v1800_v10, %v6594_v30  ;;  %v4939_v12 = vpop.permute.xlu1 %1794  ;;  %3380 = vmatprep.subr.bf16.mxu0 %v4205_v32 }
  0xd2   : > { %v1810_v44 = vsel %vm1809_vm10, %v1785_v31, %v1808_v40  ;;  %v6598_v13 = vrot.slane %v4939_v12, 4  ;;  %v1793_v50 = vpop.permute.xlu0 %1792  ;;  %3381 = vmatpush2.bf16.msra.mxu0 %v4204_v11 }
  0xd3   : > { %v1804_v52 = vrot.slane %v1793_v50, 4  ;;  %1867 = vrot.lane.b32.xlu1 %v4934_v36, %s4497_s30 }
  0xd4   : > { %1859 = vrot.lane.b32.xlu0 %v4941_v43, %s4497_s30 }
  0xd5   : > { %v1816_v56 = vsel %vm316_vm0, %v1804_v52, %v6598_v13  ;;  %v4952_v58 = vpop.permute.xlu1 %1218 }
  0xd6   : > { %v1817_v59 = vsel %vm1809_vm10, %v1793_v50, %v1816_v56  ;;  %v6552_v1 = vrot.slane %v4952_v58, 4  ;;  %v1217_v62 = vpop.permute.xlu0 %1216 }
  0xd7   : > { %v1232_v8 = vrot.slane %v1217_v62, 4  ;;  %1999 = vrot.lane.b32.xlu1 %v4589_v4, %s4514_s19  ;;  %v4254_v17 = vcombine.high %v1810_v44, %v1817_v59  ;;  %v4253_v0 = vcombine.low %v1810_v44, %v1817_v59 }
  0xd8   : > { %1997 = vrot.lane.b32.xlu0 %v4586_v3, %s4514_s19 }
  0xd9   : > { %v1240_v20 = vsel %vm316_vm0, %v1232_v8, %v6552_v1  ;;  %v4963_v24 = vpop.permute.xlu1 %1226  ;;  %3419 = vmatprep.subr.bf16.mxu1 %v4254_v17  ;;  %v4088_v17 = vld [vmem:[%s4568_s22 + $0x5c] sm:$0xff] }
  0xda   : > { %v1242_v31 = vsel %vm6565_vm11, %v1217_v62, %v1240_v20  ;;  %v6555_v10 = vrot.slane %v4963_v24, 4  ;;  %v1225_v32 = vpop.permute.xlu0 %1224  ;;  %3420 = vmatpush1.bf16.msra.mxu1 %v4253_v0  ;;  %257 = vst [vmem:[#allocation2 + $0x5c] sm:$0xff] %v4088_v17  ;;  %v4084_v0 = vld [vmem:[%s4568_s22 + $0x40] sm:$0xff] }
  0xdb   : > { %v1236_v11 = vrot.slane %v1225_v32, 4  ;;  %2007 = vrot.lane.b32.xlu1 %v4595_v5, %s4514_s19  ;;  %253 = vst [vmem:[#allocation2 + $0x24] sm:$0xff] %v4084_v0 }
  0xdc   : > { %2005 = vrot.lane.b32.xlu0 %v4583_v2, %s4514_s19 }
  0xdd   : > { %v1248_v40 = vsel %vm316_vm0, %v1236_v11, %v6555_v10  ;;  %v4974_v44 = vpop.permute.xlu1 %1715 }
  0xde   : > { %v1249_v50 = vsel %vm6565_vm11, %v1225_v32, %v1248_v40  ;;  %v6587_v52 = vrot.slane %v4974_v44, 4  ;;  %v1714_v56 = vpop.permute.xlu0 %1713  ;;  %vm1596_vm11 = vcmask 777216  }
  0xdf   : > { %v1729_v59 = vrot.slane %v1714_v56, 4  ;;  %1796 = vrot.lane.b32.xlu1 %v4934_v36, %s6553_s6  ;;  %v4198_v62 = vcombine.high %v1242_v31, %v1249_v50  ;;  %v4197_v8 = vcombine.low %v1242_v31, %v1249_v50  ;;  %v4996_v50 = vld [vmem:[%s6537_s1 + $0xc] ss:$16 sps:$4 sm:$0xff]  }
  0xe0   : > { %1788 = vrot.lane.b32.xlu0 %v4941_v43, %s6553_s6  ;;  %4288 = vmatprep.mubr.msk.bf16.mxu1 %vm3357_vm13, %v4996_v50  ;;  %s6707_s6 = smov 111  }
  0xe1   : > { %v1737_v20 = vsel %vm316_vm0, %v1729_v59, %v6587_v52  ;;  %v4987_v32 = vpop.permute.xlu1 %1723  ;;  %3382 = vmatprep.subr.bf16.mxu0 %v4198_v62  ;;  %v5160_v52 = vld [vmem:[#allocation2 + $0x8] sm:$0xff] }
  0xe2   : > { %v1739_v11 = vsel %vm1738_vm12, %v1714_v56, %v1737_v20  ;;  %v6588_v40 = vrot.slane %v4987_v32, 4  ;;  %v1722_v1 = vpop.permute.xlu0 %1721  ;;  %3383 = vmatpush2.bf16.msra.mxu0 %v4197_v8 }
  0xe3   : > { %v1733_v31 = vrot.slane %v1722_v1, 4  ;;  %1928 = vrot.lane.b32.xlu1 %v4589_v4, %s4515_s11 }
  0xe4   : > { %1926 = vrot.lane.b32.xlu0 %v4586_v3, %s4515_s11 }
  0xe5   : > { %v1745_v56 = vsel %vm316_vm0, %v1733_v31, %v6588_v40  ;;  %v5003_v59 = vpop.permute.xlu1 %1147  ;;  %v5162_v40 = vld [vmem:[#allocation2 + $0x40] sm:$0xff] }
  0xe6   : > { %v1746_v62 = vsel %vm1738_vm12, %v1722_v1, %v1745_v56  ;;  %v6558_v8 = vrot.slane %v5003_v59, 4  ;;  %v1146_v17 = vpop.permute.xlu0 %1145 }
  0xe7   : > { %v1161_v0 = vrot.slane %v1146_v17, 4  ;;  %1936 = vrot.lane.b32.xlu1 %v4595_v5, %s4515_s11  ;;  %v4247_v3 = vcombine.high %v1739_v11, %v1746_v62  ;;  %v4246_v20 = vcombine.low %v1739_v11, %v1746_v62 }
  0xe8   : > { %1934 = vrot.lane.b32.xlu0 %v4583_v2, %s4515_s11 }
  0xe9   : > { %v1169_v31 = vsel %vm316_vm0, %v1161_v0, %v6558_v8  ;;  %v5016_v10 = vpop.permute.xlu1 %1155  ;;  %3421 = vmatprep.subr.bf16.mxu1 %v4247_v3 }
  0xea   : > { %v1171_v1 = vsel %vm6561_vm14, %v1146_v17, %v1169_v31  ;;  %v6559_v56 = vrot.slane %v5016_v10, 4  ;;  %v1154_v51 = vpop.permute.xlu0 %1153  ;;  %3422 = vmatpush1.bf16.msra.mxu1 %v4246_v20 }
  0xeb   : > { %v1165_v6 = vrot.slane %v1154_v51, 4  ;;  %731 = vrot.lane.b32.xlu1 %v4595_v5, %s4490_s23 }
  0xec   : > { %723 = vrot.lane.b32.xlu0 %v4589_v4, %s4490_s23 }
  0xed   : > { %v1177_v2 = vsel %vm316_vm0, %v1165_v6, %v6559_v56  ;;  %v5027_v11 = vpop.permute.xlu1 %1644 }
  0xee   : > { %v1178_v62 = vsel %vm6561_vm14, %v1154_v51, %v1177_v2  ;;  %v6579_v17 = vrot.slane %v5027_v11, 4  ;;  %v1643_v0 = vpop.permute.xlu0 %1642  ;;  %vm6571_vm14 = vcmask 818176  }
  0xef   : > { %v1658_v3 = vrot.slane %v1643_v0, 4  ;;  %1725 = vrot.lane.b32.xlu1 %v4934_v36, %s4501_s8  ;;  %v4191_v20 = vcombine.high %v1171_v1, %v1178_v62  ;;  %v4190_v31 = vcombine.low %v1171_v1, %v1178_v62 }
  0xf0   : > { %1717 = vrot.lane.b32.xlu0 %v4941_v43, %s4501_s8 }
  0xf1   : > { %v1666_v6 = vsel %vm316_vm0, %v1658_v3, %v6579_v17  ;;  %v5038_v8 = vpop.permute.xlu1 %1652  ;;  %3384 = vmatprep.subr.bf16.mxu0 %v4191_v20 }
  0xf2   : > { %v1668_v51 = vsel %vm1667_vm15, %v1643_v0, %v1666_v6  ;;  %v6581_v2 = vrot.slane %v5038_v8, 4  ;;  %v1651_v56 = vpop.permute.xlu0 %1650  ;;  %3385 = vmatpush2.bf16.msra.mxu0 %v4190_v31 }
  0xf3   : > { %v1662_v57 = vrot.slane %v1651_v56, 4  ;;  %660 = vrot.lane.b32.xlu1 %v4595_v5, %s4491_s24 }
  0xf4   : > { %652 = vrot.lane.b32.xlu0 %v4589_v4, %s4491_s24  ;;  %v5057_v4 = vld [vmem:[#allocation2 + $0x48] sm:$0xff] }
  0xf5   : > { %v1674_v1 = vsel %vm316_vm0, %v1662_v57, %v6581_v2  ;;  %v5049_v62 = vpop.permute.xlu1 %1076 }
  0xf6   : > { %v1675_v3 = vsel %vm1667_vm15, %v1651_v56, %v1674_v1  ;;  %v6566_v0 = vrot.slane %v5049_v62, 4  ;;  %v1075_v20 = vpop.permute.xlu0 %1074  ;;  %v5064_v1 = vld [vmem:[#allocation2 + $0x10] sm:$0xff] }
  0xf7   : > { %v1090_v31 = vrot.slane %v1075_v20, 4  ;;  %1654 = vrot.lane.b32.xlu1 %v4934_v36, %s4503_s10  ;;  %v4240_v5 = vcombine.high %v1668_v51, %v1675_v3  ;;  %v4239_v6 = vcombine.low %v1668_v51, %v1675_v3 }
  0xf8   : > { %1646 = vrot.lane.b32.xlu0 %v4941_v43, %s4503_s10 }
  0xf9   : > { %v1098_v57 = vsel %vm316_vm0, %v1090_v31, %v6566_v0  ;;  %v5062_v56 = vpop.permute.xlu1 %1084  ;;  %3423 = vmatprep.subr.bf16.mxu1 %v4240_v5 }
  0xfa   : > { %v1100_v14 = vsel %vm6571_vm14, %v1075_v20, %v1098_v57  ;;  %v6568_v37 = vrot.slane %v5062_v56, 4  ;;  %v1083_v48 = vpop.permute.xlu0 %1082  ;;  %3424 = vmatpush1.bf16.msra.mxu1 %v4239_v6 }
  0xfb   : > { %v1094_v51 = vrot.slane %v1083_v48, 4  ;;  %589 = vrot.lane.b32.xlu1 %v5057_v4, %s4492_s25 }
  0xfc   : > { %581 = vrot.lane.b32.xlu0 %v5064_v1, %s4492_s25 }
  0xfd   : > { %v1106_v3 = vsel %vm316_vm0, %v1094_v51, %v6568_v37  ;;  %v5075_v31 = vpop.permute.xlu1 %1573 }
  0xfe   : > { %v1107_v5 = vsel %vm6571_vm14, %v1083_v48, %v1106_v3  ;;  %v6573_v20 = vrot.slane %v5075_v31, 4  ;;  %v1572_v57 = vpop.permute.xlu0 %1571  ;;  %vm6583_vm14 = vcmask 900096  }
  0xff   : > { %v1587_v6 = vrot.slane %v1572_v57, 4  ;;  %1583 = vrot.lane.b32.xlu1 %v4934_v36, %s4505_s12  ;;  %v4184_v0 = vcombine.high %v1100_v14, %v1107_v5  ;;  %v4183_v15 = vcombine.low %v1100_v14, %v1107_v5 }
 0x100   : > { %1575 = vrot.lane.b32.xlu0 %v4941_v43, %s4505_s12 }
 0x101   : > { %v1595_v51 = vsel %vm316_vm0, %v1587_v6, %v6573_v20  ;;  %v5086_v37 = vpop.permute.xlu1 %1581  ;;  %3386 = vmatprep.subr.bf16.mxu0 %v4184_v0 }
 0x102   : > { %v1597_v48 = vsel %vm1596_vm11, %v1572_v57, %v1595_v51  ;;  %v6574_v3 = vrot.slane %v5086_v37, 4  ;;  %v1580_v29 = vpop.permute.xlu0 %1579  ;;  %3387 = vmatpush2.bf16.msra.mxu0 %v4183_v15 }
 0x103   : > { %v1591_v55 = vrot.slane %v1580_v29, 4  ;;  %518 = vrot.lane.b32.xlu1 %v5057_v4, %s4493_s26 }
 0x104   : > { %510 = vrot.lane.b32.xlu0 %v5064_v1, %s4493_s26 }
 0x105   : > { %v1603_v14 = vsel %vm316_vm0, %v1591_v55, %v6574_v3  ;;  %v5097_v5 = vpop.permute.xlu1 %1005 }
 0x106   : > { %6692 = vst [vmem:[#allocation4_spill] sm:$0xff] %v5097_v5  ;;  %v1604_v0 = vsel %vm1596_vm11, %v1580_v29, %v1603_v14  ;;  %v6577_v57 = vrot.slane %v5097_v5, 4  ;;  %v1004_v6 = vpop.permute.xlu0 %1003 }
 0x107   : > { %v1019_v15 = vrot.slane %v1004_v6, 4  ;;  %1512 = vrot.lane.b32.xlu1 %v4934_v36, %s4507_s14  ;;  %v4233_v51 = vcombine.high %v1597_v48, %v1604_v0  ;;  %v4232_v63 = vcombine.low %v1597_v48, %v1604_v0  ;;  %v5116_v48 = vld [vmem:[#allocation2 + $0x4c] sm:$0xff] }
 0x108   : > { %1504 = vrot.lane.b32.xlu0 %v4941_v43, %s4507_s14 }
 0x109   : > { %v1027_v55 = vsel %vm316_vm0, %v1019_v15, %v6577_v57  ;;  %v5108_v20 = vpop.permute.xlu1 %1013  ;;  %3425 = vmatprep.subr.bf16.mxu1 %v4233_v51 }
 0x10a   : > { %v1029_v29 = vsel %vm6583_vm14, %v1004_v6, %v1027_v55  ;;  %v6580_v14 = vrot.slane %v5108_v20, 4  ;;  %v1012_v3 = vpop.permute.xlu0 %1011  ;;  %3426 = vmatpush1.bf16.msra.mxu1 %v4232_v63  ;;  %v5123_v6 = vld [vmem:[#allocation2 + $0x14] sm:$0xff] }
 0x10b   : > { %v1023_v41 = vrot.slane %v1012_v3, 4  ;;  %447 = vrot.lane.b32.xlu1 %v5057_v4, %s4494_s27 }
 0x10c   : > { %439 = vrot.lane.b32.xlu0 %v5064_v1, %s4494_s27 }
 0x10d   : > { %v1035_v0 = vsel %vm316_vm0, %v1023_v41, %v6580_v14  ;;  %v5121_v15 = vpop.permute.xlu1 %1502 }
 0x10e   : > { %v1036_v51 = vsel %vm6583_vm14, %v1012_v3, %v1035_v0  ;;  %v6584_v63 = vrot.slane %v5121_v15, 4  ;;  %v1501_v55 = vpop.permute.xlu0 %1500  ;;  %vm6595_vm14 = vcmask 908288  }
 0x10f   : > { %v1516_v57 = vrot.slane %v1501_v55, 4  ;;  %1441 = vrot.lane.b32.xlu1 %v5116_v48, %s4509_s21  ;;  %v4177_v49 = vcombine.high %v1029_v29, %v1036_v51  ;;  %v4176_v17 = vcombine.low %v1029_v29, %v1036_v51 }
 0x110   : > { %1433 = vrot.lane.b32.xlu0 %v5123_v6, %s4509_s21 }
 0x111   : > { %v1524_v41 = vsel %vm316_vm0, %v1516_v57, %v6584_v63  ;;  %v5134_v14 = vpop.permute.xlu1 %1510  ;;  %3388 = vmatprep.subr.bf16.mxu0 %v4177_v49 }
 0x112   : > { %v1526_v3 = vsel %vm6676_vm9, %v1501_v55, %v1524_v41  ;;  %v6585_v0 = vrot.slane %v5134_v14, 4  ;;  %v1509_v2 = vpop.permute.xlu0 %1508  ;;  %3389 = vmatpush2.bf16.msra.mxu0 %v4176_v17 }
 0x113   : > { %v1520_v27 = vrot.slane %v1509_v2, 4  ;;  %376 = vrot.lane.b32.xlu1 %v5057_v4, %s4495_s28 }
 0x114   : > { %368 = vrot.lane.b32.xlu0 %v5064_v1, %s4495_s28 }
 0x115   : > { %v1532_v57 = vsel %vm316_vm0, %v1520_v27, %v6585_v0  ;;  %v5145_v29 = vpop.permute.xlu1 %934 }
 0x116   : > { %6693 = vst [vmem:[#allocation5_spill] sm:$0xff] %v5145_v29  ;;  %v1533_v49 = vsel %vm6676_vm9, %v1509_v2, %v1532_v57  ;;  %v6589_v51 = vrot.slane %v5145_v29, 4  ;;  %v933_v55 = vpop.permute.xlu0 %932 }
 0x117   : > { %v948_v17 = vrot.slane %v933_v55, 4  ;;  %1370 = vrot.lane.b32.xlu1 %v5116_v48, %s4511_s20  ;;  %v4226_v41 = vcombine.high %v1526_v3, %v1533_v49  ;;  %v4225_v63 = vcombine.low %v1526_v3, %v1533_v49 }
 0x118   : > { %1362 = vrot.lane.b32.xlu0 %v5123_v6, %s4511_s20 }
 0x119   : > { %v956_v27 = vsel %vm316_vm0, %v948_v17, %v6589_v51  ;;  %v5156_v0 = vpop.permute.xlu1 %942  ;;  %3427 = vmatprep.subr.bf16.mxu1 %v4226_v41 }
 0x11a   : > { %6694 = vst [vmem:[#allocation6_spill] sm:$0xff] %v5156_v0  ;;  %v958_v2 = vsel %vm6595_vm14, %v933_v55, %v956_v27  ;;  %v6593_v57 = vrot.slane %v5156_v0, 4  ;;  %v941_v35 = vpop.permute.xlu0 %940  ;;  %3428 = vmatpush1.bf16.msra.mxu1 %v4225_v63 }
 0x11b   : > { %v952_v3 = vrot.slane %v941_v35, 4  ;;  %304 = vrot.lane.b32.xlu1 %v5057_v4, %s4496_s29 }
 0x11c   : > { %296 = vrot.lane.b32.xlu0 %v5064_v1, %s4496_s29 }
 0x11d   : > { %v964_v63 = vsel %vm316_vm0, %v952_v3, %v6593_v57  ;;  %v5175_v17 = vpop.permute.xlu1 %1431 }
 0x11e   : > { %v965_v41 = vsel %vm6595_vm14, %v941_v35, %v964_v63  ;;  %v6596_v27 = vrot.slane %v5175_v17, 4  ;;  %v1430_v51 = vpop.permute.xlu0 %1429  ;;  %vm6606_vm14 = vcmask 916480  }
 0x11f   : > { %v1445_v21 = vrot.slane %v1430_v51, 4  ;;  %2080 = vrot.lane.b32.xlu1 %v4934_v36, %s4513_s13  ;;  %v4170_v49 = vcombine.high %v958_v2, %v965_v41  ;;  %v4169_v18 = vcombine.low %v958_v2, %v965_v41 }
 0x120   : > { %2072 = vrot.lane.b32.xlu0 %v4941_v43, %s4513_s13 }
 0x121   : > { %v1453_v3 = vsel %vm316_vm0, %v1445_v21, %v6596_v27  ;;  %v5186_v57 = vpop.permute.xlu1 %1439  ;;  %3390 = vmatprep.subr.bf16.mxu0 %v4170_v49 }
 0x122   : > { %v1455_v35 = vsel %vm6674_vm7, %v1430_v51, %v1453_v3  ;;  %v6597_v63 = vrot.slane %v5186_v57, 4  ;;  %v1438_v55 = vpop.permute.xlu0 %1437  ;;  %3391 = vmatpush2.bf16.msra.mxu0 %v4169_v18 }
 0x123   : > { %v1449_v30 = vrot.slane %v1438_v55, 4  ;;  %2009 = vrot.lane.b32.xlu1 %v4934_v36, %s4514_s19 }
 0x124   : > { %2001 = vrot.lane.b32.xlu0 %v4941_v43, %s4514_s19 }
 0x125   : > { %v1461_v21 = vsel %vm316_vm0, %v1449_v30, %v6597_v63  ;;  %v5197_v2 = vpop.permute.xlu1 %863 }
 0x126   : > { %6695 = vst [vmem:[#allocation7_spill] sm:$0xff] %v5197_v2  ;;  %v1462_v49 = vsel %vm6674_vm7, %v1438_v55, %v1461_v21  ;;  %v6601_v51 = vrot.slane %v5197_v2, 4  ;;  %v862_v41 = vpop.permute.xlu0 %861 }
 0x127   : > { %v877_v18 = vrot.slane %v862_v41, 4  ;;  %1299 = vrot.lane.b32.xlu1 %v5116_v48, %s4498_s5  ;;  %v4219_v3 = vcombine.high %v1455_v35, %v1462_v49  ;;  %v4218_v27 = vcombine.low %v1455_v35, %v1462_v49 }
 0x128   : > { %1291 = vrot.lane.b32.xlu0 %v5123_v6, %s4498_s5 }
 0x129   : > { %v885_v30 = vsel %vm316_vm0, %v877_v18, %v6601_v51  ;;  %v5208_v63 = vpop.permute.xlu1 %871  ;;  %3429 = vmatprep.subr.bf16.mxu1 %v4219_v3 }
 0x12a   : > { %6696 = vst [vmem:[#allocation8_spill] sm:$0xff] %v5208_v63  ;;  %v887_v55 = vsel %vm6606_vm14, %v862_v41, %v885_v30  ;;  %v6602_v21 = vrot.slane %v5208_v63, 4  ;;  %v870_v13 = vpop.permute.xlu0 %869  ;;  %3430 = vmatpush1.bf16.msra.mxu1 %v4218_v27 }
 0x12b   : > { %v881_v28 = vrot.slane %v870_v13, 4  ;;  %1938 = vrot.lane.b32.xlu1 %v4934_v36, %s4515_s11 }
 0x12c   : > { %1930 = vrot.lane.b32.xlu0 %v4941_v43, %s4515_s11 }
 0x12d   : > { %v893_v35 = vsel %vm316_vm0, %v881_v28, %v6602_v21  ;;  %v5219_v49 = vpop.permute.xlu1 %1360 }
 0x12e   : > { %v894_v18 = vsel %vm6606_vm14, %v870_v13, %v893_v35  ;;  %v6607_v41 = vrot.slane %v5219_v49, 4  ;;  %v1359_v3 = vpop.permute.xlu0 %1358  ;;  %vm6627_vm14 = vcmask 834560  }
 0x12f   : > { %v1374_v27 = vrot.slane %v1359_v3, 4  ;;  %733 = vrot.lane.b32.xlu1 %v4934_v36, %s4490_s23  ;;  %v4163_v30 = vcombine.high %v887_v55, %v894_v18  ;;  %v4162_v51 = vcombine.low %v887_v55, %v894_v18 }
 0x130   : > { %725 = vrot.lane.b32.xlu0 %v4941_v43, %s4490_s23 }
 0x131   : > { %v1382_v28 = vsel %vm316_vm0, %v1374_v27, %v6607_v41  ;;  %v5230_v21 = vpop.permute.xlu1 %1368  ;;  %3392 = vmatprep.subr.bf16.mxu0 %v4163_v30 }
 0x132   : > { %v1384_v13 = vsel %vm6613_vm6, %v1359_v3, %v1382_v28  ;;  %v6608_v35 = vrot.slane %v5230_v21, 4  ;;  %v1367_v42 = vpop.permute.xlu0 %1366  ;;  %3393 = vmatpush2.bf16.msra.mxu0 %v4162_v51 }
 0x133   : > { %v1378_v2 = vrot.slane %v1367_v42, 4  ;;  %1228 = vrot.lane.b32.xlu1 %v5116_v48, %s4500_s7 }
 0x134   : > { %1220 = vrot.lane.b32.xlu0 %v5123_v6, %s4500_s7 }
 0x135   : > { %v1390_v55 = vsel %vm316_vm0, %v1378_v2, %v6608_v35  ;;  %v5241_v18 = vpop.permute.xlu1 %792 }
 0x136   : > { %6697 = vst [vmem:[#allocation9_spill] sm:$0xff] %v5241_v18  ;;  %v1391_v27 = vsel %vm6613_vm6, %v1367_v42, %v1390_v55  ;;  %v6614_v3 = vrot.slane %v5241_v18, 4  ;;  %v791_v30 = vpop.permute.xlu0 %790  ;;  %vm2093_vm6 = vcmask 572416  }
 0x137   : > { %v806_v51 = vrot.slane %v791_v30, 4  ;;  %662 = vrot.lane.b32.xlu1 %v4934_v36, %s4491_s24  ;;  %v4212_v28 = vcombine.high %v1384_v13, %v1391_v27  ;;  %v4211_v41 = vcombine.low %v1384_v13, %v1391_v27 }
 0x138   : > { %654 = vrot.lane.b32.xlu0 %v4941_v43, %s4491_s24  ;;  %s6718_s24 = smov 102  }
 0x139   : > { %v814_v2 = vsel %vm316_vm0, %v806_v51, %v6614_v3  ;;  %v5252_v35 = vpop.permute.xlu1 %800  ;;  %3431 = vmatprep.subr.bf16.mxu1 %v4212_v28 }
 0x13a   : > { %6698 = vst [vmem:[#allocation10_spill] sm:$0xff] %v5252_v35  ;;  %v816_v42 = vsel %vm6627_vm14, %v791_v30, %v814_v2  ;;  %v6615_v55 = vrot.slane %v5252_v35, 4  ;;  %v799_v63 = vpop.permute.xlu0 %798  ;;  %3432 = vmatpush1.bf16.msra.mxu1 %v4211_v41 }
 0x13b   : > { %v810_v29 = vrot.slane %v799_v63, 4  ;;  %1157 = vrot.lane.b32.xlu1 %v5116_v48, %s4502_s9 }
 0x13c   : > { %1149 = vrot.lane.b32.xlu0 %v5123_v6, %s4502_s9 }
 0x13d   : > { %v822_v13 = vsel %vm316_vm0, %v810_v29, %v6615_v55  ;;  %v5263_v27 = vpop.permute.xlu1 %2070 }
 0x13e   : > { %v823_v51 = vsel %vm6627_vm14, %v799_v63, %v822_v13  ;;  %v6620_v30 = vrot.slane %v5263_v27, 4  ;;  %v2069_v28 = vpop.permute.xlu0 %2068  ;;  %v4416_v63 = vld [vmem:[%s6537_s1] ss:$16 sps:$4 sm:$0xff]   ;;  %vm2022_vm14 = vcmask 580608  }
 0x13f   : > { %v2084_v41 = vrot.slane %v2069_v28, 4  ;;  %591 = vrot.lane.b32.xlu1 %v4934_v36, %s4492_s25  ;;  %v4156_v2 = vcombine.high %v816_v42, %v823_v51  ;;  %v4155_v3 = vcombine.low %v816_v42, %v823_v51  ;;  %v4422_v42 = vld [vmem:[%s6537_s1 + $0x24] ss:$16 sps:$4 sm:$0xff]  }
 0x140   : > { %583 = vrot.lane.b32.xlu0 %v4941_v43, %s4492_s25  ;;  %s6699_s25 = smov 100  }
 0x141   : > { %v2092_v29 = vsel %vm316_vm0, %v2084_v41, %v6620_v30  ;;  %v5274_v55 = vpop.permute.xlu1 %2078  ;;  %3394 = vmatprep.subr.bf16.mxu0 %v4156_v2 }
 0x142   : > { %v2094_v13 = vsel %vm2093_vm6, %v2069_v28, %v2092_v29  ;;  %v6625_v18 = vrot.slane %v5274_v55, 4  ;;  %v2077_v35 = vpop.permute.xlu0 %2076  ;;  %3395 = vmatpush2.bf16.msra.mxu0 %v4155_v3 }
 0x143   : > { %v2088_v51 = vrot.slane %v2077_v35, 4  ;;  %1086 = vrot.lane.b32.xlu1 %v5116_v48, %s6699_s25 }
 0x144   : > { %1078 = vrot.lane.b32.xlu0 %v5123_v6, %s6699_s25 }
 0x145   : > { %v2100_v41 = vsel %vm316_vm0, %v2088_v51, %v6625_v18  ;;  %v5291_v28 = vpop.permute.xlu1 %1867  ;;  %3397 = vmatmul.mubr.bf16.vlgmr.msra.gmra.mxu0 %v4416_v63  ;;  %v6702_v51 = vrot.slane %v4888_v38, 4 }
 0x146   : > { %6700 = vst [vmem:[#allocation11_spill] sm:$0xff] %v5291_v28  ;;  %v2101_v3 = vsel %vm2093_vm6, %v2077_v35, %v2100_v41  ;;  %v6626_v2 = vrot.slane %v5291_v28, 4  ;;  %v5295_v29 = vpop.permute.xlu0 %1859  ;;  %3406 = vmatprep.mubr.bf16.mxu0 %v4422_v42  ;;  %v6703_v42 = vrot.slane %v4875_v23, 4  ;;  %v6724_v28 = vrot.slane %v5038_v8, 4 }
 0x147   : > { %6701 = vst [vmem:[#allocation12_spill] sm:$0xff] %v5295_v29  ;;  %v6628_v30 = vrot.slane %v5295_v29, 4  ;;  %520 = vrot.lane.b32.xlu1 %v4934_v36, %s4493_s26  ;;  %v4282_v0 = vcombine.high %v2094_v13, %v2101_v3  ;;  %v4281_v5 = vcombine.low %v2094_v13, %v2101_v3  ;;  %v4424_v13 = vld [vmem:[%s6537_s1 + $0x20] ss:$16 sps:$4 sm:$0xff]  }
 0x148   : > { %v1889_v63 = vsel %vm316_vm0, %v6702_v51, %v6626_v2  ;;  %512 = vrot.lane.b32.xlu0 %v4941_v43, %s4493_s26  ;;  %s6704_s26 = smov 110  }
 0x149   : > { %v1890_v35 = vsel %vm6633_vm8, %v4888_v38, %v1889_v63  ;;  %v1882_v41 = vsel %vm316_vm0, %v6703_v42, %v6628_v30  ;;  %v5314_v18 = vpop.permute.xlu1 %1999  ;;  %3443 = vmatprep.subr.bf16.mxu1 %v4282_v0 }
 0x14a   : > { %v1883_v3 = vsel %vm6633_vm8, %v4875_v23, %v1882_v41  ;;  %v6629_v51 = vrot.slane %v5314_v18, 4  ;;  %v1998_v2 = vpop.permute.xlu0 %1997  ;;  %3444 = vmatpush2.bf16.msra.mxu1 %v4281_v5  ;;  %vm1951_vm8 = vcmask 588800  }
 0x14b   : > { %v2013_v38 = vrot.slane %v1998_v2, 4  ;;  %1015 = vrot.lane.b32.xlu1 %v5116_v48, %s6704_s26  ;;  %v4262_v63 = vcombine.low %v1883_v3, %v1890_v35  ;;  %v4263_v42 = vcombine.high %v1883_v3, %v1890_v35 }
 0x14c   : > { %1007 = vrot.lane.b32.xlu0 %v5123_v6, %s6704_s26 }
 0x14d   : > { %v2021_v0 = vsel %vm316_vm0, %v2013_v38, %v6629_v51  ;;  %v5329_v30 = vpop.permute.xlu1 %2007  ;;  %3523 = vmatprep.subr.bf16.mxu0 %v4263_v42  ;;  %3407 = vmatmul.mubr.bf16.gmra.mxu0 %v4424_v13  ;;  %v6708_v51 = vrot.slane %v4939_v12, 4 }
 0x14e   : > { %v2023_v23 = vsel %vm2022_vm14, %v1998_v2, %v2021_v0  ;;  %v6630_v5 = vrot.slane %v5329_v30, 4  ;;  %v2006_v41 = vpop.permute.xlu0 %2005  ;;  %3524 = vmatpush1.bf16.msra.mxu0 %v4262_v63  ;;  %4290 = vmatprep.mubr.msk.bf16.mxu0 %vm3357_vm13, %v4996_v50 }
 0x14f   : > { %v2017_v35 = vrot.slane %v2006_v41, 4  ;;  %449 = vrot.lane.b32.xlu1 %v4934_v36, %s4494_s27 }
 0x150   : > { %441 = vrot.lane.b32.xlu0 %v4941_v43, %s4494_s27  ;;  %s6710_s27 = smov 112  }
 0x151   : > { %v2029_v13 = vsel %vm316_vm0, %v2017_v35, %v6630_v5  ;;  %v5342_v3 = vpop.permute.xlu1 %1796 }
 0x152   : > { %6705 = vst [vmem:[#allocation13_spill] sm:$0xff] %v5342_v3  ;;  %v2030_v2 = vsel %vm2022_vm14, %v2006_v41, %v2029_v13  ;;  %v6634_v38 = vrot.slane %v5342_v3, 4  ;;  %v5346_v63 = vpop.permute.xlu0 %1788  ;;  %v6709_v13 = vrot.slane %v4926_v22, 4 }
 0x153   : > { %6706 = vst [vmem:[#allocation14_spill] sm:$0xff] %v5346_v63  ;;  %v6635_v50 = vrot.slane %v5346_v63, 4  ;;  %944 = vrot.lane.b32.xlu1 %v5116_v48, %s6707_s6  ;;  %v4275_v42 = vcombine.high %v2023_v23, %v2030_v2  ;;  %v4274_v0 = vcombine.low %v2023_v23, %v2030_v2 }
 0x154   : > { %v1818_v35 = vsel %vm316_vm0, %v6708_v51, %v6634_v38  ;;  %936 = vrot.lane.b32.xlu0 %v5123_v6, %s6707_s6 }
 0x155   : > { %v1819_v41 = vsel %vm1809_vm10, %v4939_v12, %v1818_v35  ;;  %v1811_v5 = vsel %vm316_vm0, %v6709_v13, %v6635_v50  ;;  %v5365_v29 = vpop.permute.xlu1 %1928  ;;  %3445 = vmatprep.subr.bf16.mxu1 %v4275_v42 }
 0x156   : > { %v1812_v23 = vsel %vm1809_vm10, %v4926_v22, %v1811_v5  ;;  %v6636_v51 = vrot.slane %v5365_v29, 4  ;;  %v1927_v2 = vpop.permute.xlu0 %1926  ;;  %3446 = vmatpush2.bf16.msra.mxu1 %v4274_v0 }
 0x157   : > { %v1942_v38 = vrot.slane %v1927_v2, 4  ;;  %378 = vrot.lane.b32.xlu1 %v4934_v36, %s4495_s28  ;;  %v4255_v12 = vcombine.low %v1812_v23, %v1819_v41  ;;  %v4256_v35 = vcombine.high %v1812_v23, %v1819_v41  ;;  %v5385_v36 = vld [vmem:[#allocation2 + $0x50] sm:$0xff]  ;;  %v5392_v41 = vld [vmem:[#allocation2 + $0x18] sm:$0xff] }
 0x158   : > { %370 = vrot.lane.b32.xlu0 %v4941_v43, %s4495_s28 }
 0x159   : > { %v1950_v42 = vsel %vm316_vm0, %v1942_v38, %v6636_v51  ;;  %v5377_v13 = vpop.permute.xlu1 %1936  ;;  %3525 = vmatprep.subr.bf16.mxu0 %v4256_v35  ;;  %v5400_v35 = vld [vmem:[#allocation2 + $0x48] sm:$0xff] }
 0x15a   : > { %v1952_v22 = vsel %vm1951_vm8, %v1927_v2, %v1950_v42  ;;  %v6637_v5 = vrot.slane %v5377_v13, 4  ;;  %v1935_v0 = vpop.permute.xlu0 %1934  ;;  %3526 = vmatpush1.bf16.msra.mxu0 %v4255_v12  ;;  %6712 = vst [vmem:[#allocation16_spill] sm:$0xff] %v5400_v35 }
 0x15b   : > { %v1946_v50 = vrot.slane %v1935_v0, 4  ;;  %873 = vrot.lane.b32.xlu1 %v5116_v48, %s6710_s27  ;;  %v5398_v48 = vld [vmem:[#allocation2 + $0x10] sm:$0xff] }
 0x15c   : > { %865 = vrot.lane.b32.xlu0 %v5123_v6, %s6710_s27  ;;  %6711 = vst [vmem:[#allocation15_spill] sm:$0xff] %v5398_v48 }
 0x15d   : > { %v1958_v43 = vsel %vm316_vm0, %v1946_v50, %v6637_v5  ;;  %v5390_v38 = vpop.permute.xlu1 %731 }
 0x15e   : > { %v1959_v23 = vsel %vm1951_vm8, %v1935_v0, %v1958_v43  ;;  %v6640_v2 = vrot.slane %v5390_v38, 4  ;;  %v5396_v12 = vpop.permute.xlu0 %723  ;;  %v6713_v0 = vrot.slane %v4726_v16, 4 }
 0x15f   : > { %306 = vrot.lane.b32.xlu1 %v5385_v36, %s4496_s29  ;;  %v4268_v50 = vcombine.high %v1952_v22, %v1959_v23  ;;  %v4267_v42 = vcombine.low %v1952_v22, %v1959_v23  ;;  %v6714_v22 = vrot.slane %v5396_v12, 4  ;;  %v6715_v23 = vrot.slane %v4729_v19, 4 }
 0x160   : > { %v753_v43 = vsel %vm316_vm0, %v6713_v0, %v6640_v2  ;;  %298 = vrot.lane.b32.xlu0 %v5392_v41, %s4496_s29  ;;  %v5428_v0 = vld [vmem:[%s6537_s1 + $0x8] ss:$16 sps:$4 sm:$0xff]   ;;  %s6726_s29 = smov 83  }
 0x161   : > { %v754_v6 = vsel %vm744_vm1, %v4726_v16, %v753_v43  ;;  %v746_v51 = vsel %vm316_vm0, %v6715_v23, %v6714_v22  ;;  %v5423_v63 = vpop.permute.xlu1 %1725  ;;  %3447 = vmatprep.subr.bf16.mxu1 %v4268_v50  ;;  %v5438_v43 = vld [vmem:[%s6537_s1 + $0x2c] ss:$16 sps:$4 sm:$0xff]  }
 0x162   : > { %6716 = vst [vmem:[#allocation17_spill] sm:$0xff] %v5423_v63  ;;  %v747_v5 = vsel %vm744_vm1, %v4729_v19, %v746_v51  ;;  %v6645_v2 = vrot.slane %v5423_v63, 4  ;;  %v5433_v16 = vpop.permute.xlu0 %1717  ;;  %3448 = vmatpush2.bf16.msra.mxu1 %v4267_v42  ;;  %v6719_v19 = vrot.slane %v4987_v32, 4  ;;  %v5450_v42 = vld [vmem:[#allocation2 + $0x58] sm:$0xff]  ;;  %v5461_v63 = vld [vmem:[#allocation2 + $0x20] sm:$0xff] }
 0x163   : > { %6717 = vst [vmem:[#allocation18_spill] sm:$0xff] %v5433_v16  ;;  %v6646_v50 = vrot.slane %v5433_v16, 4  ;;  %802 = vrot.lane.b32.xlu1 %v5057_v4, %s6718_s24  ;;  %v4150_v22 = vcombine.low %v747_v5, %v754_v6  ;;  %v4151_v23 = vcombine.high %v747_v5, %v754_v6  ;;  %v6720_v4 = vrot.slane %v4974_v44, 4  ;;  %v5492_v16 = vld [vmem:[#allocation2 + $0x1c] sm:$0xff] }
 0x164   : > { %v1747_v51 = vsel %vm316_vm0, %v6719_v19, %v6645_v2  ;;  %794 = vrot.lane.b32.xlu0 %v5064_v1, %s6718_s24 }
 0x165   : > { %v1748_v3 = vsel %vm1738_vm12, %v4987_v32, %v1747_v51  ;;  %v1740_v5 = vsel %vm316_vm0, %v6720_v4, %v6646_v50  ;;  %v5459_v6 = vpop.permute.xlu1 %660  ;;  %3470 = vmatprep.subr.bf16.mxu1 %v4151_v23  ;;  %3450 = vmatmul.mubr.bf16.vlgmr.msra.gmra.mxu1 %v5428_v0  ;;  %v6721_v4 = vrot.slane %v4754_v33, 4  ;;  %v6722_v50 = vrot.slane %v4743_v25, 4 }
 0x166   : > { %v1741_v1 = vsel %vm1738_vm12, %v4974_v44, %v1740_v5  ;;  %v6649_v19 = vrot.slane %v5459_v6, 4  ;;  %v5467_v2 = vpop.permute.xlu0 %652  ;;  %3471 = vmatpush1.bf16.msra.mxu1 %v4150_v22  ;;  %4289 = vmatprep.mubr.msk.bf16.mxu1 %vm3357_vm13, %v5438_v43  ;;  %v5481_v22 = vld [vmem:[#allocation2 + $0x54] sm:$0xff] }
 0x167   : > { %v6650_v32 = vrot.slane %v5467_v2, 4  ;;  %1869 = vrot.lane.b32.xlu1 %v5450_v42, %s4497_s30  ;;  %v4248_v51 = vcombine.low %v1741_v1, %v1748_v3  ;;  %v4249_v23 = vcombine.high %v1741_v1, %v1748_v3 }
 0x168   : > { %v682_v44 = vsel %vm316_vm0, %v6721_v4, %v6649_v19  ;;  %1861 = vrot.lane.b32.xlu0 %v5461_v63, %s4497_s30  ;;  %v5497_v4 = vld [vmem:[%s6537_s1 + $0x28] ss:$16 sps:$4 sm:$0xff]  }
 0x169   : > { %v683_v5 = vsel %vm673_vm2, %v4754_v33, %v682_v44  ;;  %v675_v3 = vsel %vm316_vm0, %v6722_v50, %v6650_v32  ;;  %v5490_v1 = vpop.permute.xlu1 %1654  ;;  %3527 = vmatprep.subr.bf16.mxu0 %v4249_v23 }
 0x16a   : > { %v676_v19 = vsel %vm673_vm2, %v4743_v25, %v675_v3  ;;  %v6658_v33 = vrot.slane %v5490_v1, 4  ;;  %v5502_v44 = vpop.permute.xlu0 %1646  ;;  %3528 = vmatpush1.bf16.msra.mxu0 %v4248_v51  ;;  %v6725_v51 = vrot.slane %v5027_v11, 4 }
 0x16b   : > { %6723 = vst [vmem:[#allocation19_spill] sm:$0xff] %v5502_v44  ;;  %v6657_v50 = vrot.slane %v5502_v44, 4  ;;  %1301 = vrot.lane.b32.xlu1 %v5481_v22, %s4498_s5  ;;  %v4143_v32 = vcombine.low %v676_v19, %v683_v5  ;;  %v4144_v23 = vcombine.high %v676_v19, %v683_v5 }
 0x16c   : > { %v1676_v35 = vsel %vm316_vm0, %v6724_v28, %v6658_v33  ;;  %1293 = vrot.lane.b32.xlu0 %v5492_v16, %s4498_s5 }
 0x16d   : > { %v1677_v25 = vsel %vm1667_vm15, %v5038_v8, %v1676_v35  ;;  %v1669_v3 = vsel %vm316_vm0, %v6725_v51, %v6657_v50  ;;  %v5521_v48 = vpop.permute.xlu1 %589  ;;  %3472 = vmatprep.subr.bf16.mxu1 %v4144_v23  ;;  %3460 = vmatmul.mubr.bf16.gmra.mxu1 %v5497_v4  ;;  %v5532_v8 = vld [vmem:[%s6537_s1 + $0x4] ss:$16 sps:$4 sm:$0xff]   ;;  %v6728_v50 = vrot.slane %v4765_v39, 4 }
 0x16e   : > { %v1670_v28 = vsel %vm1667_vm15, %v5027_v11, %v1669_v3  ;;  %v6661_v19 = vrot.slane %v5521_v48, 4  ;;  %v5527_v5 = vpop.permute.xlu0 %581  ;;  %3473 = vmatpush1.bf16.msra.mxu1 %v4143_v32  ;;  %3502 = vmatprep.mubr.bf16.mxu1 %v5532_v8  ;;  %v6727_v11 = vrot.slane %v4776_v47, 4 }
 0x16f   : > { %v6662_v35 = vrot.slane %v5527_v5, 4  ;;  %1798 = vrot.lane.b32.xlu1 %v5450_v42, %s6726_s29  ;;  %v4241_v23 = vcombine.low %v1670_v28, %v1677_v25  ;;  %v4242_v51 = vcombine.high %v1670_v28, %v1677_v25 }
 0x170   : > { %v611_v32 = vsel %vm316_vm0, %v6727_v11, %v6661_v19  ;;  %1790 = vrot.lane.b32.xlu0 %v5461_v63, %s6726_s29 }
 0x171   : > { %v612_v3 = vsel %vm602_vm3, %v4776_v47, %v611_v32  ;;  %v604_v33 = vsel %vm316_vm0, %v6728_v50, %v6662_v35  ;;  %v5552_v44 = vpop.permute.xlu1 %1583  ;;  %3529 = vmatprep.subr.bf16.mxu0 %v4242_v51  ;;  %v6729_v50 = vrot.slane %v5086_v37, 4 }
 0x172   : > { %v605_v25 = vsel %vm602_vm3, %v4765_v39, %v604_v33  ;;  %v6663_v28 = vrot.slane %v5552_v44, 4  ;;  %v5557_v11 = vpop.permute.xlu0 %1575  ;;  %3530 = vmatpush1.bf16.msra.mxu0 %v4241_v23  ;;  %v6730_v33 = vrot.slane %v5075_v31, 4 }
 0x173   : > { %v6664_v19 = vrot.slane %v5557_v11, 4  ;;  %1230 = vrot.lane.b32.xlu1 %v5481_v22, %s4500_s7  ;;  %v4136_v47 = vcombine.low %v605_v25, %v612_v3  ;;  %v4137_v32 = vcombine.high %v605_v25, %v612_v3 }
 0x174   : > { %v1605_v51 = vsel %vm316_vm0, %v6729_v50, %v6663_v28  ;;  %1222 = vrot.lane.b32.xlu0 %v5492_v16, %s4500_s7 }
 0x175   : > { %v1606_v39 = vsel %vm1596_vm11, %v5086_v37, %v1605_v51  ;;  %v1598_v23 = vsel %vm316_vm0, %v6730_v33, %v6664_v19  ;;  %v5576_v35 = vpop.permute.xlu1 %518  ;;  %3474 = vmatprep.subr.bf16.mxu1 %v4137_v32  ;;  %v6731_v33 = vrot.slane %v4798_v61, 4 }
 0x176   : > { %v1599_v3 = vsel %vm1596_vm11, %v5075_v31, %v1598_v23  ;;  %v6665_v25 = vrot.slane %v5576_v35, 4  ;;  %v5581_v50 = vpop.permute.xlu0 %510  ;;  %3475 = vmatpush1.bf16.msra.mxu1 %v4136_v47  ;;  %v6732_v47 = vrot.slane %v4787_v53, 4 }
 0x177   : > { %v6669_v28 = vrot.slane %v5581_v50, 4  ;;  %1727 = vrot.lane.b32.xlu1 %v5450_v42, %s4501_s8  ;;  %v4234_v37 = vcombine.low %v1599_v3, %v1606_v39  ;;  %v4235_v51 = vcombine.high %v1599_v3, %v1606_v39 }
 0x178   : > { %v540_v32 = vsel %vm316_vm0, %v6731_v33, %v6665_v25  ;;  %1719 = vrot.lane.b32.xlu0 %v5461_v63, %s4501_s8  ;;  %v6666_v25 = vmov 0  }
 0x179   : > { %v541_v31 = vsel %vm531_vm4, %v4798_v61, %v540_v32  ;;  %v533_v23 = vsel %vm316_vm0, %v6732_v47, %v6669_v28  ;;  %v5600_v19 = vpop.permute.xlu1 %1512  ;;  %3531 = vmatprep.subr.bf16.mxu0 %v4235_v51  ;;  %4411 = vset.pattern.permute.xlu1 %v6666_v25 }
 0x17a   : > { %v534_v39 = vsel %vm531_vm4, %v4787_v53, %v533_v23  ;;  %v6668_v3 = vrot.slane %v5600_v19, 4  ;;  %v5605_v33 = vpop.permute.xlu0 %1504  ;;  %3532 = vmatpush1.bf16.msra.mxu0 %v4234_v37  ;;  %4410 = vset.pattern.permute.xlu0 %v6666_v25  ;;  %v6733_v53 = vrot.slane %v5134_v14, 4  ;;  %v6734_v23 = vrot.slane %v5121_v15, 4 }
 0x17b   : > { %v6670_v61 = vrot.slane %v5605_v33, 4  ;;  %1159 = vrot.lane.b32.xlu1 %v5481_v22, %s4502_s9  ;;  %v4129_v32 = vcombine.low %v534_v39, %v541_v31  ;;  %v4130_v47 = vcombine.high %v534_v39, %v541_v31 }
 0x17c   : > { %v1534_v51 = vsel %vm316_vm0, %v6733_v53, %v6668_v3  ;;  %1151 = vrot.lane.b32.xlu0 %v5492_v16, %s4502_s9 }
 0x17d   : > { %v1535_v37 = vsel %vm6676_vm9, %v5134_v14, %v1534_v51  ;;  %v1527_v31 = vsel %vm316_vm0, %v6734_v23, %v6670_v61  ;;  %v5626_v39 = vpop.permute.xlu1 %447  ;;  %3476 = vmatprep.subr.bf16.mxu1 %v4130_v47  ;;  %v6735_v23 = vrot.slane %v4820_v26, 4 }
 0x17e   : > { %v1528_v25 = vsel %vm6676_vm9, %v5121_v15, %v1527_v31  ;;  %v6671_v53 = vrot.slane %v5626_v39, 4  ;;  %v5631_v3 = vpop.permute.xlu0 %439  ;;  %3477 = vmatpush1.bf16.msra.mxu1 %v4129_v32  ;;  %v6736_v32 = vrot.slane %v4809_v9, 4 }
 0x17f   : > { %v6672_v28 = vrot.slane %v5631_v3, 4  ;;  %1656 = vrot.lane.b32.xlu1 %v5450_v42, %s4503_s10  ;;  %v4227_v14 = vcombine.low %v1528_v25, %v1535_v37  ;;  %v4228_v51 = vcombine.high %v1528_v25, %v1535_v37 }
 0x180   : > { %v469_v47 = vsel %vm316_vm0, %v6735_v23, %v6671_v53  ;;  %1648 = vrot.lane.b32.xlu0 %v5461_v63, %s4503_s10 }
 0x181   : > { %v470_v15 = vsel %vm460_vm5, %v4820_v26, %v469_v47  ;;  %v462_v31 = vsel %vm316_vm0, %v6736_v32, %v6672_v28  ;;  %v5650_v61 = vpop.permute.xlu1 %1441  ;;  %3533 = vmatprep.subr.bf16.mxu0 %v4228_v51  ;;  %v6737_v32 = vrot.slane %v5186_v57, 4 }
 0x182   : > { %v463_v25 = vsel %vm460_vm5, %v4809_v9, %v462_v31  ;;  %v6673_v37 = vrot.slane %v5650_v61, 4  ;;  %v5655_v23 = vpop.permute.xlu0 %1433  ;;  %3534 = vmatpush1.bf16.msra.mxu0 %v4227_v14  ;;  %v6738_v14 = vrot.slane %v5175_v17, 4 }
 0x183   : > { %v6675_v53 = vrot.slane %v5655_v23, 4  ;;  %1088 = vrot.lane.b32.xlu1 %v5481_v22, %s6699_s25  ;;  %v4122_v26 = vcombine.low %v463_v25, %v470_v15  ;;  %v4123_v47 = vcombine.high %v463_v25, %v470_v15 }
 0x184   : > { %v1463_v51 = vsel %vm316_vm0, %v6737_v32, %v6673_v37  ;;  %1080 = vrot.lane.b32.xlu0 %v5492_v16, %s6699_s25 }
 0x185   : > { %v1464_v9 = vsel %vm6674_vm7, %v5186_v57, %v1463_v51  ;;  %v1456_v31 = vsel %vm316_vm0, %v6738_v14, %v6675_v53  ;;  %v5674_v28 = vpop.permute.xlu1 %376  ;;  %3478 = vmatprep.subr.bf16.mxu1 %v4123_v47  ;;  %v6739_v14 = vrot.slane %v4842_v45, 4 }
 0x186   : > { %v1457_v15 = vsel %vm6674_vm7, %v5175_v17, %v1456_v31  ;;  %v6677_v25 = vrot.slane %v5674_v28, 4  ;;  %v5679_v32 = vpop.permute.xlu0 %368  ;;  %3479 = vmatpush1.bf16.msra.mxu1 %v4122_v26  ;;  %vm6740_vm7 = vcmask 1031168   ;;  %v6741_v26 = vrot.slane %v4831_v34, 4 }
 0x187   : > { %v6678_v37 = vrot.slane %v5679_v32, 4  ;;  %1585 = vrot.lane.b32.xlu1 %v5450_v42, %s4505_s12  ;;  %v4220_v57 = vcombine.low %v1457_v15, %v1464_v9  ;;  %v4221_v51 = vcombine.high %v1457_v15, %v1464_v9  ;;  %vm6742_vm9 = vmmov %vm6740_vm7 }
 0x188   : > { %v398_v47 = vsel %vm316_vm0, %v6739_v14, %v6677_v25  ;;  %1577 = vrot.lane.b32.xlu0 %v5461_v63, %s4505_s12 }
 0x189   : > { %v399_v17 = vsel %vm6740_vm7, %v4842_v45, %v398_v47  ;;  %v391_v31 = vsel %vm316_vm0, %v6741_v26, %v6678_v37  ;;  %v5698_v53 = vpop.permute.xlu1 %1370  ;;  %3535 = vmatprep.subr.bf16.mxu0 %v4221_v51  ;;  %v6743_v26 = vrot.slane %v5230_v21, 4  ;;  %vm6744_vm7 = vcmask 711680  }
 0x18a   : > { %v392_v9 = vsel %vm6742_vm9, %v4831_v34, %v391_v31  ;;  %v6679_v15 = vrot.slane %v5698_v53, 4  ;;  %v5703_v14 = vpop.permute.xlu0 %1362  ;;  %3536 = vmatpush1.bf16.msra.mxu0 %v4220_v57  ;;  %v6745_v57 = vrot.slane %v5219_v49, 4  ;;  %vm6746_vm9 = vmmov %vm6744_vm7 }
 0x18b   : > { %v6680_v25 = vrot.slane %v5703_v14, 4  ;;  %1017 = vrot.lane.b32.xlu1 %v5481_v22, %s6704_s26  ;;  %v4115_v45 = vcombine.low %v392_v9, %v399_v17  ;;  %v4116_v47 = vcombine.high %v392_v9, %v399_v17 }
 0x18c   : > { %v1392_v51 = vsel %vm316_vm0, %v6743_v26, %v6679_v15  ;;  %1009 = vrot.lane.b32.xlu0 %v5492_v16, %s6704_s26 }
 0x18d   : > { %v1393_v34 = vsel %vm6744_vm7, %v5230_v21, %v1392_v51  ;;  %v1385_v31 = vsel %vm316_vm0, %v6745_v57, %v6680_v25  ;;  %v5722_v37 = vpop.permute.xlu1 %304  ;;  %3480 = vmatprep.subr.bf16.mxu1 %v4116_v47  ;;  %v6747_v57 = vrot.slane %v4864_v7, 4  ;;  %vm6748_vm7 = vcmask 1039360  }
 0x18e   : > { %v1386_v17 = vsel %vm6746_vm9, %v5219_v49, %v1385_v31  ;;  %v6681_v9 = vrot.slane %v5722_v37, 4  ;;  %v5727_v26 = vpop.permute.xlu0 %296  ;;  %3481 = vmatpush1.bf16.msra.mxu1 %v4115_v45  ;;  %v6749_v45 = vrot.slane %v4853_v54, 4  ;;  %vm6750_vm9 = vmmov %vm6748_vm7 }
 0x18f   : > { %v6682_v15 = vrot.slane %v5727_v26, 4  ;;  %1514 = vrot.lane.b32.xlu1 %v5450_v42, %s4507_s14  ;;  %v4213_v21 = vcombine.low %v1386_v17, %v1393_v34  ;;  %v4214_v51 = vcombine.high %v1386_v17, %v1393_v34 }
 0x190   : > { %v327_v47 = vsel %vm316_vm0, %v6747_v57, %v6681_v9  ;;  %1506 = vrot.lane.b32.xlu0 %v5461_v63, %s4507_s14 }
 0x191   : > { %v328_v49 = vsel %vm6748_vm7, %v4864_v7, %v327_v47  ;;  %v320_v31 = vsel %vm316_vm0, %v6749_v45, %v6682_v15  ;;  %v5746_v25 = vpop.permute.xlu1 %2080  ;;  %3537 = vmatprep.subr.bf16.mxu0 %v4214_v51  ;;  %v6751_v45 = vrot.slane %v5274_v55, 4  ;;  %vm6758_vm7 = vcmask 719872  }
 0x192   : > { %v321_v34 = vsel %vm6750_vm9, %v4853_v54, %v320_v31  ;;  %v6683_v17 = vrot.slane %v5746_v25, 4  ;;  %v5751_v57 = vpop.permute.xlu0 %2072  ;;  %3538 = vmatpush1.bf16.msra.mxu0 %v4213_v21  ;;  %v6752_v21 = vrot.slane %v5263_v27, 4  ;;  %vm6760_vm9 = vmmov %vm6758_vm7 }
 0x193   : > { %v6686_v9 = vrot.slane %v5751_v57, 4  ;;  %946 = vrot.lane.b32.xlu1 %v5481_v22, %s6707_s6  ;;  %v4108_v7 = vcombine.low %v321_v34, %v328_v49  ;;  %v4109_v47 = vcombine.high %v321_v34, %v328_v49 }
 0x194   : > { %v2102_v51 = vsel %vm316_vm0, %v6751_v45, %v6683_v17  ;;  %938 = vrot.lane.b32.xlu0 %v5492_v16, %s6707_s6 }
 0x195   : > { %v2103_v54 = vsel %vm2093_vm6, %v5274_v55, %v2102_v51  ;;  %v2095_v31 = vsel %vm316_vm0, %v6752_v21, %v6686_v9  ;;  %v5770_v15 = vpop.permute.xlu1 %2009  ;;  %3482 = vmatprep.subr.bf16.mxu1 %v4109_v47  ;;  %v6753_v21 = vcombine.high %v5160_v52, %v5162_v40 }
 0x196   : > { %v2096_v49 = vsel %vm2093_vm6, %v5263_v27, %v2095_v31  ;;  %v6684_v34 = vrot.slane %v5770_v15, 4  ;;  %v5775_v45 = vpop.permute.xlu0 %2001  ;;  %3483 = vmatpush1.bf16.msra.mxu1 %v4108_v7  ;;  %v6754_v27 = vrot.slane %v5329_v30, 4 }
 0x197   : > { %v6685_v17 = vrot.slane %v5775_v45, 4  ;;  %1443 = vrot.lane.b32.xlu1 %v5481_v22, %s4509_s21  ;;  %v4283_v55 = vcombine.low %v2096_v49, %v2103_v54  ;;  %v4284_v51 = vcombine.high %v2096_v49, %v2103_v54  ;;  %3484 = vmatprep.subr.bf16.mxu1 %v6753_v21  ;;  %v6755_v54 = vrot.slane %v5314_v18, 4 }
 0x198   : > { %v2031_v47 = vsel %vm316_vm0, %v6754_v27, %v6684_v34  ;;  %1435 = vrot.lane.b32.xlu0 %v5492_v16, %s4509_s21 }
 0x199   : > { %v2032_v7 = vsel %vm2022_vm14, %v5329_v30, %v2031_v47  ;;  %v2024_v31 = vsel %vm316_vm0, %v6755_v54, %v6685_v17  ;;  %v5797_v49 = vpop.permute.xlu1 %1299  ;;  %3549 = vmatprep.subr.bf16.mxu0 %v4284_v51  ;;  %v6756_v30 = vcombine.low %v5160_v52, %v5162_v40  ;;  %v6759_v40 = vrot.slane %v4901_v46, 4 }
 0x19a   : > { %v2025_v21 = vsel %vm2022_vm14, %v5314_v18, %v2024_v31  ;;  %v1309_v27 = vrot.slane %v5797_v49, 4  ;;  %v5802_v34 = vpop.permute.xlu0 %1291  ;;  %3550 = vmatpush2.bf16.msra.mxu0 %v4283_v55  ;;  %v6757_v18 = vrot.slane %v4912_v60, 4 }
 0x19b   : > { %3485 = vmatpush1.bf16.msra.mxu1 %v6756_v30  ;;  %v1305_v47 = vrot.slane %v5802_v34, 4  ;;  %875 = vrot.lane.b32.xlu1 %v5481_v22, %s6710_s27  ;;  %v4276_v54 = vcombine.low %v2025_v21, %v2032_v7  ;;  %v4277_v17 = vcombine.high %v2025_v21, %v2032_v7 }
 0x19c   : > { %v1321_v51 = vsel %vm316_vm0, %v6757_v18, %v1309_v27  ;;  %867 = vrot.lane.b32.xlu0 %v5492_v16, %s6710_s27 }
 0x19d   : > { %v1322_v52 = vsel %vm6758_vm7, %v4912_v60, %v1321_v51  ;;  %v1314_v55 = vsel %vm316_vm0, %v6759_v40, %v1305_v47  ;;  %v5824_v31 = vpop.permute.xlu1 %1938  ;;  %3551 = vmatprep.subr.bf16.mxu0 %v4277_v17  ;;  %v6761_v40 = vrot.slane %v5377_v13, 4 }
 0x19e   : > { %v1315_v7 = vsel %vm6760_vm9, %v4901_v46, %v1314_v55  ;;  %v6687_v21 = vrot.slane %v5824_v31, 4  ;;  %v5829_v30 = vpop.permute.xlu0 %1930  ;;  %3552 = vmatpush2.bf16.msra.mxu0 %v4276_v54  ;;  %v6762_v54 = vrot.slane %v5365_v29, 4 }
 0x19f   : > { %v6688_v18 = vrot.slane %v5829_v30, 4  ;;  %1372 = vrot.lane.b32.xlu1 %v5481_v22, %s4511_s20  ;;  %v4206_v60 = vcombine.low %v1315_v7, %v1322_v52  ;;  %v4207_v51 = vcombine.high %v1315_v7, %v1322_v52 }
 0x1a0   : > { %v1960_v17 = vsel %vm316_vm0, %v6761_v40, %v6687_v21  ;;  %1364 = vrot.lane.b32.xlu0 %v5492_v16, %s4511_s20 }
 0x1a1   : > { %v1961_v46 = vsel %vm1951_vm8, %v5377_v13, %v1960_v17  ;;  %v1953_v22 = vsel %vm316_vm0, %v6762_v54, %v6688_v18  ;;  %v734_v55 = vpop.permute.xlu1 %733  ;;  %3486 = vmatprep.subr.bf16.mxu1 %v4207_v51  ;;  %v6763_v17 = vrot.slane %v5390_v38, 4  ;;  %v6821_v18 = vld [vmem:[#allocation16_spill] sm:$0xff] }
 0x1a2   : > { %v1954_v52 = vsel %vm1951_vm8, %v5365_v29, %v1953_v22  ;;  %v742_v7 = vrot.slane %v734_v55, 4  ;;  %v726_v9 = vpop.permute.xlu0 %725  ;;  %3487 = vmatpush2.bf16.msra.mxu1 %v4206_v60  ;;  %v6764_v60 = vrot.slane %v5396_v12, 4 }
 0x1a3   : > { %v738_v40 = vrot.slane %v726_v9, 4  ;;  %804 = vrot.lane.b32.xlu1 %v5385_v36, %s6718_s24  ;;  %v4269_v16 = vcombine.low %v1954_v52, %v1961_v46  ;;  %v4270_v13 = vcombine.high %v1954_v52, %v1961_v46 }
 0x1a4   : > { %v755_v21 = vsel %vm316_vm0, %v6763_v17, %v742_v7  ;;  %v757_v54 = vsel %vm744_vm1, %v734_v55, %v742_v7  ;;  %796 = vrot.lane.b32.xlu0 %v5392_v41, %s6718_s24 }
 0x1a5   : > { %v756_v29 = vsel %vm744_vm1, %v5390_v38, %v755_v21  ;;  %773 = vst [vmem:[#allocation3 + $0x1bc] sm:$0xf] %v757_v54  ;;  %v748_v51 = vsel %vm316_vm0, %v6764_v60, %v738_v40  ;;  %v750_v36 = vsel %vm744_vm1, %v726_v9, %v738_v40  ;;  %v5864_v46 = vpop.permute.xlu1 %1228  ;;  %3553 = vmatprep.subr.bf16.mxu0 %v4270_v13  ;;  %v6765_v9 = vrot.slane %v4963_v24, 4 }
 0x1a6   : > { %v749_v22 = vsel %vm744_vm1, %v5396_v12, %v748_v51  ;;  %769 = vst [vmem:[#allocation3 + $0x1a0] sm:$0xf] %v750_v36  ;;  %v1238_v55 = vrot.slane %v5864_v46, 4  ;;  %v5869_v41 = vpop.permute.xlu0 %1220  ;;  %3554 = vmatpush2.bf16.msra.mxu0 %v4269_v16  ;;  %vm6766_vm1 = vcmask 801792   ;;  %v6767_v40 = vrot.slane %v4952_v58, 4 }
 0x1a7   : > { %v1234_v38 = vrot.slane %v5869_v41, 4  ;;  %2082 = vrot.lane.b32.xlu1 %v5450_v42, %s4513_s13  ;;  %v4152_v21 = vcombine.low %v749_v22, %v756_v29  ;;  %v4153_v52 = vcombine.high %v749_v22, %v756_v29  ;;  %vm6768_vm7 = vmmov %vm6766_vm1  ;;  %v6769_v36 = vrot.slane %v5459_v6, 4 }
 0x1a8   : > { %v1250_v7 = vsel %vm316_vm0, %v6765_v9, %v1238_v55  ;;  %2074 = vrot.lane.b32.xlu0 %v5461_v63, %s4513_s13 }
 0x1a9   : > { %v1251_v12 = vsel %vm6766_vm1, %v4963_v24, %v1250_v7  ;;  %v1243_v16 = vsel %vm316_vm0, %v6767_v40, %v1234_v38  ;;  %v663_v13 = vpop.permute.xlu1 %662  ;;  %3576 = vmatprep.subr.bf16.mxu0 %v4153_v52  ;;  %3556 = vmatmul.mubr.bf16.vlgmr.msra.gmra.mxu0 %v5428_v0 }
 0x1aa   : > { %v1244_v17 = vsel %vm6768_vm7, %v4952_v58, %v1243_v16  ;;  %v671_v54 = vrot.slane %v663_v13, 4  ;;  %v655_v29 = vpop.permute.xlu0 %654  ;;  %3577 = vmatpush1.bf16.msra.mxu0 %v4152_v21  ;;  %4291 = vmatprep.mubr.msk.bf16.mxu0 %vm3357_vm13, %v5438_v43  ;;  %v6770_v43 = vrot.slane %v5467_v2, 4 }
 0x1ab   : > { %v667_v24 = vrot.slane %v655_v29, 4  ;;  %2011 = vrot.lane.b32.xlu1 %v5450_v42, %s4514_s19  ;;  %v4199_v60 = vcombine.low %v1244_v17, %v1251_v12  ;;  %v4200_v51 = vcombine.high %v1244_v17, %v1251_v12  ;;  %v6771_v17 = vrot.slane %v5016_v10, 4 }
 0x1ac   : > { %v684_v22 = vsel %vm316_vm0, %v6769_v36, %v671_v54  ;;  %v686_v0 = vsel %vm673_vm2, %v663_v13, %v671_v54  ;;  %2003 = vrot.lane.b32.xlu0 %v5461_v63, %s4514_s19 }
 0x1ad   : > { %v685_v58 = vsel %vm673_vm2, %v5459_v6, %v684_v22  ;;  %702 = vst [vmem:[#allocation3 + $0x184] sm:$0xf] %v686_v0  ;;  %v677_v21 = vsel %vm316_vm0, %v6770_v43, %v667_v24  ;;  %v679_v52 = vsel %vm673_vm2, %v655_v29, %v667_v24  ;;  %v5907_v9 = vpop.permute.xlu1 %1157  ;;  %3488 = vmatprep.subr.bf16.mxu1 %v4200_v51  ;;  %v3780_v51 = vld [vmem:[%s6538_s2] sm:$0xff]  ;;  %v6775_v43 = vrot.slane %v5521_v48, 4 }
 0x1ae   : > { %v678_v7 = vsel %vm673_vm2, %v5467_v2, %v677_v21  ;;  %698 = vst [vmem:[#allocation3 + $0x168] sm:$0xf] %v679_v52  ;;  %v1167_v12 = vrot.slane %v5907_v9, 4  ;;  %v5912_v40 = vpop.permute.xlu0 %1149  ;;  %3489 = vmatpush2.bf16.msra.mxu1 %v4199_v60  ;;  %v3781_v2 = vld [vmem:[%s6538_s2 + $0x8] sm:$0xff]  ;;  %vm6772_vm2 = vcmask 809984  }
 0x1af   : > { %v1163_v6 = vrot.slane %v5912_v40, 4  ;;  %1940 = vrot.lane.b32.xlu1 %v5450_v42, %s4515_s11  ;;  %v4145_v16 = vcombine.low %v678_v7, %v685_v58  ;;  %v4146_v13 = vcombine.high %v678_v7, %v685_v58  ;;  %v6773_v42 = vrot.slane %v5003_v59, 4  ;;  %vm6774_vm9 = vmmov %vm6772_vm2 }
 0x1b0   : > { %v1179_v54 = vsel %vm316_vm0, %v6771_v17, %v1167_v12  ;;  %1932 = vrot.lane.b32.xlu0 %v5461_v63, %s4515_s11  ;;  %v3783_v17 = vld [vmem:[%s6538_s2 + $0x18] sm:$0xff]  ;;  %s6905_s11 = smul.u32 112, %s6911_s15 }
 0x1b1   : > { %v1180_v29 = vsel %vm6772_vm2, %v5016_v10, %v1179_v54  ;;  %v1172_v24 = vsel %vm316_vm0, %v6773_v42, %v1163_v6  ;;  %v592_v60 = vpop.permute.xlu1 %591  ;;  %3578 = vmatprep.subr.bf16.mxu0 %v4146_v13  ;;  %3566 = vmatmul.mubr.bf16.gmra.mxu0 %v5497_v4  ;;  %vm6792_vm2 = vcmask 908288  }
 0x1b2   : > { %v1173_v63 = vsel %vm6774_vm9, %v5003_v59, %v1172_v24  ;;  %v600_v36 = vrot.slane %v592_v60, 4  ;;  %v584_v22 = vpop.permute.xlu0 %583  ;;  %3579 = vmatpush1.bf16.msra.mxu0 %v4145_v16  ;;  %3608 = vmatprep.mubr.bf16.mxu0 %v5532_v8  ;;  %v3782_v59 = vld [vmem:[%s6538_s2 + $0x10] sm:$0xff]  ;;  %v6776_v8 = vrot.slane %v5527_v5, 4  ;;  %vm6797_vm9 = vcmask 1031168   ;;  %s6446_s6 = scalar_lea.vmem %s6540_s4, %s6905_s11 }
 0x1b3   : > { %v596_v10 = vrot.slane %v584_v22, 4  ;;  %v4192_v0 = vcombine.low %v1173_v63, %v1180_v29  ;;  %v4193_v58 = vcombine.high %v1173_v63, %v1180_v29  ;;  %3791 = vperm.xlu1 %4411, %v3781_v2  }
 0x1b4   : > { %v613_v21 = vsel %vm316_vm0, %v6775_v43, %v600_v36  ;;  %v615_v52 = vsel %vm602_vm3, %v592_v60, %v600_v36  ;;  %3786 = vperm.xlu0 %4410, %v3780_v51   ;;  %v6777_v60 = vrot.slane %v5062_v56, 4  ;;  %v6779_v36 = vrot.slane %v5049_v62, 4 }
 0x1b5   : > { %v614_v4 = vsel %vm602_vm3, %v5521_v48, %v613_v21  ;;  %631 = vst [vmem:[#allocation3 + $0x14c] sm:$0xf] %v615_v52  ;;  %v606_v7 = vsel %vm316_vm0, %v6776_v8, %v596_v10  ;;  %v608_v16 = vsel %vm602_vm3, %v584_v22, %v596_v10  ;;  %v5954_v13 = vpop.permute.xlu1 %1086  ;;  %3490 = vmatprep.subr.bf16.mxu1 %v4193_v58 }
 0x1b6   : > { %v607_v54 = vsel %vm602_vm3, %v5527_v5, %v606_v7  ;;  %627 = vst [vmem:[#allocation3 + $0x130] sm:$0xf] %v608_v16  ;;  %v1096_v48 = vrot.slane %v5954_v13, 4  ;;  %v5962_v2 = vpop.permute.xlu0 %1078  ;;  %3491 = vmatpush2.bf16.msra.mxu1 %v4192_v0  ;;  %v3832_v5 = vld [vmem:[%s6539_s3] sm:$0xff]  ;;  %vm6778_vm3 = vcmask 818176   ;;  %v3833_v0 = vld [vmem:[%s6539_s3 + $0x8] sm:$0xff] }
 0x1b7   : > { %v1092_v29 = vrot.slane %v5962_v2, 4  ;;  %v4138_v42 = vcombine.low %v607_v54, %v614_v4  ;;  %v4139_v24 = vcombine.high %v607_v54, %v614_v4  ;;  %3796 = vperm.xlu1 %4411, %v3782_v59   ;;  %vm6780_vm1 = vmmov %vm6778_vm3  ;;  %v6781_v4 = vrot.slane %v5576_v35, 4  ;;  %v3834_v16 = vld [vmem:[%s6539_s3 + $0x10] sm:$0xff] }
 0x1b8   : > { %v1108_v51 = vsel %vm316_vm0, %v6777_v60, %v1096_v48  ;;  %3801 = vperm.xlu0 %4410, %v3783_v17   ;;  %v6782_v17 = vrot.slane %v5581_v50, 4  ;;  %v3835_v60 = vld [vmem:[%s6539_s3 + $0x18] sm:$0xff] }
 0x1b9   : > { %v1109_v63 = vsel %vm6778_vm3, %v5062_v56, %v1108_v51  ;;  %v1101_v22 = vsel %vm316_vm0, %v6779_v36, %v1092_v29  ;;  %v521_v10 = vpop.permute.xlu1 %520  ;;  %3580 = vmatprep.subr.bf16.mxu0 %v4139_v24  ;;  %vm6798_vm3 = vmmov %vm6797_vm9 }
 0x1ba   : > { %v1102_v58 = vsel %vm6780_vm1, %v5049_v62, %v1101_v22  ;;  %v529_v43 = vrot.slane %v521_v10, 4  ;;  %v513_v21 = vpop.permute.xlu0 %512  ;;  %3581 = vmatpush1.bf16.msra.mxu0 %v4138_v42  ;;  %vm6800_vm1 = vmmov %vm6798_vm3 }
 0x1bb   : > { %v525_v52 = vrot.slane %v513_v21, 4  ;;  %v4185_v56 = vcombine.low %v1102_v58, %v1109_v63  ;;  %v4186_v59 = vcombine.high %v1102_v58, %v1109_v63  ;;  %3838 = vperm.xlu1 %4411, %v3832_v5   ;;  %v263_v58 = vld [vmem:[#allocation2 + $0x18] sm:$0xf] }
 0x1bc   : > { %v542_v8 = vsel %vm316_vm0, %v6781_v4, %v529_v43  ;;  %v544_v7 = vsel %vm531_vm4, %v521_v10, %v529_v43  ;;  %3843 = vperm.xlu0 %4410, %v3833_v0   ;;  %v6783_v10 = vrot.slane %v5108_v20, 4  ;;  %271 = vst [vmem:[#allocation3 + $0x18] sm:$0xf] %v263_v58 }
 0x1bd   : > { %v543_v62 = vsel %vm531_vm4, %v5576_v35, %v542_v8  ;;  %560 = vst [vmem:[#allocation3 + $0x114] sm:$0xf] %v544_v7  ;;  %v535_v54 = vsel %vm316_vm0, %v6782_v17, %v525_v52  ;;  %v537_v42 = vsel %vm531_vm4, %v513_v21, %v525_v52  ;;  %v5998_v24 = vpop.permute.xlu1 %1015  ;;  %3492 = vmatprep.subr.bf16.mxu1 %v4186_v59  ;;  %v6785_v21 = vld [vmem:[#allocation4_spill] sm:$0xff] }
 0x1be   : > { %v536_v51 = vsel %vm531_vm4, %v5581_v50, %v535_v54  ;;  %556 = vst [vmem:[#allocation3 + $0xf8] sm:$0xf] %v537_v42  ;;  %v1025_v35 = vrot.slane %v5998_v24, 4  ;;  %v6006_v5 = vpop.permute.xlu0 %1007  ;;  %3493 = vmatpush2.bf16.msra.mxu1 %v4185_v56  ;;  %v267_v50 = vld [vmem:[#allocation2 + $0x50] sm:$0xf]  ;;  %vm6784_vm4 = vcmask 900096  }
 0x1bf   : > { %v1021_v63 = vrot.slane %v6006_v5, 4  ;;  %v4131_v36 = vcombine.low %v536_v51, %v543_v62  ;;  %v4132_v22 = vcombine.high %v536_v51, %v543_v62  ;;  %3848 = vperm.xlu1 %4411, %v3834_v16   ;;  %v6786_v52 = vrot.slane %v6785_v21, 4  ;;  %275 = vst [vmem:[#allocation3 + $0x34] sm:$0xf] %v267_v50  ;;  %vm6787_vm7 = vmmov %vm6784_vm4 }
 0x1c0   : > { %v1037_v0 = vsel %vm316_vm0, %v6783_v10, %v1025_v35  ;;  %3853 = vperm.xlu0 %4410, %v3835_v60   ;;  %v6789_v51 = vrot.slane %v5631_v3, 4 }
 0x1c1   : > { %v1038_v43 = vsel %vm6784_vm4, %v5108_v20, %v1037_v0  ;;  %v1030_v56 = vsel %vm316_vm0, %v6786_v52, %v1021_v63  ;;  %v450_v59 = vpop.permute.xlu1 %449  ;;  %3582 = vmatprep.subr.bf16.mxu0 %v4132_v22  ;;  %v6788_v20 = vrot.slane %v5626_v39, 4  ;;  %v6790_v52 = vld [vmem:[#allocation6_spill] sm:$0xff]  ;;  %vm6801_vm4 = vmmov %vm6800_vm1 }
 0x1c2   : > { %v1031_v4 = vsel %vm6787_vm7, %v6785_v21, %v1030_v56  ;;  %v458_v8 = vrot.slane %v450_v59, 4  ;;  %v442_v7 = vpop.permute.xlu0 %441  ;;  %3583 = vmatpush1.bf16.msra.mxu0 %v4131_v36  ;;  %v6791_v56 = vrot.slane %v6790_v52, 4  ;;  %vm6804_vm7 = vcmask 916480  }
 0x1c3   : > { %v454_v16 = vrot.slane %v442_v7, 4  ;;  %v4178_v62 = vcombine.low %v1031_v4, %v1038_v43  ;;  %v4179_v17 = vcombine.high %v1031_v4, %v1038_v43 }
 0x1c4   : > { %v471_v54 = vsel %vm316_vm0, %v6788_v20, %v458_v8  ;;  %v473_v42 = vsel %vm460_vm5, %v450_v59, %v458_v8 }
 0x1c5   : > { %v472_v60 = vsel %vm460_vm5, %v5626_v39, %v471_v54  ;;  %489 = vst [vmem:[#allocation3 + $0xdc] sm:$0xf] %v473_v42  ;;  %v464_v22 = vsel %vm316_vm0, %v6789_v51, %v454_v16  ;;  %v466_v10 = vsel %vm460_vm5, %v442_v7, %v454_v16  ;;  %v6033_v36 = vpop.permute.xlu1 %944  ;;  %3494 = vmatprep.subr.bf16.mxu1 %v4179_v17  ;;  %v6796_v51 = vrot.slane %v5674_v28, 4 }
 0x1c6   : > { %v465_v0 = vsel %vm460_vm5, %v5631_v3, %v464_v22  ;;  %485 = vst [vmem:[#allocation3 + $0xc0] sm:$0xf] %v466_v10  ;;  %v954_v58 = vrot.slane %v6033_v36, 4  ;;  %v6038_v50 = vpop.permute.xlu0 %936  ;;  %3495 = vmatpush2.bf16.msra.mxu1 %v4178_v62  ;;  %v6793_v3 = vld [vmem:[#allocation5_spill] sm:$0xff]  ;;  %vm6795_vm5 = vmmov %vm6792_vm2 }
 0x1c7   : > { %v950_v39 = vrot.slane %v6038_v50, 4  ;;  %v4124_v43 = vcombine.low %v465_v0, %v472_v60  ;;  %v4125_v21 = vcombine.high %v465_v0, %v472_v60  ;;  %v6794_v8 = vrot.slane %v6793_v3, 4 }
 0x1c8   : > { %v966_v59 = vsel %vm316_vm0, %v6791_v56, %v954_v58 }
 0x1c9   : > { %v967_v4 = vsel %vm6792_vm2, %v6790_v52, %v966_v59  ;;  %v959_v7 = vsel %vm316_vm0, %v6794_v8, %v950_v39  ;;  %v379_v16 = vpop.permute.xlu1 %378  ;;  %3584 = vmatprep.subr.bf16.mxu0 %v4125_v21  ;;  %v6799_v21 = vrot.slane %v5679_v32, 4  ;;  %vm6807_vm2 = vmmov %vm6804_vm7 }
 0x1ca   : > { %v960_v62 = vsel %vm6795_vm5, %v6793_v3, %v959_v7  ;;  %v387_v17 = vrot.slane %v379_v16, 4  ;;  %v371_v20 = vpop.permute.xlu0 %370  ;;  %3585 = vmatpush1.bf16.msra.mxu0 %v4124_v43  ;;  %vm6809_vm5 = vcmask 1039360  }
 0x1cb   : > { %v383_v54 = vrot.slane %v371_v20, 4  ;;  %v4171_v42 = vcombine.low %v960_v62, %v967_v4  ;;  %v4172_v60 = vcombine.high %v960_v62, %v967_v4 }
 0x1cc   : > { %v400_v22 = vsel %vm316_vm0, %v6796_v51, %v387_v17  ;;  %v402_v10 = vsel %vm6797_vm9, %v379_v16, %v387_v17  ;;  %v6802_v16 = vld [vmem:[#allocation8_spill] sm:$0xff]  ;;  %vm6810_vm9 = vmmov %vm6809_vm5 }
 0x1cd   : > { %v401_v0 = vsel %vm6798_vm3, %v5674_v28, %v400_v22  ;;  %418 = vst [vmem:[#allocation3 + $0xa4] sm:$0xf] %v402_v10  ;;  %v393_v52 = vsel %vm316_vm0, %v6799_v21, %v383_v54  ;;  %v395_v56 = vsel %vm6800_vm1, %v371_v20, %v383_v54  ;;  %v6065_v43 = vpop.permute.xlu1 %873  ;;  %3496 = vmatprep.subr.bf16.mxu1 %v4172_v60  ;;  %v6803_v62 = vrot.slane %v6802_v16, 4  ;;  %vm6812_vm3 = vmmov %vm6809_vm5 }
 0x1ce   : > { %v394_v59 = vsel %vm6801_vm4, %v5679_v32, %v393_v52  ;;  %414 = vst [vmem:[#allocation3 + $0x88] sm:$0xf] %v395_v56  ;;  %v883_v4 = vrot.slane %v6065_v43, 4  ;;  %v6070_v3 = vpop.permute.xlu0 %865  ;;  %3497 = vmatpush2.bf16.msra.mxu1 %v4171_v42  ;;  %v6805_v32 = vld [vmem:[#allocation7_spill] sm:$0xff]  ;;  %v6808_v56 = vrot.slane %v5722_v37, 4  ;;  %vm6813_vm1 = vmmov %vm6812_vm3  ;;  %vm6816_vm4 = vcmask 834560  }
 0x1cf   : > { %v6690_v28 = vrot.slane %v6070_v3, 4  ;;  %v4117_v8 = vcombine.low %v394_v59, %v401_v0  ;;  %v4118_v7 = vcombine.high %v394_v59, %v401_v0  ;;  %v6806_v54 = vrot.slane %v6805_v32, 4 }
 0x1d0   : > { %v895_v17 = vsel %vm316_vm0, %v6803_v62, %v883_v4 }
 0x1d1   : > { %v896_v20 = vsel %vm6804_vm7, %v6802_v16, %v895_v17  ;;  %v888_v60 = vsel %vm316_vm0, %v6806_v54, %v6690_v28  ;;  %v307_v42 = vpop.permute.xlu1 %306  ;;  %3586 = vmatprep.subr.bf16.mxu0 %v4118_v7  ;;  %v6811_v7 = vrot.slane %v5727_v26, 4  ;;  %vm6819_vm7 = vmmov %vm6816_vm4 }
 0x1d2   : > { %v889_v51 = vsel %vm6807_vm2, %v6805_v32, %v888_v60  ;;  %v315_v22 = vrot.slane %v307_v42, 4  ;;  %v299_v10 = vpop.permute.xlu0 %298  ;;  %3587 = vmatpush1.bf16.msra.mxu0 %v4117_v8  ;;  %vm6825_vm2 = vcmask 670720  }
 0x1d3   : > { %v311_v0 = vrot.slane %v299_v10, 4  ;;  %v4164_v21 = vcombine.low %v889_v51, %v896_v20  ;;  %v4165_v52 = vcombine.high %v889_v51, %v896_v20 }
 0x1d4   : > { %v329_v59 = vsel %vm316_vm0, %v6808_v56, %v315_v22  ;;  %v331_v16 = vsel %vm6809_vm5, %v307_v42, %v315_v22  ;;  %v6814_v22 = vld [vmem:[#allocation10_spill] sm:$0xff]  ;;  %vm6826_vm5 = vmmov %vm6825_vm2 }
 0x1d5   : > { %v330_v62 = vsel %vm6810_vm9, %v5722_v37, %v329_v59  ;;  %347 = vst [vmem:[#allocation3 + $0x6c] sm:$0xf] %v331_v16  ;;  %v322_v17 = vsel %vm316_vm0, %v6811_v7, %v311_v0  ;;  %v324_v32 = vsel %vm6812_vm3, %v299_v10, %v311_v0  ;;  %v6097_v8 = vpop.permute.xlu1 %802  ;;  %3498 = vmatprep.subr.bf16.mxu1 %v4165_v52  ;;  %v6815_v10 = vrot.slane %v6814_v22, 4  ;;  %vm6829_vm9 = vmmov %vm6825_vm2 }
 0x1d6   : > { %v323_v20 = vsel %vm6813_vm1, %v5727_v26, %v322_v17  ;;  %343 = vst [vmem:[#allocation3 + $0x50] sm:$0xf] %v324_v32  ;;  %v6689_v54 = vrot.slane %v6097_v8, 4  ;;  %v6102_v60 = vpop.permute.xlu0 %794  ;;  %3499 = vmatpush2.bf16.msra.mxu1 %v4164_v21  ;;  %v6817_v26 = vld [vmem:[#allocation9_spill] sm:$0xff]  ;;  %vm6830_vm3 = vmmov %vm6825_vm2  ;;  %vm6832_vm1 = vcmask 719872  }
 0x1d7   : > { %v6691_v37 = vrot.slane %v6102_v60, 4  ;;  %v4110_v42 = vcombine.low %v323_v20, %v330_v62  ;;  %v4111_v51 = vcombine.high %v323_v20, %v330_v62  ;;  %v6818_v56 = vrot.slane %v6817_v26, 4 }
 0x1d8   : > { %v824_v0 = vsel %vm316_vm0, %v6815_v10, %v6689_v54  ;;  %v6820_v10 = vld [vmem:[#allocation15_spill] sm:$0xff] }
 0x1d9   : > { %v825_v52 = vsel %vm6816_vm4, %v6814_v22, %v824_v0  ;;  %v817_v59 = vsel %vm316_vm0, %v6818_v56, %v6691_v37  ;;  %v1870_v21 = vpop.permute.xlu1 %1869  ;;  %3588 = vmatprep.subr.bf16.mxu0 %v4111_v51  ;;  %v6822_v22 = vcombine.high %v6820_v10, %v6821_v18  ;;  %v6823_v0 = vld [vmem:[#allocation11_spill] sm:$0xff]  ;;  %vm6833_vm4 = vmmov %vm6832_vm1 }
 0x1da   : > { %v818_v16 = vsel %vm6819_vm7, %v6817_v26, %v817_v59  ;;  %v1878_v62 = vrot.slane %v1870_v21, 4  ;;  %v1862_v7 = vpop.permute.xlu0 %1861  ;;  %3589 = vmatpush1.bf16.msra.mxu0 %v4110_v42  ;;  %v6824_v54 = vrot.slane %v6823_v0, 4  ;;  %v6827_v26 = vld [vmem:[#allocation12_spill] sm:$0xff]  ;;  %vm6834_vm7 = vmmov %vm6832_vm1 }
 0x1db   : > { %v1874_v17 = vrot.slane %v1862_v7, 4  ;;  %v4157_v32 = vcombine.low %v818_v16, %v825_v52  ;;  %v4158_v20 = vcombine.high %v818_v16, %v825_v52  ;;  %3590 = vmatprep.subr.bf16.mxu0 %v6822_v22  ;;  %v6828_v59 = vrot.slane %v6827_v26, 4 }
 0x1dc   : > { %v1891_v28 = vsel %vm316_vm0, %v6824_v54, %v1878_v62  ;;  %v1893_v56 = vsel %vm6825_vm2, %v1870_v21, %v1878_v62  ;;  %v6831_v21 = vcombine.low %v6820_v10, %v6821_v18  ;;  %vm6835_vm2 = vmmov %vm6832_vm1 }
 0x1dd   : > { %v1892_v51 = vsel %vm6826_vm5, %v6823_v0, %v1891_v28  ;;  %1909 = vst [vmem:[#allocation3 + $0x53c] sm:$0xf] %v1893_v56  ;;  %v1884_v42 = vsel %vm316_vm0, %v6828_v59, %v1874_v17  ;;  %v1886_v52 = vsel %vm6829_vm9, %v1862_v7, %v1874_v17  ;;  %v1302_v16 = vpop.permute.xlu1 %1301  ;;  %3500 = vmatprep.subr.bf16.mxu1 %v4158_v20  ;;  %v6150_v56 = vld [vmem:[%s6537_s1] ss:$16 sps:$4 sm:$0xff]   ;;  %vm6840_vm5 = vcmask 801792  }
 0x1de   : > { %v1885_v22 = vsel %vm6830_vm3, %v6827_v26, %v1884_v42  ;;  %1905 = vst [vmem:[#allocation3 + $0x520] sm:$0xf] %v1886_v52  ;;  %v1310_v37 = vrot.slane %v1302_v16, 4  ;;  %v1294_v54 = vpop.permute.xlu0 %1293  ;;  %3501 = vmatpush2.bf16.msra.mxu1 %v4157_v32  ;;  %3591 = vmatpush1.bf16.msra.mxu0 %v6831_v21  ;;  %v6836_v42 = vld [vmem:[#allocation13_spill] sm:$0xff]  ;;  %vm6841_vm9 = vmmov %vm6840_vm5 }
 0x1df   : > { %v1306_v28 = vrot.slane %v1294_v54, 4  ;;  %v4264_v62 = vcombine.low %v1885_v22, %v1892_v51  ;;  %v4265_v0 = vcombine.high %v1885_v22, %v1892_v51  ;;  %v6837_v52 = vrot.slane %v6836_v42, 4  ;;  %vm6843_vm3 = vmmov %vm6840_vm5 }
 0x1e0   : > { %v1323_v7 = vsel %vm316_vm0, %v1309_v27, %v1310_v37  ;;  %v1325_v17 = vsel %vm6832_vm1, %v1302_v16, %v1310_v37  ;;  %vm6848_vm1 = vcmask 809984  }
 0x1e1   : > { %v1324_v20 = vsel %vm6833_vm4, %v5797_v49, %v1323_v7  ;;  %1341 = vst [vmem:[#allocation3 + $0x37c] sm:$0xf] %v1325_v17  ;;  %v1316_v32 = vsel %vm316_vm0, %v1305_v47, %v1306_v28  ;;  %v1318_v18 = vsel %vm6834_vm7, %v1294_v54, %v1306_v28  ;;  %v1799_v10 = vpop.permute.xlu1 %1798  ;;  %3503 = vmatmul.mubr.bf16.vlgmr.msra.gmra.mxu1 %v6150_v56  ;;  %v6158_v47 = vld [vmem:[%s6537_s1 + $0x24] ss:$16 sps:$4 sm:$0xff]   ;;  %v6838_v54 = vld [vmem:[#allocation14_spill] sm:$0xff]  ;;  %vm6849_vm4 = vmmov %vm6848_vm1 }
 0x1e2   : > { %3629 = vmatprep.subr.bf16.mxu1 %v4265_v0  ;;  %v1317_v27 = vsel %vm6835_vm2, %v5802_v34, %v1316_v32  ;;  %1337 = vst [vmem:[#allocation3 + $0x360] sm:$0xf] %v1318_v18  ;;  %v1807_v49 = vrot.slane %v1799_v10, 4  ;;  %v1791_v37 = vpop.permute.xlu0 %1790  ;;  %3512 = vmatprep.mubr.bf16.mxu1 %v6158_v47  ;;  %v6839_v21 = vrot.slane %v6838_v54, 4  ;;  %vm6851_vm7 = vmmov %vm6848_vm1  ;;  %vm6855_vm2 = vcmask 818176  }
 0x1e3   : > { %3630 = vmatpush1.bf16.msra.mxu1 %v4264_v62  ;;  %v1803_v51 = vrot.slane %v1791_v37, 4  ;;  %v4208_v26 = vcombine.low %v1317_v27, %v1324_v20  ;;  %v4209_v59 = vcombine.high %v1317_v27, %v1324_v20 }
 0x1e4   : > { %v1820_v16 = vsel %vm316_vm0, %v6837_v52, %v1807_v49  ;;  %v1822_v34 = vsel %vm1809_vm10, %v1799_v10, %v1807_v49 }
 0x1e5   : > { %v1821_v22 = vsel %vm1809_vm10, %v6836_v42, %v1820_v16  ;;  %1838 = vst [vmem:[#allocation3 + $0x504] sm:$0xf] %v1822_v34  ;;  %v1813_v28 = vsel %vm316_vm0, %v6839_v21, %v1803_v51  ;;  %v1815_v62 = vsel %vm1809_vm10, %v1791_v37, %v1803_v51  ;;  %v1231_v0 = vpop.permute.xlu1 %1230  ;;  %3592 = vmatprep.subr.bf16.mxu0 %v4209_v59  ;;  %v6186_v42 = vld [vmem:[%s6537_s1 + $0x20] ss:$16 sps:$4 sm:$0xff]  }
 0x1e6   : > { %v1814_v7 = vsel %vm1809_vm10, %v6838_v54, %v1813_v28  ;;  %1834 = vst [vmem:[#allocation3 + $0x4e8] sm:$0xf] %v1815_v62  ;;  %v1239_v17 = vrot.slane %v1231_v0, 4  ;;  %v1223_v20 = vpop.permute.xlu0 %1222  ;;  %3593 = vmatpush2.bf16.msra.mxu0 %v4208_v26  ;;  %vm6842_vm10 = vmmov %vm6840_vm5  ;;  %v6844_v54 = vld [vmem:[#allocation17_spill] sm:$0xff] }
 0x1e7   : > { %v1235_v32 = vrot.slane %v1223_v20, 4  ;;  %v4257_v18 = vcombine.low %v1814_v7, %v1821_v22  ;;  %v4258_v10 = vcombine.high %v1814_v7, %v1821_v22  ;;  %v6845_v21 = vrot.slane %v6844_v54, 4 }
 0x1e8   : > { %v1252_v27 = vsel %vm316_vm0, %v1238_v55, %v1239_v17  ;;  %v1254_v49 = vsel %vm6840_vm5, %v1231_v0, %v1239_v17  ;;  %v6846_v0 = vld [vmem:[#allocation18_spill] sm:$0xff]  ;;  %vm6856_vm5 = vmmov %vm6855_vm2 }
 0x1e9   : > { %v1253_v37 = vsel %vm6841_vm9, %v5864_v46, %v1252_v27  ;;  %1270 = vst [vmem:[#allocation3 + $0x344] sm:$0xf] %v1254_v49  ;;  %v1245_v51 = vsel %vm316_vm0, %v1234_v38, %v1235_v32  ;;  %v1247_v59 = vsel %vm6842_vm10, %v1223_v20, %v1235_v32  ;;  %v1728_v26 = vpop.permute.xlu1 %1727  ;;  %3631 = vmatprep.subr.bf16.mxu1 %v4258_v10  ;;  %v6194_v38 = vld [vmem:[%s6537_s1 + $0xc] ss:$16 sps:$4 sm:$0xff]   ;;  %v6847_v7 = vrot.slane %v6846_v0, 4  ;;  %vm6858_vm9 = vmmov %vm6855_vm2 }
 0x1ea   : > { %3513 = vmatmul.mubr.bf16.gmra.mxu1 %v6186_v42  ;;  %v1246_v55 = vsel %vm6843_vm3, %v5869_v41, %v1245_v51  ;;  %1266 = vst [vmem:[#allocation3 + $0x328] sm:$0xf] %v1247_v59  ;;  %v1736_v46 = vrot.slane %v1728_v26, 4  ;;  %v1720_v52 = vpop.permute.xlu0 %1719  ;;  %vm6861_vm10 = vcmask 900096  }
 0x1eb   : > { %3632 = vmatpush1.bf16.msra.mxu1 %v4257_v18  ;;  %4292 = vmatprep.mubr.msk.bf16.mxu1 %vm3357_vm13, %v6194_v38  ;;  %v1732_v16 = vrot.slane %v1720_v52, 4  ;;  %v4201_v34 = vcombine.low %v1246_v55, %v1253_v37  ;;  %v4202_v22 = vcombine.high %v1246_v55, %v1253_v37  ;;  %vm6862_vm3 = vmmov %vm6861_vm10 }
 0x1ec   : > { %v1749_v28 = vsel %vm316_vm0, %v6845_v21, %v1736_v46  ;;  %v1751_v41 = vsel %vm1738_vm12, %v1728_v26, %v1736_v46 }
 0x1ed   : > { %v1750_v62 = vsel %vm1738_vm12, %v6844_v54, %v1749_v28  ;;  %1767 = vst [vmem:[#allocation3 + $0x4cc] sm:$0xf] %v1751_v41  ;;  %v1742_v17 = vsel %vm316_vm0, %v6847_v7, %v1732_v16  ;;  %v1744_v20 = vsel %vm1738_vm12, %v1720_v52, %v1732_v16  ;;  %v1160_v32 = vpop.permute.xlu1 %1159  ;;  %3594 = vmatprep.subr.bf16.mxu0 %v4202_v22 }
 0x1ee   : > { %v1743_v18 = vsel %vm1738_vm12, %v6846_v0, %v1742_v17  ;;  %1763 = vst [vmem:[#allocation3 + $0x4b0] sm:$0xf] %v1744_v20  ;;  %v1168_v10 = vrot.slane %v1160_v32, 4  ;;  %v1152_v27 = vpop.permute.xlu0 %1151  ;;  %3595 = vmatpush2.bf16.msra.mxu0 %v4201_v34  ;;  %vm6850_vm12 = vmmov %vm6848_vm1  ;;  %v6853_v0 = vld [vmem:[#allocation19_spill] sm:$0xff] }
 0x1ef   : > { %v1164_v49 = vrot.slane %v1152_v27, 4  ;;  %v4250_v37 = vcombine.low %v1743_v18, %v1750_v62  ;;  %v4251_v51 = vcombine.high %v1743_v18, %v1750_v62  ;;  %v6854_v7 = vrot.slane %v6853_v0, 4 }
 0x1f0   : > { %v1181_v59 = vsel %vm316_vm0, %v1167_v12, %v1168_v10  ;;  %v1183_v26 = vsel %vm6848_vm1, %v1160_v32, %v1168_v10  ;;  %vm6864_vm1 = vmmov %vm6862_vm3 }
 0x1f1   : > { %v1182_v55 = vsel %vm6849_vm4, %v5907_v9, %v1181_v59  ;;  %1199 = vst [vmem:[#allocation3 + $0x30c] sm:$0xf] %v1183_v26  ;;  %v1174_v46 = vsel %vm316_vm0, %v1163_v6, %v1164_v49  ;;  %v1176_v52 = vsel %vm6850_vm12, %v1152_v27, %v1164_v49  ;;  %v1657_v16 = vpop.permute.xlu1 %1656  ;;  %3633 = vmatprep.subr.bf16.mxu1 %v4251_v51  ;;  %v6852_v9 = vrot.slane %v5490_v1, 4 }
 0x1f2   : > { %v1175_v34 = vsel %vm6851_vm7, %v5912_v40, %v1174_v46  ;;  %1195 = vst [vmem:[#allocation3 + $0x2f0] sm:$0xf] %v1176_v52  ;;  %v1665_v22 = vrot.slane %v1657_v16, 4  ;;  %v1649_v12 = vpop.permute.xlu0 %1648  ;;  %3634 = vmatpush1.bf16.msra.mxu1 %v4250_v37  ;;  %vm6866_vm4 = vcmask 785408  }
 0x1f3   : > { %v1661_v54 = vrot.slane %v1649_v12, 4  ;;  %v4194_v21 = vcombine.low %v1175_v34, %v1182_v55  ;;  %v4195_v28 = vcombine.high %v1175_v34, %v1182_v55  ;;  %vm6867_vm12 = vmmov %vm6866_vm4 }
 0x1f4   : > { %v1678_v41 = vsel %vm316_vm0, %v6852_v9, %v1665_v22  ;;  %v1680_v6 = vsel %vm1667_vm15, %v1657_v16, %v1665_v22  ;;  %vm6869_vm7 = vmmov %vm6866_vm4 }
 0x1f5   : > { %v1679_v62 = vsel %vm1667_vm15, %v5490_v1, %v1678_v41  ;;  %1696 = vst [vmem:[#allocation3 + $0x494] sm:$0xf] %v1680_v6  ;;  %v1671_v40 = vsel %vm316_vm0, %v6854_v7, %v1661_v54  ;;  %v1673_v17 = vsel %vm1667_vm15, %v1649_v12, %v1661_v54  ;;  %v1089_v20 = vpop.permute.xlu1 %1088  ;;  %3596 = vmatprep.subr.bf16.mxu0 %v4195_v28  ;;  %v6860_v28 = vrot.slane %v5557_v11, 4 }
 0x1f6   : > { %v1672_v32 = vsel %vm1667_vm15, %v6853_v0, %v1671_v40  ;;  %1692 = vst [vmem:[#allocation3 + $0x478] sm:$0xf] %v1673_v17  ;;  %v1097_v18 = vrot.slane %v1089_v20, 4  ;;  %v1081_v10 = vpop.permute.xlu0 %1080  ;;  %3597 = vmatpush2.bf16.msra.mxu0 %v4194_v21  ;;  %vm6857_vm15 = vmmov %vm6855_vm2 }
 0x1f7   : > { %v1093_v27 = vrot.slane %v1081_v10, 4  ;;  %v4243_v49 = vcombine.low %v1672_v32, %v1679_v62  ;;  %v4244_v37 = vcombine.high %v1672_v32, %v1679_v62 }
 0x1f8   : > { %v1110_v1 = vsel %vm316_vm0, %v1096_v48, %v1097_v18  ;;  %v1112_v51 = vsel %vm6855_vm2, %v1089_v20, %v1097_v18  ;;  %vm6870_vm2 = vmmov %vm6866_vm4 }
 0x1f9   : > { %v1111_v59 = vsel %vm6856_vm5, %v5954_v13, %v1110_v1  ;;  %1128 = vst [vmem:[#allocation3 + $0x2d4] sm:$0xf] %v1112_v51  ;;  %v1103_v26 = vsel %vm316_vm0, %v1092_v29, %v1093_v27  ;;  %v1105_v55 = vsel %vm6857_vm15, %v1081_v10, %v1093_v27  ;;  %v1586_v46 = vpop.permute.xlu1 %1585  ;;  %3635 = vmatprep.subr.bf16.mxu1 %v4244_v37  ;;  %v6859_v13 = vrot.slane %v5552_v44, 4 }
 0x1fa   : > { %v1104_v52 = vsel %vm6858_vm9, %v5962_v2, %v1103_v26  ;;  %1124 = vst [vmem:[#allocation3 + $0x2b8] sm:$0xf] %v1105_v55  ;;  %v1594_v16 = vrot.slane %v1586_v46, 4  ;;  %v1578_v48 = vpop.permute.xlu0 %1577  ;;  %3636 = vmatpush1.bf16.msra.mxu1 %v4243_v49  ;;  %v6868_v55 = vrot.slane %v5605_v33, 4  ;;  %vm6871_vm5 = vcmask 908288  }
 0x1fb   : > { %v1590_v34 = vrot.slane %v1578_v48, 4  ;;  %v4187_v22 = vcombine.low %v1104_v52, %v1111_v59  ;;  %v4188_v12 = vcombine.high %v1104_v52, %v1111_v59  ;;  %vm6872_vm15 = vmmov %vm6871_vm5 }
 0x1fc   : > { %v1607_v54 = vsel %vm316_vm0, %v6859_v13, %v1594_v16  ;;  %v1609_v29 = vsel %vm1596_vm11, %v1586_v46, %v1594_v16  ;;  %vm6873_vm9 = vmmov %vm6871_vm5 }
 0x1fd   : > { %v1608_v21 = vsel %vm1596_vm11, %v5552_v44, %v1607_v54  ;;  %1625 = vst [vmem:[#allocation3 + $0x45c] sm:$0xf] %v1609_v29  ;;  %v1600_v2 = vsel %vm316_vm0, %v6860_v28, %v1590_v34  ;;  %v1602_v9 = vsel %vm1596_vm11, %v1578_v48, %v1590_v34  ;;  %v1018_v41 = vpop.permute.xlu1 %1017  ;;  %3598 = vmatprep.subr.bf16.mxu0 %v4188_v12 }
 0x1fe   : > { %v1601_v6 = vsel %vm1596_vm11, %v5557_v11, %v1600_v2  ;;  %1621 = vst [vmem:[#allocation3 + $0x440] sm:$0xf] %v1602_v9  ;;  %v1026_v62 = vrot.slane %v1018_v41, 4  ;;  %v1010_v0 = vpop.permute.xlu0 %1009  ;;  %3599 = vmatpush2.bf16.msra.mxu0 %v4187_v22  ;;  %vm6863_vm11 = vmmov %vm6862_vm3 }
 0x1ff   : > { %v1022_v7 = vrot.slane %v1010_v0, 4  ;;  %v4236_v40 = vcombine.low %v1601_v6, %v1608_v21  ;;  %v4237_v17 = vcombine.high %v1601_v6, %v1608_v21 }
 0x200   : > { %v1039_v44 = vsel %vm316_vm0, %v1025_v35, %v1026_v62  ;;  %v1041_v20 = vsel %vm6861_vm10, %v1018_v41, %v1026_v62  ;;  %vm6874_vm10 = vmmov %vm6871_vm5 }
 0x201   : > { %v1040_v32 = vsel %vm6862_vm3, %v5998_v24, %v1039_v44  ;;  %1057 = vst [vmem:[#allocation3 + $0x29c] sm:$0xf] %v1041_v20  ;;  %v1032_v11 = vsel %vm316_vm0, %v1021_v63, %v1022_v7  ;;  %v1034_v18 = vsel %vm6863_vm11, %v1010_v0, %v1022_v7  ;;  %v1515_v10 = vpop.permute.xlu1 %1514  ;;  %3637 = vmatprep.subr.bf16.mxu1 %v4237_v17  ;;  %v6865_v24 = vrot.slane %v5600_v19, 4 }
 0x202   : > { %v1033_v27 = vsel %vm6864_vm1, %v6006_v5, %v1032_v11  ;;  %1053 = vst [vmem:[#allocation3 + $0x280] sm:$0xf] %v1034_v18  ;;  %v1523_v49 = vrot.slane %v1515_v10, 4  ;;  %v1507_v35 = vpop.permute.xlu0 %1506  ;;  %3638 = vmatpush1.bf16.msra.mxu1 %v4236_v40  ;;  %vm6876_vm3 = vcmask 703488   ;;  %v6878_v40 = vrot.slane %v5655_v23, 4 }
 0x203   : > { %v1519_v37 = vrot.slane %v1507_v35, 4  ;;  %v4180_v1 = vcombine.low %v1033_v27, %v1040_v32  ;;  %v4181_v51 = vcombine.high %v1033_v27, %v1040_v32  ;;  %vm6877_vm11 = vmmov %vm6876_vm3 }
 0x204   : > { %v1536_v59 = vsel %vm316_vm0, %v6865_v24, %v1523_v49  ;;  %v1538_v63 = vsel %vm6866_vm4, %v1515_v10, %v1523_v49  ;;  %vm6879_vm1 = vmmov %vm6876_vm3 }
 0x205   : > { %v1537_v26 = vsel %vm6867_vm12, %v5600_v19, %v1536_v59  ;;  %1554 = vst [vmem:[#allocation3 + $0x424] sm:$0xf] %v1538_v63  ;;  %v1529_v5 = vsel %vm316_vm0, %v6868_v55, %v1519_v37  ;;  %v1531_v46 = vsel %vm6869_vm7, %v1507_v35, %v1519_v37  ;;  %v947_v52 = vpop.permute.xlu1 %946  ;;  %3600 = vmatprep.subr.bf16.mxu0 %v4181_v51  ;;  %vm6880_vm4 = vmmov %vm6879_vm1  ;;  %vm6881_vm12 = vcmask 916480  }
 0x206   : > { %v1530_v16 = vsel %vm6870_vm2, %v5605_v33, %v1529_v5  ;;  %1550 = vst [vmem:[#allocation3 + $0x408] sm:$0xf] %v1531_v46  ;;  %v955_v48 = vrot.slane %v947_v52, 4  ;;  %v939_v34 = vpop.permute.xlu0 %938  ;;  %3601 = vmatpush2.bf16.msra.mxu0 %v4180_v1  ;;  %vm6882_vm7 = vmmov %vm6881_vm12  ;;  %v6883_v37 = vrot.slane %v6070_v3, 4 }
 0x207   : > { %v951_v22 = vrot.slane %v939_v34, 4  ;;  %v4229_v12 = vcombine.low %v1530_v16, %v1537_v26  ;;  %v4230_v13 = vcombine.high %v1530_v16, %v1537_v26  ;;  %vm6884_vm2 = vmmov %vm6882_vm7  ;;  %v6889_v16 = vrot.slane %v5703_v14, 4 }
 0x208   : > { %v968_v19 = vsel %vm316_vm0, %v954_v58, %v955_v48  ;;  %v970_v54 = vsel %vm6871_vm5, %v947_v52, %v955_v48  ;;  %vm6885_vm5 = vmmov %vm6884_vm2 }
 0x209   : > { %v969_v29 = vsel %vm6872_vm15, %v6033_v36, %v968_v19  ;;  %986 = vst [vmem:[#allocation3 + $0x264] sm:$0xf] %v970_v54  ;;  %v961_v33 = vsel %vm316_vm0, %v950_v39, %v951_v22  ;;  %v963_v21 = vsel %vm6873_vm9, %v939_v34, %v951_v22  ;;  %v1444_v28 = vpop.permute.xlu1 %1443  ;;  %3639 = vmatprep.subr.bf16.mxu1 %v4230_v13  ;;  %v6875_v36 = vrot.slane %v5650_v61, 4 }
 0x20a   : > { %v962_v2 = vsel %vm6874_vm10, %v6038_v50, %v961_v33  ;;  %982 = vst [vmem:[#allocation3 + $0x248] sm:$0xf] %v963_v21  ;;  %v1452_v9 = vrot.slane %v1444_v28, 4  ;;  %v1436_v58 = vpop.permute.xlu0 %1435  ;;  %3640 = vmatpush1.bf16.msra.mxu1 %v4229_v12  ;;  %vm6887_vm15 = vcmask 711680   ;;  %v6892_v33 = vrot.slane %v6097_v8, 4 }
 0x20b   : > { %v1448_v41 = vrot.slane %v1436_v58, 4  ;;  %v4173_v6 = vcombine.low %v962_v2, %v969_v29  ;;  %v4174_v62 = vcombine.high %v962_v2, %v969_v29  ;;  %vm6888_vm9 = vmmov %vm6887_vm15 }
 0x20c   : > { %v1465_v0 = vsel %vm316_vm0, %v6875_v36, %v1452_v9  ;;  %v1467_v39 = vsel %vm6876_vm3, %v1444_v28, %v1452_v9  ;;  %vm6890_vm10 = vmmov %vm6888_vm9 }
 0x20d   : > { %v1466_v7 = vsel %vm6877_vm11, %v5650_v61, %v1465_v0  ;;  %1483 = vst [vmem:[#allocation3 + $0x3ec] sm:$0xf] %v1467_v39  ;;  %v1458_v50 = vsel %vm316_vm0, %v6878_v40, %v1448_v41  ;;  %v1460_v17 = vsel %vm6879_vm1, %v1436_v58, %v1448_v41  ;;  %v876_v44 = vpop.permute.xlu1 %875  ;;  %3602 = vmatprep.subr.bf16.mxu0 %v4174_v62  ;;  %vm6891_vm3 = vmmov %vm6888_vm9  ;;  %vm6893_vm11 = vcmask 834560  }
 0x20e   : > { %v1459_v20 = vsel %vm6880_vm4, %v5655_v23, %v1458_v50  ;;  %1479 = vst [vmem:[#allocation3 + $0x3d0] sm:$0xf] %v1460_v17  ;;  %v884_v32 = vrot.slane %v876_v44, 4  ;;  %v868_v11 = vpop.permute.xlu0 %867  ;;  %3603 = vmatpush2.bf16.msra.mxu0 %v4173_v6  ;;  %vm6894_vm1 = vmmov %vm6893_vm11  ;;  %v6898_v40 = vrot.slane %v5746_v25, 4 }
 0x20f   : > { %v880_v18 = vrot.slane %v868_v11, 4  ;;  %v4222_v10 = vcombine.low %v1459_v20, %v1466_v7  ;;  %v4223_v27 = vcombine.high %v1459_v20, %v1466_v7  ;;  %vm6896_vm4 = vmmov %vm6894_vm1 }
 0x210   : > { %v897_v61 = vsel %vm316_vm0, %v883_v4, %v884_v32  ;;  %v899_v49 = vsel %vm6881_vm12, %v876_v44, %v884_v32  ;;  %vm6897_vm12 = vmmov %vm6894_vm1 }
 0x211   : > { %v898_v35 = vsel %vm6882_vm7, %v6065_v43, %v897_v61  ;;  %915 = vst [vmem:[#allocation3 + $0x22c] sm:$0xf] %v899_v49  ;;  %v890_v23 = vsel %vm316_vm0, %v6883_v37, %v880_v18  ;;  %v892_v1 = vsel %vm6884_vm2, %v868_v11, %v880_v18  ;;  %v1373_v51 = vpop.permute.xlu1 %1372  ;;  %3641 = vmatprep.subr.bf16.mxu1 %v4223_v27  ;;  %v6886_v43 = vrot.slane %v5698_v53, 4 }
 0x212   : > { %v891_v24 = vsel %vm6885_vm5, %v6070_v3, %v890_v23  ;;  %911 = vst [vmem:[#allocation3 + $0x210] sm:$0xf] %v892_v1  ;;  %v1381_v59 = vrot.slane %v1373_v51, 4  ;;  %v1365_v4 = vpop.permute.xlu0 %1364  ;;  %3642 = vmatpush1.bf16.msra.mxu1 %v4222_v10  ;;  %v6901_v23 = vrot.slane %v5770_v15, 4 }
 0x213   : > { %v1377_v63 = vrot.slane %v1365_v4, 4  ;;  %v4166_v26 = vcombine.low %v891_v24, %v898_v35  ;;  %v4167_v55 = vcombine.high %v891_v24, %v898_v35  ;;  %v4430_v24 = vld [vmem:[#allocation3 + $0x520] ss:$28 sps:$4 sm:$0xff]  }
 0x214   : > { %v1394_v5 = vsel %vm316_vm0, %v6886_v43, %v1381_v59  ;;  %v1396_v46 = vsel %vm6887_vm15, %v1373_v51, %v1381_v59  ;;  %v6902_v59 = vrot.slane %v5775_v45, 4 }
 0x215   : > { %v1395_v52 = vsel %vm6888_vm9, %v5698_v53, %v1394_v5  ;;  %1412 = vst [vmem:[#allocation3 + $0x3b4] sm:$0xf] %v1396_v46  ;;  %v1387_v3 = vsel %vm316_vm0, %v6889_v16, %v1377_v63  ;;  %v1389_v48 = vsel %vm6890_vm10, %v1365_v4, %v1377_v63  ;;  %v805_v34 = vpop.permute.xlu1 %804  ;;  %3604 = vmatprep.subr.bf16.mxu0 %v4167_v55  ;;  %v6330_v53 = vpop.f32.mrf.mxu0 }
 0x216   : > { %v1388_v22 = vsel %vm6891_vm3, %v5703_v14, %v1387_v3  ;;  %1408 = vst [vmem:[#allocation3 + $0x398] sm:$0xf] %v1389_v48  ;;  %v813_v12 = vrot.slane %v805_v34, 4  ;;  %v797_v13 = vpop.permute.xlu0 %796  ;;  %3605 = vmatpush2.bf16.msra.mxu0 %v4166_v26  ;;  %v6895_v14 = vrot.slane %v6102_v60, 4  ;;  %v6903_v3 = vrot.slane %v5824_v31, 4 }
 0x217   : > { %v809_v19 = vrot.slane %v797_v13, 4  ;;  %v4215_v54 = vcombine.low %v1388_v22, %v1395_v52  ;;  %v4216_v29 = vcombine.high %v1388_v22, %v1395_v52 }
 0x218   : > { %v826_v21 = vsel %vm316_vm0, %v6892_v33, %v813_v12  ;;  %v828_v28 = vsel %vm6893_vm11, %v805_v34, %v813_v12  ;;  %v6904_v12 = vrot.slane %v5829_v30, 4 }
 0x219   : > { %v827_v2 = vsel %vm6894_vm1, %v6097_v8, %v826_v21  ;;  %844 = vst [vmem:[#allocation3 + $0x1f4] sm:$0xf] %v828_v28  ;;  %v819_v9 = vsel %vm316_vm0, %v6895_v14, %v809_v19  ;;  %v821_v58 = vsel %vm6896_vm4, %v797_v13, %v809_v19  ;;  %v2083_v41 = vpop.permute.xlu1 %2082  ;;  %3643 = vmatprep.subr.bf16.mxu1 %v4216_v29  ;;  %v6344_v8 = vpop.f32.mrf.mxu0  ;;  %v4433_v14 = vld [vmem:[#allocation3 + $0x360] ss:$28 sps:$4 sm:$0xff]  }
 0x21a   : > { %v820_v6 = vsel %vm6897_vm12, %v6102_v60, %v819_v9  ;;  %840 = vst [vmem:[#allocation3 + $0x1d8] sm:$0xf] %v821_v58  ;;  %v2091_v62 = vrot.slane %v2083_v41, 4  ;;  %v2075_v36 = vpop.permute.xlu0 %2074  ;;  %3644 = vmatpush1.bf16.msra.mxu1 %v4215_v54  ;;  %v6899_v60 = vrot.slane %v5751_v57, 4 }
 0x21b   : > { %v2087_v0 = vrot.slane %v2075_v36, 4  ;;  %v4159_v39 = vcombine.low %v820_v6, %v827_v2  ;;  %v4160_v7 = vcombine.high %v820_v6, %v827_v2  ;;  %v6359_v37 = vpop.f32.mrf.mxu0  ;;  %v4432_v2 = vld [vmem:[#allocation3 + $0x4b0] ss:$28 sps:$4 sm:$0xff]   ;;  %v4435_v6 = vld [vmem:[#allocation3 + $0x478] ss:$28 sps:$4 sm:$0xff]  }
 0x21c   : > { %v2104_v50 = vsel %vm316_vm0, %v6898_v40, %v2091_v62  ;;  %v2106_v17 = vsel %vm2093_vm6, %v2083_v41, %v2091_v62  ;;  %v4434_v41 = vld [vmem:[#allocation3 + $0x1a0] ss:$28 sps:$4 sm:$0xff]   ;;  %v6396_v62 = vld [vmem:[%s6537_s1 + $0x8] ss:$16 sps:$4 sm:$0xff]  }
 0x21d   : > { %v2105_v44 = vsel %vm2093_vm6, %v5746_v25, %v2104_v50  ;;  %2122 = vst [vmem:[#allocation3 + $0x5e4] sm:$0xf] %v2106_v17  ;;  %v2097_v20 = vsel %vm316_vm0, %v6899_v60, %v2087_v0  ;;  %v2099_v32 = vsel %vm2093_vm6, %v2075_v36, %v2087_v0  ;;  %v2012_v11 = vpop.permute.xlu1 %2011  ;;  %3606 = vmatprep.subr.bf16.mxu0 %v4160_v7  ;;  %v6900_v25 = vmov 0   ;;  %v3404_v16 = vpop.f32.mrf.mxu0  ;;  %v4436_v36 = vld [vmem:[#allocation3 + $0x328] ss:$28 sps:$4 sm:$0xff]  }
 0x21e   : > { %v2098_v18 = vsel %vm2093_vm6, %v5751_v57, %v2097_v20  ;;  %2118 = vst [vmem:[#allocation3 + $0x5c8] sm:$0xf] %v2099_v32  ;;  %v2020_v10 = vrot.slane %v2012_v11, 4  ;;  %v2004_v27 = vpop.permute.xlu0 %2003  ;;  %3607 = vmatpush2.bf16.msra.mxu0 %v4159_v39  ;;  %v4438_v60 = vld [vmem:[#allocation3 + $0x440] ss:$28 sps:$4 sm:$0xff]  }
 0x21f   : > { %v2016_v61 = vrot.slane %v2004_v27, 4  ;;  %v4285_v49 = vcombine.low %v2098_v18, %v2105_v44  ;;  %v4286_v35 = vcombine.high %v2098_v18, %v2105_v44  ;;  %3731 = vmatprep.subr.bf16.mxu0 %v6900_v25  ;;  %v3408_v29 = vpop.f32.mrf.mxu0  ;;  %v4437_v44 = vld [vmem:[#allocation3 + $0x168] ss:$28 sps:$4 sm:$0xff]   ;;  %v6409_v20 = vld [vmem:[%s6537_s1 + $0x2c] ss:$16 sps:$4 sm:$0xff]  }
 0x220   : > { %v2033_v1 = vsel %vm316_vm0, %v6901_v23, %v2020_v10  ;;  %v2035_v51 = vsel %vm2022_vm14, %v2012_v11, %v2020_v10  ;;  %v4439_v18 = vld [vmem:[#allocation3 + $0x2f0] ss:$28 sps:$4 sm:$0xff]  }
 0x221   : > { %v2034_v57 = vsel %vm2022_vm14, %v5770_v15, %v2033_v1  ;;  %2051 = vst [vmem:[#allocation3 + $0x5ac] sm:$0xf] %v2035_v51  ;;  %v2026_v4 = vsel %vm316_vm0, %v6902_v59, %v2016_v61  ;;  %v2028_v63 = vsel %vm2022_vm14, %v2004_v27, %v2016_v61  ;;  %v1941_v26 = vpop.permute.xlu1 %1940  ;;  %3609 = vmatmul.mubr.bf16.vlgmr.msra.gmra.mxu0 %v6150_v56  ;;  %v3410_v58 = vpop.f32.mrf.mxu0  ;;  %v4440_v1 = vld [vmem:[#allocation3 + $0x130] ss:$28 sps:$4 sm:$0xff]   ;;  %v4441_v51 = vld [vmem:[#allocation3 + $0x408] ss:$28 sps:$4 sm:$0xff]  }
 0x222   : > { %3655 = vmatprep.subr.bf16.mxu1 %v4286_v35  ;;  %v2027_v55 = vsel %vm2022_vm14, %v5775_v45, %v2026_v4  ;;  %2047 = vst [vmem:[#allocation3 + $0x590] sm:$0xf] %v2028_v63  ;;  %v1949_v43 = vrot.slane %v1941_v26, 4  ;;  %v1933_v5 = vpop.permute.xlu0 %1932  ;;  %3732 = vmatpush1.bf16.msra.mxu0 %v4430_v24  ;;  %v4431_v45 = vld [vmem:[#allocation3 + $0x4e8] ss:$28 sps:$4 sm:$0xff]  }
 0x223   : > { %3656 = vmatpush2.bf16.msra.mxu1 %v4285_v49  ;;  %v1945_v15 = vrot.slane %v1933_v5, 4  ;;  %v4278_v46 = vcombine.low %v2027_v55, %v2034_v57  ;;  %v4279_v52 = vcombine.high %v2027_v55, %v2034_v57  ;;  %3733 = vmatprep.subr.bf16.mxu0 %v6900_v25  ;;  %v3412_v39 = vpop.f32.mrf.mxu0  ;;  %v4442_v63 = vld [vmem:[#allocation3 + $0x2b8] ss:$28 sps:$4 sm:$0xff]  }
 0x224   : > { %3618 = vmatprep.mubr.bf16.mxu0 %v6158_v47  ;;  %v1962_v48 = vsel %vm316_vm0, %v6903_v3, %v1949_v43  ;;  %v1964_v34 = vsel %vm1951_vm8, %v1941_v26, %v1949_v43  ;;  %v6426_v26 = vld [vmem:[%s6537_s1 + $0x28] ss:$16 sps:$4 sm:$0xff]   ;;  %v4444_v3 = vld [vmem:[#allocation3 + $0x3d0] ss:$28 sps:$4 sm:$0xff]  }
 0x225   : > { %v1963_v22 = vsel %vm1951_vm8, %v5824_v31, %v1962_v48  ;;  %1980 = vst [vmem:[#allocation3 + $0x574] sm:$0xf] %v1964_v34  ;;  %v1955_v13 = vsel %vm316_vm0, %v6904_v12, %v1945_v15  ;;  %v1957_v19 = vsel %vm1951_vm8, %v1933_v5, %v1945_v15  ;;  %3657 = vmatprep.subr.bf16.mxu1 %v4279_v52  ;;  %v3451_v54 = vpop.f32.mrf.mxu1  ;;  %v3414_v10 = vpop.f32.mrf.mxu0  ;;  %v4465_v48 = vld [vmem:[%s6537_s1 + $0x4] ss:$16 sps:$4 sm:$0xff]  }
 0x226   : > { %v1956_v33 = vsel %vm1951_vm8, %v5829_v30, %v1955_v13  ;;  %1976 = vst [vmem:[#allocation3 + $0x558] sm:$0xf] %v1957_v19  ;;  %3734 = vmatpush1.bf16.msra.mxu0 %v4431_v45  ;;  %v3452_v40 = vadd.f32 %v3451_v54, %v6330_v53  ;;  %v4445_v13 = vld [vmem:[#allocation3 + $0x280] ss:$28 sps:$4 sm:$0xff]  }
 0x227   : > { %3658 = vmatpush2.bf16.msra.mxu1 %v4278_v46  ;;  %v4271_v21 = vcombine.low %v1956_v33, %v1963_v22  ;;  %v4272_v28 = vcombine.high %v1956_v33, %v1963_v22  ;;  %3735 = vmatprep.subr.bf16.mxu0 %v6900_v25  ;;  %v3453_v31 = vpop.f32.mrf.mxu1 }
 0x228   : > { %v3454_v50 = vadd.f32 %v3453_v31, %v6344_v8  ;;  %v4446_v31 = vld [vmem:[#allocation3 + $0xc0] ss:$28 sps:$4 sm:$0xff]  }
 0x229   : > { %3659 = vmatprep.subr.bf16.mxu1 %v4272_v28  ;;  %3619 = vmatmul.mubr.bf16.gmra.mxu0 %v6186_v42  ;;  %v3455_v9 = vpop.f32.mrf.mxu1 }
 0x22a   : > { %3736 = vmatpush1.bf16.msra.mxu0 %v4432_v2  ;;  %4294 = vmatprep.mubr.msk.bf16.mxu0 %vm3357_vm13, %v6194_v38  ;;  %v3456_v32 = vadd.f32 %v3455_v9, %v6359_v37  ;;  %v4447_v2 = vld [vmem:[#allocation3 + $0x398] ss:$28 sps:$4 sm:$0xff]  }
 0x22b   : > { %3660 = vmatpush2.bf16.msra.mxu1 %v4271_v21  ;;  %3737 = vmatprep.subr.bf16.mxu0 %v6900_v25  ;;  %v3457_v30 = vpop.f32.mrf.mxu1 }
 0x22c   : > { %4330 = vmatprep.subr.bf16.mxu1 %v4433_v14  ;;  %v3458_v11 = vadd.f32 %v3457_v30, %v3404_v16  ;;  %v4443_v16 = vld [vmem:[#allocation3 + $0xf8] ss:$28 sps:$4 sm:$0xff]  }
 0x22d   : > { %v3461_v0 = vpop.f32.mrf.mxu1 }
 0x22e   : > { %3662 = vmatmul.mubr.bf16.vlgmr.msra.gmra.mxu1 %v6396_v62  ;;  %3738 = vmatpush1.bf16.msra.mxu0 %v4435_v6  ;;  %v6399_v7 = vpop.permute.xlu1 %3791  ;;  %v3462_v27 = vadd.f32 %v3461_v0, %v3408_v29  ;;  %v4449_v6 = vld [vmem:[#allocation3 + $0x88] ss:$28 sps:$4 sm:$0xff]   ;;  %v4451_v0 = vld [vmem:[#allocation3 + $0x210] ss:$28 sps:$4 sm:$0xff]  }
 0x22f   : > { %4331 = vmatpush3.bf16.msra.mxu1 %v4434_v41  ;;  %3739 = vmatprep.subr.bf16.mxu0 %v6900_v25  ;;  %v6403_v38 = vpop.permute.xlu0 %3786  ;;  %v3463_v17 = vpop.f32.mrf.mxu1  ;;  %v3811_v24 = vmul.f32 %v6399_v7, %v3456_v32  ;;  %v3812_v57 = vmul.f32 %v6399_v7, %v3458_v11 }
 0x230   : > { %4332 = vmatprep.subr.bf16.mxu1 %v4436_v36  ;;  %4293 = vmatprep.mubr.msk.bf16.mxu1 %vm3357_vm13, %v6409_v20  ;;  %v3804_v61 = vmul.f32 %v6403_v38, %v3452_v40  ;;  %v3805_v49 = vmul.f32 %v6403_v38, %v3454_v50  ;;  %v3464_v23 = vadd.f32 %v3463_v17, %v3410_v58  ;;  %v4448_v58 = vld [vmem:[#allocation3 + $0x248] ss:$28 sps:$4 sm:$0xff]   ;;  %v4453_v40 = vld [vmem:[#allocation3 + $0x590] ss:$28 sps:$4 sm:$0xff]   ;;  %v4454_v50 = vld [vmem:[#allocation3 + $0x1d8] ss:$28 sps:$4 sm:$0xff]  }
 0x231   : > { %v3465_v53 = vpop.f32.mrf.mxu1  ;;  %v4450_v36 = vld [vmem:[#allocation3 + $0x5c8] ss:$28 sps:$4 sm:$0xff]   ;;  %v4455_v17 = vld [vmem:[#allocation3 + $0x18] ss:$28 sps:$4 sm:$0xff]  }
 0x232   : > { %3740 = vmatpush1.bf16.msra.mxu0 %v4438_v60  ;;  %v6414_v8 = vpop.permute.xlu1 %3796  ;;  %v3466_v59 = vadd.f32 %v3465_v53, %v3412_v39  ;;  %v4452_v39 = vld [vmem:[#allocation3 + $0x50] ss:$28 sps:$4 sm:$0xff]  }
 0x233   : > { %4333 = vmatpush3.bf16.msra.mxu1 %v4437_v44  ;;  %3741 = vmatprep.subr.bf16.mxu0 %v6900_v25  ;;  %v6419_v35 = vpop.permute.xlu0 %3801  ;;  %v3467_v37 = vpop.f32.mrf.mxu1  ;;  %v3818_v43 = vmul.f32 %v6414_v8, %v3462_v27  ;;  %v3819_v52 = vmul.f32 %v6414_v8, %v3464_v23  ;;  %v4456_v44 = vld [vmem:[#allocation3 + $0x558] ss:$28 sps:$4 sm:$0xff]  }
 0x234   : > { %4334 = vmatprep.subr.bf16.mxu1 %v4439_v18  ;;  %v3468_v4 = vadd.f32 %v3467_v37, %v3414_v10  ;;  %v3825_v22 = vmul.f32 %v6419_v35, %v3466_v59 }
 0x236   : > { %3672 = vmatmul.mubr.bf16.gmra.mxu1 %v6426_v26  ;;  %3742 = vmatpush1.bf16.msra.mxu0 %v4441_v51  ;;  %v6429_v55 = vpop.permute.xlu1 %3838  ;;  %v3826_v12 = vmul.f32 %v6419_v35, %v3468_v4 }
 0x237   : > { %4335 = vmatpush3.bf16.msra.mxu1 %v4440_v1  ;;  %3743 = vmatprep.subr.bf16.mxu0 %v6900_v25  ;;  %v3856_v5 = vadd.f32 %v6429_v55, %v3804_v61  ;;  %v3857_v15 = vadd.f32 %v6429_v55, %v3805_v49  ;;  %v6435_v46 = vpop.permute.xlu0 %3843 }
 0x238   : > { %4336 = vmatprep.subr.bf16.mxu1 %v4442_v63  ;;  %3714 = vmatprep.mubr.bf16.mxu1 %v4465_v48  ;;  %v3863_v34 = vadd.f32 %v6435_v46, %v3811_v24  ;;  %v3864_v45 = vadd.f32 %v6435_v46, %v3812_v57 }
 0x239   : > { %v4314_v19 = vpack.c.bf16 %v3857_v15, %v3856_v5 }
 0x23a   : > { %3744 = vmatpush1.bf16.msra.mxu0 %v4444_v3  ;;  %v4318_v54 = vpack.c.bf16 %v3864_v45, %v3863_v34  ;;  %v6452_v29 = vpop.permute.xlu1 %3848 }
 0x23b   : > { %4337 = vmatpush3.bf16.msra.mxu1 %v4443_v16  ;;  %3745 = vmatprep.subr.bf16.mxu0 %v6900_v25  ;;  %3972 = vst [vmem:[%s6446_s6] sm:$0xff] %v4314_v19  ;;  %v3870_v33 = vadd.f32 %v6452_v29, %v3818_v43  ;;  %v3871_v21 = vadd.f32 %v6452_v29, %v3819_v52  ;;  %v6458_v28 = vpop.permute.xlu0 %3853 }
 0x23c   : > { %4338 = vmatprep.subr.bf16.mxu1 %v4445_v13  ;;  %3976 = vst [vmem:[%s6446_s6 + $0x1c] sm:$0xff] %v4318_v54  ;;  %v3877_v14 = vadd.f32 %v6458_v28, %v3825_v22  ;;  %v3878_v9 = vadd.f32 %v6458_v28, %v3826_v12 }
 0x23d   : > { %v4322_v30 = vpack.c.bf16 %v3871_v21, %v3870_v33 }
 0x23e   : > { %3746 = vmatpush1.bf16.msra.mxu0 %v4447_v2  ;;  %v4326_v41 = vpack.c.bf16 %v3878_v9, %v3877_v14 }
 0x23f   : > { %4339 = vmatpush3.bf16.msra.mxu1 %v4446_v31  ;;  %3757 = vmatprep.subr.bf16.mxu0 %v6900_v25  ;;  %3980 = vst [vmem:[%s6446_s6 + $0x38] sm:$0xff] %v4322_v30 }
 0x240   : > { %4340 = vmatprep.subr.bf16.mxu1 %v4448_v58  ;;  %3984 = vst [vmem:[%s6446_s6 + $0x54] sm:$0xff] %v4326_v41 }
 0x242   : > { %3758 = vmatpush2.bf16.msra.mxu0 %v4450_v36 }
 0x243   : > { %4341 = vmatpush3.bf16.msra.mxu1 %v4449_v6  ;;  %3759 = vmatprep.subr.bf16.mxu0 %v6900_v25 }
 0x244   : > { %4342 = vmatprep.subr.bf16.mxu1 %v4451_v0 }
 0x246   : > { %3760 = vmatpush2.bf16.msra.mxu0 %v4453_v40 }
 0x247   : > { %4343 = vmatpush3.bf16.msra.mxu1 %v4452_v39  ;;  %3761 = vmatprep.subr.bf16.mxu0 %v6900_v25 }
 0x248   : > { %4344 = vmatprep.subr.bf16.mxu1 %v4454_v50 }
 0x24a   : > { %3762 = vmatpush2.bf16.msra.mxu0 %v4456_v44 }
 0x24b   : > { %4345 = vmatpush3.bf16.msra.mxu1 %v4455_v17 }
 0x24d   : > { %3764 = vmatmul.mubr.bf16.vlgmr.msra.gmra.mxu0 %v6396_v62 }
 0x24e   : > { %3715 = vmatmul.mubr.bf16.vlgmr.msra.gmra.mxu1 %v6150_v56  ;;  %4295 = vmatprep.mubr.msk.bf16.mxu0 %vm3357_vm13, %v6409_v20 }
 0x24f   : > { %3722 = vmatprep.mubr.bf16.mxu1 %v6158_v47 }
 0x255   : > { %3772 = vmatmul.mubr.bf16.gmra.mxu0 %v6426_v26 }
 0x256   : > { %3723 = vmatmul.mubr.bf16.gmra.mxu1 %v6186_v42 }
 0x269   : > { %v3557_v60 = vpop.f32.mrf.mxu0 }
 0x26b   : > { %v3559_v32 = vpop.f32.mrf.mxu0 }
 0x26d   : > { %v3561_v11 = vpop.f32.mrf.mxu0 }
 0x26f   : > { %v3563_v25 = vpop.f32.mrf.mxu0 }
 0x271   : > { %v3567_v53 = vpop.f32.mrf.mxu0 }
 0x273   : > { %v3569_v47 = vpop.f32.mrf.mxu0 }
 0x275   : > { %v3571_v57 = vpop.f32.mrf.mxu0 }
 0x277   : > { %v3573_v3 = vpop.f32.mrf.mxu0 }
 0x2a1   : > { %v3504_v18 = vpop.f32.mrf.mxu1 }
 0x2a2   : > { %v3558_v10 = vadd.f32 %v3557_v60, %v3504_v18 }
 0x2a3   : > { %v3506_v27 = vpop.f32.mrf.mxu1 }
 0x2a4   : > { %v3806_v56 = vmul.f32 %v6403_v38, %v3558_v10  ;;  %v3560_v62 = vadd.f32 %v3559_v32, %v3506_v27 }
 0x2a5   : > { %v3508_v61 = vpop.f32.mrf.mxu1 }
 0x2a6   : > { %v3858_v20 = vadd.f32 %v6429_v55, %v3806_v56  ;;  %v3807_v42 = vmul.f32 %v6403_v38, %v3560_v62  ;;  %v3562_v49 = vadd.f32 %v3561_v11, %v3508_v61 }
 0x2a7   : > { %v3510_v23 = vpop.f32.mrf.mxu1 }
 0x2a8   : > { %v3859_v37 = vadd.f32 %v6429_v55, %v3807_v42  ;;  %v3813_v1 = vmul.f32 %v6399_v7, %v3562_v49  ;;  %v3564_v51 = vadd.f32 %v3563_v25, %v3510_v23 }
 0x2aa   : > { %v3514_v24 = vpop.f32.mrf.mxu1  ;;  %v4315_v59 = vpack.c.bf16 %v3859_v37, %v3858_v20  ;;  %v3865_v4 = vadd.f32 %v6435_v46, %v3813_v1  ;;  %v3814_v63 = vmul.f32 %v6399_v7, %v3564_v51 }
 0x2ab   : > { %v3568_v26 = vadd.f32 %v3567_v53, %v3514_v24 }
 0x2ac   : > { %v3516_v43 = vpop.f32.mrf.mxu1  ;;  %3973 = vst [vmem:[%s6446_s6 + $0x8] sm:$0xff] %v4315_v59  ;;  %v3866_v5 = vadd.f32 %v6435_v46, %v3814_v63 }
 0x2ad   : > { %v3820_v15 = vmul.f32 %v6414_v8, %v3568_v26  ;;  %v3570_v52 = vadd.f32 %v3569_v47, %v3516_v43 }
 0x2ae   : > { %v3518_v16 = vpop.f32.mrf.mxu1  ;;  %v4319_v48 = vpack.c.bf16 %v3866_v5, %v3865_v4 }
 0x2af   : > { %v3872_v34 = vadd.f32 %v6452_v29, %v3820_v15  ;;  %v3821_v45 = vmul.f32 %v6414_v8, %v3570_v52  ;;  %v3572_v22 = vadd.f32 %v3571_v57, %v3518_v16 }
 0x2b0   : > { %v3520_v12 = vpop.f32.mrf.mxu1  ;;  %3977 = vst [vmem:[%s6446_s6 + $0x24] sm:$0xff] %v4319_v48 }
 0x2b1   : > { %v3873_v13 = vadd.f32 %v6452_v29, %v3821_v45  ;;  %v3827_v19 = vmul.f32 %v6419_v35, %v3572_v22  ;;  %v3574_v54 = vadd.f32 %v3573_v3, %v3520_v12 }
 0x2b3   : > { %v4323_v33 = vpack.c.bf16 %v3873_v13, %v3872_v34  ;;  %v3879_v21 = vadd.f32 %v6458_v28, %v3827_v19  ;;  %v3828_v31 = vmul.f32 %v6419_v35, %v3574_v54 }
 0x2b5   : > { %3981 = vst [vmem:[%s6446_s6 + $0x40] sm:$0xff] %v4323_v33  ;;  %v3880_v2 = vadd.f32 %v6458_v28, %v3828_v31 }
 0x2b7   : > { %v4327_v14 = vpack.c.bf16 %v3880_v2, %v3879_v21 }
 0x2b9   : > { %3985 = vst [vmem:[%s6446_s6 + $0x5c] sm:$0xff] %v4327_v14 }
 0x2e1   : > { %v3610_v9 = vpop.f32.mrf.mxu0 }
 0x2e3   : > { %v3612_v58 = vpop.f32.mrf.mxu0 }
 0x2e5   : > { %v3614_v30 = vpop.f32.mrf.mxu0 }
 0x2e7   : > { %v3616_v41 = vpop.f32.mrf.mxu0 }
 0x2e9   : > { %v3620_v36 = vpop.f32.mrf.mxu0 }
 0x2eb   : > { %v3622_v44 = vpop.f32.mrf.mxu0 }
 0x2ed   : > { %v3624_v56 = vpop.f32.mrf.mxu0 }
 0x2ee   : > { %v3663_v6 = vpop.f32.mrf.mxu1 }
 0x2ef   : > { %v3664_v0 = vadd.f32 %v3663_v6, %v3610_v9  ;;  %v3626_v51 = vpop.f32.mrf.mxu0 }
 0x2f0   : > { %v3665_v39 = vpop.f32.mrf.mxu1 }
 0x2f1   : > { %v3808_v40 = vmul.f32 %v6403_v38, %v3664_v0  ;;  %v3666_v50 = vadd.f32 %v3665_v39, %v3612_v58 }
 0x2f2   : > { %v3667_v17 = vpop.f32.mrf.mxu1 }
 0x2f3   : > { %v3809_v60 = vmul.f32 %v6403_v38, %v3666_v50  ;;  %v3668_v32 = vadd.f32 %v3667_v17, %v3614_v30  ;;  %v3860_v25 = vadd.f32 %v6429_v55, %v3808_v40 }
 0x2f4   : > { %v3669_v11 = vpop.f32.mrf.mxu1 }
 0x2f5   : > { %v3861_v18 = vadd.f32 %v6429_v55, %v3809_v60  ;;  %v3815_v53 = vmul.f32 %v6399_v7, %v3668_v32  ;;  %v3670_v10 = vadd.f32 %v3669_v11, %v3616_v41 }
 0x2f6   : > { %v3673_v27 = vpop.f32.mrf.mxu1 }
 0x2f7   : > { %v4316_v62 = vpack.c.bf16 %v3861_v18, %v3860_v25  ;;  %v3816_v61 = vmul.f32 %v6399_v7, %v3670_v10  ;;  %v3674_v47 = vadd.f32 %v3673_v27, %v3620_v36  ;;  %v3867_v42 = vadd.f32 %v6435_v46, %v3815_v53 }
 0x2f8   : > { %v3675_v20 = vpop.f32.mrf.mxu1 }
 0x2f9   : > { %3974 = vst [vmem:[%s6446_s6 + $0x10] sm:$0xff] %v4316_v62  ;;  %v3868_v49 = vadd.f32 %v6435_v46, %v3816_v61  ;;  %v3822_v23 = vmul.f32 %v6414_v8, %v3674_v47  ;;  %v3676_v37 = vadd.f32 %v3675_v20, %v3622_v44 }
 0x2fa   : > { %v3677_v1 = vpop.f32.mrf.mxu1 }
 0x2fb   : > { %v4320_v24 = vpack.c.bf16 %v3868_v49, %v3867_v42  ;;  %v3874_v57 = vadd.f32 %v6452_v29, %v3822_v23  ;;  %v3823_v59 = vmul.f32 %v6414_v8, %v3676_v37  ;;  %v3678_v4 = vadd.f32 %v3677_v1, %v3624_v56 }
 0x2fc   : > { %v3679_v63 = vpop.f32.mrf.mxu1 }
 0x2fd   : > { %3978 = vst [vmem:[%s6446_s6 + $0x2c] sm:$0xff] %v4320_v24  ;;  %v3875_v26 = vadd.f32 %v6452_v29, %v3823_v59  ;;  %v3829_v43 = vmul.f32 %v6419_v35, %v3678_v4  ;;  %v3680_v5 = vadd.f32 %v3679_v63, %v3626_v51 }
 0x2ff   : > { %v4324_v15 = vpack.c.bf16 %v3875_v26, %v3874_v57  ;;  %v3881_v52 = vadd.f32 %v6458_v28, %v3829_v43  ;;  %v3830_v16 = vmul.f32 %v6419_v35, %v3680_v5 }
 0x301   : > { %3982 = vst [vmem:[%s6446_s6 + $0x48] sm:$0xff] %v4324_v15  ;;  %v3882_v3 = vadd.f32 %v6458_v28, %v3830_v16 }
 0x303   : > { %v4328_v48 = vpack.c.bf16 %v3882_v3, %v3881_v52 }
 0x305   : > { %3986 = vst [vmem:[%s6446_s6 + $0x64] sm:$0xff] %v4328_v48 }
 0x30d   : > { %v3765_v45 = vpop.f32.mrf.mxu0 }
 0x30e   : > { %v4346_v34 = vpop.f32.mrf.mxu1 }
 0x30f   : > { %v3767_v12 = vpop.f32.mrf.mxu0 }
 0x310   : > { %v4347_v22 = vpop.f32.mrf.mxu1 }
 0x311   : > { %v4348_v13 = vadd.f32 %v4347_v22, %v4346_v34  ;;  %v3768_v54 = vpop.f32.mrf.mxu0 }
 0x312   : > { %v4349_v19 = vpop.f32.mrf.mxu1 }
 0x313   : > { %v3766_v33 = vadd.f32 %v4348_v13, %v3765_v45  ;;  %v3770_v31 = vpop.f32.mrf.mxu0 }
 0x314   : > { %v4350_v21 = vpop.f32.mrf.mxu1 }
 0x315   : > { %v3810_v2 = vmul.f32 %v6403_v38, %v3766_v33  ;;  %v4351_v14 = vadd.f32 %v4350_v21, %v4349_v19  ;;  %v3773_v58 = vpop.f32.mrf.mxu0 }
 0x316   : > { %v4352_v9 = vpop.f32.mrf.mxu1 }
 0x317   : > { %v3862_v30 = vadd.f32 %v6429_v55, %v3810_v2  ;;  %v3769_v41 = vadd.f32 %v4351_v14, %v3768_v54  ;;  %v3775_v36 = vpop.f32.mrf.mxu0 }
 0x318   : > { %v4353_v6 = vpop.f32.mrf.mxu1 }
 0x319   : > { %v4317_v0 = vpack.c.bf16 %v3862_v30, %v3862_v30  ;;  %v3817_v39 = vmul.f32 %v6399_v7, %v3769_v41  ;;  %v4354_v40 = vadd.f32 %v4353_v6, %v4352_v9  ;;  %v3776_v17 = vpop.f32.mrf.mxu0 }
 0x31a   : > { %v4355_v50 = vpop.f32.mrf.mxu1 }
 0x31b   : > { %3975 = vst [vmem:[%s6446_s6 + $0x18] sm:$0xf] %v4317_v0  ;;  %v3869_v38 = vadd.f32 %v6435_v46, %v3817_v39  ;;  %v3774_v44 = vadd.f32 %v4354_v40, %v3773_v58  ;;  %v3778_v32 = vpop.f32.mrf.mxu0 }
 0x31c   : > { %v4356_v60 = vpop.f32.mrf.mxu1 }
 0x31d   : > { %v4321_v11 = vpack.c.bf16 %v3869_v38, %v3869_v38  ;;  %v3824_v55 = vmul.f32 %v6414_v8, %v3774_v44  ;;  %v4357_v25 = vadd.f32 %v4356_v60, %v4355_v50 }
 0x31f   : > { %3979 = vst [vmem:[%s6446_s6 + $0x34] sm:$0xf] %v4321_v11  ;;  %v3876_v18 = vadd.f32 %v6452_v29, %v3824_v55  ;;  %v3777_v53 = vadd.f32 %v4357_v25, %v3776_v17 }
 0x321   : > { %v4325_v7 = vpack.c.bf16 %v3876_v18, %v3876_v18  ;;  %v3831_v10 = vmul.f32 %v6419_v35, %v3777_v53 }
 0x323   : > { %3983 = vst [vmem:[%s6446_s6 + $0x50] sm:$0xf] %v4325_v7  ;;  %v3883_v27 = vadd.f32 %v6458_v28, %v3831_v10 }
 0x325   : > { %v4329_v56 = vpack.c.bf16 %v3883_v27, %v3883_v27 }
 0x327   : > { %3987 = vst [vmem:[%s6446_s6 + $0x6c] sm:$0xf] %v4329_v56 }
 0x328 PF: > { %s14_s17 = sadd.s32 1, %s4488_s17   ;;  %s6906_s15 = smov %s4484_s16 }
 0x329   : > { %p11_p5 = scmp.ge.s32.totalorder %s14_s17, 4   ;;  %s6907_s16 = smov %s6909_s18 }
 0x32b   :  { %13 = sbr.rel (!%p11_p5) target bundleno = 2 (0x2), region = 68 }

// kernel: conv2dnet_2_forward.7
= control target key start
LH: loop header
LB: loop body
LE: loop exit
PB: predicated region body
PF: predicated region fallthrough
CT: control target
= control target key end

     0   :  { %s4103_s9 = smov 0   ;;  %s4105_s10 = smov 0   ;;  %s4307_s0 = inlined_call_operand.vmem [shape: bf16[2,28672], index: 0, kind: input, shape index: {}]   ;;  %s4308_s1 = inlined_call_operand.vmem [shape: bf16[8,28672], index: 1, kind: input, shape index: {}]   ;;  %s4309_s2 = inlined_call_operand.vmem [shape: f32[2,2,8], index: 2, kind: output, shape index: {}]  }
   0x1   :  { %s4107_s11 = smov 0  }
   0x2 LB: > { %s24_s12 = sadd.s32 1, %s4080_s10  ;;  %p3793_p0 = scmp.ge.s32.totalorder %s4084_s11, 1  ;;  %s4084_s11 = sphi %s4107_s11, %s12_s11   ;;  %s4080_s10 = sphi %s4105_s10, %s4311_s10   ;;  %s4076_s9 = sphi %s4103_s9, %s4310_s9  }
   0x3   : > { %p26_p1 = scmp.ge.s32.totalorder %s24_s12, 2  ;;  %p143_p2 = scmp.lt.s32.totalorder %s4084_s11, 3 }
   0x5   : > { %s4313_s12 = smov (%p26_p1, %s24_s12), 0  ;;  %p144_p3 = pnand %p3793_p0, %p143_p2 }
   0x6   : > { %s171_s13 = smul.u32 (!%p144_p3), 112, %s4076_s9  ;;  %p185_p5 = scmp.lt.s32.totalorder (!%p144_p3), %s4076_s9, 1 }
   0x7   : > { %147 = sbr.rel (%p144_p3) target bundleno = 450 (0x1c2), region = 28 }
   0x8   : > { %p172_p4 = scmp.lt.s32.totalorder (!%p144_p3), %s171_s13, 223 }
   0xc   : > { %v285_v0 = vlaneseq  ;;  %v4086_v1 = vmov 1966171168   ;;  %s4315_s13 = smov (!%p172_p4, %s171_s13), 223  ;;  %vm194_vm0 = vcmask 58368   ;;  %s4317_s9 = smov (!%p185_p5, %s4076_s9), 1 }
   0xd   : > { %v283_v2 = vunpack.c.l.s4 %v4086_v1  ;;  %s3794_s14 = sshll.u32 %s4315_s13, 2  ;;  %s4129_s17 = scalar_lea.vmem %s4307_s0, %s4315_s13 }
   0xe   : > { %v286_v3 = vshrl.u32 %v285_v0, 7  ;;  %s4134_s20 = scalar_lea.vmem %s4308_s1, %s3794_s14  ;;  %v197_v6 = vld [vmem:[%s4129_s17] sm:$0xff]  ;;  %v198_v19 = vld [vmem:[%s4129_s17 + $0x8] sm:$0xff]  ;;  %v199_v50 = vld [vmem:[%s4129_s17 + $0x10] sm:$0xff]  ;;  %s3795_s21 = sshll.u32 %s4317_s9, 1 }
   0xf   : > { %v284_v4 = vunpack.c.0.s8 %v283_v2  ;;  %v211_v7 = vld [vmem:[%s4134_s20] sm:$0xff]  ;;  %v212_v8 = vld [vmem:[%s4134_s20 + $0x8] sm:$0xff]  ;;  %v281_v9 = vcombine.high %v197_v6, %v197_v6  ;;  %v213_v11 = vld [vmem:[%s4134_s20 + $0x10] sm:$0xff]  ;;  %v330_v35 = vcombine.high %v198_v19, %v198_v19  ;;  %v379_v61 = vcombine.high %v199_v50, %v199_v50  ;;  %s188_s24 = scalar_lea.vmem %s4309_s2, %s3795_s21 }
  0x10   : > { %v3797_v12 = vcombine.high %v211_v7, %v211_v7  ;;  %v3799_v13 = vcombine.high %v212_v8, %v212_v8  ;;  %v3796_v14 = vcombine.low %v211_v7, %v211_v7  ;;  %v3798_v15 = vcombine.low %v212_v8, %v212_v8  ;;  %v214_v16 = vld [vmem:[%s4134_s20 + $0x18] sm:$0xff]  ;;  %v215_v29 = vld [vmem:[%s4134_s20 + $0x20] sm:$0xff]  ;;  %v216_v30 = vld [vmem:[%s4134_s20 + $0x28] sm:$0xff] }
  0x11   : > { %v4124_v5 = vsub.s32 %v284_v4, %v286_v3  ;;  %v3801_v18 = vcombine.high %v213_v11, %v213_v11  ;;  %v3803_v21 = vcombine.high %v214_v16, %v214_v16  ;;  %v3800_v31 = vcombine.low %v213_v11, %v213_v11  ;;  %v217_v42 = vld [vmem:[%s4134_s20 + $0x30] sm:$0xff]  ;;  %v218_v43 = vld [vmem:[%s4134_s20 + $0x38] sm:$0xff]  ;;  %v219_v55 = vld [vmem:[%s4134_s20 + $0x40] sm:$0xff] }
  0x12   : > { %1485 = vmatprep.subr.bf16.mxu0 %v3797_v12  ;;  %1525 = vmatprep.subr.bf16.mxu1 %v3799_v13  ;;  %v3802_v32 = vcombine.low %v214_v16, %v214_v16  ;;  %v3805_v36 = vcombine.high %v215_v29, %v215_v29  ;;  %v3807_v37 = vcombine.high %v216_v30, %v216_v30  ;;  %v220_v56 = vld [vmem:[%s4134_s20 + $0x48] sm:$0xff]  ;;  %v221_v4 = vld [vmem:[%s4134_s20 + $0x50] sm:$0xff]  ;;  %v200_v13 = vld [vmem:[%s4129_s17 + $0x18] sm:$0xff] }
  0x13   : > { %v288_v10 = vrot.slane %v197_v6, %v4124_v5  ;;  %v295_v22 = vrot.slane %v281_v9, %v4124_v5  ;;  %1486 = vmatpush1.bf16.xpose.msra.mxu0 %v3796_v14  ;;  %1526 = vmatpush1.bf16.xpose.msra.mxu1 %v3798_v15  ;;  %v337_v25 = vrot.slane %v198_v19, %v4124_v5  ;;  %v222_v6 = vld [vmem:[%s4134_s20 + $0x58] sm:$0xff]  ;;  %v224_v19 = vld [vmem:[%s4134_s20 + $0x68] sm:$0xff] }
  0x14   : > { %1565 = vmatprep.subr.bf16.mxu0 %v3801_v18  ;;  %1605 = vmatprep.subr.bf16.mxu1 %v3803_v21  ;;  %v344_v40 = vrot.slane %v330_v35, %v4124_v5  ;;  %v3804_v44 = vcombine.low %v215_v29, %v215_v29  ;;  %v3806_v45 = vcombine.low %v216_v30, %v216_v30  ;;  %v223_v18 = vld [vmem:[%s4134_s20 + $0x60] sm:$0xff] }
  0x15   : > { %v296_v17 = vcombine.high %v288_v10, %v288_v10  ;;  %v304_v20 = vrot.slane %v288_v10, %v4124_v5  ;;  %v297_v24 = vcombine.high %v295_v22, %v295_v22  ;;  %v345_v34 = vcombine.high %v337_v25, %v337_v25 }
  0x16   : > { %v311_v38 = vrot.slane %v295_v22, %v4124_v5  ;;  %v346_v47 = vcombine.high %v344_v40, %v344_v40  ;;  %v3809_v48 = vcombine.high %v217_v42, %v217_v42  ;;  %v3811_v49 = vcombine.high %v218_v43, %v218_v43 }
  0x17   : > { %v318_v23 = vrot.slane %v296_v17, %v4124_v5  ;;  %v326_v27 = vcombine.high %v304_v20, %v304_v20  ;;  %v325_v28 = vrot.slane %v297_v24, %v4124_v5  ;;  %v367_v39 = vrot.slane %v345_v34, %v4124_v5 }
  0x18   : > { %v327_v41 = vcombine.high %v311_v38, %v311_v38  ;;  %v353_v51 = vrot.slane %v337_v25, %v4124_v5  ;;  %v374_v52 = vrot.slane %v346_v47, %v4124_v5  ;;  %v386_v53 = vrot.slane %v199_v50, %v4124_v5 }
  0x19   : > { %1503 = vmatprep.mubr.bf16.mxu0 %v318_v23  ;;  %v328_v26 = vcombine.high %v318_v23, %v318_v23  ;;  %v329_v33 = vcombine.high %v325_v28, %v325_v28  ;;  %v377_v46 = vcombine.high %v367_v39, %v367_v39  ;;  %v3808_v57 = vcombine.low %v217_v42, %v217_v42 }
  0x1a   : > { %1504 = vmatmul.mubr.bf16.vlgmr.msra.gmra.mxu0 %v304_v20  ;;  %v375_v54 = vcombine.high %v353_v51, %v353_v51  ;;  %v3810_v58 = vcombine.low %v218_v43, %v218_v43  ;;  %v378_v59 = vcombine.high %v374_v52, %v374_v52  ;;  %v394_v60 = vcombine.high %v386_v53, %v386_v53 }
  0x1b   : > { %1543 = vmatprep.mubr.bf16.mxu1 %v328_v26  ;;  %1566 = vmatpush1.bf16.xpose.msra.mxu0 %v3800_v31  ;;  %v3813_v62 = vcombine.high %v219_v55, %v219_v55  ;;  %v3815_v63 = vcombine.high %v220_v56, %v220_v56  ;;  %v360_v0 = vrot.slane %v344_v40, %v4124_v5  ;;  %v225_v31 = vld [vmem:[%s4134_s20 + $0x70] sm:$0xff] }
  0x1c   : > { %1544 = vmatmul.mubr.bf16.vlgmr.msra.gmra.mxu1 %v326_v27  ;;  %1583 = vmatprep.mubr.bf16.mxu0 %v325_v28  ;;  %v416_v1 = vrot.slane %v394_v60, %v4124_v5  ;;  %v393_v2 = vrot.slane %v379_v61, %v4124_v5  ;;  %v3812_v7 = vcombine.low %v219_v55, %v219_v55 }
  0x1d   : > { %1606 = vmatpush1.bf16.xpose.msra.mxu1 %v3802_v32  ;;  %1623 = vmatprep.mubr.bf16.mxu1 %v329_v33  ;;  %v376_v3 = vcombine.high %v360_v0, %v360_v0  ;;  %v3814_v8 = vcombine.low %v220_v56, %v220_v56  ;;  %v3817_v11 = vcombine.high %v221_v4, %v221_v4  ;;  %v226_v32 = vld [vmem:[%s4134_s20 + $0x78] sm:$0xff] }
  0x1e   : > { %1645 = vmatprep.subr.bf16.mxu0 %v3805_v36  ;;  %1685 = vmatprep.subr.bf16.mxu1 %v3807_v37  ;;  %v426_v9 = vcombine.high %v416_v1, %v416_v1  ;;  %v395_v10 = vcombine.high %v393_v2, %v393_v2  ;;  %v3819_v12 = vcombine.high %v222_v6, %v222_v6 }
  0x1f   : > { %v402_v14 = vrot.slane %v386_v53, %v4124_v5  ;;  %v435_v16 = vrot.slane %v200_v13, %v4124_v5  ;;  %v3816_v20 = vcombine.low %v221_v4, %v221_v4  ;;  %v3818_v21 = vcombine.low %v222_v6, %v222_v6 }
  0x20   : > { %v423_v15 = vrot.slane %v395_v10, %v4124_v5  ;;  %v428_v24 = vcombine.high %v200_v13, %v200_v13  ;;  %v3821_v25 = vcombine.high %v223_v18, %v223_v18  ;;  %v3823_v26 = vcombine.high %v224_v19, %v224_v19 }
  0x21   : > { %v424_v17 = vcombine.high %v402_v14, %v402_v14  ;;  %v443_v23 = vcombine.high %v435_v16, %v435_v16  ;;  %v409_v27 = vrot.slane %v393_v2, %v4124_v5  ;;  %v3820_v33 = vcombine.low %v223_v18, %v223_v18 }
  0x22   : > { %1584 = vmatmul.mubr.bf16.vlgmr.msra.gmra.mxu0 %v311_v38  ;;  %v427_v22 = vcombine.high %v423_v15, %v423_v15  ;;  %v442_v29 = vrot.slane %v428_v24, %v4124_v5  ;;  %v3822_v34 = vcombine.low %v224_v19, %v224_v19  ;;  %v3825_v37 = vcombine.high %v225_v31, %v225_v31 }
  0x23   : > { %1646 = vmatpush1.bf16.xpose.msra.mxu0 %v3804_v44  ;;  %1663 = vmatprep.mubr.bf16.mxu0 %v367_v39  ;;  %v465_v28 = vrot.slane %v443_v23, %v4124_v5  ;;  %v425_v30 = vcombine.high %v409_v27, %v409_v27  ;;  %v3827_v38 = vcombine.high %v226_v32, %v226_v32  ;;  %v201_v39 = vld [vmem:[%s4129_s17 + $0x20] sm:$0xff] }
  0x24   : > { %1624 = vmatmul.mubr.bf16.vlgmr.msra.gmra.mxu1 %v327_v41  ;;  %1725 = vmatprep.subr.bf16.mxu0 %v3809_v48  ;;  %v444_v36 = vcombine.high %v442_v29, %v442_v29  ;;  %v451_v40 = vrot.slane %v435_v16, %v4124_v5  ;;  %v484_v42 = vrot.slane %v201_v39, %v4124_v5  ;;  %v227_v44 = vld [vmem:[%s4134_s20 + $0x80] sm:$0xff] }
  0x25   : > { %1686 = vmatpush1.bf16.xpose.msra.mxu1 %v3806_v45  ;;  %1703 = vmatprep.mubr.bf16.mxu1 %v377_v46  ;;  %v475_v35 = vcombine.high %v465_v28, %v465_v28  ;;  %v228_v45 = vld [vmem:[%s4134_s20 + $0x88] sm:$0xff]  ;;  %v3824_v46 = vcombine.low %v225_v31, %v225_v31  ;;  %v3826_v47 = vcombine.low %v226_v32, %v226_v32 }
  0x26   : > { %1765 = vmatprep.subr.bf16.mxu1 %v3811_v49  ;;  %v472_v41 = vrot.slane %v444_v36, %v4124_v5  ;;  %v473_v43 = vcombine.high %v451_v40, %v451_v40  ;;  %v492_v49 = vcombine.high %v484_v42, %v484_v42  ;;  %v477_v50 = vcombine.high %v201_v39, %v201_v39 }
  0x27   : > { %v458_v53 = vrot.slane %v442_v29, %v4124_v5  ;;  %v3830_v60 = vcombine.low %v228_v45, %v228_v45  ;;  %v500_v2 = vrot.slane %v484_v42, %v4124_v5 }
  0x28   : > { %v476_v48 = vcombine.high %v472_v41, %v472_v41  ;;  %v491_v55 = vrot.slane %v477_v50, %v4124_v5 }
  0x29   : > { %v474_v56 = vcombine.high %v458_v53, %v458_v53  ;;  %v522_v6 = vcombine.high %v500_v2, %v500_v2 }
  0x2a   : > { %1664 = vmatmul.mubr.bf16.vlgmr.msra.gmra.mxu0 %v353_v51  ;;  %v3829_v51 = vcombine.high %v227_v44, %v227_v44  ;;  %v507_v16 = vrot.slane %v491_v55, %v4124_v5 }
  0x2b   : > { %1726 = vmatpush1.bf16.xpose.msra.mxu0 %v3808_v57  ;;  %1743 = vmatprep.mubr.bf16.mxu0 %v374_v52  ;;  %v3831_v52 = vcombine.high %v228_v45, %v228_v45  ;;  %v229_v57 = vld [vmem:[%s4134_s20 + $0x90] sm:$0xff] }
  0x2c   : > { %1704 = vmatmul.mubr.bf16.vlgmr.msra.gmra.mxu1 %v375_v54  ;;  %1805 = vmatprep.subr.bf16.mxu0 %v3813_v62  ;;  %v514_v54 = vrot.slane %v492_v49, %v4124_v5  ;;  %v493_v62 = vcombine.high %v491_v55, %v491_v55  ;;  %v523_v19 = vcombine.high %v507_v16, %v507_v16 }
  0x2d   : > { %1766 = vmatpush1.bf16.xpose.msra.mxu1 %v3810_v58  ;;  %1783 = vmatprep.mubr.bf16.mxu1 %v378_v59  ;;  %v230_v58 = vld [vmem:[%s4134_s20 + $0x98] sm:$0xff]  ;;  %v3828_v59 = vcombine.low %v227_v44, %v227_v44 }
  0x2e   : > { %1845 = vmatprep.subr.bf16.mxu1 %v3815_v63  ;;  %v524_v61 = vcombine.high %v514_v54, %v514_v54  ;;  %v3833_v63 = vcombine.high %v229_v57, %v229_v57  ;;  %v3834_v10 = vcombine.low %v230_v58, %v230_v58 }
  0x32   : > { %1744 = vmatmul.mubr.bf16.vlgmr.msra.gmra.mxu0 %v360_v0  ;;  %v3835_v0 = vcombine.high %v230_v58, %v230_v58 }
  0x33   : > { %1806 = vmatpush1.bf16.xpose.msra.mxu0 %v3812_v7  ;;  %1823 = vmatprep.mubr.bf16.mxu0 %v416_v1  ;;  %v202_v1 = vld [vmem:[%s4129_s17 + $0x28] sm:$0xff]  ;;  %v231_v7 = vld [vmem:[%s4134_s20 + $0xa0] sm:$0xff] }
  0x34   : > { %1784 = vmatmul.mubr.bf16.vlgmr.msra.gmra.mxu1 %v376_v3  ;;  %1885 = vmatprep.subr.bf16.mxu0 %v3817_v11  ;;  %v521_v3 = vrot.slane %v493_v62, %v4124_v5  ;;  %v533_v4 = vrot.slane %v202_v1, %v4124_v5  ;;  %v526_v13 = vcombine.high %v202_v1, %v202_v1 }
  0x35   : > { %1846 = vmatpush1.bf16.xpose.msra.mxu1 %v3814_v8  ;;  %1863 = vmatprep.mubr.bf16.mxu1 %v426_v9  ;;  %v232_v8 = vld [vmem:[%s4134_s20 + $0xa8] sm:$0xff]  ;;  %v3832_v9 = vcombine.low %v229_v57, %v229_v57 }
  0x36   : > { %1925 = vmatprep.subr.bf16.mxu1 %v3819_v12  ;;  %v525_v11 = vcombine.high %v521_v3, %v521_v3  ;;  %v541_v12 = vcombine.high %v533_v4, %v533_v4  ;;  %v540_v18 = vrot.slane %v526_v13, %v4124_v5  ;;  %v3838_v23 = vcombine.low %v232_v8, %v232_v8 }
  0x37   : > { %v549_v29 = vrot.slane %v533_v4, %v4124_v5 }
  0x38   : > { %v556_v42 = vrot.slane %v540_v18, %v4124_v5 }
  0x39   : > { %v571_v32 = vcombine.high %v549_v29, %v549_v29 }
  0x3a   : > { %1824 = vmatmul.mubr.bf16.vlgmr.msra.gmra.mxu0 %v402_v14  ;;  %v3837_v14 = vcombine.high %v231_v7, %v231_v7  ;;  %v572_v45 = vcombine.high %v556_v42, %v556_v42 }
  0x3b   : > { %1886 = vmatpush1.bf16.xpose.msra.mxu0 %v3816_v20  ;;  %1903 = vmatprep.mubr.bf16.mxu0 %v423_v15  ;;  %v3839_v15 = vcombine.high %v232_v8, %v232_v8  ;;  %v233_v20 = vld [vmem:[%s4134_s20 + $0xb0] sm:$0xff] }
  0x3c   : > { %1864 = vmatmul.mubr.bf16.vlgmr.msra.gmra.mxu1 %v424_v17  ;;  %1965 = vmatprep.subr.bf16.mxu0 %v3821_v25  ;;  %v563_v17 = vrot.slane %v541_v12, %v4124_v5  ;;  %v542_v25 = vcombine.high %v540_v18, %v540_v18 }
  0x3d   : > { %1926 = vmatpush1.bf16.xpose.msra.mxu1 %v3818_v21  ;;  %1943 = vmatprep.mubr.bf16.mxu1 %v427_v22  ;;  %v234_v21 = vld [vmem:[%s4134_s20 + $0xb8] sm:$0xff]  ;;  %v3836_v22 = vcombine.low %v231_v7, %v231_v7 }
  0x3e   : > { %2005 = vmatprep.subr.bf16.mxu1 %v3823_v26  ;;  %v573_v24 = vcombine.high %v563_v17, %v563_v17  ;;  %v3841_v26 = vcombine.high %v233_v20, %v233_v20  ;;  %v3842_v36 = vcombine.low %v234_v21, %v234_v21 }
  0x42   : > { %1904 = vmatmul.mubr.bf16.vlgmr.msra.gmra.mxu0 %v409_v27  ;;  %v3843_v27 = vcombine.high %v234_v21, %v234_v21 }
  0x43   : > { %1966 = vmatpush1.bf16.xpose.msra.mxu0 %v3820_v33  ;;  %1983 = vmatprep.mubr.bf16.mxu0 %v465_v28  ;;  %v203_v28 = vld [vmem:[%s4129_s17 + $0x30] sm:$0xff]  ;;  %v235_v33 = vld [vmem:[%s4134_s20 + $0xc0] sm:$0xff] }
  0x44   : > { %1944 = vmatmul.mubr.bf16.vlgmr.msra.gmra.mxu1 %v425_v30  ;;  %2045 = vmatprep.subr.bf16.mxu0 %v3825_v37  ;;  %v570_v30 = vrot.slane %v542_v25, %v4124_v5  ;;  %v582_v31 = vrot.slane %v203_v28, %v4124_v5  ;;  %v575_v39 = vcombine.high %v203_v28, %v203_v28 }
  0x45   : > { %2006 = vmatpush1.bf16.xpose.msra.mxu1 %v3822_v34  ;;  %2023 = vmatprep.mubr.bf16.mxu1 %v475_v35  ;;  %v236_v34 = vld [vmem:[%s4134_s20 + $0xc8] sm:$0xff]  ;;  %v3840_v35 = vcombine.low %v233_v20, %v233_v20 }
  0x46   : > { %2085 = vmatprep.subr.bf16.mxu1 %v3827_v38  ;;  %v574_v37 = vcombine.high %v570_v30, %v570_v30  ;;  %v590_v38 = vcombine.high %v582_v31, %v582_v31  ;;  %v589_v44 = vrot.slane %v575_v39, %v4124_v5  ;;  %v3846_v49 = vcombine.low %v236_v34, %v236_v34 }
  0x47   : > { %v598_v55 = vrot.slane %v582_v31, %v4124_v5 }
  0x48   : > { %v605_v4 = vrot.slane %v589_v44, %v4124_v5 }
  0x49   : > { %v620_v58 = vcombine.high %v598_v55, %v598_v55 }
  0x4a   : > { %1984 = vmatmul.mubr.bf16.vlgmr.msra.gmra.mxu0 %v451_v40  ;;  %v3845_v40 = vcombine.high %v235_v33, %v235_v33  ;;  %v621_v8 = vcombine.high %v605_v4, %v605_v4 }
  0x4b   : > { %2046 = vmatpush1.bf16.xpose.msra.mxu0 %v3824_v46  ;;  %2063 = vmatprep.mubr.bf16.mxu0 %v472_v41  ;;  %v3847_v41 = vcombine.high %v236_v34, %v236_v34  ;;  %v237_v46 = vld [vmem:[%s4134_s20 + $0xd0] sm:$0xff] }
  0x4c   : > { %2024 = vmatmul.mubr.bf16.vlgmr.msra.gmra.mxu1 %v473_v43  ;;  %2125 = vmatprep.subr.bf16.mxu0 %v3829_v51  ;;  %v612_v43 = vrot.slane %v590_v38, %v4124_v5  ;;  %v591_v51 = vcombine.high %v589_v44, %v589_v44 }
  0x4d   : > { %2086 = vmatpush1.bf16.xpose.msra.mxu1 %v3826_v47  ;;  %2103 = vmatprep.mubr.bf16.mxu1 %v476_v48  ;;  %v238_v47 = vld [vmem:[%s4134_s20 + $0xd8] sm:$0xff]  ;;  %v3844_v48 = vcombine.low %v235_v33, %v235_v33 }
  0x4e   : > { %2165 = vmatprep.subr.bf16.mxu1 %v3831_v52  ;;  %v622_v50 = vcombine.high %v612_v43, %v612_v43  ;;  %v3849_v52 = vcombine.high %v237_v46, %v237_v46  ;;  %v3850_v62 = vcombine.low %v238_v47, %v238_v47 }
  0x52   : > { %2064 = vmatmul.mubr.bf16.vlgmr.msra.gmra.mxu0 %v458_v53  ;;  %v3851_v53 = vcombine.high %v238_v47, %v238_v47 }
  0x53   : > { %2126 = vmatpush1.bf16.xpose.msra.mxu0 %v3828_v59  ;;  %2143 = vmatprep.mubr.bf16.mxu0 %v514_v54  ;;  %v204_v54 = vld [vmem:[%s4129_s17 + $0x38] sm:$0xff]  ;;  %v239_v59 = vld [vmem:[%s4134_s20 + $0xe0] sm:$0xff] }
  0x54   : > { %2104 = vmatmul.mubr.bf16.vlgmr.msra.gmra.mxu1 %v474_v56  ;;  %2205 = vmatprep.subr.bf16.mxu0 %v3833_v63  ;;  %v619_v56 = vrot.slane %v591_v51, %v4124_v5  ;;  %v631_v57 = vrot.slane %v204_v54, %v4124_v5  ;;  %v624_v1 = vcombine.high %v204_v54, %v204_v54 }
  0x55   : > { %2166 = vmatpush1.bf16.xpose.msra.mxu1 %v3830_v60  ;;  %2183 = vmatprep.mubr.bf16.mxu1 %v524_v61  ;;  %v240_v60 = vld [vmem:[%s4134_s20 + $0xe8] sm:$0xff]  ;;  %v3848_v61 = vcombine.low %v237_v46, %v237_v46 }
  0x56   : > { %2245 = vmatprep.subr.bf16.mxu1 %v3835_v0  ;;  %v623_v63 = vcombine.high %v619_v56, %v619_v56  ;;  %v639_v0 = vcombine.high %v631_v57, %v631_v57  ;;  %v638_v7 = vrot.slane %v624_v1, %v4124_v5  ;;  %v3854_v12 = vcombine.low %v240_v60, %v240_v60 }
  0x57   : > { %v647_v18 = vrot.slane %v631_v57, %v4124_v5 }
  0x58   : > { %v654_v31 = vrot.slane %v638_v7, %v4124_v5 }
  0x59   : > { %v669_v21 = vcombine.high %v647_v18, %v647_v18 }
  0x5a   : > { %2144 = vmatmul.mubr.bf16.vlgmr.msra.gmra.mxu0 %v500_v2  ;;  %v3853_v2 = vcombine.high %v239_v59, %v239_v59  ;;  %v670_v34 = vcombine.high %v654_v31, %v654_v31 }
  0x5b   : > { %2206 = vmatpush1.bf16.xpose.msra.mxu0 %v3832_v9  ;;  %2223 = vmatprep.mubr.bf16.mxu0 %v521_v3  ;;  %v3855_v3 = vcombine.high %v240_v60, %v240_v60  ;;  %v241_v9 = vld [vmem:[%s4134_s20 + $0xf0] sm:$0xff] }
  0x5c   : > { %2184 = vmatmul.mubr.bf16.vlgmr.msra.gmra.mxu1 %v522_v6  ;;  %2285 = vmatprep.subr.bf16.mxu0 %v3837_v14  ;;  %v661_v6 = vrot.slane %v639_v0, %v4124_v5  ;;  %v640_v14 = vcombine.high %v638_v7, %v638_v7 }
  0x5d   : > { %2246 = vmatpush1.bf16.xpose.msra.mxu1 %v3834_v10  ;;  %2263 = vmatprep.mubr.bf16.mxu1 %v525_v11  ;;  %v242_v10 = vld [vmem:[%s4134_s20 + $0xf8] sm:$0xff]  ;;  %v3852_v11 = vcombine.low %v239_v59, %v239_v59 }
  0x5e   : > { %2325 = vmatprep.subr.bf16.mxu1 %v3839_v15  ;;  %v671_v13 = vcombine.high %v661_v6, %v661_v6  ;;  %v3857_v15 = vcombine.high %v241_v9, %v241_v9  ;;  %v3858_v25 = vcombine.low %v242_v10, %v242_v10 }
  0x62   : > { %2224 = vmatmul.mubr.bf16.vlgmr.msra.gmra.mxu0 %v507_v16  ;;  %v3859_v16 = vcombine.high %v242_v10, %v242_v10 }
  0x63   : > { %2286 = vmatpush1.bf16.xpose.msra.mxu0 %v3836_v22  ;;  %2303 = vmatprep.mubr.bf16.mxu0 %v563_v17  ;;  %v205_v17 = vld [vmem:[%s4129_s17 + $0x40] sm:$0xff] }
  0x64   : > { %2264 = vmatmul.mubr.bf16.vlgmr.msra.gmra.mxu1 %v523_v19  ;;  %2365 = vmatprep.subr.bf16.mxu0 %v3841_v26  ;;  %v668_v19 = vrot.slane %v640_v14, %v4124_v5  ;;  %v680_v20 = vrot.slane %v205_v17, %v4124_v5  ;;  %v243_v22 = vld [vmem:[%s4134_s20 + $0x100] sm:$0xff]  ;;  %v673_v28 = vcombine.high %v205_v17, %v205_v17 }
  0x65   : > { %2326 = vmatpush1.bf16.xpose.msra.mxu1 %v3838_v23  ;;  %2343 = vmatprep.mubr.bf16.mxu1 %v573_v24  ;;  %v244_v23 = vld [vmem:[%s4134_s20 + $0x108] sm:$0xff]  ;;  %v3856_v24 = vcombine.low %v241_v9, %v241_v9 }
  0x66   : > { %2405 = vmatprep.subr.bf16.mxu1 %v3843_v27  ;;  %v672_v26 = vcombine.high %v668_v19, %v668_v19  ;;  %v688_v27 = vcombine.high %v680_v20, %v680_v20  ;;  %v687_v33 = vrot.slane %v673_v28, %v4124_v5  ;;  %v3862_v38 = vcombine.low %v244_v23, %v244_v23 }
  0x67   : > { %v696_v44 = vrot.slane %v680_v20, %v4124_v5 }
  0x68   : > { %v703_v57 = vrot.slane %v687_v33, %v4124_v5 }
  0x69   : > { %v718_v47 = vcombine.high %v696_v44, %v696_v44 }
  0x6a   : > { %2304 = vmatmul.mubr.bf16.vlgmr.msra.gmra.mxu0 %v549_v29  ;;  %v3861_v29 = vcombine.high %v243_v22, %v243_v22  ;;  %v719_v60 = vcombine.high %v703_v57, %v703_v57 }
  0x6b   : > { %2366 = vmatpush1.bf16.xpose.msra.mxu0 %v3840_v35  ;;  %2383 = vmatprep.mubr.bf16.mxu0 %v570_v30  ;;  %v3863_v30 = vcombine.high %v244_v23, %v244_v23  ;;  %v245_v35 = vld [vmem:[%s4134_s20 + $0x110] sm:$0xff] }
  0x6c   : > { %2344 = vmatmul.mubr.bf16.vlgmr.msra.gmra.mxu1 %v571_v32  ;;  %2445 = vmatprep.subr.bf16.mxu0 %v3845_v40  ;;  %v710_v32 = vrot.slane %v688_v27, %v4124_v5  ;;  %v689_v40 = vcombine.high %v687_v33, %v687_v33 }
  0x6d   : > { %2406 = vmatpush1.bf16.xpose.msra.mxu1 %v3842_v36  ;;  %2423 = vmatprep.mubr.bf16.mxu1 %v574_v37  ;;  %v246_v36 = vld [vmem:[%s4134_s20 + $0x118] sm:$0xff]  ;;  %v3860_v37 = vcombine.low %v243_v22, %v243_v22 }
  0x6e   : > { %2485 = vmatprep.subr.bf16.mxu1 %v3847_v41  ;;  %v720_v39 = vcombine.high %v710_v32, %v710_v32  ;;  %v3865_v41 = vcombine.high %v245_v35, %v245_v35  ;;  %v3866_v51 = vcombine.low %v246_v36, %v246_v36 }
  0x72   : > { %2384 = vmatmul.mubr.bf16.vlgmr.msra.gmra.mxu0 %v556_v42  ;;  %v3867_v42 = vcombine.high %v246_v36, %v246_v36 }
  0x73   : > { %2446 = vmatpush1.bf16.xpose.msra.mxu0 %v3844_v48  ;;  %2463 = vmatprep.mubr.bf16.mxu0 %v612_v43  ;;  %v206_v43 = vld [vmem:[%s4129_s17 + $0x48] sm:$0xff]  ;;  %v247_v48 = vld [vmem:[%s4134_s20 + $0x120] sm:$0xff] }
  0x74   : > { %2424 = vmatmul.mubr.bf16.vlgmr.msra.gmra.mxu1 %v572_v45  ;;  %2525 = vmatprep.subr.bf16.mxu0 %v3849_v52  ;;  %v717_v45 = vrot.slane %v689_v40, %v4124_v5  ;;  %v729_v46 = vrot.slane %v206_v43, %v4124_v5  ;;  %v722_v54 = vcombine.high %v206_v43, %v206_v43 }
  0x75   : > { %2486 = vmatpush1.bf16.xpose.msra.mxu1 %v3846_v49  ;;  %2503 = vmatprep.mubr.bf16.mxu1 %v622_v50  ;;  %v248_v49 = vld [vmem:[%s4134_s20 + $0x128] sm:$0xff]  ;;  %v3864_v50 = vcombine.low %v245_v35, %v245_v35 }
  0x76   : > { %2565 = vmatprep.subr.bf16.mxu1 %v3851_v53  ;;  %v721_v52 = vcombine.high %v717_v45, %v717_v45  ;;  %v737_v53 = vcombine.high %v729_v46, %v729_v46  ;;  %v736_v59 = vrot.slane %v722_v54, %v4124_v5  ;;  %v3870_v0 = vcombine.low %v248_v49, %v248_v49 }
  0x77   : > { %v745_v7 = vrot.slane %v729_v46, %v4124_v5 }
  0x78   : > { %v752_v20 = vrot.slane %v736_v59, %v4124_v5 }
  0x79   : > { %v767_v10 = vcombine.high %v745_v7, %v745_v7 }
  0x7a   : > { %2464 = vmatmul.mubr.bf16.vlgmr.msra.gmra.mxu0 %v598_v55  ;;  %v3869_v55 = vcombine.high %v247_v48, %v247_v48  ;;  %v768_v23 = vcombine.high %v752_v20, %v752_v20 }
  0x7b   : > { %2526 = vmatpush1.bf16.xpose.msra.mxu0 %v3848_v61  ;;  %2543 = vmatprep.mubr.bf16.mxu0 %v619_v56  ;;  %v3871_v56 = vcombine.high %v248_v49, %v248_v49  ;;  %v249_v61 = vld [vmem:[%s4134_s20 + $0x130] sm:$0xff] }
  0x7c   : > { %2504 = vmatmul.mubr.bf16.vlgmr.msra.gmra.mxu1 %v620_v58  ;;  %2605 = vmatprep.subr.bf16.mxu0 %v3853_v2  ;;  %v759_v58 = vrot.slane %v737_v53, %v4124_v5  ;;  %v738_v2 = vcombine.high %v736_v59, %v736_v59 }
  0x7d   : > { %2566 = vmatpush1.bf16.xpose.msra.mxu1 %v3850_v62  ;;  %2583 = vmatprep.mubr.bf16.mxu1 %v623_v63  ;;  %v250_v62 = vld [vmem:[%s4134_s20 + $0x138] sm:$0xff]  ;;  %v3868_v63 = vcombine.low %v247_v48, %v247_v48 }
  0x7e   : > { %2645 = vmatprep.subr.bf16.mxu1 %v3855_v3  ;;  %v769_v1 = vcombine.high %v759_v58, %v759_v58  ;;  %v3873_v3 = vcombine.high %v249_v61, %v249_v61  ;;  %v3874_v14 = vcombine.low %v250_v62, %v250_v62 }
  0x82   : > { %2544 = vmatmul.mubr.bf16.vlgmr.msra.gmra.mxu0 %v605_v4  ;;  %v3875_v4 = vcombine.high %v250_v62, %v250_v62 }
  0x83   : > { %2606 = vmatpush1.bf16.xpose.msra.mxu0 %v3852_v11  ;;  %2623 = vmatprep.mubr.bf16.mxu0 %v661_v6  ;;  %v207_v6 = vld [vmem:[%s4129_s17 + $0x50] sm:$0xff]  ;;  %v251_v11 = vld [vmem:[%s4134_s20 + $0x140] sm:$0xff] }
  0x84   : > { %2584 = vmatmul.mubr.bf16.vlgmr.msra.gmra.mxu1 %v621_v8  ;;  %2685 = vmatprep.subr.bf16.mxu0 %v3857_v15  ;;  %v766_v8 = vrot.slane %v738_v2, %v4124_v5  ;;  %v778_v9 = vrot.slane %v207_v6, %v4124_v5  ;;  %v771_v17 = vcombine.high %v207_v6, %v207_v6 }
  0x85   : > { %2646 = vmatpush1.bf16.xpose.msra.mxu1 %v3854_v12  ;;  %2663 = vmatprep.mubr.bf16.mxu1 %v671_v13  ;;  %v252_v12 = vld [vmem:[%s4134_s20 + $0x148] sm:$0xff]  ;;  %v3872_v13 = vcombine.low %v249_v61, %v249_v61 }
  0x86   : > { %2725 = vmatprep.subr.bf16.mxu1 %v3859_v16  ;;  %v770_v15 = vcombine.high %v766_v8, %v766_v8  ;;  %v786_v16 = vcombine.high %v778_v9, %v778_v9  ;;  %v785_v22 = vrot.slane %v771_v17, %v4124_v5  ;;  %v3878_v27 = vcombine.low %v252_v12, %v252_v12 }
  0x87   : > { %v794_v33 = vrot.slane %v778_v9, %v4124_v5 }
  0x88   : > { %v801_v46 = vrot.slane %v785_v22, %v4124_v5 }
  0x89   : > { %v816_v36 = vcombine.high %v794_v33, %v794_v33 }
  0x8a   : > { %2624 = vmatmul.mubr.bf16.vlgmr.msra.gmra.mxu0 %v647_v18  ;;  %v3877_v18 = vcombine.high %v251_v11, %v251_v11  ;;  %v817_v49 = vcombine.high %v801_v46, %v801_v46 }
  0x8b   : > { %2686 = vmatpush1.bf16.xpose.msra.mxu0 %v3856_v24  ;;  %2703 = vmatprep.mubr.bf16.mxu0 %v668_v19  ;;  %v3879_v19 = vcombine.high %v252_v12, %v252_v12  ;;  %v253_v24 = vld [vmem:[%s4134_s20 + $0x150] sm:$0xff] }
  0x8c   : > { %2664 = vmatmul.mubr.bf16.vlgmr.msra.gmra.mxu1 %v669_v21  ;;  %2765 = vmatprep.subr.bf16.mxu0 %v3861_v29  ;;  %v808_v21 = vrot.slane %v786_v16, %v4124_v5  ;;  %v787_v29 = vcombine.high %v785_v22, %v785_v22 }
  0x8d   : > { %2726 = vmatpush1.bf16.xpose.msra.mxu1 %v3858_v25  ;;  %2743 = vmatprep.mubr.bf16.mxu1 %v672_v26  ;;  %v254_v25 = vld [vmem:[%s4134_s20 + $0x158] sm:$0xff]  ;;  %v3876_v26 = vcombine.low %v251_v11, %v251_v11 }
  0x8e   : > { %2805 = vmatprep.subr.bf16.mxu1 %v3863_v30  ;;  %v818_v28 = vcombine.high %v808_v21, %v808_v21  ;;  %v3881_v30 = vcombine.high %v253_v24, %v253_v24  ;;  %v3882_v40 = vcombine.low %v254_v25, %v254_v25 }
  0x92   : > { %2704 = vmatmul.mubr.bf16.vlgmr.msra.gmra.mxu0 %v654_v31  ;;  %v3883_v31 = vcombine.high %v254_v25, %v254_v25 }
  0x93   : > { %2766 = vmatpush1.bf16.xpose.msra.mxu0 %v3860_v37  ;;  %2783 = vmatprep.mubr.bf16.mxu0 %v710_v32  ;;  %v208_v32 = vld [vmem:[%s4129_s17 + $0x58] sm:$0xff]  ;;  %v255_v37 = vld [vmem:[%s4134_s20 + $0x160] sm:$0xff] }
  0x94   : > { %2744 = vmatmul.mubr.bf16.vlgmr.msra.gmra.mxu1 %v670_v34  ;;  %2845 = vmatprep.subr.bf16.mxu0 %v3865_v41  ;;  %v815_v34 = vrot.slane %v787_v29, %v4124_v5  ;;  %v827_v35 = vrot.slane %v208_v32, %v4124_v5  ;;  %v820_v43 = vcombine.high %v208_v32, %v208_v32 }
  0x95   : > { %2806 = vmatpush1.bf16.xpose.msra.mxu1 %v3862_v38  ;;  %2823 = vmatprep.mubr.bf16.mxu1 %v720_v39  ;;  %v256_v38 = vld [vmem:[%s4134_s20 + $0x168] sm:$0xff]  ;;  %v3880_v39 = vcombine.low %v253_v24, %v253_v24 }
  0x96   : > { %2885 = vmatprep.subr.bf16.mxu1 %v3867_v42  ;;  %v819_v41 = vcombine.high %v815_v34, %v815_v34  ;;  %v835_v42 = vcombine.high %v827_v35, %v827_v35  ;;  %v834_v48 = vrot.slane %v820_v43, %v4124_v5  ;;  %v3886_v53 = vcombine.low %v256_v38, %v256_v38 }
  0x97   : > { %v843_v59 = vrot.slane %v827_v35, %v4124_v5 }
  0x98   : > { %v850_v9 = vrot.slane %v834_v48, %v4124_v5 }
  0x99   : > { %v865_v62 = vcombine.high %v843_v59, %v843_v59 }
  0x9a   : > { %2784 = vmatmul.mubr.bf16.vlgmr.msra.gmra.mxu0 %v696_v44  ;;  %v3885_v44 = vcombine.high %v255_v37, %v255_v37  ;;  %v866_v12 = vcombine.high %v850_v9, %v850_v9 }
  0x9b   : > { %2846 = vmatpush1.bf16.xpose.msra.mxu0 %v3864_v50  ;;  %2863 = vmatprep.mubr.bf16.mxu0 %v717_v45  ;;  %v3887_v45 = vcombine.high %v256_v38, %v256_v38  ;;  %v257_v50 = vld [vmem:[%s4134_s20 + $0x170] sm:$0xff] }
  0x9c   : > { %2824 = vmatmul.mubr.bf16.vlgmr.msra.gmra.mxu1 %v718_v47  ;;  %2925 = vmatprep.subr.bf16.mxu0 %v3869_v55  ;;  %v857_v47 = vrot.slane %v835_v42, %v4124_v5  ;;  %v836_v55 = vcombine.high %v834_v48, %v834_v48 }
  0x9d   : > { %2886 = vmatpush1.bf16.xpose.msra.mxu1 %v3866_v51  ;;  %2903 = vmatprep.mubr.bf16.mxu1 %v721_v52  ;;  %v258_v51 = vld [vmem:[%s4134_s20 + $0x178] sm:$0xff]  ;;  %v3884_v52 = vcombine.low %v255_v37, %v255_v37 }
  0x9e   : > { %2965 = vmatprep.subr.bf16.mxu1 %v3871_v56  ;;  %v867_v54 = vcombine.high %v857_v47, %v857_v47  ;;  %v3889_v56 = vcombine.high %v257_v50, %v257_v50  ;;  %v3890_v2 = vcombine.low %v258_v51, %v258_v51 }
  0xa2   : > { %2864 = vmatmul.mubr.bf16.vlgmr.msra.gmra.mxu0 %v703_v57  ;;  %v3891_v57 = vcombine.high %v258_v51, %v258_v51 }
  0xa3   : > { %2926 = vmatpush1.bf16.xpose.msra.mxu0 %v3868_v63  ;;  %2943 = vmatprep.mubr.bf16.mxu0 %v759_v58  ;;  %v209_v58 = vld [vmem:[%s4129_s17 + $0x60] sm:$0xff] }
  0xa4   : > { %2904 = vmatmul.mubr.bf16.vlgmr.msra.gmra.mxu1 %v719_v60  ;;  %3005 = vmatprep.subr.bf16.mxu0 %v3873_v3  ;;  %v864_v60 = vrot.slane %v836_v55, %v4124_v5  ;;  %v876_v61 = vrot.slane %v209_v58, %v4124_v5  ;;  %v259_v63 = vld [vmem:[%s4134_s20 + $0x180] sm:$0xff]  ;;  %v869_v6 = vcombine.high %v209_v58, %v209_v58 }
  0xa5   : > { %2966 = vmatpush1.bf16.xpose.msra.mxu1 %v3870_v0  ;;  %2983 = vmatprep.mubr.bf16.mxu1 %v769_v1  ;;  %v260_v0 = vld [vmem:[%s4134_s20 + $0x188] sm:$0xff]  ;;  %v3888_v1 = vcombine.low %v257_v50, %v257_v50 }
  0xa6   : > { %3045 = vmatprep.subr.bf16.mxu1 %v3875_v4  ;;  %v868_v3 = vcombine.high %v864_v60, %v864_v60  ;;  %v884_v4 = vcombine.high %v876_v61, %v876_v61  ;;  %v883_v11 = vrot.slane %v869_v6, %v4124_v5  ;;  %v3894_v16 = vcombine.low %v260_v0, %v260_v0 }
  0xa7   : > { %v892_v22 = vrot.slane %v876_v61, %v4124_v5 }
  0xa8   : > { %v899_v37 = vrot.slane %v883_v11, %v4124_v5 }
  0xa9   : > { %v914_v25 = vcombine.high %v892_v22, %v892_v22 }
  0xaa   : > { %2944 = vmatmul.mubr.bf16.vlgmr.msra.gmra.mxu0 %v745_v7  ;;  %v3893_v7 = vcombine.high %v259_v63, %v259_v63 }
  0xab   : > { %3006 = vmatpush1.bf16.xpose.msra.mxu0 %v3872_v13  ;;  %3023 = vmatprep.mubr.bf16.mxu0 %v766_v8  ;;  %v3895_v8 = vcombine.high %v260_v0, %v260_v0  ;;  %v261_v13 = vld [vmem:[%s4134_s20 + $0x190] sm:$0xff] }
  0xac   : > { %2984 = vmatmul.mubr.bf16.vlgmr.msra.gmra.mxu1 %v767_v10  ;;  %3085 = vmatprep.subr.bf16.mxu0 %v3877_v18  ;;  %v906_v10 = vrot.slane %v884_v4, %v4124_v5  ;;  %v885_v18 = vcombine.high %v883_v11, %v883_v11 }
  0xad   : > { %3046 = vmatpush1.bf16.xpose.msra.mxu1 %v3874_v14  ;;  %3063 = vmatprep.mubr.bf16.mxu1 %v770_v15  ;;  %v262_v14 = vld [vmem:[%s4134_s20 + $0x198] sm:$0xff]  ;;  %v3892_v15 = vcombine.low %v259_v63, %v259_v63 }
  0xae   : > { %3125 = vmatprep.subr.bf16.mxu1 %v3879_v19  ;;  %v916_v17 = vcombine.high %v906_v10, %v906_v10  ;;  %v3897_v19 = vcombine.high %v261_v13, %v261_v13  ;;  %v3898_v29 = vcombine.low %v262_v14, %v262_v14 }
  0xb2   : > { %3024 = vmatmul.mubr.bf16.vlgmr.msra.gmra.mxu0 %v752_v20  ;;  %v3899_v20 = vcombine.high %v262_v14, %v262_v14 }
  0xb3   : > { %3086 = vmatpush1.bf16.xpose.msra.mxu0 %v3876_v26  ;;  %3103 = vmatprep.mubr.bf16.mxu0 %v808_v21  ;;  %v210_v21 = vld [vmem:[%s4129_s17 + $0x68] sm:$0xff]  ;;  %v263_v26 = vld [vmem:[%s4134_s20 + $0x1a0] sm:$0xff] }
  0xb4   : > { %3064 = vmatmul.mubr.bf16.vlgmr.msra.gmra.mxu1 %v768_v23  ;;  %3165 = vmatprep.subr.bf16.mxu0 %v3881_v30  ;;  %v913_v23 = vrot.slane %v885_v18, %v4124_v5  ;;  %v925_v24 = vrot.slane %v210_v21, %v4124_v5  ;;  %v918_v32 = vcombine.high %v210_v21, %v210_v21 }
  0xb5   : > { %3126 = vmatpush1.bf16.xpose.msra.mxu1 %v3878_v27  ;;  %3143 = vmatprep.mubr.bf16.mxu1 %v818_v28  ;;  %v264_v27 = vld [vmem:[%s4134_s20 + $0x1a8] sm:$0xff]  ;;  %v3896_v28 = vcombine.low %v261_v13, %v261_v13  ;;  %v3900_v48 = vcombine.low %v263_v26, %v263_v26 }
  0xb6   : > { %3205 = vmatprep.subr.bf16.mxu1 %v3883_v31  ;;  %v917_v30 = vcombine.high %v913_v23, %v913_v23  ;;  %v933_v31 = vcombine.high %v925_v24, %v925_v24  ;;  %v932_v42 = vrot.slane %v918_v32, %v4124_v5  ;;  %v941_v58 = vrot.slane %v925_v24, %v4124_v5 }
  0xb8   : > { %v948_v11 = vrot.slane %v932_v42, %v4124_v5 }
  0xba   : > { %3104 = vmatmul.mubr.bf16.vlgmr.msra.gmra.mxu0 %v794_v33  ;;  %v3901_v33 = vcombine.high %v263_v26, %v263_v26  ;;  %v964_v18 = vcombine.high %v948_v11, %v948_v11 }
  0xbb   : > { %3166 = vmatpush1.bf16.xpose.msra.mxu0 %v3880_v39  ;;  %3183 = vmatprep.mubr.bf16.mxu0 %v815_v34  ;;  %v3903_v34 = vcombine.high %v264_v27, %v264_v27 }
  0xbc   : > { %3144 = vmatmul.mubr.bf16.vlgmr.msra.gmra.mxu1 %v816_v36  ;;  %3245 = vmatprep.subr.bf16.mxu0 %v3885_v44 }
  0xbd   : > { %3206 = vmatpush1.bf16.xpose.msra.mxu1 %v3882_v40  ;;  %3223 = vmatprep.mubr.bf16.mxu1 %v819_v41  ;;  %v955_v41 = vrot.slane %v933_v31, %v4124_v5 }
  0xbe   : > { %3285 = vmatprep.subr.bf16.mxu1 %v3887_v45  ;;  %v915_v45 = vcombine.high %v899_v37, %v899_v37 }
  0xc2   : > { %3184 = vmatmul.mubr.bf16.vlgmr.msra.gmra.mxu0 %v801_v46  ;;  %v265_v46 = vld [vmem:[%s4134_s20 + $0x1b0] sm:$0xff] }
  0xc3   : > { %3246 = vmatpush1.bf16.xpose.msra.mxu0 %v3884_v52  ;;  %3263 = vmatprep.mubr.bf16.mxu0 %v857_v47  ;;  %v266_v47 = vld [vmem:[%s4134_s20 + $0x1b8] sm:$0xff]  ;;  %v965_v52 = vcombine.high %v955_v41, %v955_v41 }
  0xc4   : > { %3224 = vmatmul.mubr.bf16.vlgmr.msra.gmra.mxu1 %v817_v49  ;;  %3325 = vmatprep.subr.bf16.mxu0 %v3889_v56  ;;  %v3902_v49 = vcombine.low %v264_v27, %v264_v27  ;;  %v3907_v55 = vcombine.high %v266_v47, %v266_v47  ;;  %v3906_v4 = vcombine.low %v266_v47, %v266_v47 }
  0xc5   : > { %3286 = vmatpush1.bf16.xpose.msra.mxu1 %v3886_v53  ;;  %3303 = vmatprep.mubr.bf16.mxu1 %v867_v54  ;;  %v934_v53 = vcombine.high %v932_v42, %v932_v42  ;;  %v3905_v54 = vcombine.high %v265_v46, %v265_v46 }
  0xc6   : > { %3365 = vmatprep.subr.bf16.mxu1 %v3891_v57 }
  0xca   : > { %3264 = vmatmul.mubr.bf16.vlgmr.msra.gmra.mxu0 %v843_v59 }
  0xcb   : > { %3326 = vmatpush1.bf16.xpose.msra.mxu0 %v3888_v1  ;;  %3343 = vmatprep.mubr.bf16.mxu0 %v864_v60 }
  0xcc   : > { %3304 = vmatmul.mubr.bf16.vlgmr.msra.gmra.mxu1 %v865_v62  ;;  %3405 = vmatprep.subr.bf16.mxu0 %v3893_v7  ;;  %v962_v62 = vrot.slane %v934_v53, %v4124_v5 }
  0xcd   : > { %3366 = vmatpush1.bf16.xpose.msra.mxu1 %v3890_v2  ;;  %3383 = vmatprep.mubr.bf16.mxu1 %v868_v3  ;;  %v963_v2 = vcombine.high %v941_v58, %v941_v58  ;;  %v3904_v3 = vcombine.low %v265_v46, %v265_v46 }
  0xce   : > { %3445 = vmatprep.subr.bf16.mxu1 %v3895_v8  ;;  %v966_v8 = vcombine.high %v962_v62, %v962_v62 }
  0xd2   : > { %3344 = vmatmul.mubr.bf16.vlgmr.msra.gmra.mxu0 %v850_v9 }
  0xd3   : > { %3406 = vmatpush1.bf16.xpose.msra.mxu0 %v3892_v15  ;;  %3423 = vmatprep.mubr.bf16.mxu0 %v906_v10 }
  0xd4   : > { %3384 = vmatmul.mubr.bf16.vlgmr.msra.gmra.mxu1 %v866_v12  ;;  %3485 = vmatprep.subr.bf16.mxu0 %v3897_v19 }
  0xd5   : > { %3446 = vmatpush1.bf16.xpose.msra.mxu1 %v3894_v16  ;;  %3463 = vmatprep.mubr.bf16.mxu1 %v916_v17 }
  0xd6   : > { %3525 = vmatprep.subr.bf16.mxu1 %v3899_v20 }
  0xda   : > { %v1505_v35 = vpop.f32.mrf.mxu0  ;;  %3424 = vmatmul.mubr.bf16.vlgmr.msra.gmra.mxu0 %v892_v22 }
  0xdb   : > { %3486 = vmatpush1.bf16.xpose.msra.mxu0 %v3896_v28  ;;  %3503 = vmatprep.mubr.bf16.mxu0 %v913_v23 }
  0xdc   : > { %v1545_v36 = vpop.f32.mrf.mxu1  ;;  %3464 = vmatmul.mubr.bf16.vlgmr.msra.gmra.mxu1 %v914_v25  ;;  %v1507_v39 = vpop.f32.mrf.mxu0  ;;  %3565 = vmatprep.subr.bf16.mxu0 %v3901_v33 }
  0xdd   : > { %v1546_v38 = vadd.f32 %v1545_v36, %v1505_v35  ;;  %3526 = vmatpush1.bf16.xpose.msra.mxu1 %v3898_v29  ;;  %3543 = vmatprep.mubr.bf16.mxu1 %v917_v30 }
  0xde   : > { %v1547_v40 = vpop.f32.mrf.mxu1  ;;  %3605 = vmatprep.subr.bf16.mxu1 %v3903_v34  ;;  %v1508_v43 = vpop.f32.mrf.mxu0 }
  0xe0   : > { %v1548_v44 = vpop.f32.mrf.mxu1  ;;  %v1509_v50 = vpop.f32.mrf.mxu0 }
  0xe2   : > { %v1549_v51 = vpop.f32.mrf.mxu1  ;;  %v1585_v56 = vpop.f32.mrf.mxu0  ;;  %3504 = vmatmul.mubr.bf16.vlgmr.msra.gmra.mxu0 %v899_v37 }
  0xe3   : > { %v1586_v59 = vadd.f32 %v1585_v56, %v1546_v38  ;;  %3566 = vmatpush1.bf16.xpose.msra.mxu0 %v3900_v48  ;;  %3583 = vmatprep.mubr.bf16.mxu0 %v955_v41 }
  0xe4   : > { %v1625_v57 = vpop.f32.mrf.mxu1  ;;  %3544 = vmatmul.mubr.bf16.vlgmr.msra.gmra.mxu1 %v915_v45  ;;  %v1587_v60 = vpop.f32.mrf.mxu0  ;;  %3645 = vmatprep.subr.bf16.mxu0 %v3905_v54 }
  0xe5   : > { %3606 = vmatpush1.bf16.xpose.msra.mxu1 %v3902_v49  ;;  %3623 = vmatprep.mubr.bf16.mxu1 %v965_v52  ;;  %v1626_v63 = vadd.f32 %v1625_v57, %v1586_v59 }
  0xe6   : > { %v1627_v61 = vpop.f32.mrf.mxu1  ;;  %3685 = vmatprep.subr.bf16.mxu1 %v3907_v55  ;;  %v1588_v0 = vpop.f32.mrf.mxu0 }
  0xe8   : > { %v1628_v1 = vpop.f32.mrf.mxu1  ;;  %v1589_v6 = vpop.f32.mrf.mxu0 }
  0xea   : > { %v1629_v7 = vpop.f32.mrf.mxu1  ;;  %v1665_v9 = vpop.f32.mrf.mxu0  ;;  %3584 = vmatmul.mubr.bf16.vlgmr.msra.gmra.mxu0 %v941_v58 }
  0xeb   : > { %v1666_v12 = vadd.f32 %v1665_v9, %v1626_v63  ;;  %3646 = vmatpush1.bf16.xpose.msra.mxu0 %v3904_v3  ;;  %3663 = vmatprep.mubr.bf16.mxu0 %v962_v62 }
  0xec   : > { %v1705_v10 = vpop.f32.mrf.mxu1  ;;  %3624 = vmatmul.mubr.bf16.vlgmr.msra.gmra.mxu1 %v963_v2  ;;  %v1667_v13 = vpop.f32.mrf.mxu0 }
  0xed   : > { %3686 = vmatpush1.bf16.xpose.msra.mxu1 %v3906_v4  ;;  %3703 = vmatprep.mubr.bf16.mxu1 %v966_v8  ;;  %v1706_v15 = vadd.f32 %v1705_v10, %v1666_v12 }
  0xee   : > { %v1707_v14 = vpop.f32.mrf.mxu1  ;;  %v1668_v16 = vpop.f32.mrf.mxu0 }
  0xf0   : > { %v1708_v17 = vpop.f32.mrf.mxu1  ;;  %v1669_v19 = vpop.f32.mrf.mxu0 }
  0xf2   : > { %v1709_v20 = vpop.f32.mrf.mxu1  ;;  %v1745_v21 = vpop.f32.mrf.mxu0  ;;  %3664 = vmatmul.mubr.bf16.vlgmr.msra.gmra.mxu0 %v948_v11 }
  0xf3   : > { %v1746_v23 = vadd.f32 %v1745_v21, %v1706_v15 }
  0xf4   : > { %v1785_v22 = vpop.f32.mrf.mxu1  ;;  %3704 = vmatmul.mubr.bf16.vlgmr.msra.gmra.mxu1 %v964_v18  ;;  %v1747_v24 = vpop.f32.mrf.mxu0 }
  0xf5   : > { %v1786_v25 = vadd.f32 %v1785_v22, %v1746_v23 }
  0xf6   : > { %v1787_v5 = vpop.f32.mrf.mxu1  ;;  %v1748_v26 = vpop.f32.mrf.mxu0 }
  0xf8   : > { %v1788_v27 = vpop.f32.mrf.mxu1  ;;  %v1749_v28 = vpop.f32.mrf.mxu0 }
  0xfa   : > { %v1789_v29 = vpop.f32.mrf.mxu1  ;;  %v1825_v30 = vpop.f32.mrf.mxu0 }
  0xfb   : > { %v1826_v32 = vadd.f32 %v1825_v30, %v1786_v25 }
  0xfc   : > { %v1865_v31 = vpop.f32.mrf.mxu1  ;;  %v1827_v33 = vpop.f32.mrf.mxu0 }
  0xfd   : > { %v1866_v35 = vadd.f32 %v1865_v31, %v1826_v32 }
  0xfe   : > { %v1867_v34 = vpop.f32.mrf.mxu1  ;;  %v1828_v36 = vpop.f32.mrf.mxu0 }
  0xff   : > { %v4087_v34 = vmov 0.0  }
 0x100   : > { %v1868_v37 = vpop.f32.mrf.mxu1  ;;  %v1829_v38 = vpop.f32.mrf.mxu0  ;;  %195 = vst.msk [vmem:[#allocation2] sm:$0x3] %vm194_vm0, %v4087_v34 }
 0x102   : > { %v1869_v39 = vpop.f32.mrf.mxu1  ;;  %v1905_v40 = vpop.f32.mrf.mxu0 }
 0x103   : > { %v1906_v42 = vadd.f32 %v1905_v40, %v1866_v35 }
 0x104   : > { %v1945_v41 = vpop.f32.mrf.mxu1  ;;  %v1907_v43 = vpop.f32.mrf.mxu0 }
 0x105   : > { %v1946_v45 = vadd.f32 %v1945_v41, %v1906_v42 }
 0x106   : > { %v1947_v44 = vpop.f32.mrf.mxu1  ;;  %v1908_v46 = vpop.f32.mrf.mxu0 }
 0x108   : > { %v1948_v47 = vpop.f32.mrf.mxu1  ;;  %v1909_v48 = vpop.f32.mrf.mxu0 }
 0x10a   : > { %v1949_v49 = vpop.f32.mrf.mxu1  ;;  %v1985_v50 = vpop.f32.mrf.mxu0 }
 0x10b   : > { %v1986_v52 = vadd.f32 %v1985_v50, %v1946_v45 }
 0x10c   : > { %v2025_v51 = vpop.f32.mrf.mxu1  ;;  %v1987_v53 = vpop.f32.mrf.mxu0 }
 0x10d   : > { %v2026_v55 = vadd.f32 %v2025_v51, %v1986_v52 }
 0x10e   : > { %v2027_v54 = vpop.f32.mrf.mxu1  ;;  %v1988_v56 = vpop.f32.mrf.mxu0 }
 0x110   : > { %v2028_v57 = vpop.f32.mrf.mxu1  ;;  %v1989_v58 = vpop.f32.mrf.mxu0 }
 0x112   : > { %v2029_v59 = vpop.f32.mrf.mxu1  ;;  %v2065_v60 = vpop.f32.mrf.mxu0 }
 0x113   : > { %v2066_v62 = vadd.f32 %v2065_v60, %v2026_v55 }
 0x114   : > { %v2105_v61 = vpop.f32.mrf.mxu1  ;;  %v2067_v63 = vpop.f32.mrf.mxu0 }
 0x115   : > { %v2106_v1 = vadd.f32 %v2105_v61, %v2066_v62 }
 0x116   : > { %v2107_v0 = vpop.f32.mrf.mxu1  ;;  %v2068_v2 = vpop.f32.mrf.mxu0 }
 0x118   : > { %v2108_v3 = vpop.f32.mrf.mxu1  ;;  %v2069_v4 = vpop.f32.mrf.mxu0 }
 0x11a   : > { %v2109_v6 = vpop.f32.mrf.mxu1  ;;  %v2145_v7 = vpop.f32.mrf.mxu0 }
 0x11b   : > { %v2146_v9 = vadd.f32 %v2145_v7, %v2106_v1 }
 0x11c   : > { %v2185_v8 = vpop.f32.mrf.mxu1  ;;  %v2147_v10 = vpop.f32.mrf.mxu0 }
 0x11d   : > { %v2186_v12 = vadd.f32 %v2185_v8, %v2146_v9 }
 0x11e   : > { %v2187_v11 = vpop.f32.mrf.mxu1  ;;  %v2148_v13 = vpop.f32.mrf.mxu0 }
 0x120   : > { %v2188_v14 = vpop.f32.mrf.mxu1  ;;  %v2149_v15 = vpop.f32.mrf.mxu0 }
 0x122   : > { %v2189_v16 = vpop.f32.mrf.mxu1  ;;  %v2225_v17 = vpop.f32.mrf.mxu0 }
 0x123   : > { %v2226_v19 = vadd.f32 %v2225_v17, %v2186_v12 }
 0x124   : > { %v2265_v18 = vpop.f32.mrf.mxu1  ;;  %v2227_v20 = vpop.f32.mrf.mxu0 }
 0x125   : > { %v2266_v22 = vadd.f32 %v2265_v18, %v2226_v19 }
 0x126   : > { %v2267_v21 = vpop.f32.mrf.mxu1  ;;  %v2228_v23 = vpop.f32.mrf.mxu0 }
 0x128   : > { %v2268_v24 = vpop.f32.mrf.mxu1  ;;  %v2229_v5 = vpop.f32.mrf.mxu0 }
 0x12a   : > { %v2269_v25 = vpop.f32.mrf.mxu1  ;;  %v2305_v26 = vpop.f32.mrf.mxu0 }
 0x12b   : > { %v2306_v28 = vadd.f32 %v2305_v26, %v2266_v22 }
 0x12c   : > { %v2345_v27 = vpop.f32.mrf.mxu1  ;;  %v2307_v29 = vpop.f32.mrf.mxu0 }
 0x12d   : > { %v2346_v31 = vadd.f32 %v2345_v27, %v2306_v28 }
 0x12e   : > { %v2347_v30 = vpop.f32.mrf.mxu1  ;;  %v2308_v32 = vpop.f32.mrf.mxu0 }
 0x130   : > { %v2348_v33 = vpop.f32.mrf.mxu1  ;;  %v2309_v35 = vpop.f32.mrf.mxu0 }
 0x132   : > { %v2349_v36 = vpop.f32.mrf.mxu1  ;;  %v2385_v37 = vpop.f32.mrf.mxu0 }
 0x133   : > { %v2386_v39 = vadd.f32 %v2385_v37, %v2346_v31 }
 0x134   : > { %v2425_v38 = vpop.f32.mrf.mxu1  ;;  %v2387_v40 = vpop.f32.mrf.mxu0 }
 0x135   : > { %v2426_v42 = vadd.f32 %v2425_v38, %v2386_v39 }
 0x136   : > { %v2427_v41 = vpop.f32.mrf.mxu1  ;;  %v2388_v43 = vpop.f32.mrf.mxu0 }
 0x138   : > { %v2428_v44 = vpop.f32.mrf.mxu1  ;;  %v2389_v45 = vpop.f32.mrf.mxu0 }
 0x13a   : > { %v2429_v46 = vpop.f32.mrf.mxu1  ;;  %v2465_v47 = vpop.f32.mrf.mxu0 }
 0x13b   : > { %v2466_v16 = vadd.f32 %v2465_v47, %v2426_v42 }
 0x13c   : > { %v2505_v48 = vpop.f32.mrf.mxu1  ;;  %v2467_v49 = vpop.f32.mrf.mxu0 }
 0x13d   : > { %v2506_v21 = vadd.f32 %v2505_v48, %v2466_v16 }
 0x13e   : > { %v2507_v50 = vpop.f32.mrf.mxu1  ;;  %v2468_v51 = vpop.f32.mrf.mxu0 }
 0x140   : > { %v2508_v52 = vpop.f32.mrf.mxu1  ;;  %v2469_v53 = vpop.f32.mrf.mxu0 }
 0x142   : > { %v2509_v54 = vpop.f32.mrf.mxu1  ;;  %v2545_v55 = vpop.f32.mrf.mxu0 }
 0x143   : > { %v2546_v24 = vadd.f32 %v2545_v55, %v2506_v21 }
 0x144   : > { %v2585_v56 = vpop.f32.mrf.mxu1  ;;  %v2547_v57 = vpop.f32.mrf.mxu0 }
 0x145   : > { %v2586_v28 = vadd.f32 %v2585_v56, %v2546_v24 }
 0x146   : > { %v2587_v58 = vpop.f32.mrf.mxu1  ;;  %v2548_v59 = vpop.f32.mrf.mxu0 }
 0x148   : > { %v2588_v60 = vpop.f32.mrf.mxu1  ;;  %v2549_v61 = vpop.f32.mrf.mxu0 }
 0x14a   : > { %v2589_v62 = vpop.f32.mrf.mxu1  ;;  %v2625_v63 = vpop.f32.mrf.mxu0 }
 0x14b   : > { %v2626_v31 = vadd.f32 %v2625_v63, %v2586_v28 }
 0x14c   : > { %v2665_v0 = vpop.f32.mrf.mxu1  ;;  %v2627_v1 = vpop.f32.mrf.mxu0 }
 0x14d   : > { %v2666_v36 = vadd.f32 %v2665_v0, %v2626_v31 }
 0x14e   : > { %v2667_v2 = vpop.f32.mrf.mxu1  ;;  %v2628_v3 = vpop.f32.mrf.mxu0 }
 0x150   : > { %v2668_v4 = vpop.f32.mrf.mxu1  ;;  %v2629_v6 = vpop.f32.mrf.mxu0 }
 0x152   : > { %v2669_v7 = vpop.f32.mrf.mxu1  ;;  %v2705_v8 = vpop.f32.mrf.mxu0 }
 0x153   : > { %v2706_v39 = vadd.f32 %v2705_v8, %v2666_v36 }
 0x154   : > { %v2745_v9 = vpop.f32.mrf.mxu1  ;;  %v2707_v10 = vpop.f32.mrf.mxu0 }
 0x155   : > { %v2746_v44 = vadd.f32 %v2745_v9, %v2706_v39 }
 0x156   : > { %v2747_v11 = vpop.f32.mrf.mxu1  ;;  %v2708_v12 = vpop.f32.mrf.mxu0 }
 0x158   : > { %v2748_v13 = vpop.f32.mrf.mxu1  ;;  %v2709_v14 = vpop.f32.mrf.mxu0 }
 0x15a   : > { %v2749_v15 = vpop.f32.mrf.mxu1  ;;  %v2785_v17 = vpop.f32.mrf.mxu0 }
 0x15b   : > { %v2786_v47 = vadd.f32 %v2785_v17, %v2746_v44 }
 0x15c   : > { %v2825_v18 = vpop.f32.mrf.mxu1  ;;  %v2787_v19 = vpop.f32.mrf.mxu0 }
 0x15d   : > { %v2826_v52 = vadd.f32 %v2825_v18, %v2786_v47 }
 0x15e   : > { %v2827_v20 = vpop.f32.mrf.mxu1  ;;  %v2788_v22 = vpop.f32.mrf.mxu0 }
 0x160   : > { %v2828_v23 = vpop.f32.mrf.mxu1  ;;  %v2789_v5 = vpop.f32.mrf.mxu0 }
 0x162   : > { %v2829_v25 = vpop.f32.mrf.mxu1  ;;  %v2865_v26 = vpop.f32.mrf.mxu0 }
 0x163   : > { %v2866_v55 = vadd.f32 %v2865_v26, %v2826_v52 }
 0x164   : > { %v2905_v27 = vpop.f32.mrf.mxu1  ;;  %v2867_v29 = vpop.f32.mrf.mxu0 }
 0x165   : > { %v2906_v60 = vadd.f32 %v2905_v27, %v2866_v55 }
 0x166   : > { %v2907_v30 = vpop.f32.mrf.mxu1  ;;  %v2868_v32 = vpop.f32.mrf.mxu0 }
 0x168   : > { %v2908_v33 = vpop.f32.mrf.mxu1  ;;  %v2869_v34 = vpop.f32.mrf.mxu0 }
 0x16a   : > { %v2909_v35 = vpop.f32.mrf.mxu1  ;;  %v2945_v37 = vpop.f32.mrf.mxu0 }
 0x16b   : > { %v2946_v63 = vadd.f32 %v2945_v37, %v2906_v60 }
 0x16c   : > { %v2985_v38 = vpop.f32.mrf.mxu1  ;;  %v2947_v40 = vpop.f32.mrf.mxu0 }
 0x16d   : > { %v2986_v4 = vadd.f32 %v2985_v38, %v2946_v63 }
 0x16e   : > { %v2987_v41 = vpop.f32.mrf.mxu1  ;;  %v2948_v42 = vpop.f32.mrf.mxu0 }
 0x170   : > { %v2988_v43 = vpop.f32.mrf.mxu1  ;;  %v2949_v45 = vpop.f32.mrf.mxu0 }
 0x172   : > { %v2989_v46 = vpop.f32.mrf.mxu1  ;;  %v3025_v48 = vpop.f32.mrf.mxu0 }
 0x173   : > { %v3026_v8 = vadd.f32 %v3025_v48, %v2986_v4 }
 0x174   : > { %v3065_v49 = vpop.f32.mrf.mxu1  ;;  %v3027_v50 = vpop.f32.mrf.mxu0 }
 0x175   : > { %v3066_v13 = vadd.f32 %v3065_v49, %v3026_v8 }
 0x176   : > { %v3067_v51 = vpop.f32.mrf.mxu1  ;;  %v3028_v53 = vpop.f32.mrf.mxu0 }
 0x178   : > { %v3068_v54 = vpop.f32.mrf.mxu1  ;;  %v3029_v56 = vpop.f32.mrf.mxu0 }
 0x17a   : > { %v3069_v57 = vpop.f32.mrf.mxu1  ;;  %v3105_v58 = vpop.f32.mrf.mxu0 }
 0x17b   : > { %v3106_v16 = vadd.f32 %v3105_v58, %v3066_v13 }
 0x17c   : > { %v3145_v59 = vpop.f32.mrf.mxu1  ;;  %v3107_v61 = vpop.f32.mrf.mxu0 }
 0x17d   : > { %v3146_v21 = vadd.f32 %v3145_v59, %v3106_v16 }
 0x17e   : > { %v3147_v62 = vpop.f32.mrf.mxu1  ;;  %v3108_v0 = vpop.f32.mrf.mxu0 }
 0x180   : > { %v3148_v1 = vpop.f32.mrf.mxu1  ;;  %v3109_v2 = vpop.f32.mrf.mxu0 }
 0x182   : > { %v3149_v3 = vpop.f32.mrf.mxu1  ;;  %v3185_v6 = vpop.f32.mrf.mxu0 }
 0x183   : > { %v3186_v24 = vadd.f32 %v3185_v6, %v3146_v21 }
 0x184   : > { %v3225_v7 = vpop.f32.mrf.mxu1  ;;  %v3187_v9 = vpop.f32.mrf.mxu0 }
 0x185   : > { %v3226_v28 = vadd.f32 %v3225_v7, %v3186_v24  ;;  %v196_v9 = vld [vmem:[#allocation2] sm:$0x3] }
 0x186   : > { %v3227_v10 = vpop.f32.mrf.mxu1  ;;  %v3188_v11 = vpop.f32.mrf.mxu0 }
 0x188   : > { %v3228_v12 = vpop.f32.mrf.mxu1  ;;  %v3189_v14 = vpop.f32.mrf.mxu0 }
 0x18a   : > { %v3229_v15 = vpop.f32.mrf.mxu1  ;;  %v3265_v17 = vpop.f32.mrf.mxu0 }
 0x18b   : > { %v3266_v31 = vadd.f32 %v3265_v17, %v3226_v28 }
 0x18c   : > { %v3305_v18 = vpop.f32.mrf.mxu1  ;;  %v3267_v19 = vpop.f32.mrf.mxu0 }
 0x18d   : > { %v3306_v36 = vadd.f32 %v3305_v18, %v3266_v31 }
 0x18e   : > { %v3307_v20 = vpop.f32.mrf.mxu1  ;;  %v3268_v22 = vpop.f32.mrf.mxu0 }
 0x190   : > { %v3308_v23 = vpop.f32.mrf.mxu1  ;;  %v3269_v5 = vpop.f32.mrf.mxu0 }
 0x192   : > { %v3309_v25 = vpop.f32.mrf.mxu1  ;;  %v3345_v26 = vpop.f32.mrf.mxu0 }
 0x193   : > { %v3346_v39 = vadd.f32 %v3345_v26, %v3306_v36 }
 0x194   : > { %v3385_v27 = vpop.f32.mrf.mxu1  ;;  %v3347_v29 = vpop.f32.mrf.mxu0 }
 0x195   : > { %v3386_v44 = vadd.f32 %v3385_v27, %v3346_v39 }
 0x196   : > { %v3387_v30 = vpop.f32.mrf.mxu1  ;;  %v3348_v32 = vpop.f32.mrf.mxu0 }
 0x198   : > { %v3388_v33 = vpop.f32.mrf.mxu1  ;;  %v3349_v34 = vpop.f32.mrf.mxu0 }
 0x19a   : > { %v3389_v35 = vpop.f32.mrf.mxu1  ;;  %v3425_v37 = vpop.f32.mrf.mxu0 }
 0x19b   : > { %v3426_v47 = vadd.f32 %v3425_v37, %v3386_v44 }
 0x19c   : > { %v3465_v38 = vpop.f32.mrf.mxu1  ;;  %v3427_v40 = vpop.f32.mrf.mxu0 }
 0x19d   : > { %v3466_v52 = vadd.f32 %v3465_v38, %v3426_v47 }
 0x19e   : > { %v3467_v41 = vpop.f32.mrf.mxu1  ;;  %v3428_v42 = vpop.f32.mrf.mxu0 }
 0x1a0   : > { %v3468_v43 = vpop.f32.mrf.mxu1  ;;  %v3429_v45 = vpop.f32.mrf.mxu0 }
 0x1a2   : > { %v3469_v46 = vpop.f32.mrf.mxu1  ;;  %v3505_v48 = vpop.f32.mrf.mxu0 }
 0x1a3   : > { %v3506_v55 = vadd.f32 %v3505_v48, %v3466_v52 }
 0x1a4   : > { %v3545_v49 = vpop.f32.mrf.mxu1  ;;  %v3507_v50 = vpop.f32.mrf.mxu0 }
 0x1a5   : > { %v3546_v60 = vadd.f32 %v3545_v49, %v3506_v55 }
 0x1a6   : > { %v3547_v51 = vpop.f32.mrf.mxu1  ;;  %v3508_v53 = vpop.f32.mrf.mxu0 }
 0x1a8   : > { %v3548_v54 = vpop.f32.mrf.mxu1  ;;  %v3509_v56 = vpop.f32.mrf.mxu0 }
 0x1aa   : > { %v3549_v57 = vpop.f32.mrf.mxu1  ;;  %v3585_v58 = vpop.f32.mrf.mxu0 }
 0x1ab   : > { %v3586_v63 = vadd.f32 %v3585_v58, %v3546_v60 }
 0x1ac   : > { %v3625_v59 = vpop.f32.mrf.mxu1  ;;  %v3587_v61 = vpop.f32.mrf.mxu0 }
 0x1ad   : > { %v3626_v4 = vadd.f32 %v3625_v59, %v3586_v63 }
 0x1ae   : > { %v3627_v62 = vpop.f32.mrf.mxu1  ;;  %v3588_v0 = vpop.f32.mrf.mxu0 }
 0x1b0   : > { %v3628_v1 = vpop.f32.mrf.mxu1  ;;  %v3589_v2 = vpop.f32.mrf.mxu0 }
 0x1b2   : > { %v3629_v3 = vpop.f32.mrf.mxu1  ;;  %v3665_v6 = vpop.f32.mrf.mxu0 }
 0x1b3   : > { %v3666_v8 = vadd.f32 %v3665_v6, %v3626_v4 }
 0x1b4   : > { %v3705_v7 = vpop.f32.mrf.mxu1  ;;  %v3667_v10 = vpop.f32.mrf.mxu0 }
 0x1b5   : > { %v3706_v12 = vadd.f32 %v3705_v7, %v3666_v8 }
 0x1b6   : > { %v3707_v11 = vpop.f32.mrf.mxu1  ;;  %v3668_v13 = vpop.f32.mrf.mxu0 }
 0x1b7   : > { %v3711_v15 = vadd.f32 %v3706_v12, %v196_v9 }
 0x1b8   : > { %v3708_v14 = vpop.f32.mrf.mxu1  ;;  %v3669_v16 = vpop.f32.mrf.mxu0 }
 0x1b9   : > { %3713 = vst.msk [vmem:[#allocation2] sm:$0x3] %vm194_vm0, %v3711_v15 }
 0x1ba   : > { %v3709_v17 = vpop.f32.mrf.mxu1 }
 0x1c0   : > { %v3717_v18 = vld [vmem:[#allocation2] sm:$0x3] }
 0x1c1   : > { %3718 = vst.msk [vmem:[%s188_s24] sm:$0x3] %vm194_vm0, %v3717_v18 }
 0x1c2 PF: > { %s12_s11 = sadd.s32 1, %s4084_s11   ;;  %s4310_s9 = smov %s4080_s10 }
 0x1c3   : > { %p9_p6 = scmp.ge.s32.totalorder %s12_s11, 4   ;;  %s4311_s10 = smov %s4313_s12 }
 0x1c5   :  { %11 = sbr.rel (!%p9_p6) target bundleno = 2 (0x2), region = 69 }

</bundles_post_ra>
